<compile_context>
chip_gen: v5e
topology: v5e:2x2
jax: 0.10.0
libtpu: 0.0.40
codegen_flags: <defaults>
</compile_context>

<pallas_src>
import functools
import math

import jax
import jax.numpy as jnp
from jax.experimental import pallas as pl
from jax.experimental.pallas import tpu as pltpu


_VMEM_LIMIT = 48 * 1024 * 1024  # explicit scoped-VMEM cap (well below v7x physical 64 MiB)


# ----------------------------------------------------------------------------
# Pallas kernels
# ----------------------------------------------------------------------------
def _pw_kernel(x_ref, w_ref, s_ref, b_ref, o_ref, *, relu):
    # bf16 MXU matmul, f32 accumulate + BN(+ReLU) epilogue.
    y = jnp.dot(x_ref[...], w_ref[...], preferred_element_type=jnp.float32)
    y = y * s_ref[...] + b_ref[...]
    if relu:
        y = jnp.maximum(y, 0.0)
    o_ref[...] = y.astype(o_ref.dtype)


def _dsconv_kernel(*refs, mode):
    """Fused: 3x3 DW conv (BN-scale prefolded) + bias + ReLU -> 1x1 conv + BN -> epilogue.

    mode == "relu":  out = relu(pw)                                  (plain _DSConv)
    mode == "hi":    out = relu(pw + conv_bn(hi))                    (FeatureFusionModule)
    mode == "final": out = relu(pw) @ w2 + b2                        (_DSConv + classifier 1x1)
    """
    if mode == "hi":
        (xt_ref, xm_ref, xb_ref, dww_ref, dwb_ref,
         pww_ref, pws_ref, pwb_ref,
         hi_ref, hw_ref, hs_ref, hb_ref, o_ref) = refs
    elif mode == "final":
        (xt_ref, xm_ref, xb_ref, dww_ref, dwb_ref,
         pww_ref, pws_ref, pwb_ref, w2_ref, b2_ref, o_ref) = refs
    else:
        (xt_ref, xm_ref, xb_ref, dww_ref, dwb_ref,
         pww_ref, pws_ref, pwb_ref, o_ref) = refs

    th, W, C = xm_ref.shape[1], xm_ref.shape[2], xm_ref.shape[3]

    i = pl.program_id(1)
    top_ok = (i > 0).astype(jnp.float32)                       # zero the halo row at the
    bot_ok = (i < pl.num_programs(1) - 1).astype(jnp.float32)  # top/bottom image border

    # Zero-padded (th+2, W+2, C) slab built in registers (no HBM pad pass).
    top = xt_ref[0].astype(jnp.float32) * top_ok
    mid = xm_ref[0].astype(jnp.float32)
    bot = xb_ref[0].astype(jnp.float32) * bot_ok
    xpad = jnp.concatenate([top, mid, bot], axis=0)            # (th+2, W, C)
    zcol = jnp.zeros((th + 2, 1, C), jnp.float32)
    xpad = jnp.concatenate([zcol, xpad, zcol], axis=1)         # (th+2, W+2, C)

    # 9-tap depthwise conv on the VPU, f32 accumulation, then DW bias + ReLU
    # (the DW BatchNorm scale is already folded into dww).
    acc = jnp.zeros((th, W, C), jnp.float32)
    for ky in range(3):
        for kx in range(3):
            acc = acc + xpad[ky:ky + th, kx:kx + W, :] * dww_ref[ky, kx, :]
    y = jnp.maximum(acc + dwb_ref[0], 0.0)

    # 1x1 conv on the MXU straight off the DW result (no HBM round trip).
    y = jnp.dot(y.reshape(th * W, C).astype(jnp.bfloat16), pww_ref[...],
                preferred_element_type=jnp.float32)
    y = y * pws_ref[...] + pwb_ref[...]

    if mode == "hi":
        hi = hi_ref[0].reshape(th * W, hi_ref.shape[3])
        z = jnp.dot(hi, hw_ref[...], preferred_element_type=jnp.float32)
        y = jnp.maximum(y + z * hs_ref[...] + hb_ref[...], 0.0)
    elif mode == "final":
        y = jnp.maximum(y, 0.0)
        y = jnp.dot(y.astype(jnp.bfloat16), w2_ref[...],
                    preferred_element_type=jnp.float32) + b2_ref[...]
    else:
        y = jnp.maximum(y, 0.0)

    o_ref[...] = y.reshape(o_ref.shape).astype(o_ref.dtype)


# ----------------------------------------------------------------------------
# Kernel wrappers
# ----------------------------------------------------------------------------
def pointwise_conv_bn(x, w, scale, bias, *, relu=True, out_dtype=jnp.bfloat16,
                      row_tile=512):
    """x: [N, Cin] bf16; w: [Cin, Cout] bf16; scale/bias: [1, Cout] f32."""
    N, Cin = x.shape
    Cout = w.shape[1]
    tn = min(row_tile, N)
    n_blocks = pl.cdiv(N, tn)
    Np = n_blocks * tn
    if Np != N:  # pad the row dim instead of collapsing to one giant block
        x = jnp.pad(x, ((0, Np - N), (0, 0)))

    out = pl.pallas_call(
        functools.partial(_pw_kernel, relu=relu),
        out_shape=jax.ShapeDtypeStruct((Np, Cout), out_dtype),
        grid=(n_blocks,),
        in_specs=[
            pl.BlockSpec((tn, Cin), lambda i: (i, 0)),
            pl.BlockSpec((Cin, Cout), lambda i: (0, 0)),
            pl.BlockSpec((1, Cout), lambda i: (0, 0)),
            pl.BlockSpec((1, Cout), lambda i: (0, 0)),
        ],
        out_specs=pl.BlockSpec((tn, Cout), lambda i: (i, 0)),
        compiler_params=pltpu.CompilerParams(
            dimension_semantics=("parallel",),
            vmem_limit_bytes=_VMEM_LIMIT),
    )(x, w, scale, bias)
    return out if Np == N else out[:N]


def conv1x1_bn(x_nhwc, p, relu=True, out_dtype=jnp.bfloat16):
    B, H, W, C = x_nhwc.shape
    xf = x_nhwc.astype(jnp.bfloat16).reshape(B * H * W, C)
    y = pointwise_conv_bn(xf, p["w"], p["s"], p["b"], relu=relu, out_dtype=out_dtype)
    return y.reshape(B, H, W, -1)


def _row_tile(H, W, C, budget_bytes=1 << 20):
    """Pick the largest row-tile (divisor of H) whose bf16 input block fits the budget."""
    per_row = max(1, W * C * 2)                   # bf16 bytes per image row
    t = max(1, min(H, budget_bytes // per_row))
    t = max(min(8, H), t)
    while H % t:
        t -= 1
    return t


def fused_dsconv(x, dw_p, pw_p, *, mode="relu", hi=None, hi_p=None,
                 final_w=None, final_b=None, out_dtype=jnp.bfloat16):
    """Fused DW3x3+BN+ReLU -> 1x1+BN (+ mode-specific epilogue), row-tiled over (B, H/th)."""
    B, H, W, C = x.shape
    th = _row_tile(H, W, C)
    n_rows = H // th
    Cout = pw_p["w"].shape[1]

    # Fold the depthwise BatchNorm scale into the 3x3 weights (exact in f32).
    dww = dw_p["w"].astype(jnp.float32) * dw_p["s"].reshape(1, 1, -1)
    dwb = dw_p["b"]

    rows_map = lambda b, i: (b, i, 0, 0)
    halo_top = lambda b, i: (b, jnp.maximum(i * th - 1, 0), 0, 0)       # clamped; zeroed in-kernel
    halo_bot = lambda b, i: (b, jnp.minimum(i * th + th, H - 1), 0, 0)  # clamped; zeroed in-kernel
    full2 = lambda b, i: (0, 0)
    full3 = lambda b, i: (0, 0, 0)

    in_specs = [
        pl.BlockSpec((1, 1, W, C), halo_top),
        pl.BlockSpec((1, th, W, C), rows_map),
        pl.BlockSpec((1, 1, W, C), halo_bot),
        pl.BlockSpec((3, 3, C), full3),
        pl.BlockSpec((1, C), full2),
        pl.BlockSpec((C, Cout), full2),
        pl.BlockSpec((1, Cout), full2),
        pl.BlockSpec((1, Cout), full2),
    ]
    args = [x, x, x, dww, dwb, pw_p["w"], pw_p["s"], pw_p["b"]]
    out_c = Cout

    if mode == "hi":
        Ch = hi.shape[-1]
        in_specs += [
            pl.BlockSpec((1, th, W, Ch), rows_map),
            pl.BlockSpec((Ch, Cout), full2),
            pl.BlockSpec((1, Cout), full2),
            pl.BlockSpec((1, Cout), full2),
        ]
        args += [hi, hi_p["w"], hi_p["s"], hi_p["b"]]
    elif mode == "final":
        out_c = final_w.shape[1]
        in_specs += [
            pl.BlockSpec((Cout, out_c), full2),
            pl.BlockSpec((1, out_c), full2),
        ]
        args += [final_w, final_b]

    return pl.pallas_call(
        functools.partial(_dsconv_kernel, mode=mode),
        out_shape=jax.ShapeDtypeStruct((B, H, W, out_c), out_dtype),
        grid=(B, n_rows),
        in_specs=in_specs,
        out_specs=pl.BlockSpec((1, th, W, out_c), rows_map),
        compiler_params=pltpu.CompilerParams(
            dimension_semantics=("parallel", "parallel"),
            vmem_limit_bytes=_VMEM_LIMIT),
    )(*args)


# ----------------------------------------------------------------------------
# JAX glue (layout plumbing, tiny pooling / interpolation)
# ----------------------------------------------------------------------------
def space_to_depth(x, f):
    B, H, W, C = x.shape
    x = x.reshape(B, H // f, f, W // f, f, C)
    x = jnp.transpose(x, (0, 1, 3, 2, 4, 5))
    return x.reshape(B, H // f, W // f, f * f * C)


def adaptive_avg_pool(x, out_size):
    """PyTorch-style AdaptiveAvgPool2d on NHWC (f32)."""
    x = x.astype(jnp.float32)
    B, H, W, C = x.shape
    rows = []
    for i in range(out_size):
        hs, he = (i * H) // out_size, math.ceil((i + 1) * H / out_size)
        cols = []
        for j in range(out_size):
            ws, we = (j * W) // out_size, math.ceil((j + 1) * W / out_size)
            cols.append(jnp.mean(x[:, hs:he, ws:we, :], axis=(1, 2)))
        rows.append(jnp.stack(cols, axis=1))
    return jnp.stack(rows, axis=1)  # [B, out, out, C]


def _bilinear_matrix(n_in, n_out):
    """Interpolation matrix for F.interpolate(mode='bilinear', align_corners=True)."""
    if n_in == 1:
        return jnp.ones((n_out, 1), jnp.float32)
    pos = jnp.arange(n_out, dtype=jnp.float32) * (n_in - 1) / (n_out - 1)
    lo = jnp.floor(pos).astype(jnp.int32)
    hi = jnp.minimum(lo + 1, n_in - 1)
    frac = pos - lo.astype(jnp.float32)
    m = jnp.zeros((n_out, n_in), jnp.float32)
    m = m.at[jnp.arange(n_out), lo].add(1.0 - frac)
    m = m.at[jnp.arange(n_out), hi].add(frac)
    return m


def bilinear_upsample(x, h_out, w_out):
    B, H, W, C = x.shape
    mh = _bilinear_matrix(H, h_out)
    mw = _bilinear_matrix(W, w_out)
    y = jnp.einsum("oh,bhwc->bowc", mh, x)
    y = jnp.einsum("pw,bowc->bopc", mw, y)
    return y


# ----------------------------------------------------------------------------
# Parameters (synthetic, deterministic; BN folded to scale/bias; bf16 matmul weights)
# ----------------------------------------------------------------------------
def init_params(key):
    keys = iter(jax.random.split(key, 64))

    def nk():
        return next(keys)

    def conv_bn(cin, cout):
        return dict(
            w=(0.1 * jax.random.normal(nk(), (cin, cout), jnp.float32)).astype(jnp.bfloat16),
            s=1.0 + 0.05 * jax.random.normal(nk(), (1, cout), jnp.float32),
            b=0.05 * jax.random.normal(nk(), (1, cout), jnp.float32),
        )

    def dw_bn(c):
        return dict(
            w=0.1 * jax.random.normal(nk(), (3, 3, c), jnp.float32),
            s=1.0 + 0.05 * jax.random.normal(nk(), (1, c), jnp.float32),
            b=0.05 * jax.random.normal(nk(), (1, c), jnp.float32),
        )

    p = {}
    # encoder stand-in (see TODO above): 24ch @ 1/4 res, 96ch @ 1/16 res
    p["enc_hi"] = conv_bn(6 * 16, 24)
    p["enc_lo"] = conv_bn(6 * 256, 96)

    # PyramidPooling(96 -> 128), inter = 24: the four 96->24 branch convs are packed
    # into ONE lane-dense 96->128 weight (last 32 output lanes are zero padding).
    branches = [conv_bn(96, 24) for _ in range(4)]
    wcat = jnp.concatenate([q["w"].astype(jnp.float32) for q in branches], axis=1)
    scat = jnp.concatenate([q["s"] for q in branches], axis=1)
    bcat = jnp.concatenate([q["b"] for q in branches], axis=1)
    p["ppm_branch"] = dict(
        w=jnp.pad(wcat, ((0, 0), (0, 32))).astype(jnp.bfloat16),
        s=jnp.pad(scat, ((0, 0), (0, 32)), constant_values=1.0),
        b=jnp.pad(bcat, ((0, 0), (0, 32))),
    )
    p["ppm_out"] = conv_bn(96 + 24 * 4, 128)

    # FeatureFusionModule(24, 128, 128)
    p["ffm_dw"] = dw_bn(128)
    p["ffm_lo"] = conv_bn(128, 128)
    p["ffm_hi"] = conv_bn(24, 128)

    # Classifier(128, 2)
    p["cls_ds1_dw"] = dw_bn(128)
    p["cls_ds1_pw"] = conv_bn(128, 128)
    p["cls_ds2_dw"] = dw_bn(128)
    p["cls_ds2_pw"] = conv_bn(128, 128)
    p["cls_w"] = (0.1 * jax.random.normal(nk(), (128, 2), jnp.float32)).astype(jnp.bfloat16)
    p["cls_b"] = 0.05 * jax.random.normal(nk(), (1, 2), jnp.float32)
    return p


# ----------------------------------------------------------------------------
# Forward pass
# ----------------------------------------------------------------------------
def forward(params, x_nchw):
    x = jnp.transpose(x_nchw, (0, 2, 3, 1)).astype(jnp.bfloat16)  # NCHW -> NHWC, bf16

    # --- encoder stand-in (see TODO) ---
    hi = conv1x1_bn(space_to_depth(x, 4), params["enc_hi"])       # [B, H/4,  W/4,  24]
    lo = conv1x1_bn(space_to_depth(x, 16), params["enc_lo"])      # [B, H/16, W/16, 96]
    h, w = lo.shape[1], lo.shape[2]

    # --- PyramidPooling ---
    # conv+BN is affine and commutes with average pooling, so apply all four branch
    # convs as one lane-dense matmul on `lo`, then pool each 24-ch slice and ReLU.
    br = conv1x1_bn(lo, params["ppm_branch"], relu=False)          # [B, h, w, 128] (0:96 valid)
    feats = [lo.astype(jnp.float32)]
    for k, sz in enumerate((1, 2, 3, 6)):
        f = adaptive_avg_pool(br[..., 24 * k:24 * (k + 1)], sz)
        f = jnp.maximum(f, 0.0)                                    # ReLU after pooling == original
        feats.append(bilinear_upsample(f, h, w))
    ppm = conv1x1_bn(jnp.concatenate(feats, axis=-1), params["ppm_out"], relu=True)  # [B,h,w,128]

    # --- FeatureFusionModule (scale_factor=4), fully fused ---
    up = bilinear_upsample(ppm, 4 * h, 4 * w).astype(jnp.bfloat16)  # [B, H/4, W/4, 128]
    # relu( conv_bn(hi) + conv_bn(dwconv_bn_relu(up)) ) in one kernel.
    fused = fused_dsconv(up, params["ffm_dw"], params["ffm_lo"],
                         mode="hi", hi=hi, hi_p=params["ffm_hi"])

    # --- Classifier: two fused DSConvs; the final 128->2 conv rides in the last one ---
    y = fused_dsconv(fused, params["cls_ds1_dw"], params["cls_ds1_pw"], mode="relu")
    out = fused_dsconv(y, params["cls_ds2_dw"], params["cls_ds2_pw"], mode="final",
                       final_w=params["cls_w"], final_b=params["cls_b"],
                       out_dtype=jnp.float32)                      # [B, H/4, W/4, 2]

    return [jnp.transpose(out, (0, 3, 1, 2))]  # NHWC -> NCHW, list like the torch module


# ----------------------------------------------------------------------------
if __name__ == "__main__":
    B, C, H, W = 2, 6, 64, 64  # two stacked RGB frames (MobileNetV2MultiInput(2))
    x = jax.random.normal(jax.random.PRNGKey(0), (B, C, H, W), jnp.float32)
    params = init_params(jax.random.PRNGKey(1))

    out = jax.jit(forward)(params, x)
    out0 = jax.block_until_ready(out[0])

    assert out0.shape == (B, 2, H // 4, W // 4), out0.shape
    assert out0.dtype == jnp.float32
    assert bool(jnp.all(jnp.isfinite(out0)))
    print("KERNEL_OK")
</pallas_src>

<mosaic_0001>
module attributes {stable_mosaic.version = 11 : i64} {
  func.func @_pw_kernel(%arg0: i32, %arg1: memref<32x1536xbf16, #tpu.memory_space<vmem>>, %arg2: memref<1536x96xbf16, #tpu.memory_space<vmem>>, %arg3: memref<1x96xf32, #tpu.memory_space<vmem>>, %arg4: memref<1x96xf32, #tpu.memory_space<vmem>>, %arg5: memref<32x96xbf16, #tpu.memory_space<vmem>>) attributes {dimension_semantics = [#tpu.dimension_semantics<parallel>], iteration_bounds = array<i64: 1>, scalar_prefetch = 0 : i64, scratch_operands = 0 : i64, tpu.core_type = #tpu.core_type<tc>, window_params = [{transform_indices = @transform_0, window_bounds = array<i64: 32, 1536>}, {pipeline_mode = #tpu.pipeline_mode<synchronous>, transform_indices = @transform_1, window_bounds = array<i64: 1536, 96>}, {pipeline_mode = #tpu.pipeline_mode<synchronous>, transform_indices = @transform_2, window_bounds = array<i64: 1, 96>}, {pipeline_mode = #tpu.pipeline_mode<synchronous>, transform_indices = @transform_3, window_bounds = array<i64: 1, 96>}, {transform_indices = @transform_4, window_bounds = array<i64: 32, 96>}]} {
    %c0 = arith.constant 0 : index
    %c0_0 = arith.constant 0 : index
    %0 = vector.load %arg1[%c0, %c0_0] : memref<32x1536xbf16, #tpu.memory_space<vmem>>, vector<32x1536xbf16>
    %c0_1 = arith.constant 0 : index
    %c0_2 = arith.constant 0 : index
    %1 = vector.load %arg2[%c0_1, %c0_2] : memref<1536x96xbf16, #tpu.memory_space<vmem>>, vector<1536x96xbf16>
    %cst = arith.constant dense<0.000000e+00> : vector<32x96xf32>
    %2 = tpu.matmul %0, %1, %cst {dimension_numbers = #tpu.dot_dimension_numbers<[1], [0], [0], [1], [0, 0, 1, 1], [], []>} : vector<32x1536xbf16>, vector<1536x96xbf16>, vector<32x96xf32> -> vector<32x96xf32>
    %c0_3 = arith.constant 0 : index
    %c0_4 = arith.constant 0 : index
    %3 = vector.load %arg3[%c0_3, %c0_4] : memref<1x96xf32, #tpu.memory_space<vmem>>, vector<1x96xf32>
    %4 = vector.broadcast %3 : vector<1x96xf32> to vector<32x96xf32>
    %5 = arith.mulf %2, %4 : vector<32x96xf32>
    %c0_5 = arith.constant 0 : index
    %c0_6 = arith.constant 0 : index
    %6 = vector.load %arg4[%c0_5, %c0_6] : memref<1x96xf32, #tpu.memory_space<vmem>>, vector<1x96xf32>
    %7 = vector.broadcast %6 : vector<1x96xf32> to vector<32x96xf32>
    %8 = arith.addf %5, %7 : vector<32x96xf32>
    %cst_7 = arith.constant 0.000000e+00 : f32
    %9 = vector.broadcast %cst_7 : f32 to vector<32x96xf32>
    %10 = arith.maximumf %8, %9 : vector<32x96xf32>
    %11 = arith.truncf %10 : vector<32x96xf32> to vector<32x96xbf16>
    %c0_8 = arith.constant 0 : index
    %c0_9 = arith.constant 0 : index
    %12 = vector.load %arg5[%c0_8, %c0_9] : memref<32x96xbf16, #tpu.memory_space<vmem>>, vector<32x96xbf16>
    tpu.vector_store %arg5[%c0_8, %c0_9], %11 {strides = array<i32>} : memref<32x96xbf16, #tpu.memory_space<vmem>>, vector<32x96xbf16>,
    return
  }
  func.func @transform_0(%arg0: i32) -> (i32, i32) {
    %c0_i32 = arith.constant 0 : i32
    %c0_i32_0 = arith.constant 0 : i32
    return %arg0, %c0_i32 : i32, i32
  }
  func.func @transform_1(%arg0: i32) -> (i32, i32) {
    %c0_i32 = arith.constant 0 : i32
    %c0_i32_0 = arith.constant 0 : i32
    %c0_i32_1 = arith.constant 0 : i32
    return %c0_i32, %c0_i32_0 : i32, i32
  }
  func.func @transform_2(%arg0: i32) -> (i32, i32) {
    %c0_i32 = arith.constant 0 : i32
    %c0_i32_0 = arith.constant 0 : i32
    %c0_i32_1 = arith.constant 0 : i32
    return %c0_i32, %c0_i32_0 : i32, i32
  }
  func.func @transform_3(%arg0: i32) -> (i32, i32) {
    %c0_i32 = arith.constant 0 : i32
    %c0_i32_0 = arith.constant 0 : i32
    %c0_i32_1 = arith.constant 0 : i32
    return %c0_i32, %c0_i32_0 : i32, i32
  }
  func.func @transform_4(%arg0: i32) -> (i32, i32) {
    %c0_i32 = arith.constant 0 : i32
    %c0_i32_0 = arith.constant 0 : i32
    return %arg0, %c0_i32 : i32, i32
  }
}

module attributes {stable_mosaic.version = 11 : i64} {
  func.func @_pw_kernel(%arg0: i32, %arg1: memref<32x96xbf16, #tpu.memory_space<vmem>>, %arg2: memref<96x128xbf16, #tpu.memory_space<vmem>>, %arg3: memref<1x128xf32, #tpu.memory_space<vmem>>, %arg4: memref<1x128xf32, #tpu.memory_space<vmem>>, %arg5: memref<32x128xbf16, #tpu.memory_space<vmem>>) attributes {dimension_semantics = [#tpu.dimension_semantics<parallel>], iteration_bounds = array<i64: 1>, scalar_prefetch = 0 : i64, scratch_operands = 0 : i64, tpu.core_type = #tpu.core_type<tc>, window_params = [{transform_indices = @transform_0, window_bounds = array<i64: 32, 96>}, {pipeline_mode = #tpu.pipeline_mode<synchronous>, transform_indices = @transform_1, window_bounds = array<i64: 96, 128>}, {pipeline_mode = #tpu.pipeline_mode<synchronous>, transform_indices = @transform_2, window_bounds = array<i64: 1, 128>}, {pipeline_mode = #tpu.pipeline_mode<synchronous>, transform_indices = @transform_3, window_bounds = array<i64: 1, 128>}, {transform_indices = @transform_4, window_bounds = array<i64: 32, 128>}]} {
    %c0 = arith.constant 0 : index
    %c0_0 = arith.constant 0 : index
    %0 = vector.load %arg1[%c0, %c0_0] : memref<32x96xbf16, #tpu.memory_space<vmem>>, vector<32x96xbf16>
    %c0_1 = arith.constant 0 : index
    %c0_2 = arith.constant 0 : index
    %1 = vector.load %arg2[%c0_1, %c0_2] : memref<96x128xbf16, #tpu.memory_space<vmem>>, vector<96x128xbf16>
    %cst = arith.constant dense<0.000000e+00> : vector<32x128xf32>
    %2 = tpu.matmul %0, %1, %cst {dimension_numbers = #tpu.dot_dimension_numbers<[1], [0], [0], [1], [0, 0, 1, 1], [], []>} : vector<32x96xbf16>, vector<96x128xbf16>, vector<32x128xf32> -> vector<32x128xf32>
    %c0_3 = arith.constant 0 : index
    %c0_4 = arith.constant 0 : index
    %3 = vector.load %arg3[%c0_3, %c0_4] : memref<1x128xf32, #tpu.memory_space<vmem>>, vector<1x128xf32>
    %4 = vector.broadcast %3 : vector<1x128xf32> to vector<32x128xf32>
    %5 = arith.mulf %2, %4 : vector<32x128xf32>
    %c0_5 = arith.constant 0 : index
    %c0_6 = arith.constant 0 : index
    %6 = vector.load %arg4[%c0_5, %c0_6] : memref<1x128xf32, #tpu.memory_space<vmem>>, vector<1x128xf32>
    %7 = vector.broadcast %6 : vector<1x128xf32> to vector<32x128xf32>
    %8 = arith.addf %5, %7 : vector<32x128xf32>
    %9 = arith.truncf %8 : vector<32x128xf32> to vector<32x128xbf16>
    %c0_7 = arith.constant 0 : index
    %c0_8 = arith.constant 0 : index
    %10 = vector.load %arg5[%c0_7, %c0_8] : memref<32x128xbf16, #tpu.memory_space<vmem>>, vector<32x128xbf16>
    tpu.vector_store %arg5[%c0_7, %c0_8], %9 {strides = array<i32>} : memref<32x128xbf16, #tpu.memory_space<vmem>>, vector<32x128xbf16>,
    return
  }
  func.func @transform_0(%arg0: i32) -> (i32, i32) {
    %c0_i32 = arith.constant 0 : i32
    %c0_i32_0 = arith.constant 0 : i32
    return %arg0, %c0_i32 : i32, i32
  }
  func.func @transform_1(%arg0: i32) -> (i32, i32) {
    %c0_i32 = arith.constant 0 : i32
    %c0_i32_0 = arith.constant 0 : i32
    %c0_i32_1 = arith.constant 0 : i32
    return %c0_i32, %c0_i32_0 : i32, i32
  }
  func.func @transform_2(%arg0: i32) -> (i32, i32) {
    %c0_i32 = arith.constant 0 : i32
    %c0_i32_0 = arith.constant 0 : i32
    %c0_i32_1 = arith.constant 0 : i32
    return %c0_i32, %c0_i32_0 : i32, i32
  }
  func.func @transform_3(%arg0: i32) -> (i32, i32) {
    %c0_i32 = arith.constant 0 : i32
    %c0_i32_0 = arith.constant 0 : i32
    %c0_i32_1 = arith.constant 0 : i32
    return %c0_i32, %c0_i32_0 : i32, i32
  }
  func.func @transform_4(%arg0: i32) -> (i32, i32) {
    %c0_i32 = arith.constant 0 : i32
    %c0_i32_0 = arith.constant 0 : i32
    return %arg0, %c0_i32 : i32, i32
  }
}

module attributes {stable_mosaic.version = 11 : i64} {
  func.func @_pw_kernel(%arg0: i32, %arg1: memref<32x192xbf16, #tpu.memory_space<vmem>>, %arg2: memref<192x128xbf16, #tpu.memory_space<vmem>>, %arg3: memref<1x128xf32, #tpu.memory_space<vmem>>, %arg4: memref<1x128xf32, #tpu.memory_space<vmem>>, %arg5: memref<32x128xbf16, #tpu.memory_space<vmem>>) attributes {dimension_semantics = [#tpu.dimension_semantics<parallel>], iteration_bounds = array<i64: 1>, scalar_prefetch = 0 : i64, scratch_operands = 0 : i64, tpu.core_type = #tpu.core_type<tc>, window_params = [{transform_indices = @transform_0, window_bounds = array<i64: 32, 192>}, {pipeline_mode = #tpu.pipeline_mode<synchronous>, transform_indices = @transform_1, window_bounds = array<i64: 192, 128>}, {pipeline_mode = #tpu.pipeline_mode<synchronous>, transform_indices = @transform_2, window_bounds = array<i64: 1, 128>}, {pipeline_mode = #tpu.pipeline_mode<synchronous>, transform_indices = @transform_3, window_bounds = array<i64: 1, 128>}, {transform_indices = @transform_4, window_bounds = array<i64: 32, 128>}]} {
    %c0 = arith.constant 0 : index
    %c0_0 = arith.constant 0 : index
    %0 = vector.load %arg1[%c0, %c0_0] : memref<32x192xbf16, #tpu.memory_space<vmem>>, vector<32x192xbf16>
    %c0_1 = arith.constant 0 : index
    %c0_2 = arith.constant 0 : index
    %1 = vector.load %arg2[%c0_1, %c0_2] : memref<192x128xbf16, #tpu.memory_space<vmem>>, vector<192x128xbf16>
    %cst = arith.constant dense<0.000000e+00> : vector<32x128xf32>
    %2 = tpu.matmul %0, %1, %cst {dimension_numbers = #tpu.dot_dimension_numbers<[1], [0], [0], [1], [0, 0, 1, 1], [], []>} : vector<32x192xbf16>, vector<192x128xbf16>, vector<32x128xf32> -> vector<32x128xf32>
    %c0_3 = arith.constant 0 : index
    %c0_4 = arith.constant 0 : index
    %3 = vector.load %arg3[%c0_3, %c0_4] : memref<1x128xf32, #tpu.memory_space<vmem>>, vector<1x128xf32>
    %4 = vector.broadcast %3 : vector<1x128xf32> to vector<32x128xf32>
    %5 = arith.mulf %2, %4 : vector<32x128xf32>
    %c0_5 = arith.constant 0 : index
    %c0_6 = arith.constant 0 : index
    %6 = vector.load %arg4[%c0_5, %c0_6] : memref<1x128xf32, #tpu.memory_space<vmem>>, vector<1x128xf32>
    %7 = vector.broadcast %6 : vector<1x128xf32> to vector<32x128xf32>
    %8 = arith.addf %5, %7 : vector<32x128xf32>
    %cst_7 = arith.constant 0.000000e+00 : f32
    %9 = vector.broadcast %cst_7 : f32 to vector<32x128xf32>
    %10 = arith.maximumf %8, %9 : vector<32x128xf32>
    %11 = arith.truncf %10 : vector<32x128xf32> to vector<32x128xbf16>
    %c0_8 = arith.constant 0 : index
    %c0_9 = arith.constant 0 : index
    %12 = vector.load %arg5[%c0_8, %c0_9] : memref<32x128xbf16, #tpu.memory_space<vmem>>, vector<32x128xbf16>
    tpu.vector_store %arg5[%c0_8, %c0_9], %11 {strides = array<i32>} : memref<32x128xbf16, #tpu.memory_space<vmem>>, vector<32x128xbf16>,
    return
  }
  func.func @transform_0(%arg0: i32) -> (i32, i32) {
    %c0_i32 = arith.constant 0 : i32
    %c0_i32_0 = arith.constant 0 : i32
    return %arg0, %c0_i32 : i32, i32
  }
  func.func @transform_1(%arg0: i32) -> (i32, i32) {
    %c0_i32 = arith.constant 0 : i32
    %c0_i32_0 = arith.constant 0 : i32
    %c0_i32_1 = arith.constant 0 : i32
    return %c0_i32, %c0_i32_0 : i32, i32
  }
  func.func @transform_2(%arg0: i32) -> (i32, i32) {
    %c0_i32 = arith.constant 0 : i32
    %c0_i32_0 = arith.constant 0 : i32
    %c0_i32_1 = arith.constant 0 : i32
    return %c0_i32, %c0_i32_0 : i32, i32
  }
  func.func @transform_3(%arg0: i32) -> (i32, i32) {
    %c0_i32 = arith.constant 0 : i32
    %c0_i32_0 = arith.constant 0 : i32
    %c0_i32_1 = arith.constant 0 : i32
    return %c0_i32, %c0_i32_0 : i32, i32
  }
  func.func @transform_4(%arg0: i32) -> (i32, i32) {
    %c0_i32 = arith.constant 0 : i32
    %c0_i32_0 = arith.constant 0 : i32
    return %arg0, %c0_i32 : i32, i32
  }
}

module attributes {stable_mosaic.version = 11 : i64} {
  func.func @_pw_kernel(%arg0: i32, %arg1: memref<512x96xbf16, #tpu.memory_space<vmem>>, %arg2: memref<96x24xbf16, #tpu.memory_space<vmem>>, %arg3: memref<1x24xf32, #tpu.memory_space<vmem>>, %arg4: memref<1x24xf32, #tpu.memory_space<vmem>>, %arg5: memref<512x24xbf16, #tpu.memory_space<vmem>>) attributes {dimension_semantics = [#tpu.dimension_semantics<parallel>], iteration_bounds = array<i64: 1>, scalar_prefetch = 0 : i64, scratch_operands = 0 : i64, tpu.core_type = #tpu.core_type<tc>, window_params = [{transform_indices = @transform_0, window_bounds = array<i64: 512, 96>}, {pipeline_mode = #tpu.pipeline_mode<synchronous>, transform_indices = @transform_1, window_bounds = array<i64: 96, 24>}, {pipeline_mode = #tpu.pipeline_mode<synchronous>, transform_indices = @transform_2, window_bounds = array<i64: 1, 24>}, {pipeline_mode = #tpu.pipeline_mode<synchronous>, transform_indices = @transform_3, window_bounds = array<i64: 1, 24>}, {transform_indices = @transform_4, window_bounds = array<i64: 512, 24>}]} {
    %c0 = arith.constant 0 : index
    %c0_0 = arith.constant 0 : index
    %0 = vector.load %arg1[%c0, %c0_0] : memref<512x96xbf16, #tpu.memory_space<vmem>>, vector<512x96xbf16>
    %c0_1 = arith.constant 0 : index
    %c0_2 = arith.constant 0 : index
    %1 = vector.load %arg2[%c0_1, %c0_2] : memref<96x24xbf16, #tpu.memory_space<vmem>>, vector<96x24xbf16>
    %cst = arith.constant dense<0.000000e+00> : vector<512x24xf32>
    %2 = tpu.matmul %0, %1, %cst {dimension_numbers = #tpu.dot_dimension_numbers<[1], [0], [0], [1], [0, 0, 1, 1], [], []>} : vector<512x96xbf16>, vector<96x24xbf16>, vector<512x24xf32> -> vector<512x24xf32>
    %c0_3 = arith.constant 0 : index
    %c0_4 = arith.constant 0 : index
    %3 = vector.load %arg3[%c0_3, %c0_4] : memref<1x24xf32, #tpu.memory_space<vmem>>, vector<1x24xf32>
    %4 = vector.broadcast %3 : vector<1x24xf32> to vector<512x24xf32>
    %5 = arith.mulf %2, %4 : vector<512x24xf32>
    %c0_5 = arith.constant 0 : index
    %c0_6 = arith.constant 0 : index
    %6 = vector.load %arg4[%c0_5, %c0_6] : memref<1x24xf32, #tpu.memory_space<vmem>>, vector<1x24xf32>
    %7 = vector.broadcast %6 : vector<1x24xf32> to vector<512x24xf32>
    %8 = arith.addf %5, %7 : vector<512x24xf32>
    %cst_7 = arith.constant 0.000000e+00 : f32
    %9 = vector.broadcast %cst_7 : f32 to vector<512x24xf32>
    %10 = arith.maximumf %8, %9 : vector<512x24xf32>
    %11 = arith.truncf %10 : vector<512x24xf32> to vector<512x24xbf16>
    %c0_8 = arith.constant 0 : index
    %c0_9 = arith.constant 0 : index
    %12 = vector.load %arg5[%c0_8, %c0_9] : memref<512x24xbf16, #tpu.memory_space<vmem>>, vector<512x24xbf16>
    tpu.vector_store %arg5[%c0_8, %c0_9], %11 {strides = array<i32>} : memref<512x24xbf16, #tpu.memory_space<vmem>>, vector<512x24xbf16>,
    return
  }
  func.func @transform_0(%arg0: i32) -> (i32, i32) {
    %c0_i32 = arith.constant 0 : i32
    %c0_i32_0 = arith.constant 0 : i32
    return %arg0, %c0_i32 : i32, i32
  }
  func.func @transform_1(%arg0: i32) -> (i32, i32) {
    %c0_i32 = arith.constant 0 : i32
    %c0_i32_0 = arith.constant 0 : i32
    %c0_i32_1 = arith.constant 0 : i32
    return %c0_i32, %c0_i32_0 : i32, i32
  }
  func.func @transform_2(%arg0: i32) -> (i32, i32) {
    %c0_i32 = arith.constant 0 : i32
    %c0_i32_0 = arith.constant 0 : i32
    %c0_i32_1 = arith.constant 0 : i32
    return %c0_i32, %c0_i32_0 : i32, i32
  }
  func.func @transform_3(%arg0: i32) -> (i32, i32) {
    %c0_i32 = arith.constant 0 : i32
    %c0_i32_0 = arith.constant 0 : i32
    %c0_i32_1 = arith.constant 0 : i32
    return %c0_i32, %c0_i32_0 : i32, i32
  }
  func.func @transform_4(%arg0: i32) -> (i32, i32) {
    %c0_i32 = arith.constant 0 : i32
    %c0_i32_0 = arith.constant 0 : i32
    return %arg0, %c0_i32 : i32, i32
  }
}

module attributes {stable_mosaic.version = 11 : i64} {
  func.func @_dsconv_kernel(%arg0: i32, %arg1: i32, %arg2: memref<1x1x16x128xbf16, #tpu.memory_space<vmem>>, %arg3: memref<1x16x16x128xbf16, #tpu.memory_space<vmem>>, %arg4: memref<1x1x16x128xbf16, #tpu.memory_space<vmem>>, %arg5: memref<3x3x128xf32, #tpu.memory_space<vmem>>, %arg6: memref<1x128xf32, #tpu.memory_space<vmem>>, %arg7: memref<128x128xbf16, #tpu.memory_space<vmem>>, %arg8: memref<1x128xf32, #tpu.memory_space<vmem>>, %arg9: memref<1x128xf32, #tpu.memory_space<vmem>>, %arg10: memref<1x16x16x24xbf16, #tpu.memory_space<vmem>>, %arg11: memref<24x128xbf16, #tpu.memory_space<vmem>>, %arg12: memref<1x128xf32, #tpu.memory_space<vmem>>, %arg13: memref<1x128xf32, #tpu.memory_space<vmem>>, %arg14: memref<1x16x16x128xbf16, #tpu.memory_space<vmem>>) attributes {dimension_semantics = [#tpu.dimension_semantics<parallel>, #tpu.dimension_semantics<parallel>], iteration_bounds = array<i64: 2, 1>, scalar_prefetch = 0 : i64, scratch_operands = 0 : i64, tpu.core_type = #tpu.core_type<tc>, window_params = [{transform_indices = @transform_0, window_bounds = array<i64: 1, 1, 16, 128>}, {transform_indices = @transform_1, window_bounds = array<i64: 1, 16, 16, 128>}, {transform_indices = @transform_2, window_bounds = array<i64: 1, 1, 16, 128>}, {pipeline_mode = #tpu.pipeline_mode<synchronous>, transform_indices = @transform_3, window_bounds = array<i64: 3, 3, 128>}, {pipeline_mode = #tpu.pipeline_mode<synchronous>, transform_indices = @transform_4, window_bounds = array<i64: 1, 128>}, {pipeline_mode = #tpu.pipeline_mode<synchronous>, transform_indices = @transform_5, window_bounds = array<i64: 128, 128>}, {pipeline_mode = #tpu.pipeline_mode<synchronous>, transform_indices = @transform_6, window_bounds = array<i64: 1, 128>}, {pipeline_mode = #tpu.pipeline_mode<synchronous>, transform_indices = @transform_7, window_bounds = array<i64: 1, 128>}, {transform_indices = @transform_8, window_bounds = array<i64: 1, 16, 16, 24>}, {pipeline_mode = #tpu.pipeline_mode<synchronous>, transform_indices = @transform_9, window_bounds = array<i64: 24, 128>}, {pipeline_mode = #tpu.pipeline_mode<synchronous>, transform_indices = @transform_10, window_bounds = array<i64: 1, 128>}, {pipeline_mode = #tpu.pipeline_mode<synchronous>, transform_indices = @transform_11, window_bounds = array<i64: 1, 128>}, {transform_indices = @transform_12, window_bounds = array<i64: 1, 16, 16, 128>}]} {
    %c0_i32 = arith.constant 0 : i32
    %0 = arith.cmpi sgt, %arg1, %c0_i32 : i32
    %1 = arith.extui %0 : i1 to i32
    %2 = arith.sitofp %1 : i32 to f32
    %c0_i32_0 = arith.constant 0 : i32
    %3 = arith.cmpi slt, %arg1, %c0_i32_0 : i32
    %4 = arith.extui %3 : i1 to i32
    %5 = arith.sitofp %4 : i32 to f32
    %c0 = arith.constant 0 : index
    %c0_1 = arith.constant 0 : index
    %c0_2 = arith.constant 0 : index
    %c0_3 = arith.constant 0 : index
    %6 = vector.load %arg2[%c0, %c0_1, %c0_2, %c0_3] : memref<1x1x16x128xbf16, #tpu.memory_space<vmem>>, vector<1x1x16x128xbf16>
    %7 = vector.shape_cast %6 : vector<1x1x16x128xbf16> to vector<1x16x128xbf16>
    %8 = arith.extf %7 : vector<1x16x128xbf16> to vector<1x16x128xf32>
    %9 = vector.broadcast %2 : f32 to vector<1x16x128xf32>
    %10 = arith.mulf %8, %9 : vector<1x16x128xf32>
    %c0_4 = arith.constant 0 : index
    %c0_5 = arith.constant 0 : index
    %c0_6 = arith.constant 0 : index
    %c0_7 = arith.constant 0 : index
    %11 = vector.load %arg3[%c0_4, %c0_5, %c0_6, %c0_7] : memref<1x16x16x128xbf16, #tpu.memory_space<vmem>>, vector<1x16x16x128xbf16>
    %12 = vector.shape_cast %11 : vector<1x16x16x128xbf16> to vector<16x16x128xbf16>
    %13 = arith.extf %12 : vector<16x16x128xbf16> to vector<16x16x128xf32>
    %c0_8 = arith.constant 0 : index
    %c0_9 = arith.constant 0 : index
    %c0_10 = arith.constant 0 : index
    %c0_11 = arith.constant 0 : index
    %14 = vector.load %arg4[%c0_8, %c0_9, %c0_10, %c0_11] : memref<1x1x16x128xbf16, #tpu.memory_space<vmem>>, vector<1x1x16x128xbf16>
    %15 = vector.shape_cast %14 : vector<1x1x16x128xbf16> to vector<1x16x128xbf16>
    %16 = arith.extf %15 : vector<1x16x128xbf16> to vector<1x16x128xf32>
    %17 = vector.broadcast %5 : f32 to vector<1x16x128xf32>
    %18 = arith.mulf %16, %17 : vector<1x16x128xf32>
    %19 = tpu.concatenate %10, %13, %18 in 0 : vector<1x16x128xf32>, vector<16x16x128xf32>, vector<1x16x128xf32> -> vector<18x16x128xf32>
    %cst = arith.constant 0.000000e+00 : f32
    %20 = vector.broadcast %cst : f32 to vector<18x1x128xf32>
    %21 = tpu.concatenate %20, %19, %20 in 1 : vector<18x1x128xf32>, vector<18x16x128xf32>, vector<18x1x128xf32> -> vector<18x18x128xf32>
    %cst_12 = arith.constant 0.000000e+00 : f32
    %22 = vector.broadcast %cst_12 : f32 to vector<16x16x128xf32>
    %23 = vector.extract_strided_slice %21 {offsets = [0, 0, 0], sizes = [16, 16, 128], strides = [1, 1, 1]} : vector<18x18x128xf32> to vector<16x16x128xf32>
    %c0_13 = arith.constant 0 : index
    %c0_14 = arith.constant 0 : index
    %c0_15 = arith.constant 0 : index
    %24 = vector.load %arg5[%c0_13, %c0_14, %c0_15] : memref<3x3x128xf32, #tpu.memory_space<vmem>>, vector<1x1x128xf32>
    %25 = vector.shape_cast %24 : vector<1x1x128xf32> to vector<128xf32>
    %26 = vector.shape_cast %25 : vector<128xf32> to vector<1x1x128xf32>
    %27 = vector.broadcast %26 : vector<1x1x128xf32> to vector<16x16x128xf32>
    %28 = arith.mulf %23, %27 : vector<16x16x128xf32>
    %29 = arith.addf %22, %28 : vector<16x16x128xf32>
    %30 = vector.extract_strided_slice %21 {offsets = [0, 1, 0], sizes = [16, 16, 128], strides = [1, 1, 1]} : vector<18x18x128xf32> to vector<16x16x128xf32>
    %c0_16 = arith.constant 0 : index
    %c1 = arith.constant 1 : index
    %c0_17 = arith.constant 0 : index
    %31 = vector.load %arg5[%c0_16, %c1, %c0_17] : memref<3x3x128xf32, #tpu.memory_space<vmem>>, vector<1x1x128xf32>
    %32 = vector.shape_cast %31 : vector<1x1x128xf32> to vector<128xf32>
    %33 = vector.shape_cast %32 : vector<128xf32> to vector<1x1x128xf32>
    %34 = vector.broadcast %33 : vector<1x1x128xf32> to vector<16x16x128xf32>
    %35 = arith.mulf %30, %34 : vector<16x16x128xf32>
    %36 = arith.addf %29, %35 : vector<16x16x128xf32>
    %37 = vector.extract_strided_slice %21 {offsets = [0, 2, 0], sizes = [16, 16, 128], strides = [1, 1, 1]} : vector<18x18x128xf32> to vector<16x16x128xf32>
    %c0_18 = arith.constant 0 : index
    %c2 = arith.constant 2 : index
    %c0_19 = arith.constant 0 : index
    %38 = vector.load %arg5[%c0_18, %c2, %c0_19] : memref<3x3x128xf32, #tpu.memory_space<vmem>>, vector<1x1x128xf32>
    %39 = vector.shape_cast %38 : vector<1x1x128xf32> to vector<128xf32>
    %40 = vector.shape_cast %39 : vector<128xf32> to vector<1x1x128xf32>
    %41 = vector.broadcast %40 : vector<1x1x128xf32> to vector<16x16x128xf32>
    %42 = arith.mulf %37, %41 : vector<16x16x128xf32>
    %43 = arith.addf %36, %42 : vector<16x16x128xf32>
    %44 = vector.extract_strided_slice %21 {offsets = [1, 0, 0], sizes = [16, 16, 128], strides = [1, 1, 1]} : vector<18x18x128xf32> to vector<16x16x128xf32>
    %c1_20 = arith.constant 1 : index
    %c0_21 = arith.constant 0 : index
    %c0_22 = arith.constant 0 : index
    %45 = vector.load %arg5[%c1_20, %c0_21, %c0_22] : memref<3x3x128xf32, #tpu.memory_space<vmem>>, vector<1x1x128xf32>
    %46 = vector.shape_cast %45 : vector<1x1x128xf32> to vector<128xf32>
    %47 = vector.shape_cast %46 : vector<128xf32> to vector<1x1x128xf32>
    %48 = vector.broadcast %47 : vector<1x1x128xf32> to vector<16x16x128xf32>
    %49 = arith.mulf %44, %48 : vector<16x16x128xf32>
    %50 = arith.addf %43, %49 : vector<16x16x128xf32>
    %51 = vector.extract_strided_slice %21 {offsets = [1, 1, 0], sizes = [16, 16, 128], strides = [1, 1, 1]} : vector<18x18x128xf32> to vector<16x16x128xf32>
    %c1_23 = arith.constant 1 : index
    %c1_24 = arith.constant 1 : index
    %c0_25 = arith.constant 0 : index
    %52 = vector.load %arg5[%c1_23, %c1_24, %c0_25] : memref<3x3x128xf32, #tpu.memory_space<vmem>>, vector<1x1x128xf32>
    %53 = vector.shape_cast %52 : vector<1x1x128xf32> to vector<128xf32>
    %54 = vector.shape_cast %53 : vector<128xf32> to vector<1x1x128xf32>
    %55 = vector.broadcast %54 : vector<1x1x128xf32> to vector<16x16x128xf32>
    %56 = arith.mulf %51, %55 : vector<16x16x128xf32>
    %57 = arith.addf %50, %56 : vector<16x16x128xf32>
    %58 = vector.extract_strided_slice %21 {offsets = [1, 2, 0], sizes = [16, 16, 128], strides = [1, 1, 1]} : vector<18x18x128xf32> to vector<16x16x128xf32>
    %c1_26 = arith.constant 1 : index
    %c2_27 = arith.constant 2 : index
    %c0_28 = arith.constant 0 : index
    %59 = vector.load %arg5[%c1_26, %c2_27, %c0_28] : memref<3x3x128xf32, #tpu.memory_space<vmem>>, vector<1x1x128xf32>
    %60 = vector.shape_cast %59 : vector<1x1x128xf32> to vector<128xf32>
    %61 = vector.shape_cast %60 : vector<128xf32> to vector<1x1x128xf32>
    %62 = vector.broadcast %61 : vector<1x1x128xf32> to vector<16x16x128xf32>
    %63 = arith.mulf %58, %62 : vector<16x16x128xf32>
    %64 = arith.addf %57, %63 : vector<16x16x128xf32>
    %65 = vector.extract_strided_slice %21 {offsets = [2, 0, 0], sizes = [16, 16, 128], strides = [1, 1, 1]} : vector<18x18x128xf32> to vector<16x16x128xf32>
    %c2_29 = arith.constant 2 : index
    %c0_30 = arith.constant 0 : index
    %c0_31 = arith.constant 0 : index
    %66 = vector.load %arg5[%c2_29, %c0_30, %c0_31] : memref<3x3x128xf32, #tpu.memory_space<vmem>>, vector<1x1x128xf32>
    %67 = vector.shape_cast %66 : vector<1x1x128xf32> to vector<128xf32>
    %68 = vector.shape_cast %67 : vector<128xf32> to vector<1x1x128xf32>
    %69 = vector.broadcast %68 : vector<1x1x128xf32> to vector<16x16x128xf32>
    %70 = arith.mulf %65, %69 : vector<16x16x128xf32>
    %71 = arith.addf %64, %70 : vector<16x16x128xf32>
    %72 = vector.extract_strided_slice %21 {offsets = [2, 1, 0], sizes = [16, 16, 128], strides = [1, 1, 1]} : vector<18x18x128xf32> to vector<16x16x128xf32>
    %c2_32 = arith.constant 2 : index
    %c1_33 = arith.constant 1 : index
    %c0_34 = arith.constant 0 : index
    %73 = vector.load %arg5[%c2_32, %c1_33, %c0_34] : memref<3x3x128xf32, #tpu.memory_space<vmem>>, vector<1x1x128xf32>
    %74 = vector.shape_cast %73 : vector<1x1x128xf32> to vector<128xf32>
    %75 = vector.shape_cast %74 : vector<128xf32> to vector<1x1x128xf32>
    %76 = vector.broadcast %75 : vector<1x1x128xf32> to vector<16x16x128xf32>
    %77 = arith.mulf %72, %76 : vector<16x16x128xf32>
    %78 = arith.addf %71, %77 : vector<16x16x128xf32>
    %79 = vector.extract_strided_slice %21 {offsets = [2, 2, 0], sizes = [16, 16, 128], strides = [1, 1, 1]} : vector<18x18x128xf32> to vector<16x16x128xf32>
    %c2_35 = arith.constant 2 : index
    %c2_36 = arith.constant 2 : index
    %c0_37 = arith.constant 0 : index
    %80 = vector.load %arg5[%c2_35, %c2_36, %c0_37] : memref<3x3x128xf32, #tpu.memory_space<vmem>>, vector<1x1x128xf32>
    %81 = vector.shape_cast %80 : vector<1x1x128xf32> to vector<128xf32>
    %82 = vector.shape_cast %81 : vector<128xf32> to vector<1x1x128xf32>
    %83 = vector.broadcast %82 : vector<1x1x128xf32> to vector<16x16x128xf32>
    %84 = arith.mulf %79, %83 : vector<16x16x128xf32>
    %85 = arith.addf %78, %84 : vector<16x16x128xf32>
    %c0_38 = arith.constant 0 : index
    %c0_39 = arith.constant 0 : index
    %86 = vector.load %arg6[%c0_38, %c0_39] : memref<1x128xf32, #tpu.memory_space<vmem>>, vector<1x128xf32>
    %87 = vector.shape_cast %86 : vector<1x128xf32> to vector<128xf32>
    %88 = vector.shape_cast %87 : vector<128xf32> to vector<1x1x128xf32>
    %89 = vector.broadcast %88 : vector<1x1x128xf32> to vector<16x16x128xf32>
    %90 = arith.addf %85, %89 : vector<16x16x128xf32>
    %cst_40 = arith.constant 0.000000e+00 : f32
    %91 = vector.broadcast %cst_40 : f32 to vector<16x16x128xf32>
    %92 = arith.maximumf %90, %91 : vector<16x16x128xf32>
    %93 = vector.shape_cast %92 : vector<16x16x128xf32> to vector<256x128xf32>
    %94 = arith.truncf %93 : vector<256x128xf32> to vector<256x128xbf16>
    %c0_41 = arith.constant 0 : index
    %c0_42 = arith.constant 0 : index
    %95 = vector.load %arg7[%c0_41, %c0_42] : memref<128x128xbf16, #tpu.memory_space<vmem>>, vector<128x128xbf16>
    %cst_43 = arith.constant dense<0.000000e+00> : vector<256x128xf32>
    %96 = tpu.matmul %94, %95, %cst_43 {dimension_numbers = #tpu.dot_dimension_numbers<[1], [0], [0], [1], [0, 0, 1, 1], [], []>} : vector<256x128xbf16>, vector<128x128xbf16>, vector<256x128xf32> -> vector<256x128xf32>
    %c0_44 = arith.constant 0 : index
    %c0_45 = arith.constant 0 : index
    %97 = vector.load %arg8[%c0_44, %c0_45] : memref<1x128xf32, #tpu.memory_space<vmem>>, vector<1x128xf32>
    %98 = vector.broadcast %97 : vector<1x128xf32> to vector<256x128xf32>
    %99 = arith.mulf %96, %98 : vector<256x128xf32>
    %c0_46 = arith.constant 0 : index
    %c0_47 = arith.constant 0 : index
    %100 = vector.load %arg9[%c0_46, %c0_47] : memref<1x128xf32, #tpu.memory_space<vmem>>, vector<1x128xf32>
    %101 = vector.broadcast %100 : vector<1x128xf32> to vector<256x128xf32>
    %102 = arith.addf %99, %101 : vector<256x128xf32>
    %c0_48 = arith.constant 0 : index
    %c0_49 = arith.constant 0 : index
    %c0_50 = arith.constant 0 : index
    %c0_51 = arith.constant 0 : index
    %103 = vector.load %arg10[%c0_48, %c0_49, %c0_50, %c0_51] : memref<1x16x16x24xbf16, #tpu.memory_space<vmem>>, vector<1x16x16x24xbf16>
    %104 = vector.shape_cast %103 : vector<1x16x16x24xbf16> to vector<16x16x24xbf16>
    %105 = vector.shape_cast %104 : vector<16x16x24xbf16> to vector<256x24xbf16>
    %c0_52 = arith.constant 0 : index
    %c0_53 = arith.constant 0 : index
    %106 = vector.load %arg11[%c0_52, %c0_53] : memref<24x128xbf16, #tpu.memory_space<vmem>>, vector<24x128xbf16>
    %cst_54 = arith.constant dense<0.000000e+00> : vector<256x128xf32>
    %107 = tpu.matmul %105, %106, %cst_54 {dimension_numbers = #tpu.dot_dimension_numbers<[1], [0], [0], [1], [0, 0, 1, 1], [], []>} : vector<256x24xbf16>, vector<24x128xbf16>, vector<256x128xf32> -> vector<256x128xf32>
    %c0_55 = arith.constant 0 : index
    %c0_56 = arith.constant 0 : index
    %108 = vector.load %arg12[%c0_55, %c0_56] : memref<1x128xf32, #tpu.memory_space<vmem>>, vector<1x128xf32>
    %109 = vector.broadcast %108 : vector<1x128xf32> to vector<256x128xf32>
    %110 = arith.mulf %107, %109 : vector<256x128xf32>
    %111 = arith.addf %102, %110 : vector<256x128xf32>
    %c0_57 = arith.constant 0 : index
    %c0_58 = arith.constant 0 : index
    %112 = vector.load %arg13[%c0_57, %c0_58] : memref<1x128xf32, #tpu.memory_space<vmem>>, vector<1x128xf32>
    %113 = vector.broadcast %112 : vector<1x128xf32> to vector<256x128xf32>
    %114 = arith.addf %111, %113 : vector<256x128xf32>
    %cst_59 = arith.constant 0.000000e+00 : f32
    %115 = vector.broadcast %cst_59 : f32 to vector<256x128xf32>
    %116 = arith.maximumf %114, %115 : vector<256x128xf32>
    %117 = vector.shape_cast %116 : vector<256x128xf32> to vector<1x16x16x128xf32>
    %118 = arith.truncf %117 : vector<1x16x16x128xf32> to vector<1x16x16x128xbf16>
    %c0_60 = arith.constant 0 : index
    %c0_61 = arith.constant 0 : index
    %c0_62 = arith.constant 0 : index
    %c0_63 = arith.constant 0 : index
    %119 = vector.load %arg14[%c0_60, %c0_61, %c0_62, %c0_63] : memref<1x16x16x128xbf16, #tpu.memory_space<vmem>>, vector<1x16x16x128xbf16>
    tpu.vector_store %arg14[%c0_60, %c0_61, %c0_62, %c0_63], %118 {strides = array<i32>} : memref<1x16x16x128xbf16, #tpu.memory_space<vmem>>, vector<1x16x16x128xbf16>,
    return
  }
  func.func @transform_0(%arg0: i32, %arg1: i32) -> (i32, i32, i32, i32) {
    %c16_i32 = arith.constant 16 : i32
    %0 = arith.muli %arg1, %c16_i32 : i32
    %c1_i32 = arith.constant 1 : i32
    %1 = arith.subi %0, %c1_i32 : i32
    %c0_i32 = arith.constant 0 : i32
    %2 = arith.maxsi %1, %c0_i32 : i32
    %c0_i32_0 = arith.constant 0 : i32
    %c0_i32_1 = arith.constant 0 : i32
    %c0_i32_2 = arith.constant 0 : i32
    return %arg0, %2, %c0_i32_0, %c0_i32_1 : i32, i32, i32, i32
  }
  func.func @transform_1(%arg0: i32, %arg1: i32) -> (i32, i32, i32, i32) {
    %c0_i32 = arith.constant 0 : i32
    %c0_i32_0 = arith.constant 0 : i32
    %c0_i32_1 = arith.constant 0 : i32
    return %arg0, %arg1, %c0_i32, %c0_i32_0 : i32, i32, i32, i32
  }
  func.func @transform_2(%arg0: i32, %arg1: i32) -> (i32, i32, i32, i32) {
    %c16_i32 = arith.constant 16 : i32
    %0 = arith.muli %arg1, %c16_i32 : i32
    %c16_i32_0 = arith.constant 16 : i32
    %1 = arith.addi %0, %c16_i32_0 : i32
    %c15_i32 = arith.constant 15 : i32
    %2 = arith.minsi %1, %c15_i32 : i32
    %c0_i32 = arith.constant 0 : i32
    %c0_i32_1 = arith.constant 0 : i32
    %c0_i32_2 = arith.constant 0 : i32
    return %arg0, %2, %c0_i32, %c0_i32_1 : i32, i32, i32, i32
  }
  func.func @transform_3(%arg0: i32, %arg1: i32) -> (i32, i32, i32) {
    %c0_i32 = arith.constant 0 : i32
    %c0_i32_0 = arith.constant 0 : i32
    %c0_i32_1 = arith.constant 0 : i32
    %c0_i32_2 = arith.constant 0 : i32
    return %c0_i32, %c0_i32_0, %c0_i32_1 : i32, i32, i32
  }
  func.func @transform_4(%arg0: i32, %arg1: i32) -> (i32, i32) {
    %c0_i32 = arith.constant 0 : i32
    %c0_i32_0 = arith.constant 0 : i32
    %c0_i32_1 = arith.constant 0 : i32
    return %c0_i32, %c0_i32_0 : i32, i32
  }
  func.func @transform_5(%arg0: i32, %arg1: i32) -> (i32, i32) {
    %c0_i32 = arith.constant 0 : i32
    %c0_i32_0 = arith.constant 0 : i32
    %c0_i32_1 = arith.constant 0 : i32
    return %c0_i32, %c0_i32_0 : i32, i32
  }
  func.func @transform_6(%arg0: i32, %arg1: i32) -> (i32, i32) {
    %c0_i32 = arith.constant 0 : i32
    %c0_i32_0 = arith.constant 0 : i32
    %c0_i32_1 = arith.constant 0 : i32
    return %c0_i32, %c0_i32_0 : i32, i32
  }
  func.func @transform_7(%arg0: i32, %arg1: i32) -> (i32, i32) {
    %c0_i32 = arith.constant 0 : i32
    %c0_i32_0 = arith.constant 0 : i32
    %c0_i32_1 = arith.constant 0 : i32
    return %c0_i32, %c0_i32_0 : i32, i32
  }
  func.func @transform_8(%arg0: i32, %arg1: i32) -> (i32, i32, i32, i32) {
    %c0_i32 = arith.constant 0 : i32
    %c0_i32_0 = arith.constant 0 : i32
    %c0_i32_1 = arith.constant 0 : i32
    return %arg0, %arg1, %c0_i32, %c0_i32_0 : i32, i32, i32, i32
  }
  func.func @transform_9(%arg0: i32, %arg1: i32) -> (i32, i32) {
    %c0_i32 = arith.constant 0 : i32
    %c0_i32_0 = arith.constant 0 : i32
    %c0_i32_1 = arith.constant 0 : i32
    return %c0_i32, %c0_i32_0 : i32, i32
  }
  func.func @transform_10(%arg0: i32, %arg1: i32) -> (i32, i32) {
    %c0_i32 = arith.constant 0 : i32
    %c0_i32_0 = arith.constant 0 : i32
    %c0_i32_1 = arith.constant 0 : i32
    return %c0_i32, %c0_i32_0 : i32, i32
  }
  func.func @transform_11(%arg0: i32, %arg1: i32) -> (i32, i32) {
    %c0_i32 = arith.constant 0 : i32
    %c0_i32_0 = arith.constant 0 : i32
    %c0_i32_1 = arith.constant 0 : i32
    return %c0_i32, %c0_i32_0 : i32, i32
  }
  func.func @transform_12(%arg0: i32, %arg1: i32) -> (i32, i32, i32, i32) {
    %c0_i32 = arith.constant 0 : i32
    %c0_i32_0 = arith.constant 0 : i32
    %c0_i32_1 = arith.constant 0 : i32
    return %arg0, %arg1, %c0_i32, %c0_i32_0 : i32, i32, i32, i32
  }
}

module attributes {stable_mosaic.version = 11 : i64} {
  func.func @_dsconv_kernel(%arg0: i32, %arg1: i32, %arg2: memref<1x1x16x128xbf16, #tpu.memory_space<vmem>>, %arg3: memref<1x16x16x128xbf16, #tpu.memory_space<vmem>>, %arg4: memref<1x1x16x128xbf16, #tpu.memory_space<vmem>>, %arg5: memref<3x3x128xf32, #tpu.memory_space<vmem>>, %arg6: memref<1x128xf32, #tpu.memory_space<vmem>>, %arg7: memref<128x128xbf16, #tpu.memory_space<vmem>>, %arg8: memref<1x128xf32, #tpu.memory_space<vmem>>, %arg9: memref<1x128xf32, #tpu.memory_space<vmem>>, %arg10: memref<1x16x16x128xbf16, #tpu.memory_space<vmem>>) attributes {dimension_semantics = [#tpu.dimension_semantics<parallel>, #tpu.dimension_semantics<parallel>], iteration_bounds = array<i64: 2, 1>, scalar_prefetch = 0 : i64, scratch_operands = 0 : i64, tpu.core_type = #tpu.core_type<tc>, window_params = [{transform_indices = @transform_0, window_bounds = array<i64: 1, 1, 16, 128>}, {transform_indices = @transform_1, window_bounds = array<i64: 1, 16, 16, 128>}, {transform_indices = @transform_2, window_bounds = array<i64: 1, 1, 16, 128>}, {pipeline_mode = #tpu.pipeline_mode<synchronous>, transform_indices = @transform_3, window_bounds = array<i64: 3, 3, 128>}, {pipeline_mode = #tpu.pipeline_mode<synchronous>, transform_indices = @transform_4, window_bounds = array<i64: 1, 128>}, {pipeline_mode = #tpu.pipeline_mode<synchronous>, transform_indices = @transform_5, window_bounds = array<i64: 128, 128>}, {pipeline_mode = #tpu.pipeline_mode<synchronous>, transform_indices = @transform_6, window_bounds = array<i64: 1, 128>}, {pipeline_mode = #tpu.pipeline_mode<synchronous>, transform_indices = @transform_7, window_bounds = array<i64: 1, 128>}, {transform_indices = @transform_8, window_bounds = array<i64: 1, 16, 16, 128>}]} {
    %c0_i32 = arith.constant 0 : i32
    %0 = arith.cmpi sgt, %arg1, %c0_i32 : i32
    %1 = arith.extui %0 : i1 to i32
    %2 = arith.sitofp %1 : i32 to f32
    %c0_i32_0 = arith.constant 0 : i32
    %3 = arith.cmpi slt, %arg1, %c0_i32_0 : i32
    %4 = arith.extui %3 : i1 to i32
    %5 = arith.sitofp %4 : i32 to f32
    %c0 = arith.constant 0 : index
    %c0_1 = arith.constant 0 : index
    %c0_2 = arith.constant 0 : index
    %c0_3 = arith.constant 0 : index
    %6 = vector.load %arg2[%c0, %c0_1, %c0_2, %c0_3] : memref<1x1x16x128xbf16, #tpu.memory_space<vmem>>, vector<1x1x16x128xbf16>
    %7 = vector.shape_cast %6 : vector<1x1x16x128xbf16> to vector<1x16x128xbf16>
    %8 = arith.extf %7 : vector<1x16x128xbf16> to vector<1x16x128xf32>
    %9 = vector.broadcast %2 : f32 to vector<1x16x128xf32>
    %10 = arith.mulf %8, %9 : vector<1x16x128xf32>
    %c0_4 = arith.constant 0 : index
    %c0_5 = arith.constant 0 : index
    %c0_6 = arith.constant 0 : index
    %c0_7 = arith.constant 0 : index
    %11 = vector.load %arg3[%c0_4, %c0_5, %c0_6, %c0_7] : memref<1x16x16x128xbf16, #tpu.memory_space<vmem>>, vector<1x16x16x128xbf16>
    %12 = vector.shape_cast %11 : vector<1x16x16x128xbf16> to vector<16x16x128xbf16>
    %13 = arith.extf %12 : vector<16x16x128xbf16> to vector<16x16x128xf32>
    %c0_8 = arith.constant 0 : index
    %c0_9 = arith.constant 0 : index
    %c0_10 = arith.constant 0 : index
    %c0_11 = arith.constant 0 : index
    %14 = vector.load %arg4[%c0_8, %c0_9, %c0_10, %c0_11] : memref<1x1x16x128xbf16, #tpu.memory_space<vmem>>, vector<1x1x16x128xbf16>
    %15 = vector.shape_cast %14 : vector<1x1x16x128xbf16> to vector<1x16x128xbf16>
    %16 = arith.extf %15 : vector<1x16x128xbf16> to vector<1x16x128xf32>
    %17 = vector.broadcast %5 : f32 to vector<1x16x128xf32>
    %18 = arith.mulf %16, %17 : vector<1x16x128xf32>
    %19 = tpu.concatenate %10, %13, %18 in 0 : vector<1x16x128xf32>, vector<16x16x128xf32>, vector<1x16x128xf32> -> vector<18x16x128xf32>
    %cst = arith.constant 0.000000e+00 : f32
    %20 = vector.broadcast %cst : f32 to vector<18x1x128xf32>
    %21 = tpu.concatenate %20, %19, %20 in 1 : vector<18x1x128xf32>, vector<18x16x128xf32>, vector<18x1x128xf32> -> vector<18x18x128xf32>
    %cst_12 = arith.constant 0.000000e+00 : f32
    %22 = vector.broadcast %cst_12 : f32 to vector<16x16x128xf32>
    %23 = vector.extract_strided_slice %21 {offsets = [0, 0, 0], sizes = [16, 16, 128], strides = [1, 1, 1]} : vector<18x18x128xf32> to vector<16x16x128xf32>
    %c0_13 = arith.constant 0 : index
    %c0_14 = arith.constant 0 : index
    %c0_15 = arith.constant 0 : index
    %24 = vector.load %arg5[%c0_13, %c0_14, %c0_15] : memref<3x3x128xf32, #tpu.memory_space<vmem>>, vector<1x1x128xf32>
    %25 = vector.shape_cast %24 : vector<1x1x128xf32> to vector<128xf32>
    %26 = vector.shape_cast %25 : vector<128xf32> to vector<1x1x128xf32>
    %27 = vector.broadcast %26 : vector<1x1x128xf32> to vector<16x16x128xf32>
    %28 = arith.mulf %23, %27 : vector<16x16x128xf32>
    %29 = arith.addf %22, %28 : vector<16x16x128xf32>
    %30 = vector.extract_strided_slice %21 {offsets = [0, 1, 0], sizes = [16, 16, 128], strides = [1, 1, 1]} : vector<18x18x128xf32> to vector<16x16x128xf32>
    %c0_16 = arith.constant 0 : index
    %c1 = arith.constant 1 : index
    %c0_17 = arith.constant 0 : index
    %31 = vector.load %arg5[%c0_16, %c1, %c0_17] : memref<3x3x128xf32, #tpu.memory_space<vmem>>, vector<1x1x128xf32>
    %32 = vector.shape_cast %31 : vector<1x1x128xf32> to vector<128xf32>
    %33 = vector.shape_cast %32 : vector<128xf32> to vector<1x1x128xf32>
    %34 = vector.broadcast %33 : vector<1x1x128xf32> to vector<16x16x128xf32>
    %35 = arith.mulf %30, %34 : vector<16x16x128xf32>
    %36 = arith.addf %29, %35 : vector<16x16x128xf32>
    %37 = vector.extract_strided_slice %21 {offsets = [0, 2, 0], sizes = [16, 16, 128], strides = [1, 1, 1]} : vector<18x18x128xf32> to vector<16x16x128xf32>
    %c0_18 = arith.constant 0 : index
    %c2 = arith.constant 2 : index
    %c0_19 = arith.constant 0 : index
    %38 = vector.load %arg5[%c0_18, %c2, %c0_19] : memref<3x3x128xf32, #tpu.memory_space<vmem>>, vector<1x1x128xf32>
    %39 = vector.shape_cast %38 : vector<1x1x128xf32> to vector<128xf32>
    %40 = vector.shape_cast %39 : vector<128xf32> to vector<1x1x128xf32>
    %41 = vector.broadcast %40 : vector<1x1x128xf32> to vector<16x16x128xf32>
    %42 = arith.mulf %37, %41 : vector<16x16x128xf32>
    %43 = arith.addf %36, %42 : vector<16x16x128xf32>
    %44 = vector.extract_strided_slice %21 {offsets = [1, 0, 0], sizes = [16, 16, 128], strides = [1, 1, 1]} : vector<18x18x128xf32> to vector<16x16x128xf32>
    %c1_20 = arith.constant 1 : index
    %c0_21 = arith.constant 0 : index
    %c0_22 = arith.constant 0 : index
    %45 = vector.load %arg5[%c1_20, %c0_21, %c0_22] : memref<3x3x128xf32, #tpu.memory_space<vmem>>, vector<1x1x128xf32>
    %46 = vector.shape_cast %45 : vector<1x1x128xf32> to vector<128xf32>
    %47 = vector.shape_cast %46 : vector<128xf32> to vector<1x1x128xf32>
    %48 = vector.broadcast %47 : vector<1x1x128xf32> to vector<16x16x128xf32>
    %49 = arith.mulf %44, %48 : vector<16x16x128xf32>
    %50 = arith.addf %43, %49 : vector<16x16x128xf32>
    %51 = vector.extract_strided_slice %21 {offsets = [1, 1, 0], sizes = [16, 16, 128], strides = [1, 1, 1]} : vector<18x18x128xf32> to vector<16x16x128xf32>
    %c1_23 = arith.constant 1 : index
    %c1_24 = arith.constant 1 : index
    %c0_25 = arith.constant 0 : index
    %52 = vector.load %arg5[%c1_23, %c1_24, %c0_25] : memref<3x3x128xf32, #tpu.memory_space<vmem>>, vector<1x1x128xf32>
    %53 = vector.shape_cast %52 : vector<1x1x128xf32> to vector<128xf32>
    %54 = vector.shape_cast %53 : vector<128xf32> to vector<1x1x128xf32>
    %55 = vector.broadcast %54 : vector<1x1x128xf32> to vector<16x16x128xf32>
    %56 = arith.mulf %51, %55 : vector<16x16x128xf32>
    %57 = arith.addf %50, %56 : vector<16x16x128xf32>
    %58 = vector.extract_strided_slice %21 {offsets = [1, 2, 0], sizes = [16, 16, 128], strides = [1, 1, 1]} : vector<18x18x128xf32> to vector<16x16x128xf32>
    %c1_26 = arith.constant 1 : index
    %c2_27 = arith.constant 2 : index
    %c0_28 = arith.constant 0 : index
    %59 = vector.load %arg5[%c1_26, %c2_27, %c0_28] : memref<3x3x128xf32, #tpu.memory_space<vmem>>, vector<1x1x128xf32>
    %60 = vector.shape_cast %59 : vector<1x1x128xf32> to vector<128xf32>
    %61 = vector.shape_cast %60 : vector<128xf32> to vector<1x1x128xf32>
    %62 = vector.broadcast %61 : vector<1x1x128xf32> to vector<16x16x128xf32>
    %63 = arith.mulf %58, %62 : vector<16x16x128xf32>
    %64 = arith.addf %57, %63 : vector<16x16x128xf32>
    %65 = vector.extract_strided_slice %21 {offsets = [2, 0, 0], sizes = [16, 16, 128], strides = [1, 1, 1]} : vector<18x18x128xf32> to vector<16x16x128xf32>
    %c2_29 = arith.constant 2 : index
    %c0_30 = arith.constant 0 : index
    %c0_31 = arith.constant 0 : index
    %66 = vector.load %arg5[%c2_29, %c0_30, %c0_31] : memref<3x3x128xf32, #tpu.memory_space<vmem>>, vector<1x1x128xf32>
    %67 = vector.shape_cast %66 : vector<1x1x128xf32> to vector<128xf32>
    %68 = vector.shape_cast %67 : vector<128xf32> to vector<1x1x128xf32>
    %69 = vector.broadcast %68 : vector<1x1x128xf32> to vector<16x16x128xf32>
    %70 = arith.mulf %65, %69 : vector<16x16x128xf32>
    %71 = arith.addf %64, %70 : vector<16x16x128xf32>
    %72 = vector.extract_strided_slice %21 {offsets = [2, 1, 0], sizes = [16, 16, 128], strides = [1, 1, 1]} : vector<18x18x128xf32> to vector<16x16x128xf32>
    %c2_32 = arith.constant 2 : index
    %c1_33 = arith.constant 1 : index
    %c0_34 = arith.constant 0 : index
    %73 = vector.load %arg5[%c2_32, %c1_33, %c0_34] : memref<3x3x128xf32, #tpu.memory_space<vmem>>, vector<1x1x128xf32>
    %74 = vector.shape_cast %73 : vector<1x1x128xf32> to vector<128xf32>
    %75 = vector.shape_cast %74 : vector<128xf32> to vector<1x1x128xf32>
    %76 = vector.broadcast %75 : vector<1x1x128xf32> to vector<16x16x128xf32>
    %77 = arith.mulf %72, %76 : vector<16x16x128xf32>
    %78 = arith.addf %71, %77 : vector<16x16x128xf32>
    %79 = vector.extract_strided_slice %21 {offsets = [2, 2, 0], sizes = [16, 16, 128], strides = [1, 1, 1]} : vector<18x18x128xf32> to vector<16x16x128xf32>
    %c2_35 = arith.constant 2 : index
    %c2_36 = arith.constant 2 : index
    %c0_37 = arith.constant 0 : index
    %80 = vector.load %arg5[%c2_35, %c2_36, %c0_37] : memref<3x3x128xf32, #tpu.memory_space<vmem>>, vector<1x1x128xf32>
    %81 = vector.shape_cast %80 : vector<1x1x128xf32> to vector<128xf32>
    %82 = vector.shape_cast %81 : vector<128xf32> to vector<1x1x128xf32>
    %83 = vector.broadcast %82 : vector<1x1x128xf32> to vector<16x16x128xf32>
    %84 = arith.mulf %79, %83 : vector<16x16x128xf32>
    %85 = arith.addf %78, %84 : vector<16x16x128xf32>
    %c0_38 = arith.constant 0 : index
    %c0_39 = arith.constant 0 : index
    %86 = vector.load %arg6[%c0_38, %c0_39] : memref<1x128xf32, #tpu.memory_space<vmem>>, vector<1x128xf32>
    %87 = vector.shape_cast %86 : vector<1x128xf32> to vector<128xf32>
    %88 = vector.shape_cast %87 : vector<128xf32> to vector<1x1x128xf32>
    %89 = vector.broadcast %88 : vector<1x1x128xf32> to vector<16x16x128xf32>
    %90 = arith.addf %85, %89 : vector<16x16x128xf32>
    %cst_40 = arith.constant 0.000000e+00 : f32
    %91 = vector.broadcast %cst_40 : f32 to vector<16x16x128xf32>
    %92 = arith.maximumf %90, %91 : vector<16x16x128xf32>
    %93 = vector.shape_cast %92 : vector<16x16x128xf32> to vector<256x128xf32>
    %94 = arith.truncf %93 : vector<256x128xf32> to vector<256x128xbf16>
    %c0_41 = arith.constant 0 : index
    %c0_42 = arith.constant 0 : index
    %95 = vector.load %arg7[%c0_41, %c0_42] : memref<128x128xbf16, #tpu.memory_space<vmem>>, vector<128x128xbf16>
    %cst_43 = arith.constant dense<0.000000e+00> : vector<256x128xf32>
    %96 = tpu.matmul %94, %95, %cst_43 {dimension_numbers = #tpu.dot_dimension_numbers<[1], [0], [0], [1], [0, 0, 1, 1], [], []>} : vector<256x128xbf16>, vector<128x128xbf16>, vector<256x128xf32> -> vector<256x128xf32>
    %c0_44 = arith.constant 0 : index
    %c0_45 = arith.constant 0 : index
    %97 = vector.load %arg8[%c0_44, %c0_45] : memref<1x128xf32, #tpu.memory_space<vmem>>, vector<1x128xf32>
    %98 = vector.broadcast %97 : vector<1x128xf32> to vector<256x128xf32>
    %99 = arith.mulf %96, %98 : vector<256x128xf32>
    %c0_46 = arith.constant 0 : index
    %c0_47 = arith.constant 0 : index
    %100 = vector.load %arg9[%c0_46, %c0_47] : memref<1x128xf32, #tpu.memory_space<vmem>>, vector<1x128xf32>
    %101 = vector.broadcast %100 : vector<1x128xf32> to vector<256x128xf32>
    %102 = arith.addf %99, %101 : vector<256x128xf32>
    %cst_48 = arith.constant 0.000000e+00 : f32
    %103 = vector.broadcast %cst_48 : f32 to vector<256x128xf32>
    %104 = arith.maximumf %102, %103 : vector<256x128xf32>
    %105 = vector.shape_cast %104 : vector<256x128xf32> to vector<1x16x16x128xf32>
    %106 = arith.truncf %105 : vector<1x16x16x128xf32> to vector<1x16x16x128xbf16>
    %c0_49 = arith.constant 0 : index
    %c0_50 = arith.constant 0 : index
    %c0_51 = arith.constant 0 : index
    %c0_52 = arith.constant 0 : index
    %107 = vector.load %arg10[%c0_49, %c0_50, %c0_51, %c0_52] : memref<1x16x16x128xbf16, #tpu.memory_space<vmem>>, vector<1x16x16x128xbf16>
    tpu.vector_store %arg10[%c0_49, %c0_50, %c0_51, %c0_52], %106 {strides = array<i32>} : memref<1x16x16x128xbf16, #tpu.memory_space<vmem>>, vector<1x16x16x128xbf16>,
    return
  }
  func.func @transform_0(%arg0: i32, %arg1: i32) -> (i32, i32, i32, i32) {
    %c16_i32 = arith.constant 16 : i32
    %0 = arith.muli %arg1, %c16_i32 : i32
    %c1_i32 = arith.constant 1 : i32
    %1 = arith.subi %0, %c1_i32 : i32
    %c0_i32 = arith.constant 0 : i32
    %2 = arith.maxsi %1, %c0_i32 : i32
    %c0_i32_0 = arith.constant 0 : i32
    %c0_i32_1 = arith.constant 0 : i32
    %c0_i32_2 = arith.constant 0 : i32
    return %arg0, %2, %c0_i32_0, %c0_i32_1 : i32, i32, i32, i32
  }
  func.func @transform_1(%arg0: i32, %arg1: i32) -> (i32, i32, i32, i32) {
    %c0_i32 = arith.constant 0 : i32
    %c0_i32_0 = arith.constant 0 : i32
    %c0_i32_1 = arith.constant 0 : i32
    return %arg0, %arg1, %c0_i32, %c0_i32_0 : i32, i32, i32, i32
  }
  func.func @transform_2(%arg0: i32, %arg1: i32) -> (i32, i32, i32, i32) {
    %c16_i32 = arith.constant 16 : i32
    %0 = arith.muli %arg1, %c16_i32 : i32
    %c16_i32_0 = arith.constant 16 : i32
    %1 = arith.addi %0, %c16_i32_0 : i32
    %c15_i32 = arith.constant 15 : i32
    %2 = arith.minsi %1, %c15_i32 : i32
    %c0_i32 = arith.constant 0 : i32
    %c0_i32_1 = arith.constant 0 : i32
    %c0_i32_2 = arith.constant 0 : i32
    return %arg0, %2, %c0_i32, %c0_i32_1 : i32, i32, i32, i32
  }
  func.func @transform_3(%arg0: i32, %arg1: i32) -> (i32, i32, i32) {
    %c0_i32 = arith.constant 0 : i32
    %c0_i32_0 = arith.constant 0 : i32
    %c0_i32_1 = arith.constant 0 : i32
    %c0_i32_2 = arith.constant 0 : i32
    return %c0_i32, %c0_i32_0, %c0_i32_1 : i32, i32, i32
  }
  func.func @transform_4(%arg0: i32, %arg1: i32) -> (i32, i32) {
    %c0_i32 = arith.constant 0 : i32
    %c0_i32_0 = arith.constant 0 : i32
    %c0_i32_1 = arith.constant 0 : i32
    return %c0_i32, %c0_i32_0 : i32, i32
  }
  func.func @transform_5(%arg0: i32, %arg1: i32) -> (i32, i32) {
    %c0_i32 = arith.constant 0 : i32
    %c0_i32_0 = arith.constant 0 : i32
    %c0_i32_1 = arith.constant 0 : i32
    return %c0_i32, %c0_i32_0 : i32, i32
  }
  func.func @transform_6(%arg0: i32, %arg1: i32) -> (i32, i32) {
    %c0_i32 = arith.constant 0 : i32
    %c0_i32_0 = arith.constant 0 : i32
    %c0_i32_1 = arith.constant 0 : i32
    return %c0_i32, %c0_i32_0 : i32, i32
  }
  func.func @transform_7(%arg0: i32, %arg1: i32) -> (i32, i32) {
    %c0_i32 = arith.constant 0 : i32
    %c0_i32_0 = arith.constant 0 : i32
    %c0_i32_1 = arith.constant 0 : i32
    return %c0_i32, %c0_i32_0 : i32, i32
  }
  func.func @transform_8(%arg0: i32, %arg1: i32) -> (i32, i32, i32, i32) {
    %c0_i32 = arith.constant 0 : i32
    %c0_i32_0 = arith.constant 0 : i32
    %c0_i32_1 = arith.constant 0 : i32
    return %arg0, %arg1, %c0_i32, %c0_i32_0 : i32, i32, i32, i32
  }
}

module attributes {stable_mosaic.version = 11 : i64} {
  func.func @_dsconv_kernel(%arg0: i32, %arg1: i32, %arg2: memref<1x1x16x128xbf16, #tpu.memory_space<vmem>>, %arg3: memref<1x16x16x128xbf16, #tpu.memory_space<vmem>>, %arg4: memref<1x1x16x128xbf16, #tpu.memory_space<vmem>>, %arg5: memref<3x3x128xf32, #tpu.memory_space<vmem>>, %arg6: memref<1x128xf32, #tpu.memory_space<vmem>>, %arg7: memref<128x128xbf16, #tpu.memory_space<vmem>>, %arg8: memref<1x128xf32, #tpu.memory_space<vmem>>, %arg9: memref<1x128xf32, #tpu.memory_space<vmem>>, %arg10: memref<128x2xbf16, #tpu.memory_space<vmem>>, %arg11: memref<1x2xf32, #tpu.memory_space<vmem>>, %arg12: memref<1x16x16x2xf32, #tpu.memory_space<vmem>>) attributes {dimension_semantics = [#tpu.dimension_semantics<parallel>, #tpu.dimension_semantics<parallel>], iteration_bounds = array<i64: 2, 1>, scalar_prefetch = 0 : i64, scratch_operands = 0 : i64, tpu.core_type = #tpu.core_type<tc>, window_params = [{transform_indices = @transform_0, window_bounds = array<i64: 1, 1, 16, 128>}, {transform_indices = @transform_1, window_bounds = array<i64: 1, 16, 16, 128>}, {transform_indices = @transform_2, window_bounds = array<i64: 1, 1, 16, 128>}, {pipeline_mode = #tpu.pipeline_mode<synchronous>, transform_indices = @transform_3, window_bounds = array<i64: 3, 3, 128>}, {pipeline_mode = #tpu.pipeline_mode<synchronous>, transform_indices = @transform_4, window_bounds = array<i64: 1, 128>}, {pipeline_mode = #tpu.pipeline_mode<synchronous>, transform_indices = @transform_5, window_bounds = array<i64: 128, 128>}, {pipeline_mode = #tpu.pipeline_mode<synchronous>, transform_indices = @transform_6, window_bounds = array<i64: 1, 128>}, {pipeline_mode = #tpu.pipeline_mode<synchronous>, transform_indices = @transform_7, window_bounds = array<i64: 1, 128>}, {pipeline_mode = #tpu.pipeline_mode<synchronous>, transform_indices = @transform_8, window_bounds = array<i64: 128, 2>}, {pipeline_mode = #tpu.pipeline_mode<synchronous>, transform_indices = @transform_9, window_bounds = array<i64: 1, 2>}, {transform_indices = @transform_10, window_bounds = array<i64: 1, 16, 16, 2>}]} {
    %c0_i32 = arith.constant 0 : i32
    %0 = arith.cmpi sgt, %arg1, %c0_i32 : i32
    %1 = arith.extui %0 : i1 to i32
    %2 = arith.sitofp %1 : i32 to f32
    %c0_i32_0 = arith.constant 0 : i32
    %3 = arith.cmpi slt, %arg1, %c0_i32_0 : i32
    %4 = arith.extui %3 : i1 to i32
    %5 = arith.sitofp %4 : i32 to f32
    %c0 = arith.constant 0 : index
    %c0_1 = arith.constant 0 : index
    %c0_2 = arith.constant 0 : index
    %c0_3 = arith.constant 0 : index
    %6 = vector.load %arg2[%c0, %c0_1, %c0_2, %c0_3] : memref<1x1x16x128xbf16, #tpu.memory_space<vmem>>, vector<1x1x16x128xbf16>
    %7 = vector.shape_cast %6 : vector<1x1x16x128xbf16> to vector<1x16x128xbf16>
    %8 = arith.extf %7 : vector<1x16x128xbf16> to vector<1x16x128xf32>
    %9 = vector.broadcast %2 : f32 to vector<1x16x128xf32>
    %10 = arith.mulf %8, %9 : vector<1x16x128xf32>
    %c0_4 = arith.constant 0 : index
    %c0_5 = arith.constant 0 : index
    %c0_6 = arith.constant 0 : index
    %c0_7 = arith.constant 0 : index
    %11 = vector.load %arg3[%c0_4, %c0_5, %c0_6, %c0_7] : memref<1x16x16x128xbf16, #tpu.memory_space<vmem>>, vector<1x16x16x128xbf16>
    %12 = vector.shape_cast %11 : vector<1x16x16x128xbf16> to vector<16x16x128xbf16>
    %13 = arith.extf %12 : vector<16x16x128xbf16> to vector<16x16x128xf32>
    %c0_8 = arith.constant 0 : index
    %c0_9 = arith.constant 0 : index
    %c0_10 = arith.constant 0 : index
    %c0_11 = arith.constant 0 : index
    %14 = vector.load %arg4[%c0_8, %c0_9, %c0_10, %c0_11] : memref<1x1x16x128xbf16, #tpu.memory_space<vmem>>, vector<1x1x16x128xbf16>
    %15 = vector.shape_cast %14 : vector<1x1x16x128xbf16> to vector<1x16x128xbf16>
    %16 = arith.extf %15 : vector<1x16x128xbf16> to vector<1x16x128xf32>
    %17 = vector.broadcast %5 : f32 to vector<1x16x128xf32>
    %18 = arith.mulf %16, %17 : vector<1x16x128xf32>
    %19 = tpu.concatenate %10, %13, %18 in 0 : vector<1x16x128xf32>, vector<16x16x128xf32>, vector<1x16x128xf32> -> vector<18x16x128xf32>
    %cst = arith.constant 0.000000e+00 : f32
    %20 = vector.broadcast %cst : f32 to vector<18x1x128xf32>
    %21 = tpu.concatenate %20, %19, %20 in 1 : vector<18x1x128xf32>, vector<18x16x128xf32>, vector<18x1x128xf32> -> vector<18x18x128xf32>
    %cst_12 = arith.constant 0.000000e+00 : f32
    %22 = vector.broadcast %cst_12 : f32 to vector<16x16x128xf32>
    %23 = vector.extract_strided_slice %21 {offsets = [0, 0, 0], sizes = [16, 16, 128], strides = [1, 1, 1]} : vector<18x18x128xf32> to vector<16x16x128xf32>
    %c0_13 = arith.constant 0 : index
    %c0_14 = arith.constant 0 : index
    %c0_15 = arith.constant 0 : index
    %24 = vector.load %arg5[%c0_13, %c0_14, %c0_15] : memref<3x3x128xf32, #tpu.memory_space<vmem>>, vector<1x1x128xf32>
    %25 = vector.shape_cast %24 : vector<1x1x128xf32> to vector<128xf32>
    %26 = vector.shape_cast %25 : vector<128xf32> to vector<1x1x128xf32>
    %27 = vector.broadcast %26 : vector<1x1x128xf32> to vector<16x16x128xf32>
    %28 = arith.mulf %23, %27 : vector<16x16x128xf32>
    %29 = arith.addf %22, %28 : vector<16x16x128xf32>
    %30 = vector.extract_strided_slice %21 {offsets = [0, 1, 0], sizes = [16, 16, 128], strides = [1, 1, 1]} : vector<18x18x128xf32> to vector<16x16x128xf32>
    %c0_16 = arith.constant 0 : index
    %c1 = arith.constant 1 : index
    %c0_17 = arith.constant 0 : index
    %31 = vector.load %arg5[%c0_16, %c1, %c0_17] : memref<3x3x128xf32, #tpu.memory_space<vmem>>, vector<1x1x128xf32>
    %32 = vector.shape_cast %31 : vector<1x1x128xf32> to vector<128xf32>
    %33 = vector.shape_cast %32 : vector<128xf32> to vector<1x1x128xf32>
    %34 = vector.broadcast %33 : vector<1x1x128xf32> to vector<16x16x128xf32>
    %35 = arith.mulf %30, %34 : vector<16x16x128xf32>
    %36 = arith.addf %29, %35 : vector<16x16x128xf32>
    %37 = vector.extract_strided_slice %21 {offsets = [0, 2, 0], sizes = [16, 16, 128], strides = [1, 1, 1]} : vector<18x18x128xf32> to vector<16x16x128xf32>
    %c0_18 = arith.constant 0 : index
    %c2 = arith.constant 2 : index
    %c0_19 = arith.constant 0 : index
    %38 = vector.load %arg5[%c0_18, %c2, %c0_19] : memref<3x3x128xf32, #tpu.memory_space<vmem>>, vector<1x1x128xf32>
    %39 = vector.shape_cast %38 : vector<1x1x128xf32> to vector<128xf32>
    %40 = vector.shape_cast %39 : vector<128xf32> to vector<1x1x128xf32>
    %41 = vector.broadcast %40 : vector<1x1x128xf32> to vector<16x16x128xf32>
    %42 = arith.mulf %37, %41 : vector<16x16x128xf32>
    %43 = arith.addf %36, %42 : vector<16x16x128xf32>
    %44 = vector.extract_strided_slice %21 {offsets = [1, 0, 0], sizes = [16, 16, 128], strides = [1, 1, 1]} : vector<18x18x128xf32> to vector<16x16x128xf32>
    %c1_20 = arith.constant 1 : index
    %c0_21 = arith.constant 0 : index
    %c0_22 = arith.constant 0 : index
    %45 = vector.load %arg5[%c1_20, %c0_21, %c0_22] : memref<3x3x128xf32, #tpu.memory_space<vmem>>, vector<1x1x128xf32>
    %46 = vector.shape_cast %45 : vector<1x1x128xf32> to vector<128xf32>
    %47 = vector.shape_cast %46 : vector<128xf32> to vector<1x1x128xf32>
    %48 = vector.broadcast %47 : vector<1x1x128xf32> to vector<16x16x128xf32>
    %49 = arith.mulf %44, %48 : vector<16x16x128xf32>
    %50 = arith.addf %43, %49 : vector<16x16x128xf32>
    %51 = vector.extract_strided_slice %21 {offsets = [1, 1, 0], sizes = [16, 16, 128], strides = [1, 1, 1]} : vector<18x18x128xf32> to vector<16x16x128xf32>
    %c1_23 = arith.constant 1 : index
    %c1_24 = arith.constant 1 : index
    %c0_25 = arith.constant 0 : index
    %52 = vector.load %arg5[%c1_23, %c1_24, %c0_25] : memref<3x3x128xf32, #tpu.memory_space<vmem>>, vector<1x1x128xf32>
    %53 = vector.shape_cast %52 : vector<1x1x128xf32> to vector<128xf32>
    %54 = vector.shape_cast %53 : vector<128xf32> to vector<1x1x128xf32>
    %55 = vector.broadcast %54 : vector<1x1x128xf32> to vector<16x16x128xf32>
    %56 = arith.mulf %51, %55 : vector<16x16x128xf32>
    %57 = arith.addf %50, %56 : vector<16x16x128xf32>
    %58 = vector.extract_strided_slice %21 {offsets = [1, 2, 0], sizes = [16, 16, 128], strides = [1, 1, 1]} : vector<18x18x128xf32> to vector<16x16x128xf32>
    %c1_26 = arith.constant 1 : index
    %c2_27 = arith.constant 2 : index
    %c0_28 = arith.constant 0 : index
    %59 = vector.load %arg5[%c1_26, %c2_27, %c0_28] : memref<3x3x128xf32, #tpu.memory_space<vmem>>, vector<1x1x128xf32>
    %60 = vector.shape_cast %59 : vector<1x1x128xf32> to vector<128xf32>
    %61 = vector.shape_cast %60 : vector<128xf32> to vector<1x1x128xf32>
    %62 = vector.broadcast %61 : vector<1x1x128xf32> to vector<16x16x128xf32>
    %63 = arith.mulf %58, %62 : vector<16x16x128xf32>
    %64 = arith.addf %57, %63 : vector<16x16x128xf32>
    %65 = vector.extract_strided_slice %21 {offsets = [2, 0, 0], sizes = [16, 16, 128], strides = [1, 1, 1]} : vector<18x18x128xf32> to vector<16x16x128xf32>
    %c2_29 = arith.constant 2 : index
    %c0_30 = arith.constant 0 : index
    %c0_31 = arith.constant 0 : index
    %66 = vector.load %arg5[%c2_29, %c0_30, %c0_31] : memref<3x3x128xf32, #tpu.memory_space<vmem>>, vector<1x1x128xf32>
    %67 = vector.shape_cast %66 : vector<1x1x128xf32> to vector<128xf32>
    %68 = vector.shape_cast %67 : vector<128xf32> to vector<1x1x128xf32>
    %69 = vector.broadcast %68 : vector<1x1x128xf32> to vector<16x16x128xf32>
    %70 = arith.mulf %65, %69 : vector<16x16x128xf32>
    %71 = arith.addf %64, %70 : vector<16x16x128xf32>
    %72 = vector.extract_strided_slice %21 {offsets = [2, 1, 0], sizes = [16, 16, 128], strides = [1, 1, 1]} : vector<18x18x128xf32> to vector<16x16x128xf32>
    %c2_32 = arith.constant 2 : index
    %c1_33 = arith.constant 1 : index
    %c0_34 = arith.constant 0 : index
    %73 = vector.load %arg5[%c2_32, %c1_33, %c0_34] : memref<3x3x128xf32, #tpu.memory_space<vmem>>, vector<1x1x128xf32>
    %74 = vector.shape_cast %73 : vector<1x1x128xf32> to vector<128xf32>
    %75 = vector.shape_cast %74 : vector<128xf32> to vector<1x1x128xf32>
    %76 = vector.broadcast %75 : vector<1x1x128xf32> to vector<16x16x128xf32>
    %77 = arith.mulf %72, %76 : vector<16x16x128xf32>
    %78 = arith.addf %71, %77 : vector<16x16x128xf32>
    %79 = vector.extract_strided_slice %21 {offsets = [2, 2, 0], sizes = [16, 16, 128], strides = [1, 1, 1]} : vector<18x18x128xf32> to vector<16x16x128xf32>
    %c2_35 = arith.constant 2 : index
    %c2_36 = arith.constant 2 : index
    %c0_37 = arith.constant 0 : index
    %80 = vector.load %arg5[%c2_35, %c2_36, %c0_37] : memref<3x3x128xf32, #tpu.memory_space<vmem>>, vector<1x1x128xf32>
    %81 = vector.shape_cast %80 : vector<1x1x128xf32> to vector<128xf32>
    %82 = vector.shape_cast %81 : vector<128xf32> to vector<1x1x128xf32>
    %83 = vector.broadcast %82 : vector<1x1x128xf32> to vector<16x16x128xf32>
    %84 = arith.mulf %79, %83 : vector<16x16x128xf32>
    %85 = arith.addf %78, %84 : vector<16x16x128xf32>
    %c0_38 = arith.constant 0 : index
    %c0_39 = arith.constant 0 : index
    %86 = vector.load %arg6[%c0_38, %c0_39] : memref<1x128xf32, #tpu.memory_space<vmem>>, vector<1x128xf32>
    %87 = vector.shape_cast %86 : vector<1x128xf32> to vector<128xf32>
    %88 = vector.shape_cast %87 : vector<128xf32> to vector<1x1x128xf32>
    %89 = vector.broadcast %88 : vector<1x1x128xf32> to vector<16x16x128xf32>
    %90 = arith.addf %85, %89 : vector<16x16x128xf32>
    %cst_40 = arith.constant 0.000000e+00 : f32
    %91 = vector.broadcast %cst_40 : f32 to vector<16x16x128xf32>
    %92 = arith.maximumf %90, %91 : vector<16x16x128xf32>
    %93 = vector.shape_cast %92 : vector<16x16x128xf32> to vector<256x128xf32>
    %94 = arith.truncf %93 : vector<256x128xf32> to vector<256x128xbf16>
    %c0_41 = arith.constant 0 : index
    %c0_42 = arith.constant 0 : index
    %95 = vector.load %arg7[%c0_41, %c0_42] : memref<128x128xbf16, #tpu.memory_space<vmem>>, vector<128x128xbf16>
    %cst_43 = arith.constant dense<0.000000e+00> : vector<256x128xf32>
    %96 = tpu.matmul %94, %95, %cst_43 {dimension_numbers = #tpu.dot_dimension_numbers<[1], [0], [0], [1], [0, 0, 1, 1], [], []>} : vector<256x128xbf16>, vector<128x128xbf16>, vector<256x128xf32> -> vector<256x128xf32>
    %c0_44 = arith.constant 0 : index
    %c0_45 = arith.constant 0 : index
    %97 = vector.load %arg8[%c0_44, %c0_45] : memref<1x128xf32, #tpu.memory_space<vmem>>, vector<1x128xf32>
    %98 = vector.broadcast %97 : vector<1x128xf32> to vector<256x128xf32>
    %99 = arith.mulf %96, %98 : vector<256x128xf32>
    %c0_46 = arith.constant 0 : index
    %c0_47 = arith.constant 0 : index
    %100 = vector.load %arg9[%c0_46, %c0_47] : memref<1x128xf32, #tpu.memory_space<vmem>>, vector<1x128xf32>
    %101 = vector.broadcast %100 : vector<1x128xf32> to vector<256x128xf32>
    %102 = arith.addf %99, %101 : vector<256x128xf32>
    %cst_48 = arith.constant 0.000000e+00 : f32
    %103 = vector.broadcast %cst_48 : f32 to vector<256x128xf32>
    %104 = arith.maximumf %102, %103 : vector<256x128xf32>
    %105 = arith.truncf %104 : vector<256x128xf32> to vector<256x128xbf16>
    %c0_49 = arith.constant 0 : index
    %c0_50 = arith.constant 0 : index
    %106 = vector.load %arg10[%c0_49, %c0_50] : memref<128x2xbf16, #tpu.memory_space<vmem>>, vector<128x2xbf16>
    %cst_51 = arith.constant dense<0.000000e+00> : vector<256x2xf32>
    %107 = tpu.matmul %105, %106, %cst_51 {dimension_numbers = #tpu.dot_dimension_numbers<[1], [0], [0], [1], [0, 0, 1, 1], [], []>} : vector<256x128xbf16>, vector<128x2xbf16>, vector<256x2xf32> -> vector<256x2xf32>
    %c0_52 = arith.constant 0 : index
    %c0_53 = arith.constant 0 : index
    %108 = vector.load %arg11[%c0_52, %c0_53] : memref<1x2xf32, #tpu.memory_space<vmem>>, vector<1x2xf32>
    %109 = vector.broadcast %108 : vector<1x2xf32> to vector<256x2xf32>
    %110 = arith.addf %107, %109 : vector<256x2xf32>
    %111 = vector.shape_cast %110 : vector<256x2xf32> to vector<1x16x16x2xf32>
    %c0_54 = arith.constant 0 : index
    %c0_55 = arith.constant 0 : index
    %c0_56 = arith.constant 0 : index
    %c0_57 = arith.constant 0 : index
    %112 = vector.load %arg12[%c0_54, %c0_55, %c0_56, %c0_57] : memref<1x16x16x2xf32, #tpu.memory_space<vmem>>, vector<1x16x16x2xf32>
    tpu.vector_store %arg12[%c0_54, %c0_55, %c0_56, %c0_57], %111 {strides = array<i32>} : memref<1x16x16x2xf32, #tpu.memory_space<vmem>>, vector<1x16x16x2xf32>,
    return
  }
  func.func @transform_0(%arg0: i32, %arg1: i32) -> (i32, i32, i32, i32) {
    %c16_i32 = arith.constant 16 : i32
    %0 = arith.muli %arg1, %c16_i32 : i32
    %c1_i32 = arith.constant 1 : i32
    %1 = arith.subi %0, %c1_i32 : i32
    %c0_i32 = arith.constant 0 : i32
    %2 = arith.maxsi %1, %c0_i32 : i32
    %c0_i32_0 = arith.constant 0 : i32
    %c0_i32_1 = arith.constant 0 : i32
    %c0_i32_2 = arith.constant 0 : i32
    return %arg0, %2, %c0_i32_0, %c0_i32_1 : i32, i32, i32, i32
  }
  func.func @transform_1(%arg0: i32, %arg1: i32) -> (i32, i32, i32, i32) {
    %c0_i32 = arith.constant 0 : i32
    %c0_i32_0 = arith.constant 0 : i32
    %c0_i32_1 = arith.constant 0 : i32
    return %arg0, %arg1, %c0_i32, %c0_i32_0 : i32, i32, i32, i32
  }
  func.func @transform_2(%arg0: i32, %arg1: i32) -> (i32, i32, i32, i32) {
    %c16_i32 = arith.constant 16 : i32
    %0 = arith.muli %arg1, %c16_i32 : i32
    %c16_i32_0 = arith.constant 16 : i32
    %1 = arith.addi %0, %c16_i32_0 : i32
    %c15_i32 = arith.constant 15 : i32
    %2 = arith.minsi %1, %c15_i32 : i32
    %c0_i32 = arith.constant 0 : i32
    %c0_i32_1 = arith.constant 0 : i32
    %c0_i32_2 = arith.constant 0 : i32
    return %arg0, %2, %c0_i32, %c0_i32_1 : i32, i32, i32, i32
  }
  func.func @transform_3(%arg0: i32, %arg1: i32) -> (i32, i32, i32) {
    %c0_i32 = arith.constant 0 : i32
    %c0_i32_0 = arith.constant 0 : i32
    %c0_i32_1 = arith.constant 0 : i32
    %c0_i32_2 = arith.constant 0 : i32
    return %c0_i32, %c0_i32_0, %c0_i32_1 : i32, i32, i32
  }
  func.func @transform_4(%arg0: i32, %arg1: i32) -> (i32, i32) {
    %c0_i32 = arith.constant 0 : i32
    %c0_i32_0 = arith.constant 0 : i32
    %c0_i32_1 = arith.constant 0 : i32
    return %c0_i32, %c0_i32_0 : i32, i32
  }
  func.func @transform_5(%arg0: i32, %arg1: i32) -> (i32, i32) {
    %c0_i32 = arith.constant 0 : i32
    %c0_i32_0 = arith.constant 0 : i32
    %c0_i32_1 = arith.constant 0 : i32
    return %c0_i32, %c0_i32_0 : i32, i32
  }
  func.func @transform_6(%arg0: i32, %arg1: i32) -> (i32, i32) {
    %c0_i32 = arith.constant 0 : i32
    %c0_i32_0 = arith.constant 0 : i32
    %c0_i32_1 = arith.constant 0 : i32
    return %c0_i32, %c0_i32_0 : i32, i32
  }
  func.func @transform_7(%arg0: i32, %arg1: i32) -> (i32, i32) {
    %c0_i32 = arith.constant 0 : i32
    %c0_i32_0 = arith.constant 0 : i32
    %c0_i32_1 = arith.constant 0 : i32
    return %c0_i32, %c0_i32_0 : i32, i32
  }
  func.func @transform_8(%arg0: i32, %arg1: i32) -> (i32, i32) {
    %c0_i32 = arith.constant 0 : i32
    %c0_i32_0 = arith.constant 0 : i32
    %c0_i32_1 = arith.constant 0 : i32
    return %c0_i32, %c0_i32_0 : i32, i32
  }
  func.func @transform_9(%arg0: i32, %arg1: i32) -> (i32, i32) {
    %c0_i32 = arith.constant 0 : i32
    %c0_i32_0 = arith.constant 0 : i32
    %c0_i32_1 = arith.constant 0 : i32
    return %c0_i32, %c0_i32_0 : i32, i32
  }
  func.func @transform_10(%arg0: i32, %arg1: i32) -> (i32, i32, i32, i32) {
    %c0_i32 = arith.constant 0 : i32
    %c0_i32_0 = arith.constant 0 : i32
    %c0_i32_1 = arith.constant 0 : i32
    return %arg0, %arg1, %c0_i32, %c0_i32_0 : i32, i32, i32, i32
  }
}

</mosaic_0001>

<bundles_post_ra>
// kernel: forward.9
= control target key start
LH: loop header
LB: loop body
LE: loop exit
PB: predicated region body
PF: predicated region fallthrough
CT: control target
= control target key end

     0   :  { %vm80_vm0 = vcmask 785408   ;;  %s256_s1 = inlined_call_operand.vmem [shape: bf16[96,128], index: 1, kind: input, shape index: {}]   ;;  %s257_s2 = inlined_call_operand.vmem [shape: f32[1,128], index: 2, kind: input, shape index: {}]   ;;  %s258_s3 = inlined_call_operand.vmem [shape: f32[1,128], index: 3, kind: input, shape index: {}]   ;;  %s259_s0 = inlined_call_operand.vmem [shape: bf16[32,96], index: 0, kind: input, shape index: {}]   ;;  %s260_s4 = inlined_call_operand.vmem [shape: bf16[32,128], index: 4, kind: output, shape index: {}]  }
   0x1   :  { %v175_v0 = vld [vmem:[%s256_s1 + $0x28] sm:$0xff]  ;;  %v174_v1 = vld [vmem:[%s256_s1 + $0x20] sm:$0xff]  ;;  %v173_v2 = vld [vmem:[%s256_s1 + $0x18] sm:$0xff] }
   0x2   :  { %89 = vmatpush.bf16.msra.mxu0 %v175_v0  ;;  %187 = vmatpush.bf16.msra.mxu1 %v175_v0  ;;  %v172_v3 = vld [vmem:[%s256_s1 + $0x10] sm:$0xff]  ;;  %v171_v4 = vld [vmem:[%s256_s1 + $0x8] sm:$0xff]  ;;  %v170_v5 = vld [vmem:[%s256_s1] sm:$0xff] }
   0x3   :  { %v168_v6 = vld [vmem:[%s259_s0] sm:$0xff]  ;;  %v169_v7 = vld [vmem:[%s259_s0 + $0x8] sm:$0xff] }
   0x4   :  { %v193_v10 = vld [vmem:[%s257_s2] ss:$0 sm:$0xff] }
   0x5   :  { %v194_v12 = vld [vmem:[%s258_s3] ss:$0 sm:$0xff] }
   0x6   :  { %90 = vmatpush.bf16.msra.mxu0 %v174_v1  ;;  %188 = vmatpush.bf16.msra.mxu1 %v174_v1 }
   0xa   :  { %91 = vmatpush.bf16.msra.mxu0 %v173_v2  ;;  %189 = vmatpush.bf16.msra.mxu1 %v173_v2 }
   0xe   :  { %92 = vmatpush.bf16.msra.mxu0 %v172_v3  ;;  %190 = vmatpush.bf16.msra.mxu1 %v172_v3 }
  0x12   :  { %93 = vmatpush.bf16.msra.mxu0 %v171_v4  ;;  %191 = vmatpush.bf16.msra.mxu1 %v171_v4 }
  0x16   :  { %94 = vmatpush.bf16.msra.mxu0 %v170_v5  ;;  %192 = vmatpush.bf16.msra.mxu1 %v170_v5 }
  0x19   :  { %166 = vmatmul.msk.bf16.vlgmr.msra.gmra.mxu0 %vm80_vm0, %v168_v6  ;;  %167 = vmatmul.msk.bf16.vlgmr.msra.gmra.mxu1 %vm80_vm0, %v169_v7 }
  0x96   :  { %v96_v8 = vpop.f32.mrf.mxu0  ;;  %v101_v9 = vpop.f32.mrf.mxu1 }
  0x97   :  { %v110_v11 = vmul.f32 %v193_v10, %v96_v8  ;;  %v112_v13 = vmul.f32 %v193_v10, %v101_v9 }
  0x99   :  { %v118_v18 = vadd.f32 %v194_v12, %v110_v11  ;;  %v120_v19 = vadd.f32 %v194_v12, %v112_v13 }
  0x9e   :  { %v98_v14 = vpop.f32.mrf.mxu0  ;;  %v103_v15 = vpop.f32.mrf.mxu1 }
  0x9f   :  { %v111_v16 = vmul.f32 %v193_v10, %v98_v14  ;;  %v113_v17 = vmul.f32 %v193_v10, %v103_v15 }
  0xa1   :  { %v119_v20 = vadd.f32 %v194_v12, %v111_v16  ;;  %v121_v21 = vadd.f32 %v194_v12, %v113_v17 }
  0xa3   :  { %v179_v22 = vpack.c.bf16 %v119_v20, %v118_v18  ;;  %v184_v23 = vpack.c.bf16 %v121_v21, %v120_v19 }
  0xa5   :  { %180 = vst [vmem:[%s260_s4] sm:$0xff] %v179_v22  }
  0xa6   :  { %186 = vst [vmem:[%s260_s4 + $0x8] sm:$0xff] %v184_v23  }

// kernel: forward.8
= control target key start
LH: loop header
LB: loop body
LE: loop exit
PB: predicated region body
PF: predicated region fallthrough
CT: control target
= control target key end

     0   :  { %vm1181_vm0 = vcmask 781312   ;;  %s2271_s1 = inlined_call_operand.vmem [shape: bf16[1536,96], index: 1, kind: input, shape index: {}]   ;;  %s2272_s0 = inlined_call_operand.vmem [shape: bf16[32,1536], index: 0, kind: input, shape index: {}]   ;;  %s2273_s2 = inlined_call_operand.vmem [shape: f32[1,96], index: 2, kind: input, shape index: {}]   ;;  %s2274_s3 = inlined_call_operand.vmem [shape: f32[1,96], index: 3, kind: input, shape index: {}]   ;;  %s2275_s4 = inlined_call_operand.vmem [shape: bf16[32,96], index: 4, kind: output, shape index: {}]  }
   0x1   :  { %v1701_v0 = vld [vmem:[%s2271_s1 + $0x38] sm:$0xff]  ;;  %v1700_v4 = vld [vmem:[%s2271_s1 + $0x30] sm:$0xff]  ;;  %v1699_v8 = vld [vmem:[%s2271_s1 + $0x28] sm:$0xff] }
   0x2   :  { %v1709_v1 = vld [vmem:[%s2271_s1 + $0x78] sm:$0xff]  ;;  %929 = vmatpush.bf16.msra.mxu0 %v1701_v0  ;;  %v1708_v5 = vld [vmem:[%s2271_s1 + $0x70] sm:$0xff]  ;;  %v1707_v9 = vld [vmem:[%s2271_s1 + $0x68] sm:$0xff] }
   0x3   :  { %v1717_v2 = vld [vmem:[%s2271_s1 + $0xb8] sm:$0xff]  ;;  %948 = vmatpush.bf16.msra.mxu1 %v1709_v1  ;;  %v1716_v6 = vld [vmem:[%s2271_s1 + $0xb0] sm:$0xff]  ;;  %v1715_v10 = vld [vmem:[%s2271_s1 + $0xa8] sm:$0xff] }
   0x4   :  { %v1725_v3 = vld [vmem:[%s2271_s1 + $0xf8] sm:$0xff]  ;;  %967 = vmatpush.bf16.msra.mxu2 %v1717_v2  ;;  %v1724_v7 = vld [vmem:[%s2271_s1 + $0xf0] sm:$0xff]  ;;  %v1723_v11 = vld [vmem:[%s2271_s1 + $0xe8] sm:$0xff] }
   0x5   :  { %986 = vmatpush.bf16.msra.mxu3 %v1725_v3  ;;  %v1698_v12 = vld [vmem:[%s2271_s1 + $0x20] sm:$0xff]  ;;  %v1697_v16 = vld [vmem:[%s2271_s1 + $0x18] sm:$0xff]  ;;  %v1696_v20 = vld [vmem:[%s2271_s1 + $0x10] sm:$0xff] }
   0x6   :  { %930 = vmatpush.bf16.msra.mxu0 %v1700_v4  ;;  %v1706_v13 = vld [vmem:[%s2271_s1 + $0x60] sm:$0xff]  ;;  %v1705_v17 = vld [vmem:[%s2271_s1 + $0x58] sm:$0xff]  ;;  %v1704_v21 = vld [vmem:[%s2271_s1 + $0x50] sm:$0xff] }
   0x7   :  { %949 = vmatpush.bf16.msra.mxu1 %v1708_v5  ;;  %v1714_v14 = vld [vmem:[%s2271_s1 + $0xa0] sm:$0xff]  ;;  %v1713_v18 = vld [vmem:[%s2271_s1 + $0x98] sm:$0xff]  ;;  %v1712_v22 = vld [vmem:[%s2271_s1 + $0x90] sm:$0xff] }
   0x8   :  { %968 = vmatpush.bf16.msra.mxu2 %v1716_v6  ;;  %v1722_v15 = vld [vmem:[%s2271_s1 + $0xe0] sm:$0xff]  ;;  %v1721_v19 = vld [vmem:[%s2271_s1 + $0xd8] sm:$0xff]  ;;  %v1720_v23 = vld [vmem:[%s2271_s1 + $0xd0] sm:$0xff] }
   0x9   :  { %987 = vmatpush.bf16.msra.mxu3 %v1724_v7  ;;  %v1695_v24 = vld [vmem:[%s2271_s1 + $0x8] sm:$0xff]  ;;  %v1694_v28 = vld [vmem:[%s2271_s1] sm:$0xff]  ;;  %v1676_v33 = vld [vmem:[%s2272_s0 + $0x2c] sm:$0xf0] }
   0xa   :  { %931 = vmatpush.bf16.msra.mxu0 %v1699_v8  ;;  %v1703_v25 = vld [vmem:[%s2271_s1 + $0x48] sm:$0xff]  ;;  %v1702_v29 = vld [vmem:[%s2271_s1 + $0x40] sm:$0xff]  ;;  %v1194_v35 = vld [vmem:[%s2272_s0 + $0x30] sm:$0xf0] }
   0xb   :  { %950 = vmatpush.bf16.msra.mxu1 %v1707_v9  ;;  %v1711_v26 = vld [vmem:[%s2271_s1 + $0x88] sm:$0xff]  ;;  %v1710_v30 = vld [vmem:[%s2271_s1 + $0x80] sm:$0xff]  ;;  %v1677_v37 = vld [vmem:[%s2272_s0 + $0x34] sm:$0xf0] }
   0xc   :  { %969 = vmatpush.bf16.msra.mxu2 %v1715_v10  ;;  %v1719_v27 = vld [vmem:[%s2271_s1 + $0xc8] sm:$0xff]  ;;  %v1718_v31 = vld [vmem:[%s2271_s1 + $0xc0] sm:$0xff]  ;;  %v1202_v39 = vld [vmem:[%s2272_s0 + $0x38] sm:$0xf0] }
   0xd   :  { %988 = vmatpush.bf16.msra.mxu3 %v1723_v11  ;;  %v1192_v32 = vld [vmem:[%s2272_s0] sm:$0xf]  ;;  %v1670_v34 = vld [vmem:[%s2272_s0 + $0x4] sm:$0xf]  ;;  %v1200_v36 = vld [vmem:[%s2272_s0 + $0x8] sm:$0xf] }
   0xe   :  { %932 = vmatpush.bf16.msra.mxu0 %v1698_v12  ;;  %v1671_v38 = vld [vmem:[%s2272_s0 + $0xc] sm:$0xf]  ;;  %v1749_v40 = vld [vmem:[%s2271_s1 + $0x1b8] sm:$0xff]  ;;  %v1193_v42 = vor.u32 %v1676_v33, %v1192_v32  ;;  %v1197_v43 = vor.u32 %v1670_v34, %v1194_v35  ;;  %v1201_v44 = vor.u32 %v1677_v37, %v1200_v36  ;;  %v1748_v48 = vld [vmem:[%s2271_s1 + $0x1b0] sm:$0xff] }
   0xf   :  { %951 = vmatpush.bf16.msra.mxu1 %v1706_v13  ;;  %v1733_v41 = vld [vmem:[%s2271_s1 + $0x138] sm:$0xff]  ;;  %v1205_v45 = vor.u32 %v1671_v38, %v1202_v39  ;;  %v1732_v49 = vld [vmem:[%s2271_s1 + $0x130] sm:$0xff]  ;;  %v1747_v52 = vld [vmem:[%s2271_s1 + $0x1a8] sm:$0xff] }
  0x10   :  { %970 = vmatpush.bf16.msra.mxu2 %v1714_v14  ;;  %v1741_v46 = vld [vmem:[%s2271_s1 + $0x178] sm:$0xff]  ;;  %v1740_v50 = vld [vmem:[%s2271_s1 + $0x170] sm:$0xff]  ;;  %v1731_v53 = vld [vmem:[%s2271_s1 + $0x128] sm:$0xff] }
  0x11   :  { %989 = vmatpush.bf16.msra.mxu3 %v1722_v15  ;;  %v1757_v47 = vld [vmem:[%s2271_s1 + $0x1f8] sm:$0xff]  ;;  %v1756_v51 = vld [vmem:[%s2271_s1 + $0x1f0] sm:$0xff]  ;;  %v1739_v54 = vld [vmem:[%s2271_s1 + $0x168] sm:$0xff] }
  0x12   :  { %933 = vmatpush.bf16.msra.mxu0 %v1697_v16  ;;  %v1755_v55 = vld [vmem:[%s2271_s1 + $0x1e8] sm:$0xff]  ;;  %v1746_v56 = vld [vmem:[%s2271_s1 + $0x1a0] sm:$0xff]  ;;  %v1688_v61 = vld [vmem:[%s2272_s0 + $0x8c] sm:$0xf0] }
  0x13   :  { %952 = vmatpush.bf16.msra.mxu1 %v1705_v17  ;;  %v1730_v57 = vld [vmem:[%s2271_s1 + $0x120] sm:$0xff]  ;;  %v1242_v63 = vld [vmem:[%s2272_s0 + $0x90] sm:$0xf0]  ;;  %v1248_v0 = vld [vmem:[%s2272_s0 + $0x68] sm:$0xf] }
  0x14   :  { %971 = vmatpush.bf16.msra.mxu2 %v1713_v18  ;;  %v1738_v58 = vld [vmem:[%s2271_s1 + $0x160] sm:$0xff]  ;;  %v1689_v1 = vld [vmem:[%s2272_s0 + $0x94] sm:$0xf0]  ;;  %v1683_v2 = vld [vmem:[%s2272_s0 + $0x6c] sm:$0xf] }
  0x15   :  { %990 = vmatpush.bf16.msra.mxu3 %v1721_v19  ;;  %v1754_v59 = vld [vmem:[%s2271_s1 + $0x1e0] sm:$0xff]  ;;  %v1250_v3 = vld [vmem:[%s2272_s0 + $0x98] sm:$0xf0]  ;;  %v1249_v8 = vor.u32 %v1689_v1, %v1248_v0  ;;  %v1744_v12 = vld [vmem:[%s2271_s1 + $0x190] sm:$0xff] }
  0x16   :  { %934 = vmatpush.bf16.msra.mxu0 %v1696_v20  ;;  %v1240_v60 = vld [vmem:[%s2272_s0 + $0x60] sm:$0xf]  ;;  %v1682_v62 = vld [vmem:[%s2272_s0 + $0x64] sm:$0xf]  ;;  %v1745_v4 = vld [vmem:[%s2271_s1 + $0x198] sm:$0xff]  ;;  %v1253_v9 = vor.u32 %v1683_v2, %v1250_v3 }
  0x17   :  { %953 = vmatpush.bf16.msra.mxu1 %v1704_v21  ;;  %v1729_v5 = vld [vmem:[%s2271_s1 + $0x118] sm:$0xff]  ;;  %v1241_v6 = vor.u32 %v1688_v61, %v1240_v60  ;;  %v1245_v7 = vor.u32 %v1682_v62, %v1242_v63  ;;  %v1728_v13 = vld [vmem:[%s2271_s1 + $0x110] sm:$0xff]  ;;  %v1743_v16 = vld [vmem:[%s2271_s1 + $0x188] sm:$0xff] }
  0x18   :  { %972 = vmatpush.bf16.msra.mxu2 %v1712_v22  ;;  %v1737_v10 = vld [vmem:[%s2271_s1 + $0x158] sm:$0xff]  ;;  %v1736_v14 = vld [vmem:[%s2271_s1 + $0x150] sm:$0xff]  ;;  %v1727_v17 = vld [vmem:[%s2271_s1 + $0x108] sm:$0xff] }
  0x19   :  { %991 = vmatpush.bf16.msra.mxu3 %v1720_v23  ;;  %v1753_v11 = vld [vmem:[%s2271_s1 + $0x1d8] sm:$0xff]  ;;  %v1752_v15 = vld [vmem:[%s2271_s1 + $0x1d0] sm:$0xff]  ;;  %v1735_v18 = vld [vmem:[%s2271_s1 + $0x148] sm:$0xff] }
  0x1a   :  { %935 = vmatpush.bf16.msra.mxu0 %v1695_v24  ;;  %v1751_v19 = vld [vmem:[%s2271_s1 + $0x1c8] sm:$0xff]  ;;  %v1742_v20 = vld [vmem:[%s2271_s1 + $0x180] sm:$0xff]  ;;  %v1208_v24 = vld [vmem:[%s2272_s0 + $0x10] sm:$0xf] }
  0x1b   :  { %954 = vmatpush.bf16.msra.mxu1 %v1703_v25  ;;  %v1726_v21 = vld [vmem:[%s2271_s1 + $0x100] sm:$0xff]  ;;  %v1781_v25 = vld [vmem:[%s2271_s1 + $0x2b8] sm:$0xff]  ;;  %v1218_v33 = vld [vmem:[%s2272_s0 + $0x48] sm:$0xf0] }
  0x1c   :  { %973 = vmatpush.bf16.msra.mxu2 %v1711_v26  ;;  %v1734_v22 = vld [vmem:[%s2271_s1 + $0x140] sm:$0xff]  ;;  %v1765_v26 = vld [vmem:[%s2271_s1 + $0x238] sm:$0xff]  ;;  %v1780_v37 = vld [vmem:[%s2271_s1 + $0x2b0] sm:$0xff] }
  0x1d   :  { %992 = vmatpush.bf16.msra.mxu3 %v1719_v27  ;;  %v1750_v23 = vld [vmem:[%s2271_s1 + $0x1c0] sm:$0xff]  ;;  %v1673_v32 = vld [vmem:[%s2272_s0 + $0x1c] sm:$0xf]  ;;  %v1266_v61 = vld [vmem:[%s2272_s0 + $0xa8] sm:$0xf0] }
  0x1e   :  { %936 = vmatpush.bf16.msra.mxu0 %v1694_v28  ;;  %v1678_v27 = vld [vmem:[%s2272_s0 + $0x3c] sm:$0xf0]  ;;  %v1672_v28 = vld [vmem:[%s2272_s0 + $0x14] sm:$0xf]  ;;  %v1773_v34 = vld [vmem:[%s2271_s1 + $0x278] sm:$0xff] }
  0x1f   :  { %955 = vmatpush.bf16.msra.mxu1 %v1702_v29  ;;  %v1210_v29 = vld [vmem:[%s2272_s0 + $0x40] sm:$0xf0]  ;;  %v1789_v35 = vld [vmem:[%s2271_s1 + $0x2f8] sm:$0xff]  ;;  %v1209_v36 = vor.u32 %v1678_v27, %v1208_v24  ;;  %v1776_v1 = vld [vmem:[%s2271_s1 + $0x290] sm:$0xff] }
  0x20   :  { %974 = vmatpush.bf16.msra.mxu2 %v1710_v30  ;;  %v1216_v30 = vld [vmem:[%s2272_s0 + $0x18] sm:$0xf]  ;;  %v1213_v38 = vor.u32 %v1672_v28, %v1210_v29  ;;  %v1272_v28 = vld [vmem:[%s2272_s0 + $0x80] sm:$0xf]  ;;  %v1692_v29 = vld [vmem:[%s2272_s0 + $0xac] sm:$0xf0] }
  0x21   :  { %993 = vmatpush.bf16.msra.mxu3 %v1718_v31  ;;  %937 = vmatmul.bf16.vlgmr.msra.gmra.mxu0 %v1193_v42  ;;  %v1679_v31 = vld [vmem:[%s2272_s0 + $0x44] sm:$0xf0]  ;;  %v1772_v42 = vld [vmem:[%s2271_s1 + $0x270] sm:$0xff]  ;;  %v1761_v60 = vld [vmem:[%s2271_s1 + $0x218] sm:$0xff] }
  0x22   :  { %1005 = vmatpush.bf16.msrb.mxu0 %v1733_v41  ;;  %956 = vmatmul.bf16.vlgmr.msra.gmra.mxu1 %v1197_v43  ;;  %v1217_v39 = vor.u32 %v1679_v31, %v1216_v30  ;;  %v1764_v41 = vld [vmem:[%s2271_s1 + $0x230] sm:$0xff]  ;;  %v1769_v62 = vld [vmem:[%s2271_s1 + $0x258] sm:$0xff]  ;;  %v1686_v30 = vld [vmem:[%s2272_s0 + $0x84] sm:$0xf] }
  0x23   :  { %975 = vmatmul.bf16.vlgmr.msra.gmra.mxu2 %v1201_v44  ;;  %1024 = vmatpush.bf16.msrb.mxu1 %v1741_v46  ;;  %v1788_v43 = vld [vmem:[%s2271_s1 + $0x2f0] sm:$0xff]  ;;  %v1779_v44 = vld [vmem:[%s2271_s1 + $0x2a8] sm:$0xff]  ;;  %v1785_v63 = vld [vmem:[%s2271_s1 + $0x2d8] sm:$0xff] }
  0x24   :  { %1043 = vmatpush.bf16.msrb.mxu2 %v1749_v40  ;;  %994 = vmatmul.bf16.vlgmr.msra.gmra.mxu3 %v1205_v45  ;;  %v1221_v40 = vor.u32 %v1673_v32, %v1218_v33  ;;  %v1763_v45 = vld [vmem:[%s2271_s1 + $0x228] sm:$0xff]  ;;  %v1274_v31 = vld [vmem:[%s2272_s0 + $0xb0] sm:$0xf0]  ;;  %v1693_v33 = vld [vmem:[%s2272_s0 + $0xb4] sm:$0xf0] }
  0x25   :  { %1062 = vmatpush.bf16.msrb.mxu3 %v1757_v47  ;;  %v1771_v46 = vld [vmem:[%s2271_s1 + $0x268] sm:$0xff] }
  0x26   :  { %1006 = vmatpush.bf16.msrb.mxu0 %v1732_v49  ;;  %v1787_v47 = vld [vmem:[%s2271_s1 + $0x2e8] sm:$0xff]  ;;  %v1762_v49 = vld [vmem:[%s2271_s1 + $0x220] sm:$0xff] }
  0x27   :  { %1025 = vmatpush.bf16.msrb.mxu1 %v1740_v50  ;;  %v1770_v50 = vld [vmem:[%s2271_s1 + $0x260] sm:$0xff]  ;;  %v1280_v32 = vld [vmem:[%s2272_s0 + $0x88] sm:$0xf] }
  0x28   :  { %1044 = vmatpush.bf16.msrb.mxu2 %v1748_v48  ;;  %v1778_v48 = vld [vmem:[%s2271_s1 + $0x2a0] sm:$0xff] }
  0x29   :  { %1063 = vmatpush.bf16.msrb.mxu3 %v1756_v51  ;;  %v1786_v51 = vld [vmem:[%s2271_s1 + $0x2e0] sm:$0xff] }
  0x2a   :  { %1007 = vmatpush.bf16.msrb.mxu0 %v1731_v53  ;;  %v1690_v53 = vld [vmem:[%s2272_s0 + $0x9c] sm:$0xf0] }
  0x2b   :  { %1026 = vmatpush.bf16.msrb.mxu1 %v1739_v54  ;;  %v1777_v54 = vld [vmem:[%s2271_s1 + $0x298] sm:$0xff] }
  0x2c   :  { %1045 = vmatpush.bf16.msrb.mxu2 %v1747_v52  ;;  %v1256_v52 = vld [vmem:[%s2272_s0 + $0x70] sm:$0xf] }
  0x2d   :  { %1064 = vmatpush.bf16.msrb.mxu3 %v1755_v55  ;;  %v1684_v55 = vld [vmem:[%s2272_s0 + $0x74] sm:$0xf]  ;;  %v1257_v0 = vor.u32 %v1690_v53, %v1256_v52 }
  0x2e   :  { %1008 = vmatpush.bf16.msrb.mxu0 %v1730_v57  ;;  %v1264_v57 = vld [vmem:[%s2272_s0 + $0x78] sm:$0xf] }
  0x2f   :  { %1027 = vmatpush.bf16.msrb.mxu1 %v1738_v58  ;;  %v1691_v58 = vld [vmem:[%s2272_s0 + $0xa4] sm:$0xf0] }
  0x30   :  { %1046 = vmatpush.bf16.msrb.mxu2 %v1746_v56  ;;  %v1258_v56 = vld [vmem:[%s2272_s0 + $0xa0] sm:$0xf0]  ;;  %v1265_v3 = vor.u32 %v1691_v58, %v1264_v57 }
  0x31   :  { %1065 = vmatpush.bf16.msrb.mxu3 %v1754_v59  ;;  %942 = vmatmul.bf16.gmra.mxu0 %v1241_v6  ;;  %v1685_v59 = vld [vmem:[%s2272_s0 + $0x7c] sm:$0xf]  ;;  %v1261_v2 = vor.u32 %v1684_v55, %v1258_v56  ;;  %v1768_v6 = vld [vmem:[%s2271_s1 + $0x250] sm:$0xff] }
  0x32   :  { %1009 = vmatpush.bf16.msrb.mxu0 %v1729_v5  ;;  %961 = vmatmul.bf16.gmra.mxu1 %v1245_v7  ;;  %v1760_v5 = vld [vmem:[%s2271_s1 + $0x210] sm:$0xff] }
  0x33   :  { %980 = vmatmul.bf16.gmra.mxu2 %v1249_v8  ;;  %1028 = vmatpush.bf16.msrb.mxu1 %v1737_v10  ;;  %v1784_v7 = vld [vmem:[%s2271_s1 + $0x2d0] sm:$0xff]  ;;  %v1775_v8 = vld [vmem:[%s2271_s1 + $0x288] sm:$0xff] }
  0x34   :  { %1047 = vmatpush.bf16.msrb.mxu2 %v1745_v4  ;;  %999 = vmatmul.bf16.gmra.mxu3 %v1253_v9  ;;  %v1269_v4 = vor.u32 %v1685_v59, %v1266_v61  ;;  %v1759_v9 = vld [vmem:[%s2271_s1 + $0x208] sm:$0xff] }
  0x35   :  { %1066 = vmatpush.bf16.msrb.mxu3 %v1753_v11  ;;  %v1767_v10 = vld [vmem:[%s2271_s1 + $0x248] sm:$0xff] }
  0x36   :  { %1010 = vmatpush.bf16.msrb.mxu0 %v1728_v13  ;;  %v1783_v11 = vld [vmem:[%s2271_s1 + $0x2c8] sm:$0xff]  ;;  %v1758_v13 = vld [vmem:[%s2271_s1 + $0x200] sm:$0xff] }
  0x37   :  { %1029 = vmatpush.bf16.msrb.mxu1 %v1736_v14  ;;  %v1766_v14 = vld [vmem:[%s2271_s1 + $0x240] sm:$0xff] }
  0x38   :  { %1048 = vmatpush.bf16.msrb.mxu2 %v1744_v12  ;;  %v1774_v12 = vld [vmem:[%s2271_s1 + $0x280] sm:$0xff] }
  0x39   :  { %1067 = vmatpush.bf16.msrb.mxu3 %v1752_v15  ;;  %v1782_v15 = vld [vmem:[%s2271_s1 + $0x2c0] sm:$0xff] }
  0x3a   :  { %1011 = vmatpush.bf16.msrb.mxu0 %v1727_v17  ;;  %v1680_v17 = vld [vmem:[%s2272_s0 + $0x4c] sm:$0xf0] }
  0x3b   :  { %1030 = vmatpush.bf16.msrb.mxu1 %v1735_v18  ;;  %v1674_v18 = vld [vmem:[%s2272_s0 + $0x24] sm:$0xf] }
  0x3c   :  { %1049 = vmatpush.bf16.msrb.mxu2 %v1743_v16  ;;  %v1224_v16 = vld [vmem:[%s2272_s0 + $0x20] sm:$0xf] }
  0x3d   :  { %1068 = vmatpush.bf16.msrb.mxu3 %v1751_v19  ;;  %v1226_v19 = vld [vmem:[%s2272_s0 + $0x50] sm:$0xf0]  ;;  %v1225_v24 = vor.u32 %v1680_v17, %v1224_v16 }
  0x3e   :  { %1012 = vmatpush.bf16.msrb.mxu0 %v1726_v21  ;;  %v1681_v21 = vld [vmem:[%s2272_s0 + $0x54] sm:$0xf0] }
  0x3f   :  { %1031 = vmatpush.bf16.msrb.mxu1 %v1734_v22  ;;  %v1675_v22 = vld [vmem:[%s2272_s0 + $0x2c] sm:$0xf] }
  0x40   :  { %1050 = vmatpush.bf16.msrb.mxu2 %v1742_v20  ;;  %v1232_v20 = vld [vmem:[%s2272_s0 + $0x28] sm:$0xf] }
  0x41   :  { %1069 = vmatpush.bf16.msrb.mxu3 %v1750_v23  ;;  %1013 = vmatmul.bf16.vlgmr.msrb.gmra.mxu0 %v1209_v36  ;;  %v1234_v23 = vld [vmem:[%s2272_s0 + $0x58] sm:$0xf0]  ;;  %v1273_v36 = vor.u32 %v1692_v29, %v1272_v28 }
  0x42   :  { %1081 = vmatpush.bf16.msra.mxu0 %v1765_v26  ;;  %1032 = vmatmul.bf16.vlgmr.msrb.gmra.mxu1 %v1213_v38  ;;  %v1233_v26 = vor.u32 %v1681_v21, %v1232_v20  ;;  %v1237_v27 = vor.u32 %v1675_v22, %v1234_v23  ;;  %v1281_v38 = vor.u32 %v1693_v33, %v1280_v32 }
  0x43   :  { %1100 = vmatpush.bf16.msra.mxu1 %v1773_v34  ;;  %1051 = vmatmul.bf16.vlgmr.msrb.gmra.mxu2 %v1217_v39  ;;  %v1687_v34 = vld [vmem:[%s2272_s0 + $0x8c] sm:$0xf] }
  0x44   :  { %1119 = vmatpush.bf16.msra.mxu2 %v1781_v25  ;;  %1070 = vmatmul.bf16.vlgmr.msrb.gmra.mxu3 %v1221_v40  ;;  %v1229_v25 = vor.u32 %v1674_v18, %v1226_v19 }
  0x45   :  { %1138 = vmatpush.bf16.msra.mxu3 %v1789_v35  ;;  %v1282_v35 = vld [vmem:[%s2272_s0 + $0xb8] sm:$0xf0] }
  0x46   :  { %1082 = vmatpush.bf16.msra.mxu0 %v1764_v41  ;;  %v1285_v39 = vor.u32 %v1687_v34, %v1282_v35  ;;  %v1790_v35 = vld [vmem:[%s2273_s2] ss:$0 sm:$0xff] }
  0x47   :  { %1101 = vmatpush.bf16.msra.mxu1 %v1772_v42 }
  0x48   :  { %1120 = vmatpush.bf16.msra.mxu2 %v1780_v37  ;;  %v1277_v37 = vor.u32 %v1686_v30, %v1274_v31 }
  0x49   :  { %1139 = vmatpush.bf16.msra.mxu3 %v1788_v43 }
  0x4a   :  { %1083 = vmatpush.bf16.msra.mxu0 %v1763_v45 }
  0x4b   :  { %1102 = vmatpush.bf16.msra.mxu1 %v1771_v46 }
  0x4c   :  { %1121 = vmatpush.bf16.msra.mxu2 %v1779_v44 }
  0x4d   :  { %1140 = vmatpush.bf16.msra.mxu3 %v1787_v47 }
  0x4e   :  { %1084 = vmatpush.bf16.msra.mxu0 %v1762_v49 }
  0x4f   :  { %1103 = vmatpush.bf16.msra.mxu1 %v1770_v50 }
  0x50   :  { %1122 = vmatpush.bf16.msra.mxu2 %v1778_v48 }
  0x51   :  { %1141 = vmatpush.bf16.msra.mxu3 %v1786_v51  ;;  %1018 = vmatmul.bf16.gmra.mxu0 %v1257_v0 }
  0x52   :  { %1085 = vmatpush.bf16.msra.mxu0 %v1761_v60  ;;  %1037 = vmatmul.bf16.gmra.mxu1 %v1261_v2 }
  0x53   :  { %1104 = vmatpush.bf16.msra.mxu1 %v1769_v62  ;;  %1056 = vmatmul.bf16.gmra.mxu2 %v1265_v3 }
  0x54   :  { %1123 = vmatpush.bf16.msra.mxu2 %v1777_v54  ;;  %1075 = vmatmul.bf16.gmra.mxu3 %v1269_v4 }
  0x55   :  { %1142 = vmatpush.bf16.msra.mxu3 %v1785_v63 }
  0x56   :  { %1086 = vmatpush.bf16.msra.mxu0 %v1760_v5 }
  0x57   :  { %1105 = vmatpush.bf16.msra.mxu1 %v1768_v6 }
  0x58   :  { %1124 = vmatpush.bf16.msra.mxu2 %v1776_v1 }
  0x59   :  { %1143 = vmatpush.bf16.msra.mxu3 %v1784_v7 }
  0x5a   :  { %1087 = vmatpush.bf16.msra.mxu0 %v1759_v9 }
  0x5b   :  { %1106 = vmatpush.bf16.msra.mxu1 %v1767_v10 }
  0x5c   :  { %1125 = vmatpush.bf16.msra.mxu2 %v1775_v8 }
  0x5d   :  { %1144 = vmatpush.bf16.msra.mxu3 %v1783_v11 }
  0x5e   :  { %1088 = vmatpush.bf16.msra.mxu0 %v1758_v13 }
  0x5f   :  { %1107 = vmatpush.bf16.msra.mxu1 %v1766_v14 }
  0x60   :  { %1126 = vmatpush.bf16.msra.mxu2 %v1774_v12 }
  0x61   :  { %1145 = vmatpush.bf16.msra.mxu3 %v1782_v15  ;;  %1089 = vmatmul.bf16.vlgmr.msra.gmra.mxu0 %v1225_v24 }
  0x62   :  { %1108 = vmatmul.bf16.vlgmr.msra.gmra.mxu1 %v1229_v25 }
  0x63   :  { %1127 = vmatmul.bf16.vlgmr.msra.gmra.mxu2 %v1233_v26 }
  0x64   :  { %1146 = vmatmul.bf16.vlgmr.msra.gmra.mxu3 %v1237_v27 }
  0x71   :  { %1094 = vmatmul.bf16.gmra.mxu0 %v1273_v36 }
  0x72   :  { %1113 = vmatmul.bf16.gmra.mxu1 %v1277_v37 }
  0x73   :  { %1132 = vmatmul.bf16.gmra.mxu2 %v1281_v38 }
  0x74   :  { %1151 = vmatmul.bf16.gmra.mxu3 %v1285_v39 }
  0x9e   :  { %v938_v40 = vpop.f32.mrf.mxu0 }
  0x9f   :  { %v957_v41 = vpop.f32.mrf.mxu1 }
  0xa0   :  { %v958_v62 = vadd.f32 %v957_v41, %v938_v40  ;;  %v1791_v40 = vld [vmem:[%s2274_s3] ss:$0 sm:$0xff] }
  0xa6   :  { %v976_v42 = vpop.f32.mrf.mxu2  ;;  %v940_v44 = vpop.f32.mrf.mxu0 }
  0xa7   :  { %v995_v43 = vpop.f32.mrf.mxu3  ;;  %v959_v45 = vpop.f32.mrf.mxu1  ;;  %v977_v0 = vadd.f32 %v976_v42, %v958_v62 }
  0xa8   :  { %v960_v5 = vadd.f32 %v959_v45, %v940_v44 }
  0xa9   :  { %v996_v4 = vadd.f32 %v995_v43, %v977_v0 }
  0xae   :  { %v978_v46 = vpop.f32.mrf.mxu2  ;;  %v943_v48 = vpop.f32.mrf.mxu0 }
  0xaf   :  { %v997_v47 = vpop.f32.mrf.mxu3  ;;  %v962_v49 = vpop.f32.mrf.mxu1  ;;  %v979_v8 = vadd.f32 %v978_v46, %v960_v5 }
  0xb0   :  { %v963_v15 = vadd.f32 %v962_v49, %v943_v48 }
  0xb1   :  { %v998_v13 = vadd.f32 %v997_v47, %v979_v8 }
  0xb6   :  { %v981_v50 = vpop.f32.mrf.mxu2  ;;  %v945_v52 = vpop.f32.mrf.mxu0 }
  0xb7   :  { %v1000_v51 = vpop.f32.mrf.mxu3  ;;  %v964_v53 = vpop.f32.mrf.mxu1  ;;  %v982_v18 = vadd.f32 %v981_v50, %v963_v15 }
  0xb8   :  { %v965_v27 = vadd.f32 %v964_v53, %v945_v52 }
  0xb9   :  { %v1001_v25 = vadd.f32 %v1000_v51, %v982_v18 }
  0xbe   :  { %v983_v54 = vpop.f32.mrf.mxu2  ;;  %v1014_v56 = vpop.f32.mrf.mxu0 }
  0xbf   :  { %v1002_v55 = vpop.f32.mrf.mxu3  ;;  %v1033_v57 = vpop.f32.mrf.mxu1  ;;  %v1015_v6 = vadd.f32 %v1014_v56, %v996_v4  ;;  %v984_v31 = vadd.f32 %v983_v54, %v965_v27 }
  0xc1   :  { %v1034_v12 = vadd.f32 %v1033_v57, %v1015_v6  ;;  %v1003_v42 = vadd.f32 %v1002_v55, %v984_v31 }
  0xc6   :  { %v1052_v58 = vpop.f32.mrf.mxu2  ;;  %v1016_v60 = vpop.f32.mrf.mxu0 }
  0xc7   :  { %v1071_v59 = vpop.f32.mrf.mxu3  ;;  %v1035_v61 = vpop.f32.mrf.mxu1  ;;  %v1053_v14 = vadd.f32 %v1052_v58, %v1034_v12  ;;  %v1017_v16 = vadd.f32 %v1016_v60, %v998_v13 }
  0xc9   :  { %v1072_v19 = vadd.f32 %v1071_v59, %v1053_v14  ;;  %v1036_v23 = vadd.f32 %v1035_v61, %v1017_v16 }
  0xce   :  { %v1054_v63 = vpop.f32.mrf.mxu2  ;;  %v1019_v2 = vpop.f32.mrf.mxu0 }
  0xcf   :  { %v1073_v1 = vpop.f32.mrf.mxu3  ;;  %v1038_v3 = vpop.f32.mrf.mxu1  ;;  %v1055_v26 = vadd.f32 %v1054_v63, %v1036_v23  ;;  %v1020_v28 = vadd.f32 %v1019_v2, %v1001_v25 }
  0xd1   :  { %v1074_v32 = vadd.f32 %v1073_v1, %v1055_v26  ;;  %v1039_v38 = vadd.f32 %v1038_v3, %v1020_v28 }
  0xd6   :  { %v1057_v7 = vpop.f32.mrf.mxu2  ;;  %v1021_v10 = vpop.f32.mrf.mxu0 }
  0xd7   :  { %v1076_v9 = vpop.f32.mrf.mxu3  ;;  %v1040_v11 = vpop.f32.mrf.mxu1  ;;  %v1058_v43 = vadd.f32 %v1057_v7, %v1039_v38  ;;  %v1022_v45 = vadd.f32 %v1021_v10, %v1003_v42 }
  0xd9   :  { %v1077_v49 = vadd.f32 %v1076_v9, %v1058_v43  ;;  %v1041_v54 = vadd.f32 %v1040_v11, %v1022_v45 }
  0xde   :  { %v1059_v17 = vpop.f32.mrf.mxu2  ;;  %v1090_v21 = vpop.f32.mrf.mxu0 }
  0xdf   :  { %v1078_v20 = vpop.f32.mrf.mxu3  ;;  %v1109_v22 = vpop.f32.mrf.mxu1  ;;  %v1091_v24 = vadd.f32 %v1090_v21, %v1072_v19  ;;  %v1060_v60 = vadd.f32 %v1059_v17, %v1041_v54 }
  0xe1   :  { %v1110_v29 = vadd.f32 %v1109_v22, %v1091_v24  ;;  %v1079_v0 = vadd.f32 %v1078_v20, %v1060_v60 }
  0xe6   :  { %v1128_v30 = vpop.f32.mrf.mxu2  ;;  %v1092_v36 = vpop.f32.mrf.mxu0 }
  0xe7   :  { %v1129_v33 = vadd.f32 %v1128_v30, %v1110_v29  ;;  %v1147_v34 = vpop.f32.mrf.mxu3  ;;  %v1111_v37 = vpop.f32.mrf.mxu1  ;;  %v1093_v41 = vadd.f32 %v1092_v36, %v1074_v32 }
  0xe9   :  { %v1148_v39 = vadd.f32 %v1147_v34, %v1129_v33  ;;  %v1112_v47 = vadd.f32 %v1111_v37, %v1093_v41 }
  0xeb   :  { %v1161_v44 = vmul.f32 %v1790_v35, %v1148_v39 }
  0xed   :  { %v1169_v46 = vadd.f32 %v1791_v40, %v1161_v44 }
  0xee   :  { %v1130_v48 = vpop.f32.mrf.mxu2  ;;  %v1095_v53 = vpop.f32.mrf.mxu0 }
  0xef   :  { %v1173_v50 = vmax.f32 %v1169_v46, 0.0  ;;  %v1131_v51 = vadd.f32 %v1130_v48, %v1112_v47  ;;  %v1149_v52 = vpop.f32.mrf.mxu3  ;;  %v1096_v58 = vadd.f32 %v1095_v53, %v1077_v49  ;;  %v1114_v59 = vpop.f32.mrf.mxu1 }
  0xf1   :  { %v1177_v56 = vpack.c.bf16 %v1173_v50, %v1173_v50  ;;  %v1150_v57 = vadd.f32 %v1149_v52, %v1131_v51  ;;  %v1115_v62 = vadd.f32 %v1114_v59, %v1096_v58 }
  0xf3   :  { %1182 = vst.msk [vmem:[%s2275_s4] sm:$0xf] %vm1181_vm0, %v1177_v56  ;;  %v1162_v55 = vmul.f32 %v1790_v35, %v1150_v57 }
  0xf5   :  { %v1170_v61 = vadd.f32 %v1791_v40, %v1162_v55 }
  0xf6   :  { %v1133_v63 = vpop.f32.mrf.mxu2  ;;  %v1097_v4 = vpop.f32.mrf.mxu0 }
  0xf7   :  { %v1174_v1 = vmax.f32 %v1170_v61, 0.0  ;;  %v1134_v2 = vadd.f32 %v1133_v63, %v1115_v62  ;;  %v1152_v3 = vpop.f32.mrf.mxu3  ;;  %v1098_v7 = vadd.f32 %v1097_v4, %v1079_v0  ;;  %v1116_v9 = vpop.f32.mrf.mxu1 }
  0xf9   :  { %v1178_v5 = vpack.c.bf16 %v1174_v1, %v1174_v1  ;;  %v1153_v6 = vadd.f32 %v1152_v3, %v1134_v2  ;;  %v1117_v11 = vadd.f32 %v1116_v9, %v1098_v7 }
  0xfb   :  { %1183 = vst.msk [vmem:[%s2275_s4 + $0x4] sm:$0xf] %vm1181_vm0, %v1178_v5  ;;  %v1163_v8 = vmul.f32 %v1790_v35, %v1153_v6 }
  0xfd   :  { %v1171_v10 = vadd.f32 %v1791_v40, %v1163_v8 }
  0xfe   :  { %v1135_v12 = vpop.f32.mrf.mxu2 }
  0xff   :  { %v1175_v13 = vmax.f32 %v1171_v10, 0.0  ;;  %v1136_v14 = vadd.f32 %v1135_v12, %v1117_v11  ;;  %v1154_v15 = vpop.f32.mrf.mxu3 }
 0x101   :  { %v1179_v16 = vpack.c.bf16 %v1175_v13, %v1175_v13  ;;  %v1155_v17 = vadd.f32 %v1154_v15, %v1136_v14 }
 0x103   :  { %1184 = vst.msk [vmem:[%s2275_s4 + $0x8] sm:$0xf] %vm1181_vm0, %v1179_v16  ;;  %v1164_v18 = vmul.f32 %v1790_v35, %v1155_v17 }
 0x105   :  { %v1172_v19 = vadd.f32 %v1791_v40, %v1164_v18 }
 0x107   :  { %v1176_v20 = vmax.f32 %v1172_v19, 0.0 }
 0x109   :  { %v1180_v21 = vpack.c.bf16 %v1176_v20, %v1176_v20 }
 0x10b   :  { %1185 = vst.msk [vmem:[%s2275_s4 + $0xc] sm:$0xf] %vm1181_vm0, %v1180_v21 }

// kernel: forward.10
= control target key start
LH: loop header
LB: loop body
LE: loop exit
PB: predicated region body
PF: predicated region fallthrough
CT: control target
= control target key end

     0   :  { %vm136_vm0 = vcmask 523264   ;;  %s415_s1 = inlined_call_operand.vmem [shape: bf16[192,128], index: 1, kind: input, shape index: {}]   ;;  %s416_s0 = inlined_call_operand.vmem [shape: bf16[32,192], index: 0, kind: input, shape index: {}]   ;;  %s417_s2 = inlined_call_operand.vmem [shape: f32[1,128], index: 2, kind: input, shape index: {}]   ;;  %s418_s3 = inlined_call_operand.vmem [shape: f32[1,128], index: 3, kind: input, shape index: {}]   ;;  %s419_s4 = inlined_call_operand.vmem [shape: bf16[32,128], index: 4, kind: output, shape index: {}]  }
   0x1   :  { %v290_v0 = vld [vmem:[%s415_s1 + $0x38] sm:$0xff]  ;;  %v289_v2 = vld [vmem:[%s415_s1 + $0x30] sm:$0xff]  ;;  %v288_v4 = vld [vmem:[%s415_s1 + $0x28] sm:$0xff] }
   0x2   :  { %v294_v1 = vld [vmem:[%s415_s1 + $0x58] sm:$0xff]  ;;  %143 = vmatpush.bf16.msra.mxu0 %v290_v0  ;;  %306 = vmatpush.bf16.msra.mxu2 %v290_v0  ;;  %v293_v3 = vld [vmem:[%s415_s1 + $0x50] sm:$0xff]  ;;  %v292_v5 = vld [vmem:[%s415_s1 + $0x48] sm:$0xff] }
   0x3   :  { %166 = vmatpush.bf16.msra.mxu1 %v294_v1  ;;  %v287_v6 = vld [vmem:[%s415_s1 + $0x20] sm:$0xff]  ;;  %v217_v9 = vld [vmem:[%s416_s0 + $0x8] sm:$0xf0]  ;;  %v286_v11 = vld [vmem:[%s415_s1 + $0x18] sm:$0xff] }
   0x4   :  { %v291_v7 = vld [vmem:[%s415_s1 + $0x40] sm:$0xff]  ;;  %v285_v12 = vld [vmem:[%s415_s1 + $0x10] sm:$0xff]  ;;  %v284_v13 = vld [vmem:[%s415_s1 + $0x8] sm:$0xff] }
   0x5   :  { %v279_v8 = vld [vmem:[%s416_s0 + $0x4] sm:$0xf]  ;;  %v215_v15 = vld [vmem:[%s416_s0] sm:$0xf]  ;;  %v280_v16 = vld [vmem:[%s416_s0 + $0x4] sm:$0xf0] }
   0x6   :  { %144 = vmatpush.bf16.msra.mxu0 %v289_v2  ;;  %307 = vmatpush.bf16.msra.mxu2 %v289_v2  ;;  %v220_v10 = vor.u32 %v279_v8, %v217_v9  ;;  %v283_v14 = vld [vmem:[%s415_s1] sm:$0xff]  ;;  %v223_v17 = vld [vmem:[%s416_s0 + $0x10] sm:$0xf]  ;;  %v282_v18 = vld [vmem:[%s416_s0 + $0x14] sm:$0xf0]  ;;  %v216_v21 = vor.u32 %v280_v16, %v215_v15 }
   0x7   :  { %167 = vmatpush.bf16.msra.mxu1 %v293_v3  ;;  %v281_v19 = vld [vmem:[%s416_s0 + $0x14] sm:$0xf]  ;;  %v225_v20 = vld [vmem:[%s416_s0 + $0x18] sm:$0xf0]  ;;  %v224_v22 = vor.u32 %v282_v18, %v223_v17  ;;  %v314_v28 = vld [vmem:[%s417_s2] ss:$0 sm:$0xff] }
   0x8   :  { %v228_v23 = vor.u32 %v281_v19, %v225_v20  ;;  %v315_v31 = vld [vmem:[%s418_s3] ss:$0 sm:$0xff] }
   0xa   :  { %145 = vmatpush.bf16.msra.mxu0 %v288_v4  ;;  %308 = vmatpush.bf16.msra.mxu2 %v288_v4 }
   0xb   :  { %168 = vmatpush.bf16.msra.mxu1 %v292_v5 }
   0xe   :  { %146 = vmatpush.bf16.msra.mxu0 %v287_v6  ;;  %309 = vmatpush.bf16.msra.mxu2 %v287_v6 }
   0xf   :  { %169 = vmatpush.bf16.msra.mxu1 %v291_v7 }
  0x12   :  { %277 = vmatmul.msk.bf16.vlgmr.msra.gmra.mxu1 %vm136_vm0, %v220_v10  ;;  %147 = vmatpush.bf16.msra.mxu0 %v286_v11 }
  0x13   :  { %310 = vmatpush.bf16.msra.mxu2 %v286_v11 }
  0x16   :  { %148 = vmatpush.bf16.msra.mxu0 %v285_v12 }
  0x17   :  { %311 = vmatpush.bf16.msra.mxu2 %v285_v12 }
  0x1a   :  { %149 = vmatpush.bf16.msra.mxu0 %v284_v13 }
  0x1b   :  { %312 = vmatpush.bf16.msra.mxu2 %v284_v13 }
  0x1e   :  { %150 = vmatpush.bf16.msra.mxu0 %v283_v14 }
  0x1f   :  { %313 = vmatpush.bf16.msra.mxu2 %v283_v14 }
  0x21   :  { %151 = vmatmul.bf16.vlgmr.msra.gmra.mxu0 %v216_v21 }
  0x22   :  { %156 = vmatmul.bf16.vlgmr.msra.gmra.mxu2 %v224_v22  ;;  %278 = vmatmul.msk.bf16.gmra.mxu1 %vm136_vm0, %v228_v23 }
  0x8f   :  { %v171_v24 = vpop.f32.mrf.mxu1 }
  0x97   :  { %v173_v25 = vpop.f32.mrf.mxu1 }
  0x9e   :  { %v152_v26 = vpop.f32.mrf.mxu0 }
  0x9f   :  { %v172_v27 = vadd.f32 %v171_v24, %v152_v26  ;;  %v176_v29 = vpop.f32.mrf.mxu1 }
  0xa1   :  { %v185_v30 = vmul.f32 %v314_v28, %v172_v27 }
  0xa3   :  { %v193_v36 = vadd.f32 %v315_v31, %v185_v30 }
  0xa5   :  { %v157_v32 = vpop.f32.mrf.mxu2  ;;  %v197_v40 = vmax.f32 %v193_v36, 0.0 }
  0xa6   :  { %v154_v33 = vpop.f32.mrf.mxu0  ;;  %v177_v35 = vadd.f32 %v176_v29, %v157_v32 }
  0xa7   :  { %v174_v34 = vadd.f32 %v173_v25, %v154_v33  ;;  %v178_v42 = vpop.f32.mrf.mxu1 }
  0xa8   :  { %v187_v39 = vmul.f32 %v314_v28, %v177_v35 }
  0xa9   :  { %v186_v37 = vmul.f32 %v314_v28, %v174_v34 }
  0xaa   :  { %v195_v46 = vadd.f32 %v315_v31, %v187_v39 }
  0xab   :  { %v194_v38 = vadd.f32 %v315_v31, %v186_v37 }
  0xac   :  { %v199_v49 = vmax.f32 %v195_v46, 0.0 }
  0xad   :  { %v198_v41 = vmax.f32 %v194_v38, 0.0  ;;  %v159_v43 = vpop.f32.mrf.mxu2 }
  0xae   :  { %v179_v44 = vadd.f32 %v178_v42, %v159_v43 }
  0xaf   :  { %v298_v45 = vpack.c.bf16 %v198_v41, %v197_v40 }
  0xb0   :  { %v188_v47 = vmul.f32 %v314_v28, %v179_v44 }
  0xb1   :  { %299 = vst [vmem:[%s419_s4] sm:$0xff] %v298_v45  }
  0xb2   :  { %v196_v48 = vadd.f32 %v315_v31, %v188_v47 }
  0xb4   :  { %v200_v50 = vmax.f32 %v196_v48, 0.0 }
  0xb6   :  { %v303_v51 = vpack.c.bf16 %v200_v50, %v199_v49 }
  0xb8   :  { %305 = vst [vmem:[%s419_s4 + $0x8] sm:$0xff] %v303_v51  }

// kernel: forward.7
= control target key start
LH: loop header
LB: loop body
LE: loop exit
PB: predicated region body
PF: predicated region fallthrough
CT: control target
= control target key end

     0   :  { %vm290_vm0 = vcmask 785408   ;;  %vm820_vm1 = vcmask 191488   ;;  %s1696_s1 = inlined_call_operand.vmem [shape: bf16[96,24], index: 1, kind: input, shape index: {}]   ;;  %s1697_s2 = inlined_call_operand.vmem [shape: f32[1,24], index: 2, kind: input, shape index: {}]   ;;  %s1698_s3 = inlined_call_operand.vmem [shape: f32[1,24], index: 3, kind: input, shape index: {}]   ;;  %s1699_s0 = inlined_call_operand.vmem [shape: bf16[512,96], index: 0, kind: input, shape index: {}]   ;;  %s1700_s4 = inlined_call_operand.vmem [shape: bf16[512,24], index: 4, kind: output, shape index: {}]  }
   0x1   :  { %v1110_v0 = vld [vmem:[%s1696_s1 + $0x28] sm:$0xff]  ;;  %v1109_v1 = vld [vmem:[%s1696_s1 + $0x20] sm:$0xff]  ;;  %v1108_v2 = vld [vmem:[%s1696_s1 + $0x18] sm:$0xff] }
   0x2   :  { %389 = vmatpush.bf16.msra.mxu0 %v1110_v0  ;;  %1111 = vmatpush.bf16.msra.mxu1 %v1110_v0  ;;  %v1107_v3 = vld [vmem:[%s1696_s1 + $0x10] sm:$0xff]  ;;  %v1106_v4 = vld [vmem:[%s1696_s1 + $0x8] sm:$0xff]  ;;  %v1105_v5 = vld [vmem:[%s1696_s1] sm:$0xff] }
   0x3   :  { %1112 = vmatpush.bf16.msra.mxu2 %v1110_v0  ;;  %1113 = vmatpush.bf16.msra.mxu3 %v1110_v0  ;;  %v1073_v6 = vld [vmem:[%s1699_s0] sm:$0xff]  ;;  %v1074_v10 = vld [vmem:[%s1699_s0 + $0x8] sm:$0xff]  ;;  %v1075_v14 = vld [vmem:[%s1699_s0 + $0x10] sm:$0xff] }
   0x4   :  { %v1081_v7 = vld [vmem:[%s1699_s0 + $0x40] sm:$0xff]  ;;  %v1082_v11 = vld [vmem:[%s1699_s0 + $0x48] sm:$0xff]  ;;  %v1083_v15 = vld [vmem:[%s1699_s0 + $0x50] sm:$0xff] }
   0x5   :  { %v1089_v8 = vld [vmem:[%s1699_s0 + $0x80] sm:$0xff]  ;;  %v1090_v12 = vld [vmem:[%s1699_s0 + $0x88] sm:$0xff]  ;;  %v1091_v16 = vld [vmem:[%s1699_s0 + $0x90] sm:$0xff] }
   0x6   :  { %390 = vmatpush.bf16.msra.mxu0 %v1109_v1  ;;  %1114 = vmatpush.bf16.msra.mxu1 %v1109_v1  ;;  %v1097_v9 = vld [vmem:[%s1699_s0 + $0xc0] sm:$0xff]  ;;  %v1098_v13 = vld [vmem:[%s1699_s0 + $0xc8] sm:$0xff]  ;;  %v1099_v17 = vld [vmem:[%s1699_s0 + $0xd0] sm:$0xff] }
   0x7   :  { %1115 = vmatpush.bf16.msra.mxu2 %v1109_v1  ;;  %1116 = vmatpush.bf16.msra.mxu3 %v1109_v1  ;;  %v1076_v18 = vld [vmem:[%s1699_s0 + $0x18] sm:$0xff]  ;;  %v1077_v22 = vld [vmem:[%s1699_s0 + $0x20] sm:$0xff]  ;;  %v1078_v26 = vld [vmem:[%s1699_s0 + $0x28] sm:$0xff] }
   0x8   :  { %v1084_v19 = vld [vmem:[%s1699_s0 + $0x58] sm:$0xff]  ;;  %v1085_v23 = vld [vmem:[%s1699_s0 + $0x60] sm:$0xff]  ;;  %v1086_v27 = vld [vmem:[%s1699_s0 + $0x68] sm:$0xff] }
   0x9   :  { %v1092_v20 = vld [vmem:[%s1699_s0 + $0x98] sm:$0xff]  ;;  %v1093_v24 = vld [vmem:[%s1699_s0 + $0xa0] sm:$0xff]  ;;  %v1094_v28 = vld [vmem:[%s1699_s0 + $0xa8] sm:$0xff] }
   0xa   :  { %391 = vmatpush.bf16.msra.mxu0 %v1108_v2  ;;  %1117 = vmatpush.bf16.msra.mxu1 %v1108_v2  ;;  %v1100_v21 = vld [vmem:[%s1699_s0 + $0xd8] sm:$0xff]  ;;  %v1101_v25 = vld [vmem:[%s1699_s0 + $0xe0] sm:$0xff]  ;;  %v1102_v29 = vld [vmem:[%s1699_s0 + $0xe8] sm:$0xff] }
   0xb   :  { %1118 = vmatpush.bf16.msra.mxu2 %v1108_v2  ;;  %1119 = vmatpush.bf16.msra.mxu3 %v1108_v2  ;;  %v1079_v30 = vld [vmem:[%s1699_s0 + $0x30] sm:$0xff]  ;;  %v1080_v34 = vld [vmem:[%s1699_s0 + $0x38] sm:$0xff]  ;;  %v1305_v38 = vld [vmem:[%s1697_s2] ss:$0 sm:$0xff] }
   0xc   :  { %v1087_v31 = vld [vmem:[%s1699_s0 + $0x70] sm:$0xff]  ;;  %v1088_v35 = vld [vmem:[%s1699_s0 + $0x78] sm:$0xff]  ;;  %v1310_v39 = vld [vmem:[%s1698_s3] ss:$0 sm:$0xff] }
   0xd   :  { %v1095_v32 = vld [vmem:[%s1699_s0 + $0xb0] sm:$0xff]  ;;  %v1096_v36 = vld [vmem:[%s1699_s0 + $0xb8] sm:$0xff] }
   0xe   :  { %392 = vmatpush.bf16.msra.mxu0 %v1107_v3  ;;  %1120 = vmatpush.bf16.msra.mxu1 %v1107_v3  ;;  %v1103_v33 = vld [vmem:[%s1699_s0 + $0xf0] sm:$0xff]  ;;  %v1104_v37 = vld [vmem:[%s1699_s0 + $0xf8] sm:$0xff] }
   0xf   :  { %1121 = vmatpush.bf16.msra.mxu2 %v1107_v3  ;;  %1122 = vmatpush.bf16.msra.mxu3 %v1107_v3 }
  0x12   :  { %393 = vmatpush.bf16.msra.mxu0 %v1106_v4  ;;  %1123 = vmatpush.bf16.msra.mxu1 %v1106_v4 }
  0x13   :  { %1124 = vmatpush.bf16.msra.mxu2 %v1106_v4  ;;  %1125 = vmatpush.bf16.msra.mxu3 %v1106_v4 }
  0x16   :  { %394 = vmatpush.bf16.msra.mxu0 %v1105_v5  ;;  %1126 = vmatpush.bf16.msra.mxu1 %v1105_v5 }
  0x17   :  { %1127 = vmatpush.bf16.msra.mxu2 %v1105_v5  ;;  %1128 = vmatpush.bf16.msra.mxu3 %v1105_v5 }
  0x19   :  { %1041 = vmatmul.msk.bf16.vlgmr.msra.gmra.mxu0 %vm290_vm0, %v1073_v6  ;;  %1049 = vmatmul.msk.bf16.vlgmr.msra.gmra.mxu1 %vm290_vm0, %v1081_v7 }
  0x1a   :  { %1057 = vmatmul.msk.bf16.vlgmr.msra.gmra.mxu2 %vm290_vm0, %v1089_v8  ;;  %1065 = vmatmul.msk.bf16.vlgmr.msra.gmra.mxu3 %vm290_vm0, %v1097_v9 }
  0x29   :  { %1042 = vmatmul.msk.bf16.gmra.mxu0 %vm290_vm0, %v1074_v10  ;;  %1050 = vmatmul.msk.bf16.gmra.mxu1 %vm290_vm0, %v1082_v11 }
  0x2a   :  { %1058 = vmatmul.msk.bf16.gmra.mxu2 %vm290_vm0, %v1090_v12  ;;  %1066 = vmatmul.msk.bf16.gmra.mxu3 %vm290_vm0, %v1098_v13 }
  0x39   :  { %1043 = vmatmul.msk.bf16.gmra.mxu0 %vm290_vm0, %v1075_v14  ;;  %1051 = vmatmul.msk.bf16.gmra.mxu1 %vm290_vm0, %v1083_v15 }
  0x3a   :  { %1059 = vmatmul.msk.bf16.gmra.mxu2 %vm290_vm0, %v1091_v16  ;;  %1067 = vmatmul.msk.bf16.gmra.mxu3 %vm290_vm0, %v1099_v17 }
  0x49   :  { %1044 = vmatmul.msk.bf16.gmra.mxu0 %vm290_vm0, %v1076_v18  ;;  %1052 = vmatmul.msk.bf16.gmra.mxu1 %vm290_vm0, %v1084_v19 }
  0x4a   :  { %1060 = vmatmul.msk.bf16.gmra.mxu2 %vm290_vm0, %v1092_v20  ;;  %1068 = vmatmul.msk.bf16.gmra.mxu3 %vm290_vm0, %v1100_v21 }
  0x59   :  { %1045 = vmatmul.msk.bf16.gmra.mxu0 %vm290_vm0, %v1077_v22  ;;  %1053 = vmatmul.msk.bf16.gmra.mxu1 %vm290_vm0, %v1085_v23 }
  0x5a   :  { %1061 = vmatmul.msk.bf16.gmra.mxu2 %vm290_vm0, %v1093_v24  ;;  %1069 = vmatmul.msk.bf16.gmra.mxu3 %vm290_vm0, %v1101_v25 }
  0x69   :  { %1046 = vmatmul.msk.bf16.gmra.mxu0 %vm290_vm0, %v1078_v26  ;;  %1054 = vmatmul.msk.bf16.gmra.mxu1 %vm290_vm0, %v1086_v27 }
  0x6a   :  { %1062 = vmatmul.msk.bf16.gmra.mxu2 %vm290_vm0, %v1094_v28  ;;  %1070 = vmatmul.msk.bf16.gmra.mxu3 %vm290_vm0, %v1102_v29 }
  0x79   :  { %1047 = vmatmul.msk.bf16.gmra.mxu0 %vm290_vm0, %v1079_v30  ;;  %1055 = vmatmul.msk.bf16.gmra.mxu1 %vm290_vm0, %v1087_v31 }
  0x7a   :  { %1063 = vmatmul.msk.bf16.gmra.mxu2 %vm290_vm0, %v1095_v32  ;;  %1071 = vmatmul.msk.bf16.gmra.mxu3 %vm290_vm0, %v1103_v33 }
  0x89   :  { %1048 = vmatmul.msk.bf16.gmra.mxu0 %vm290_vm0, %v1080_v34  ;;  %1056 = vmatmul.msk.bf16.gmra.mxu1 %vm290_vm0, %v1088_v35 }
  0x8a   :  { %1064 = vmatmul.msk.bf16.gmra.mxu2 %vm290_vm0, %v1096_v36  ;;  %1072 = vmatmul.msk.bf16.gmra.mxu3 %vm290_vm0, %v1104_v37 }
  0x96   :  { %v396_v40 = vpop.f32.mrf.mxu0  ;;  %v436_v41 = vpop.f32.mrf.mxu1 }
  0x97   :  { %v560_v42 = vmul.f32 %v1305_v38, %v396_v40  ;;  %v576_v43 = vmul.f32 %v1305_v38, %v436_v41 }
  0x99   :  { %v628_v44 = vadd.f32 %v1310_v39, %v560_v42  ;;  %v644_v45 = vadd.f32 %v1310_v39, %v576_v43 }
  0x9b   :  { %v692_v46 = vmax.f32 %v628_v44, 0.0  ;;  %v708_v47 = vmax.f32 %v644_v45, 0.0 }
  0x9d   :  { %v756_v48 = vpack.c.bf16 %v692_v46, %v692_v46  ;;  %v772_v49 = vpack.c.bf16 %v708_v47, %v708_v47  ;;  %v476_v50 = vpop.f32.mrf.mxu2  ;;  %v516_v51 = vpop.f32.mrf.mxu3 }
  0x9e   :  { %v592_v52 = vmul.f32 %v1305_v38, %v476_v50  ;;  %v608_v53 = vmul.f32 %v1305_v38, %v516_v51  ;;  %v398_v54 = vpop.f32.mrf.mxu0  ;;  %v438_v55 = vpop.f32.mrf.mxu1 }
  0x9f   :  { %821 = vst.msk [vmem:[%s1700_s4] sm:$0xf] %vm820_vm1, %v756_v48  ;;  %v561_v56 = vmul.f32 %v1305_v38, %v398_v54  ;;  %v577_v57 = vmul.f32 %v1305_v38, %v438_v55 }
  0xa0   :  { %837 = vst.msk [vmem:[%s1700_s4 + $0x40] sm:$0xf] %vm820_vm1, %v772_v49  ;;  %v660_v58 = vadd.f32 %v1310_v39, %v592_v52  ;;  %v676_v59 = vadd.f32 %v1310_v39, %v608_v53 }
  0xa1   :  { %v629_v60 = vadd.f32 %v1310_v39, %v561_v56  ;;  %v645_v61 = vadd.f32 %v1310_v39, %v577_v57 }
  0xa2   :  { %v724_v62 = vmax.f32 %v660_v58, 0.0  ;;  %v740_v63 = vmax.f32 %v676_v59, 0.0 }
  0xa3   :  { %v693_v0 = vmax.f32 %v629_v60, 0.0  ;;  %v709_v1 = vmax.f32 %v645_v61, 0.0 }
  0xa4   :  { %v788_v2 = vpack.c.bf16 %v724_v62, %v724_v62  ;;  %v804_v3 = vpack.c.bf16 %v740_v63, %v740_v63 }
  0xa5   :  { %v757_v4 = vpack.c.bf16 %v693_v0, %v693_v0  ;;  %v773_v5 = vpack.c.bf16 %v709_v1, %v709_v1  ;;  %v478_v6 = vpop.f32.mrf.mxu2  ;;  %v518_v7 = vpop.f32.mrf.mxu3 }
  0xa6   :  { %853 = vst.msk [vmem:[%s1700_s4 + $0x80] sm:$0xf] %vm820_vm1, %v788_v2  ;;  %v593_v8 = vmul.f32 %v1305_v38, %v478_v6  ;;  %v609_v9 = vmul.f32 %v1305_v38, %v518_v7  ;;  %v401_v10 = vpop.f32.mrf.mxu0  ;;  %v441_v11 = vpop.f32.mrf.mxu1 }
  0xa7   :  { %869 = vst.msk [vmem:[%s1700_s4 + $0xc0] sm:$0xf] %vm820_vm1, %v804_v3  ;;  %v562_v12 = vmul.f32 %v1305_v38, %v401_v10  ;;  %v578_v13 = vmul.f32 %v1305_v38, %v441_v11 }
  0xa8   :  { %822 = vst.msk [vmem:[%s1700_s4 + $0x4] sm:$0xf] %vm820_vm1, %v757_v4  ;;  %v661_v14 = vadd.f32 %v1310_v39, %v593_v8  ;;  %v677_v15 = vadd.f32 %v1310_v39, %v609_v9 }
  0xa9   :  { %838 = vst.msk [vmem:[%s1700_s4 + $0x44] sm:$0xf] %vm820_vm1, %v773_v5  ;;  %v630_v16 = vadd.f32 %v1310_v39, %v562_v12  ;;  %v646_v17 = vadd.f32 %v1310_v39, %v578_v13 }
  0xaa   :  { %v725_v18 = vmax.f32 %v661_v14, 0.0  ;;  %v741_v19 = vmax.f32 %v677_v15, 0.0 }
  0xab   :  { %v694_v20 = vmax.f32 %v630_v16, 0.0  ;;  %v710_v21 = vmax.f32 %v646_v17, 0.0 }
  0xac   :  { %v789_v22 = vpack.c.bf16 %v725_v18, %v725_v18  ;;  %v805_v23 = vpack.c.bf16 %v741_v19, %v741_v19 }
  0xad   :  { %v758_v24 = vpack.c.bf16 %v694_v20, %v694_v20  ;;  %v774_v25 = vpack.c.bf16 %v710_v21, %v710_v21  ;;  %v481_v26 = vpop.f32.mrf.mxu2  ;;  %v521_v27 = vpop.f32.mrf.mxu3 }
  0xae   :  { %854 = vst.msk [vmem:[%s1700_s4 + $0x84] sm:$0xf] %vm820_vm1, %v789_v22  ;;  %v594_v28 = vmul.f32 %v1305_v38, %v481_v26  ;;  %v610_v29 = vmul.f32 %v1305_v38, %v521_v27  ;;  %v403_v30 = vpop.f32.mrf.mxu0  ;;  %v443_v31 = vpop.f32.mrf.mxu1 }
  0xaf   :  { %870 = vst.msk [vmem:[%s1700_s4 + $0xc4] sm:$0xf] %vm820_vm1, %v805_v23  ;;  %v563_v32 = vmul.f32 %v1305_v38, %v403_v30  ;;  %v579_v33 = vmul.f32 %v1305_v38, %v443_v31 }
  0xb0   :  { %823 = vst.msk [vmem:[%s1700_s4 + $0x8] sm:$0xf] %vm820_vm1, %v758_v24  ;;  %v662_v34 = vadd.f32 %v1310_v39, %v594_v28  ;;  %v678_v35 = vadd.f32 %v1310_v39, %v610_v29 }
  0xb1   :  { %839 = vst.msk [vmem:[%s1700_s4 + $0x48] sm:$0xf] %vm820_vm1, %v774_v25  ;;  %v631_v36 = vadd.f32 %v1310_v39, %v563_v32  ;;  %v647_v37 = vadd.f32 %v1310_v39, %v579_v33 }
  0xb2   :  { %v726_v40 = vmax.f32 %v662_v34, 0.0  ;;  %v742_v41 = vmax.f32 %v678_v35, 0.0 }
  0xb3   :  { %v695_v42 = vmax.f32 %v631_v36, 0.0  ;;  %v711_v43 = vmax.f32 %v647_v37, 0.0 }
  0xb4   :  { %v790_v44 = vpack.c.bf16 %v726_v40, %v726_v40  ;;  %v806_v45 = vpack.c.bf16 %v742_v41, %v742_v41 }
  0xb5   :  { %v759_v46 = vpack.c.bf16 %v695_v42, %v695_v42  ;;  %v775_v47 = vpack.c.bf16 %v711_v43, %v711_v43  ;;  %v483_v48 = vpop.f32.mrf.mxu2  ;;  %v523_v49 = vpop.f32.mrf.mxu3 }
  0xb6   :  { %855 = vst.msk [vmem:[%s1700_s4 + $0x88] sm:$0xf] %vm820_vm1, %v790_v44  ;;  %v595_v50 = vmul.f32 %v1305_v38, %v483_v48  ;;  %v611_v51 = vmul.f32 %v1305_v38, %v523_v49  ;;  %v406_v52 = vpop.f32.mrf.mxu0  ;;  %v446_v53 = vpop.f32.mrf.mxu1 }
  0xb7   :  { %871 = vst.msk [vmem:[%s1700_s4 + $0xc8] sm:$0xf] %vm820_vm1, %v806_v45  ;;  %v564_v54 = vmul.f32 %v1305_v38, %v406_v52  ;;  %v580_v55 = vmul.f32 %v1305_v38, %v446_v53 }
  0xb8   :  { %824 = vst.msk [vmem:[%s1700_s4 + $0xc] sm:$0xf] %vm820_vm1, %v759_v46  ;;  %v663_v56 = vadd.f32 %v1310_v39, %v595_v50  ;;  %v679_v57 = vadd.f32 %v1310_v39, %v611_v51 }
  0xb9   :  { %840 = vst.msk [vmem:[%s1700_s4 + $0x4c] sm:$0xf] %vm820_vm1, %v775_v47  ;;  %v632_v58 = vadd.f32 %v1310_v39, %v564_v54  ;;  %v648_v59 = vadd.f32 %v1310_v39, %v580_v55 }
  0xba   :  { %v727_v60 = vmax.f32 %v663_v56, 0.0  ;;  %v743_v61 = vmax.f32 %v679_v57, 0.0 }
  0xbb   :  { %v696_v62 = vmax.f32 %v632_v58, 0.0  ;;  %v712_v63 = vmax.f32 %v648_v59, 0.0 }
  0xbc   :  { %v791_v0 = vpack.c.bf16 %v727_v60, %v727_v60  ;;  %v807_v1 = vpack.c.bf16 %v743_v61, %v743_v61 }
  0xbd   :  { %v760_v2 = vpack.c.bf16 %v696_v62, %v696_v62  ;;  %v776_v3 = vpack.c.bf16 %v712_v63, %v712_v63  ;;  %v486_v4 = vpop.f32.mrf.mxu2  ;;  %v526_v5 = vpop.f32.mrf.mxu3 }
  0xbe   :  { %856 = vst.msk [vmem:[%s1700_s4 + $0x8c] sm:$0xf] %vm820_vm1, %v791_v0  ;;  %v596_v6 = vmul.f32 %v1305_v38, %v486_v4  ;;  %v612_v7 = vmul.f32 %v1305_v38, %v526_v5  ;;  %v408_v8 = vpop.f32.mrf.mxu0  ;;  %v448_v9 = vpop.f32.mrf.mxu1 }
  0xbf   :  { %872 = vst.msk [vmem:[%s1700_s4 + $0xcc] sm:$0xf] %vm820_vm1, %v807_v1  ;;  %v565_v10 = vmul.f32 %v1305_v38, %v408_v8  ;;  %v581_v11 = vmul.f32 %v1305_v38, %v448_v9 }
  0xc0   :  { %825 = vst.msk [vmem:[%s1700_s4 + $0x10] sm:$0xf] %vm820_vm1, %v760_v2  ;;  %v664_v12 = vadd.f32 %v1310_v39, %v596_v6  ;;  %v680_v13 = vadd.f32 %v1310_v39, %v612_v7 }
  0xc1   :  { %841 = vst.msk [vmem:[%s1700_s4 + $0x50] sm:$0xf] %vm820_vm1, %v776_v3  ;;  %v633_v14 = vadd.f32 %v1310_v39, %v565_v10  ;;  %v649_v15 = vadd.f32 %v1310_v39, %v581_v11 }
  0xc2   :  { %v728_v16 = vmax.f32 %v664_v12, 0.0  ;;  %v744_v17 = vmax.f32 %v680_v13, 0.0 }
  0xc3   :  { %v697_v18 = vmax.f32 %v633_v14, 0.0  ;;  %v713_v19 = vmax.f32 %v649_v15, 0.0 }
  0xc4   :  { %v792_v20 = vpack.c.bf16 %v728_v16, %v728_v16  ;;  %v808_v21 = vpack.c.bf16 %v744_v17, %v744_v17 }
  0xc5   :  { %v761_v22 = vpack.c.bf16 %v697_v18, %v697_v18  ;;  %v777_v23 = vpack.c.bf16 %v713_v19, %v713_v19  ;;  %v488_v24 = vpop.f32.mrf.mxu2  ;;  %v528_v25 = vpop.f32.mrf.mxu3 }
  0xc6   :  { %857 = vst.msk [vmem:[%s1700_s4 + $0x90] sm:$0xf] %vm820_vm1, %v792_v20  ;;  %v597_v26 = vmul.f32 %v1305_v38, %v488_v24  ;;  %v613_v27 = vmul.f32 %v1305_v38, %v528_v25  ;;  %v411_v28 = vpop.f32.mrf.mxu0  ;;  %v451_v29 = vpop.f32.mrf.mxu1 }
  0xc7   :  { %873 = vst.msk [vmem:[%s1700_s4 + $0xd0] sm:$0xf] %vm820_vm1, %v808_v21  ;;  %v566_v30 = vmul.f32 %v1305_v38, %v411_v28  ;;  %v582_v31 = vmul.f32 %v1305_v38, %v451_v29 }
  0xc8   :  { %826 = vst.msk [vmem:[%s1700_s4 + $0x14] sm:$0xf] %vm820_vm1, %v761_v22  ;;  %v665_v32 = vadd.f32 %v1310_v39, %v597_v26  ;;  %v681_v33 = vadd.f32 %v1310_v39, %v613_v27 }
  0xc9   :  { %842 = vst.msk [vmem:[%s1700_s4 + $0x54] sm:$0xf] %vm820_vm1, %v777_v23  ;;  %v634_v34 = vadd.f32 %v1310_v39, %v566_v30  ;;  %v650_v35 = vadd.f32 %v1310_v39, %v582_v31 }
  0xca   :  { %v729_v36 = vmax.f32 %v665_v32, 0.0  ;;  %v745_v37 = vmax.f32 %v681_v33, 0.0 }
  0xcb   :  { %v698_v40 = vmax.f32 %v634_v34, 0.0  ;;  %v714_v41 = vmax.f32 %v650_v35, 0.0 }
  0xcc   :  { %v793_v42 = vpack.c.bf16 %v729_v36, %v729_v36  ;;  %v809_v43 = vpack.c.bf16 %v745_v37, %v745_v37 }
  0xcd   :  { %v762_v44 = vpack.c.bf16 %v698_v40, %v698_v40  ;;  %v778_v45 = vpack.c.bf16 %v714_v41, %v714_v41  ;;  %v491_v46 = vpop.f32.mrf.mxu2  ;;  %v531_v47 = vpop.f32.mrf.mxu3 }
  0xce   :  { %858 = vst.msk [vmem:[%s1700_s4 + $0x94] sm:$0xf] %vm820_vm1, %v793_v42  ;;  %v598_v48 = vmul.f32 %v1305_v38, %v491_v46  ;;  %v614_v49 = vmul.f32 %v1305_v38, %v531_v47  ;;  %v413_v50 = vpop.f32.mrf.mxu0  ;;  %v453_v51 = vpop.f32.mrf.mxu1 }
  0xcf   :  { %874 = vst.msk [vmem:[%s1700_s4 + $0xd4] sm:$0xf] %vm820_vm1, %v809_v43  ;;  %v567_v52 = vmul.f32 %v1305_v38, %v413_v50  ;;  %v583_v53 = vmul.f32 %v1305_v38, %v453_v51 }
  0xd0   :  { %827 = vst.msk [vmem:[%s1700_s4 + $0x18] sm:$0xf] %vm820_vm1, %v762_v44  ;;  %v666_v54 = vadd.f32 %v1310_v39, %v598_v48  ;;  %v682_v55 = vadd.f32 %v1310_v39, %v614_v49 }
  0xd1   :  { %843 = vst.msk [vmem:[%s1700_s4 + $0x58] sm:$0xf] %vm820_vm1, %v778_v45  ;;  %v635_v56 = vadd.f32 %v1310_v39, %v567_v52  ;;  %v651_v57 = vadd.f32 %v1310_v39, %v583_v53 }
  0xd2   :  { %v730_v58 = vmax.f32 %v666_v54, 0.0  ;;  %v746_v59 = vmax.f32 %v682_v55, 0.0 }
  0xd3   :  { %v699_v60 = vmax.f32 %v635_v56, 0.0  ;;  %v715_v61 = vmax.f32 %v651_v57, 0.0 }
  0xd4   :  { %v794_v62 = vpack.c.bf16 %v730_v58, %v730_v58  ;;  %v810_v63 = vpack.c.bf16 %v746_v59, %v746_v59 }
  0xd5   :  { %v763_v0 = vpack.c.bf16 %v699_v60, %v699_v60  ;;  %v779_v1 = vpack.c.bf16 %v715_v61, %v715_v61  ;;  %v493_v2 = vpop.f32.mrf.mxu2  ;;  %v533_v3 = vpop.f32.mrf.mxu3 }
  0xd6   :  { %859 = vst.msk [vmem:[%s1700_s4 + $0x98] sm:$0xf] %vm820_vm1, %v794_v62  ;;  %v599_v4 = vmul.f32 %v1305_v38, %v493_v2  ;;  %v615_v5 = vmul.f32 %v1305_v38, %v533_v3  ;;  %v416_v6 = vpop.f32.mrf.mxu0  ;;  %v456_v7 = vpop.f32.mrf.mxu1 }
  0xd7   :  { %875 = vst.msk [vmem:[%s1700_s4 + $0xd8] sm:$0xf] %vm820_vm1, %v810_v63  ;;  %v568_v8 = vmul.f32 %v1305_v38, %v416_v6  ;;  %v584_v9 = vmul.f32 %v1305_v38, %v456_v7 }
  0xd8   :  { %828 = vst.msk [vmem:[%s1700_s4 + $0x1c] sm:$0xf] %vm820_vm1, %v763_v0  ;;  %v667_v10 = vadd.f32 %v1310_v39, %v599_v4  ;;  %v683_v11 = vadd.f32 %v1310_v39, %v615_v5 }
  0xd9   :  { %844 = vst.msk [vmem:[%s1700_s4 + $0x5c] sm:$0xf] %vm820_vm1, %v779_v1  ;;  %v636_v12 = vadd.f32 %v1310_v39, %v568_v8  ;;  %v652_v13 = vadd.f32 %v1310_v39, %v584_v9 }
  0xda   :  { %v731_v14 = vmax.f32 %v667_v10, 0.0  ;;  %v747_v15 = vmax.f32 %v683_v11, 0.0 }
  0xdb   :  { %v700_v16 = vmax.f32 %v636_v12, 0.0  ;;  %v716_v17 = vmax.f32 %v652_v13, 0.0 }
  0xdc   :  { %v795_v18 = vpack.c.bf16 %v731_v14, %v731_v14  ;;  %v811_v19 = vpack.c.bf16 %v747_v15, %v747_v15 }
  0xdd   :  { %v764_v20 = vpack.c.bf16 %v700_v16, %v700_v16  ;;  %v780_v21 = vpack.c.bf16 %v716_v17, %v716_v17  ;;  %v496_v22 = vpop.f32.mrf.mxu2  ;;  %v536_v23 = vpop.f32.mrf.mxu3 }
  0xde   :  { %860 = vst.msk [vmem:[%s1700_s4 + $0x9c] sm:$0xf] %vm820_vm1, %v795_v18  ;;  %v600_v24 = vmul.f32 %v1305_v38, %v496_v22  ;;  %v616_v25 = vmul.f32 %v1305_v38, %v536_v23  ;;  %v418_v26 = vpop.f32.mrf.mxu0  ;;  %v458_v27 = vpop.f32.mrf.mxu1 }
  0xdf   :  { %876 = vst.msk [vmem:[%s1700_s4 + $0xdc] sm:$0xf] %vm820_vm1, %v811_v19  ;;  %v569_v28 = vmul.f32 %v1305_v38, %v418_v26  ;;  %v585_v29 = vmul.f32 %v1305_v38, %v458_v27 }
  0xe0   :  { %829 = vst.msk [vmem:[%s1700_s4 + $0x20] sm:$0xf] %vm820_vm1, %v764_v20  ;;  %v668_v30 = vadd.f32 %v1310_v39, %v600_v24  ;;  %v684_v31 = vadd.f32 %v1310_v39, %v616_v25 }
  0xe1   :  { %845 = vst.msk [vmem:[%s1700_s4 + $0x60] sm:$0xf] %vm820_vm1, %v780_v21  ;;  %v637_v32 = vadd.f32 %v1310_v39, %v569_v28  ;;  %v653_v33 = vadd.f32 %v1310_v39, %v585_v29 }
  0xe2   :  { %v732_v34 = vmax.f32 %v668_v30, 0.0  ;;  %v748_v35 = vmax.f32 %v684_v31, 0.0 }
  0xe3   :  { %v701_v36 = vmax.f32 %v637_v32, 0.0  ;;  %v717_v37 = vmax.f32 %v653_v33, 0.0 }
  0xe4   :  { %v796_v40 = vpack.c.bf16 %v732_v34, %v732_v34  ;;  %v812_v41 = vpack.c.bf16 %v748_v35, %v748_v35 }
  0xe5   :  { %v765_v42 = vpack.c.bf16 %v701_v36, %v701_v36  ;;  %v781_v43 = vpack.c.bf16 %v717_v37, %v717_v37  ;;  %v498_v44 = vpop.f32.mrf.mxu2  ;;  %v538_v45 = vpop.f32.mrf.mxu3 }
  0xe6   :  { %861 = vst.msk [vmem:[%s1700_s4 + $0xa0] sm:$0xf] %vm820_vm1, %v796_v40  ;;  %v601_v46 = vmul.f32 %v1305_v38, %v498_v44  ;;  %v617_v47 = vmul.f32 %v1305_v38, %v538_v45  ;;  %v421_v48 = vpop.f32.mrf.mxu0  ;;  %v461_v49 = vpop.f32.mrf.mxu1 }
  0xe7   :  { %877 = vst.msk [vmem:[%s1700_s4 + $0xe0] sm:$0xf] %vm820_vm1, %v812_v41  ;;  %v570_v50 = vmul.f32 %v1305_v38, %v421_v48  ;;  %v586_v51 = vmul.f32 %v1305_v38, %v461_v49 }
  0xe8   :  { %830 = vst.msk [vmem:[%s1700_s4 + $0x24] sm:$0xf] %vm820_vm1, %v765_v42  ;;  %v669_v52 = vadd.f32 %v1310_v39, %v601_v46  ;;  %v685_v53 = vadd.f32 %v1310_v39, %v617_v47 }
  0xe9   :  { %846 = vst.msk [vmem:[%s1700_s4 + $0x64] sm:$0xf] %vm820_vm1, %v781_v43  ;;  %v638_v54 = vadd.f32 %v1310_v39, %v570_v50  ;;  %v654_v55 = vadd.f32 %v1310_v39, %v586_v51 }
  0xea   :  { %v733_v56 = vmax.f32 %v669_v52, 0.0  ;;  %v749_v57 = vmax.f32 %v685_v53, 0.0 }
  0xeb   :  { %v702_v58 = vmax.f32 %v638_v54, 0.0  ;;  %v718_v59 = vmax.f32 %v654_v55, 0.0 }
  0xec   :  { %v797_v60 = vpack.c.bf16 %v733_v56, %v733_v56  ;;  %v813_v61 = vpack.c.bf16 %v749_v57, %v749_v57 }
  0xed   :  { %v766_v62 = vpack.c.bf16 %v702_v58, %v702_v58  ;;  %v782_v63 = vpack.c.bf16 %v718_v59, %v718_v59  ;;  %v501_v0 = vpop.f32.mrf.mxu2  ;;  %v541_v1 = vpop.f32.mrf.mxu3 }
  0xee   :  { %862 = vst.msk [vmem:[%s1700_s4 + $0xa4] sm:$0xf] %vm820_vm1, %v797_v60  ;;  %v602_v2 = vmul.f32 %v1305_v38, %v501_v0  ;;  %v618_v3 = vmul.f32 %v1305_v38, %v541_v1  ;;  %v423_v4 = vpop.f32.mrf.mxu0  ;;  %v463_v5 = vpop.f32.mrf.mxu1 }
  0xef   :  { %878 = vst.msk [vmem:[%s1700_s4 + $0xe4] sm:$0xf] %vm820_vm1, %v813_v61  ;;  %v571_v6 = vmul.f32 %v1305_v38, %v423_v4  ;;  %v587_v7 = vmul.f32 %v1305_v38, %v463_v5 }
  0xf0   :  { %831 = vst.msk [vmem:[%s1700_s4 + $0x28] sm:$0xf] %vm820_vm1, %v766_v62  ;;  %v670_v8 = vadd.f32 %v1310_v39, %v602_v2  ;;  %v686_v9 = vadd.f32 %v1310_v39, %v618_v3 }
  0xf1   :  { %847 = vst.msk [vmem:[%s1700_s4 + $0x68] sm:$0xf] %vm820_vm1, %v782_v63  ;;  %v639_v10 = vadd.f32 %v1310_v39, %v571_v6  ;;  %v655_v11 = vadd.f32 %v1310_v39, %v587_v7 }
  0xf2   :  { %v734_v12 = vmax.f32 %v670_v8, 0.0  ;;  %v750_v13 = vmax.f32 %v686_v9, 0.0 }
  0xf3   :  { %v703_v14 = vmax.f32 %v639_v10, 0.0  ;;  %v719_v15 = vmax.f32 %v655_v11, 0.0 }
  0xf4   :  { %v798_v16 = vpack.c.bf16 %v734_v12, %v734_v12  ;;  %v814_v17 = vpack.c.bf16 %v750_v13, %v750_v13 }
  0xf5   :  { %v767_v18 = vpack.c.bf16 %v703_v14, %v703_v14  ;;  %v783_v19 = vpack.c.bf16 %v719_v15, %v719_v15  ;;  %v503_v20 = vpop.f32.mrf.mxu2  ;;  %v543_v21 = vpop.f32.mrf.mxu3 }
  0xf6   :  { %863 = vst.msk [vmem:[%s1700_s4 + $0xa8] sm:$0xf] %vm820_vm1, %v798_v16  ;;  %v603_v22 = vmul.f32 %v1305_v38, %v503_v20  ;;  %v619_v23 = vmul.f32 %v1305_v38, %v543_v21  ;;  %v426_v24 = vpop.f32.mrf.mxu0  ;;  %v466_v25 = vpop.f32.mrf.mxu1 }
  0xf7   :  { %879 = vst.msk [vmem:[%s1700_s4 + $0xe8] sm:$0xf] %vm820_vm1, %v814_v17  ;;  %v572_v26 = vmul.f32 %v1305_v38, %v426_v24  ;;  %v588_v27 = vmul.f32 %v1305_v38, %v466_v25 }
  0xf8   :  { %832 = vst.msk [vmem:[%s1700_s4 + $0x2c] sm:$0xf] %vm820_vm1, %v767_v18  ;;  %v671_v28 = vadd.f32 %v1310_v39, %v603_v22  ;;  %v687_v29 = vadd.f32 %v1310_v39, %v619_v23 }
  0xf9   :  { %848 = vst.msk [vmem:[%s1700_s4 + $0x6c] sm:$0xf] %vm820_vm1, %v783_v19  ;;  %v640_v30 = vadd.f32 %v1310_v39, %v572_v26  ;;  %v656_v31 = vadd.f32 %v1310_v39, %v588_v27 }
  0xfa   :  { %v735_v32 = vmax.f32 %v671_v28, 0.0  ;;  %v751_v33 = vmax.f32 %v687_v29, 0.0 }
  0xfb   :  { %v704_v34 = vmax.f32 %v640_v30, 0.0  ;;  %v720_v35 = vmax.f32 %v656_v31, 0.0 }
  0xfc   :  { %v799_v36 = vpack.c.bf16 %v735_v32, %v735_v32  ;;  %v815_v37 = vpack.c.bf16 %v751_v33, %v751_v33 }
  0xfd   :  { %v768_v40 = vpack.c.bf16 %v704_v34, %v704_v34  ;;  %v784_v41 = vpack.c.bf16 %v720_v35, %v720_v35  ;;  %v506_v42 = vpop.f32.mrf.mxu2  ;;  %v546_v43 = vpop.f32.mrf.mxu3 }
  0xfe   :  { %864 = vst.msk [vmem:[%s1700_s4 + $0xac] sm:$0xf] %vm820_vm1, %v799_v36  ;;  %v604_v44 = vmul.f32 %v1305_v38, %v506_v42  ;;  %v620_v45 = vmul.f32 %v1305_v38, %v546_v43  ;;  %v428_v46 = vpop.f32.mrf.mxu0  ;;  %v468_v47 = vpop.f32.mrf.mxu1 }
  0xff   :  { %880 = vst.msk [vmem:[%s1700_s4 + $0xec] sm:$0xf] %vm820_vm1, %v815_v37  ;;  %v573_v48 = vmul.f32 %v1305_v38, %v428_v46  ;;  %v589_v49 = vmul.f32 %v1305_v38, %v468_v47 }
 0x100   :  { %833 = vst.msk [vmem:[%s1700_s4 + $0x30] sm:$0xf] %vm820_vm1, %v768_v40  ;;  %v672_v50 = vadd.f32 %v1310_v39, %v604_v44  ;;  %v688_v51 = vadd.f32 %v1310_v39, %v620_v45 }
 0x101   :  { %849 = vst.msk [vmem:[%s1700_s4 + $0x70] sm:$0xf] %vm820_vm1, %v784_v41  ;;  %v641_v52 = vadd.f32 %v1310_v39, %v573_v48  ;;  %v657_v53 = vadd.f32 %v1310_v39, %v589_v49 }
 0x102   :  { %v736_v54 = vmax.f32 %v672_v50, 0.0  ;;  %v752_v55 = vmax.f32 %v688_v51, 0.0 }
 0x103   :  { %v705_v56 = vmax.f32 %v641_v52, 0.0  ;;  %v721_v57 = vmax.f32 %v657_v53, 0.0 }
 0x104   :  { %v800_v58 = vpack.c.bf16 %v736_v54, %v736_v54  ;;  %v816_v59 = vpack.c.bf16 %v752_v55, %v752_v55 }
 0x105   :  { %v769_v60 = vpack.c.bf16 %v705_v56, %v705_v56  ;;  %v785_v61 = vpack.c.bf16 %v721_v57, %v721_v57  ;;  %v508_v62 = vpop.f32.mrf.mxu2  ;;  %v548_v63 = vpop.f32.mrf.mxu3 }
 0x106   :  { %865 = vst.msk [vmem:[%s1700_s4 + $0xb0] sm:$0xf] %vm820_vm1, %v800_v58  ;;  %v605_v0 = vmul.f32 %v1305_v38, %v508_v62  ;;  %v621_v1 = vmul.f32 %v1305_v38, %v548_v63  ;;  %v431_v2 = vpop.f32.mrf.mxu0  ;;  %v471_v3 = vpop.f32.mrf.mxu1 }
 0x107   :  { %881 = vst.msk [vmem:[%s1700_s4 + $0xf0] sm:$0xf] %vm820_vm1, %v816_v59  ;;  %v574_v4 = vmul.f32 %v1305_v38, %v431_v2  ;;  %v590_v5 = vmul.f32 %v1305_v38, %v471_v3 }
 0x108   :  { %834 = vst.msk [vmem:[%s1700_s4 + $0x34] sm:$0xf] %vm820_vm1, %v769_v60  ;;  %v673_v6 = vadd.f32 %v1310_v39, %v605_v0  ;;  %v689_v7 = vadd.f32 %v1310_v39, %v621_v1 }
 0x109   :  { %850 = vst.msk [vmem:[%s1700_s4 + $0x74] sm:$0xf] %vm820_vm1, %v785_v61  ;;  %v642_v8 = vadd.f32 %v1310_v39, %v574_v4  ;;  %v658_v9 = vadd.f32 %v1310_v39, %v590_v5 }
 0x10a   :  { %v737_v10 = vmax.f32 %v673_v6, 0.0  ;;  %v753_v11 = vmax.f32 %v689_v7, 0.0 }
 0x10b   :  { %v706_v12 = vmax.f32 %v642_v8, 0.0  ;;  %v722_v13 = vmax.f32 %v658_v9, 0.0 }
 0x10c   :  { %v801_v14 = vpack.c.bf16 %v737_v10, %v737_v10  ;;  %v817_v15 = vpack.c.bf16 %v753_v11, %v753_v11 }
 0x10d   :  { %v770_v16 = vpack.c.bf16 %v706_v12, %v706_v12  ;;  %v786_v17 = vpack.c.bf16 %v722_v13, %v722_v13  ;;  %v511_v18 = vpop.f32.mrf.mxu2  ;;  %v551_v19 = vpop.f32.mrf.mxu3 }
 0x10e   :  { %866 = vst.msk [vmem:[%s1700_s4 + $0xb4] sm:$0xf] %vm820_vm1, %v801_v14  ;;  %v606_v20 = vmul.f32 %v1305_v38, %v511_v18  ;;  %v622_v21 = vmul.f32 %v1305_v38, %v551_v19  ;;  %v433_v22 = vpop.f32.mrf.mxu0  ;;  %v473_v23 = vpop.f32.mrf.mxu1 }
 0x10f   :  { %882 = vst.msk [vmem:[%s1700_s4 + $0xf4] sm:$0xf] %vm820_vm1, %v817_v15  ;;  %v575_v24 = vmul.f32 %v1305_v38, %v433_v22  ;;  %v591_v25 = vmul.f32 %v1305_v38, %v473_v23 }
 0x110   :  { %835 = vst.msk [vmem:[%s1700_s4 + $0x38] sm:$0xf] %vm820_vm1, %v770_v16  ;;  %v674_v26 = vadd.f32 %v1310_v39, %v606_v20  ;;  %v690_v27 = vadd.f32 %v1310_v39, %v622_v21 }
 0x111   :  { %851 = vst.msk [vmem:[%s1700_s4 + $0x78] sm:$0xf] %vm820_vm1, %v786_v17  ;;  %v643_v28 = vadd.f32 %v1310_v39, %v575_v24  ;;  %v659_v29 = vadd.f32 %v1310_v39, %v591_v25 }
 0x112   :  { %v738_v30 = vmax.f32 %v674_v26, 0.0  ;;  %v754_v31 = vmax.f32 %v690_v27, 0.0 }
 0x113   :  { %v707_v32 = vmax.f32 %v643_v28, 0.0  ;;  %v723_v33 = vmax.f32 %v659_v29, 0.0 }
 0x114   :  { %v802_v34 = vpack.c.bf16 %v738_v30, %v738_v30  ;;  %v818_v35 = vpack.c.bf16 %v754_v31, %v754_v31 }
 0x115   :  { %v771_v36 = vpack.c.bf16 %v707_v32, %v707_v32  ;;  %v787_v37 = vpack.c.bf16 %v723_v33, %v723_v33  ;;  %v513_v40 = vpop.f32.mrf.mxu2  ;;  %v553_v41 = vpop.f32.mrf.mxu3 }
 0x116   :  { %867 = vst.msk [vmem:[%s1700_s4 + $0xb8] sm:$0xf] %vm820_vm1, %v802_v34  ;;  %v607_v42 = vmul.f32 %v1305_v38, %v513_v40  ;;  %v623_v43 = vmul.f32 %v1305_v38, %v553_v41 }
 0x117   :  { %883 = vst.msk [vmem:[%s1700_s4 + $0xf8] sm:$0xf] %vm820_vm1, %v818_v35 }
 0x118   :  { %836 = vst.msk [vmem:[%s1700_s4 + $0x3c] sm:$0xf] %vm820_vm1, %v771_v36  ;;  %v675_v44 = vadd.f32 %v1310_v39, %v607_v42  ;;  %v691_v45 = vadd.f32 %v1310_v39, %v623_v43 }
 0x119   :  { %852 = vst.msk [vmem:[%s1700_s4 + $0x7c] sm:$0xf] %vm820_vm1, %v787_v37 }
 0x11a   :  { %v739_v38 = vmax.f32 %v675_v44, 0.0  ;;  %v755_v46 = vmax.f32 %v691_v45, 0.0 }
 0x11c   :  { %v803_v47 = vpack.c.bf16 %v739_v38, %v739_v38  ;;  %v819_v48 = vpack.c.bf16 %v755_v46, %v755_v46 }
 0x11e   :  { %868 = vst.msk [vmem:[%s1700_s4 + $0xbc] sm:$0xf] %vm820_vm1, %v803_v47 }
 0x11f   :  { %884 = vst.msk [vmem:[%s1700_s4 + $0xfc] sm:$0xf] %vm820_vm1, %v819_v48 }

// kernel: forward.11
= control target key start
LH: loop header
LB: loop body
LE: loop exit
PB: predicated region body
PF: predicated region fallthrough
CT: control target
= control target key end

     0   :  { %s3985_s21 = smov 0   ;;  %s3987_s22 = smov 0   ;;  %s5606_s0 = inlined_call_operand.vmem [shape: bf16[2,16,16,128], index: 0, kind: input, shape index: {}, may-alias: {0,1,2}]   ;;  %s5607_s1 = inlined_call_operand.vmem [shape: bf16[2,16,16,128], index: 1, kind: input, shape index: {}, may-alias: {0,1,2}]   ;;  %s5608_s2 = inlined_call_operand.vmem [shape: bf16[2,16,16,128], index: 2, kind: input, shape index: {}, may-alias: {0,1,2}]   ;;  %s5609_s3 = inlined_call_operand.vmem [shape: f32[3,3,128], index: 3, kind: input, shape index: {}]   ;;  %s5610_s4 = inlined_call_operand.vmem [shape: f32[1,128], index: 4, kind: input, shape index: {}]   ;;  %s5611_s5 = inlined_call_operand.vmem [shape: bf16[128,128], index: 5, kind: input, shape index: {}]   ;;  %s5612_s6 = inlined_call_operand.vmem [shape: f32[1,128], index: 6, kind: input, shape index: {}]   ;;  %s5613_s7 = inlined_call_operand.vmem [shape: f32[1,128], index: 7, kind: input, shape index: {}]   ;;  %s5614_s8 = inlined_call_operand.vmem [shape: bf16[2,16,16,24], index: 8, kind: input, shape index: {}]   ;;  %s5615_s9 = inlined_call_operand.vmem [shape: bf16[24,128], index: 9, kind: input, shape index: {}]   ;;  %s5616_s10 = inlined_call_operand.vmem [shape: f32[1,128], index: 10, kind: input, shape index: {}]   ;;  %s5617_s11 = inlined_call_operand.vmem [shape: f32[1,128], index: 11, kind: input, shape index: {}]   ;;  %s5618_s12 = inlined_call_operand.vmem [shape: bf16[2,16,16,128], index: 12, kind: output, shape index: {}]  }
   0x1   :  { %s3989_s23 = smov 0  }
   0x2 LB: > { %s34_s24 = sadd.s32 1, %s3914_s22  ;;  %p3479_p0 = scmp.ge.s32.totalorder %s3918_s23, 1  ;;  %s3918_s23 = sphi %s3989_s23, %s22_s23   ;;  %s3914_s22 = sphi %s3987_s22, %s5620_s22   ;;  %s3910_s21 = sphi %s3985_s21, %s5619_s21  }
   0x3   : > { %p36_p1 = scmp.ge.s32.totalorder %s34_s24, 2  ;;  %p466_p2 = scmp.lt.s32.totalorder %s3918_s23, 3 }
   0x5   : > { %s5622_s24 = smov (%p36_p1, %s34_s24), 0  ;;  %p467_p3 = pnand %p3479_p0, %p466_p2 }
   0x6   : > { %p558_p4 = scmp.lt.s32.totalorder (!%p467_p3), %s3910_s21, 1 }
   0x7   : > { %470 = sbr.rel (%p467_p3) target bundleno = 505 (0x1f9), region = 68 }
   0xc   : > { %v2884_v0 = vld [vmem:[%s5615_s9 + $0x8] sm:$0xf]  ;;  %v3627_v1 = vld [vmem:[%s5611_s5 + $0x38] sm:$0xff]  ;;  %vm3023_vm0 = vcmask 1043456   ;;  %v3626_v3 = vld [vmem:[%s5611_s5 + $0x30] sm:$0xff]  ;;  %s5624_s21 = smov (!%p558_p4, %s3910_s21), 1 }
   0xd   : > { %v2970_v2 = vunpack.c.l.b16 %v2884_v0  ;;  %3828 = vmatpush.bf16.msra.mxu2 %v3627_v1  ;;  %2689 = vmatpush.bf16.msra.mxu0 %v3627_v1  ;;  %s4012_s13 = sshll.u32 %s5624_s21, 7  ;;  %v3644_v6 = vld [vmem:[%s5615_s9] sm:$0xff]  ;;  %vm2974_vm1 = vcmask 195584   ;;  %v3625_v7 = vld [vmem:[%s5611_s5 + $0x28] sm:$0xff]  ;;  %vm742_vm2 = vcmask 1040384   ;;  %vm1051_vm3 = vcmask 1046528  }
   0xe   : > { %s4018_s16 = scalar_lea.vmem %s5607_s1, %s4012_s13  ;;  %s4027_s21 = scalar_lea.vmem %s5614_s8, %s4012_s13  ;;  %v4038_v13 = vld [vmem:[%s5609_s3] ss:$0 sm:$0xff]  ;;  %v4046_v19 = vld [vmem:[%s5609_s3 + $0x1] ss:$0 sm:$0xff]  ;;  %v4051_v20 = vld [vmem:[%s5609_s3 + $0x2] ss:$0 sm:$0xff] }
   0xf   : > { %v2972_v4 = vpack.c.b16 %v2970_v2, %v2970_v2  ;;  %v3804_v8 = vld [vmem:[%s4018_s16 + $0x38] sm:$0xff]   ;;  %v3805_v11 = vld [vmem:[%s4018_s16 + $0x40] sm:$0xff]   ;;  %v3806_v12 = vld [vmem:[%s4018_s16 + $0x48] sm:$0xff]   ;;  %vm1294_vm4 = vcmask 1045504   ;;  %s566_s14 = scalar_lea.vmem %s5606_s0, %s4012_s13  ;;  %s3617_s25 = sadd.s32 120, %s4012_s13 }
  0x10   : > { %v3679_v9 = vunpack.c.l.bf16 %v3804_v8  ;;  %v3680_v10 = vunpack.c.h.bf16 %v3804_v8  ;;  %v3624_v14 = vld [vmem:[%s5611_s5 + $0x20] sm:$0xff]  ;;  %v3683_v15 = vunpack.c.l.bf16 %v3805_v11  ;;  %v3684_v16 = vunpack.c.h.bf16 %v3805_v11  ;;  %v3623_v41 = vld [vmem:[%s5611_s5 + $0x18] sm:$0xff]  ;;  %v3622_v59 = vld [vmem:[%s5611_s5 + $0x10] sm:$0xff]  ;;  %s594_s28 = scalar_lea.vmem %s5608_s2, %s3617_s25  ;;  %s5451_s25 = scalar_lea.vmem %s5618_s12, %s4012_s13 }
  0x11   : > { %v3025_v5 = vsel %vm3023_vm0, %v2972_v4, 0  ;;  %3829 = vmatpush.bf16.msra.mxu2 %v3626_v3  ;;  %2690 = vmatpush.bf16.msra.mxu0 %v3626_v3  ;;  %v3687_v17 = vunpack.c.l.bf16 %v3806_v12  ;;  %v3688_v18 = vunpack.c.h.bf16 %v3806_v12  ;;  %v3628_v21 = vld [vmem:[%s4027_s21] sm:$0xff]  ;;  %v4136_v0 = vld [vmem:[%s5609_s3 + $0x8] ss:$0 sm:$0xff] }
  0x12   : > { %3033 = vmatpush.bf16.msra.mxu1 %v3025_v5  ;;  %3836 = vmatpush.bf16.msra.mxu3 %v3025_v5  ;;  %v767_v22 = vrot.slane %v3679_v9, 7  ;;  %v768_v23 = vrot.slane %v3680_v10, 7  ;;  %v770_v24 = vrot.slane %v3683_v15, 7  ;;  %v771_v25 = vrot.slane %v3684_v16, 7  ;;  %v4066_v31 = vld [vmem:[%s5609_s3 + $0x4] ss:$0 sm:$0xff] }
  0x13   : > { %v773_v26 = vrot.slane %v3687_v17, 7  ;;  %v774_v27 = vrot.slane %v3688_v18, 7  ;;  %v4094_v40 = vld [vmem:[%s5609_s3 + $0x5] ss:$0 sm:$0xff]  ;;  %v4110_v46 = vld [vmem:[%s5609_s3 + $0x6] ss:$0 sm:$0xff] }
  0x14   : > { %v4055_v28 = vsel %vm742_vm2, %v767_v22, %v768_v23  ;;  %v4058_v29 = vsel %vm742_vm2, 0.0, %v767_v22  ;;  %v4061_v30 = vsel %vm742_vm2, %v768_v23, 0.0  ;;  %v4069_v32 = vsel %vm742_vm2, %v770_v24, %v771_v25  ;;  %v4145_v9 = vld [vmem:[%s5609_s3 + $0x9] ss:$0 sm:$0xff]  ;;  %v4152_v15 = vld [vmem:[%s5609_s3 + $0xa] ss:$0 sm:$0xff] }
  0x15   : > { %3830 = vmatpush.bf16.msra.mxu2 %v3625_v7  ;;  %2691 = vmatpush.bf16.msra.mxu0 %v3625_v7  ;;  %v4072_v33 = vsel %vm742_vm2, %v773_v26, %v774_v27  ;;  %v4075_v34 = vsel %vm742_vm2, 0.0, %v770_v24  ;;  %v4078_v35 = vsel %vm742_vm2, 0.0, %v773_v26  ;;  %v4082_v36 = vsel %vm742_vm2, %v771_v25, 0.0  ;;  %v3621_v16 = vld [vmem:[%s5611_s5 + $0x8] sm:$0xff] }
  0x16   : > { %3034 = vmatpush.bf16.msra.mxu1 %v3644_v6  ;;  %3837 = vmatpush.bf16.msra.mxu3 %v3644_v6  ;;  %v4085_v37 = vsel %vm742_vm2, %v774_v27, 0.0  ;;  %v905_v38 = vmul.f32 %v4038_v13, %v4058_v29  ;;  %v906_v39 = vmul.f32 %v4038_v13, %v4055_v28  ;;  %v979_v42 = vmul.f32 %v4046_v19, %v4058_v29 }
  0x17   : > { %v980_v43 = vmul.f32 %v4046_v19, %v4055_v28  ;;  %v981_v44 = vmul.f32 %v4046_v19, %v4061_v30  ;;  %v1222_v45 = vmul.f32 %v4051_v20, %v4058_v29  ;;  %v1223_v47 = vmul.f32 %v4051_v20, %v4055_v28 }
  0x18   : > { %v1224_v48 = vmul.f32 %v4051_v20, %v4061_v30  ;;  %v1458_v49 = vmul.f32 %v4066_v31, %v4075_v34  ;;  %v1459_v50 = vmul.f32 %v4066_v31, %v4069_v32  ;;  %v1092_v51 = vrot.slane %v979_v42, 1  ;;  %v3629_v42 = vld [vmem:[%s4027_s21 + $0x8] sm:$0xff] }
  0x19   : > { %3596 = vmatmul.msk.bf16.vlgmr.msra.gmra.mxu1 %vm2974_vm1, %v3628_v21  ;;  %3831 = vmatpush.bf16.msra.mxu2 %v3624_v14  ;;  %v1093_v52 = vrot.slane %v980_v43, 1  ;;  %v1095_v53 = vrot.slane %v981_v44, 1  ;;  %v1335_v54 = vrot.slane %v1222_v45, 2  ;;  %v1336_v55 = vrot.slane %v1223_v47, 2 }
  0x1a   : > { %2692 = vmatpush.bf16.msra.mxu0 %v3624_v14  ;;  %v1338_v56 = vrot.slane %v1224_v48, 2  ;;  %v1532_v57 = vmul.f32 %v4094_v40, %v4075_v34  ;;  %v1533_v58 = vmul.f32 %v4094_v40, %v4069_v32  ;;  %v1534_v62 = vmul.f32 %v4094_v40, %v4082_v36  ;;  %v3646_v48 = vld [vmem:[%s566_s14] sm:$0xff]  }
  0x1b   : > { %v1094_v60 = vsel %vm1051_vm3, %v1092_v51, %v1093_v52  ;;  %v1096_v61 = vsel %vm1051_vm3, %v1093_v52, %v1095_v53  ;;  %v1774_v63 = vmul.f32 %v4110_v46, %v4075_v34  ;;  %v1337_v3 = vsel %vm1294_vm4, %v1335_v54, %v1336_v55 }
  0x1c   : > { %v1180_v1 = vadd.f32 %v1094_v60, %v905_v38  ;;  %v1181_v2 = vadd.f32 %v1096_v61, %v906_v39  ;;  %v1339_v4 = vsel %vm1294_vm4, %v1336_v55, %v1338_v56  ;;  %v1644_v5 = vrot.slane %v1532_v57, 1 }
  0x1d   : > { %3832 = vmatpush.bf16.msra.mxu2 %v3623_v41  ;;  %v1645_v6 = vrot.slane %v1533_v58, 1  ;;  %v1647_v7 = vrot.slane %v1534_v62, 1  ;;  %v1775_v8 = vmul.f32 %v4110_v46, %v4069_v32  ;;  %v1776_v12 = vmul.f32 %v4110_v46, %v4082_v36  ;;  %v3650_v58 = vld [vmem:[%s4018_s16] sm:$0xff]  }
  0x1e   : > { %2693 = vmatpush.bf16.msra.mxu0 %v3623_v41  ;;  %v1423_v10 = vadd.f32 %v1337_v3, %v1180_v1  ;;  %v1424_v11 = vadd.f32 %v1339_v4, %v1181_v2  ;;  %v1886_v14 = vrot.slane %v1774_v63, 2  ;;  %v2009_v22 = vmul.f32 %v4136_v0, %v4078_v35  ;;  %v3798_v4 = vld [vmem:[%s4018_s16 + $0x8] sm:$0xff]  }
  0x1f   : > { %v1646_v17 = vsel %vm1051_vm3, %v1644_v5, %v1645_v6  ;;  %v1648_v18 = vsel %vm1051_vm3, %v1645_v6, %v1647_v7  ;;  %v1887_v21 = vrot.slane %v1775_v8, 2  ;;  %v1889_v25 = vrot.slane %v1776_v12, 2 }
  0x20   : > { %v1490_v23 = vadd.f32 %v1458_v49, %v1423_v10  ;;  %v1491_v24 = vadd.f32 %v1459_v50, %v1424_v11  ;;  %v2010_v26 = vmul.f32 %v4136_v0, %v4072_v33  ;;  %v2083_v38 = vmul.f32 %v4145_v9, %v4078_v35  ;;  %v3620_v49 = vld [vmem:[%s5611_s5] sm:$0xff] }
  0x21   : > { %3833 = vmatpush.bf16.msra.mxu2 %v3622_v59  ;;  %v1888_v27 = vsel %vm1294_vm4, %v1886_v14, %v1887_v21  ;;  %v2084_v39 = vmul.f32 %v4145_v9, %v4072_v33  ;;  %v2085_v41 = vmul.f32 %v4145_v9, %v4085_v37  ;;  %v1890_v45 = vsel %vm1294_vm4, %v1887_v21, %v1889_v25  ;;  %v4195_v14 = vld [vmem:[%s5610_s4] ss:$0 sm:$0xff] }
  0x22   : > { %2694 = vmatpush.bf16.msra.mxu0 %v3622_v59  ;;  %v1732_v43 = vadd.f32 %v1646_v17, %v1490_v23  ;;  %v1733_v44 = vadd.f32 %v1648_v18, %v1491_v24  ;;  %v2325_v47 = vmul.f32 %v4152_v15, %v4078_v35  ;;  %v2195_v50 = vrot.slane %v2083_v38, 1 }
  0x23   : > { %v2196_v51 = vrot.slane %v2084_v39, 1  ;;  %v2198_v52 = vrot.slane %v2085_v41, 1  ;;  %v2326_v53 = vmul.f32 %v4152_v15, %v4072_v33  ;;  %v2327_v56 = vmul.f32 %v4152_v15, %v4085_v37 }
  0x24   : > { %v1974_v54 = vadd.f32 %v1888_v27, %v1732_v43  ;;  %v1975_v55 = vadd.f32 %v1890_v45, %v1733_v44  ;;  %v2437_v57 = vrot.slane %v2325_v47, 2  ;;  %v3647_v62 = vunpack.c.l.bf16 %v3646_v48  ;;  %v3637_v27 = vld [vmem:[%s4027_s21 + $0x48] sm:$0xff] }
  0x25   : > { %3834 = vmatpush.bf16.msra.mxu2 %v3621_v16  ;;  %v2197_v59 = vsel %vm1051_vm3, %v2195_v50, %v2196_v51  ;;  %v2199_v60 = vsel %vm1051_vm3, %v2196_v51, %v2198_v52  ;;  %v2438_v61 = vrot.slane %v2326_v53, 2  ;;  %v2440_v2 = vrot.slane %v2327_v56, 2  ;;  %3605 = vmatmul.msk.bf16.vlgmr.msra.gmra.mxu3 %vm2974_vm1, %v3637_v27 }
  0x26   : > { %2695 = vmatpush.bf16.msra.mxu0 %v3621_v16  ;;  %v2041_v63 = vadd.f32 %v2009_v22, %v1974_v54  ;;  %v2042_v1 = vadd.f32 %v2010_v26, %v1975_v55  ;;  %v3648_v3 = vunpack.c.h.bf16 %v3646_v48  ;;  %v633_v6 = vmul.f32 0.0, %v3647_v62 }
  0x27   : > { %v2439_v5 = vsel %vm1294_vm4, %v2437_v57, %v2438_v61  ;;  %v3651_v7 = vunpack.c.l.bf16 %v3650_v58  ;;  %v3652_v8 = vunpack.c.h.bf16 %v3650_v58  ;;  %v2441_v12 = vsel %vm1294_vm4, %v2438_v61, %v2440_v2 }
  0x28   : > { %v2283_v10 = vadd.f32 %v2197_v59, %v2041_v63  ;;  %v2284_v11 = vadd.f32 %v2199_v60, %v2042_v1  ;;  %v634_v16 = vmul.f32 0.0, %v3648_v3  ;;  %v3655_v17 = vunpack.c.l.bf16 %v3798_v4 }
  0x29   : > { %3597 = vmatmul.msk.bf16.gmra.mxu1 %vm2974_vm1, %v3629_v42  ;;  %3835 = vmatpush.bf16.msra.mxu2 %v3620_v49  ;;  %v3656_v18 = vunpack.c.h.bf16 %v3798_v4  ;;  %v743_v21 = vrot.slane %v633_v6, 7  ;;  %v746_v22 = vrot.slane %v3651_v7, 7  ;;  %v747_v26 = vrot.slane %v3652_v8, 7 }
  0x2a   : > { %2696 = vmatpush.bf16.msra.mxu0 %v3620_v49  ;;  %v2525_v23 = vadd.f32 %v2439_v5, %v2283_v10  ;;  %v2526_v24 = vadd.f32 %v2441_v12, %v2284_v11  ;;  %v744_v25 = vrot.slane %v634_v16, 7  ;;  %v749_v38 = vrot.slane %v3655_v17, 7  ;;  %v3630_v10 = vld [vmem:[%s4027_s21 + $0x10] sm:$0xff] }
  0x2b   : > { %v750_v39 = vrot.slane %v3656_v18, 7  ;;  %v851_v41 = vsel %vm742_vm2, 0.0, %v743_v21  ;;  %v4200_v42 = vsel %vm742_vm2, 0.0, %v746_v22  ;;  %v4206_v47 = vsel %vm742_vm2, %v746_v22, %v747_v26 }
  0x2c   : > { %v2561_v43 = vadd.f32 %v4195_v14, %v2525_v23  ;;  %v2562_v44 = vadd.f32 %v4195_v14, %v2526_v24  ;;  %v745_v45 = vsel %vm742_vm2, %v743_v21, %v744_v25  ;;  %v4213_v49 = vsel %vm742_vm2, 0.0, %v749_v38 }
  0x2d   : > { %v4210_v48 = vsel %vm742_vm2, %v749_v38, %v750_v39  ;;  %v869_v50 = vsel %vm742_vm2, %v744_v25, 0.0  ;;  %v4217_v51 = vsel %vm742_vm2, %v747_v26, 0.0  ;;  %v4220_v54 = vsel %vm742_vm2, %v750_v39, 0.0 }
  0x2e   : > { %v2593_v52 = vmax.f32 %v2561_v43, 0.0  ;;  %v2594_v53 = vmax.f32 %v2562_v44, 0.0  ;;  %v889_v55 = vmul.f32 %v4038_v13, %v851_v41  ;;  %v890_v56 = vmul.f32 %v4038_v13, %v745_v45 }
  0x2f   : > { %v955_v57 = vmul.f32 %v4046_v19, %v851_v41  ;;  %v956_v58 = vmul.f32 %v4046_v19, %v745_v45  ;;  %v957_v59 = vmul.f32 %v4046_v19, %v869_v50  ;;  %v1198_v61 = vmul.f32 %v4051_v20, %v851_v41 }
  0x30   : > { %v2617_v60 = vpack.c.bf16 %v2594_v53, %v2593_v52  ;;  %v1199_v62 = vmul.f32 %v4051_v20, %v745_v45  ;;  %v1200_v63 = vmul.f32 %v4051_v20, %v869_v50  ;;  %v1442_v4 = vmul.f32 %v4066_v31, %v4200_v42 }
  0x31   : > { %v1052_v1 = vrot.slane %v955_v57, 1  ;;  %v1053_v2 = vrot.slane %v956_v58, 1  ;;  %v1055_v3 = vrot.slane %v957_v59, 1  ;;  %v1295_v5 = vrot.slane %v1198_v61, 2 }
  0x32   : > { %2737 = vmatmul.bf16.vlgmr.msra.gmra.mxu2 %v2617_v60  ;;  %v1296_v6 = vrot.slane %v1199_v62, 2  ;;  %v1298_v7 = vrot.slane %v1200_v63, 2  ;;  %v1443_v8 = vmul.f32 %v4066_v31, %v4206_v47  ;;  %v1508_v16 = vmul.f32 %v4094_v40, %v4200_v42 }
  0x33   : > { %v1054_v11 = vsel %vm1051_vm3, %v1052_v1, %v1053_v2  ;;  %v1056_v12 = vsel %vm1051_vm3, %v1053_v2, %v1055_v3  ;;  %v1509_v17 = vmul.f32 %v4094_v40, %v4206_v47  ;;  %v1510_v24 = vmul.f32 %v4094_v40, %v4217_v51  ;;  %v3807_v3 = vld [vmem:[%s4018_s16 + $0x50] sm:$0xff]  }
  0x34   : > { %v1164_v18 = vadd.f32 %v1054_v11, %v889_v55  ;;  %v1165_v21 = vadd.f32 %v1056_v12, %v890_v56  ;;  %v1297_v22 = vsel %vm1294_vm4, %v1295_v5, %v1296_v6  ;;  %v1299_v23 = vsel %vm1294_vm4, %v1296_v6, %v1298_v7 }
  0x35   : > { %v1604_v25 = vrot.slane %v1508_v16, 1  ;;  %v1605_v26 = vrot.slane %v1509_v17, 1  ;;  %v1750_v27 = vmul.f32 %v4110_v46, %v4200_v42  ;;  %v1751_v41 = vmul.f32 %v4110_v46, %v4206_v47 }
  0x36   : > { %v1407_v38 = vadd.f32 %v1297_v22, %v1164_v18  ;;  %v1408_v39 = vadd.f32 %v1299_v23, %v1165_v21  ;;  %v1752_v43 = vmul.f32 %v4110_v46, %v4217_v51  ;;  %v1607_v45 = vrot.slane %v1510_v24, 1 }
  0x37   : > { %v1606_v44 = vsel %vm1051_vm3, %v1604_v25, %v1605_v26  ;;  %v1846_v50 = vrot.slane %v1750_v27, 2  ;;  %v1993_v52 = vmul.f32 %v4136_v0, %v4213_v49  ;;  %v1847_v56 = vrot.slane %v1751_v41, 2 }
  0x38   : > { %v1474_v53 = vadd.f32 %v1442_v4, %v1407_v38  ;;  %v1475_v55 = vadd.f32 %v1443_v8, %v1408_v39  ;;  %v1849_v57 = vrot.slane %v1752_v43, 2  ;;  %v1608_v58 = vsel %vm1051_vm3, %v1605_v26, %v1607_v45 }
  0x39   : > { %3598 = vmatmul.msk.bf16.gmra.mxu1 %vm2974_vm1, %v3630_v10  ;;  %v1994_v59 = vmul.f32 %v4136_v0, %v4210_v48  ;;  %v2059_v60 = vmul.f32 %v4145_v9, %v4213_v49  ;;  %v2060_v61 = vmul.f32 %v4145_v9, %v4210_v48  ;;  %v1848_v1 = vsel %vm1294_vm4, %v1846_v50, %v1847_v56 }
  0x3a   : > { %v1716_v62 = vadd.f32 %v1606_v44, %v1474_v53  ;;  %v1717_v63 = vadd.f32 %v1608_v58, %v1475_v55  ;;  %v1850_v2 = vsel %vm1294_vm4, %v1847_v56, %v1849_v57  ;;  %v2061_v4 = vmul.f32 %v4145_v9, %v4220_v54 }
  0x3b   : > { %v2155_v5 = vrot.slane %v2059_v60, 1  ;;  %v2156_v6 = vrot.slane %v2060_v61, 1  ;;  %v2301_v7 = vmul.f32 %v4152_v15, %v4213_v49  ;;  %v2302_v11 = vmul.f32 %v4152_v15, %v4210_v48 }
  0x3c   : > { %v1958_v8 = vadd.f32 %v1848_v1, %v1716_v62  ;;  %v1959_v10 = vadd.f32 %v1850_v2, %v1717_v63  ;;  %v2303_v12 = vmul.f32 %v4152_v15, %v4220_v54  ;;  %v2158_v17 = vrot.slane %v2061_v4, 1 }
  0x3d   : > { %v2157_v16 = vsel %vm1051_vm3, %v2155_v5, %v2156_v6  ;;  %v2397_v18 = vrot.slane %v2301_v7, 2  ;;  %v3691_v21 = vunpack.c.l.bf16 %v3807_v3  ;;  %v2398_v24 = vrot.slane %v2302_v11, 2 }
  0x3e   : > { %v2025_v22 = vadd.f32 %v1993_v52, %v1958_v8  ;;  %v2026_v23 = vadd.f32 %v1994_v59, %v1959_v10  ;;  %v2400_v25 = vrot.slane %v2303_v12, 2  ;;  %v2159_v26 = vsel %vm1051_vm3, %v2156_v6, %v2158_v17 }
  0x3f   : > { %v3692_v27 = vunpack.c.h.bf16 %v3807_v3  ;;  %v776_v38 = vrot.slane %v3691_v21, 7  ;;  %v907_v39 = vmul.f32 %v4038_v13, %v4075_v34  ;;  %v2399_v44 = vsel %vm1294_vm4, %v2397_v18, %v2398_v24 }
  0x40   : > { %v2267_v41 = vadd.f32 %v2157_v16, %v2025_v22  ;;  %v2268_v43 = vadd.f32 %v2159_v26, %v2026_v23  ;;  %v2401_v45 = vsel %vm1294_vm4, %v2398_v24, %v2400_v25  ;;  %v908_v52 = vmul.f32 %v4038_v13, %v4069_v32 }
  0x41   : > { %v777_v50 = vrot.slane %v3692_v27, 7  ;;  %v4280_v53 = vsel %vm742_vm2, 0.0, %v776_v38  ;;  %v982_v55 = vmul.f32 %v4046_v19, %v4075_v34  ;;  %v983_v58 = vmul.f32 %v4046_v19, %v4069_v32 }
  0x42   : > { %v2509_v56 = vadd.f32 %v2399_v44, %v2267_v41  ;;  %v2510_v57 = vadd.f32 %v2401_v45, %v2268_v43  ;;  %v984_v59 = vmul.f32 %v4046_v19, %v4082_v36  ;;  %v1225_v63 = vmul.f32 %v4051_v20, %v4075_v34 }
  0x43   : > { %v4291_v60 = vsel %vm742_vm2, %v776_v38, %v777_v50  ;;  %v4294_v61 = vsel %vm742_vm2, %v777_v50, 0.0  ;;  %v1097_v62 = vrot.slane %v982_v55, 1  ;;  %v1098_v3 = vrot.slane %v983_v58, 1 }
  0x44   : > { %v2545_v1 = vadd.f32 %v4195_v14, %v2509_v56  ;;  %v2546_v2 = vadd.f32 %v4195_v14, %v2510_v57  ;;  %v1100_v4 = vrot.slane %v984_v59, 1  ;;  %v1226_v5 = vmul.f32 %v4051_v20, %v4069_v32 }
  0x45   : > { %v1227_v6 = vmul.f32 %v4051_v20, %v4082_v36  ;;  %v1340_v7 = vrot.slane %v1225_v63, 2  ;;  %v1460_v8 = vmul.f32 %v4066_v31, %v4078_v35  ;;  %v1099_v12 = vsel %vm1051_vm3, %v1097_v62, %v1098_v3 }
  0x46   : > { %v2577_v10 = vmax.f32 %v2545_v1, 0.0  ;;  %v2578_v11 = vmax.f32 %v2546_v2, 0.0  ;;  %v1101_v16 = vsel %vm1051_vm3, %v1098_v3, %v1100_v4  ;;  %v1182_v17 = vadd.f32 %v1099_v12, %v907_v39 }
  0x47   : > { %v1183_v18 = vadd.f32 %v1101_v16, %v908_v52  ;;  %v1341_v21 = vrot.slane %v1226_v5, 2  ;;  %v1343_v22 = vrot.slane %v1227_v6, 2  ;;  %v1461_v24 = vmul.f32 %v4066_v31, %v4072_v33 }
  0x48   : > { %v2609_v23 = vpack.c.bf16 %v2578_v11, %v2577_v10  ;;  %v1535_v25 = vmul.f32 %v4094_v40, %v4078_v35  ;;  %v1536_v26 = vmul.f32 %v4094_v40, %v4072_v33  ;;  %v1537_v39 = vmul.f32 %v4094_v40, %v4085_v37 }
  0x49   : > { %v1342_v27 = vsel %vm1294_vm4, %v1340_v7, %v1341_v21  ;;  %v1344_v38 = vsel %vm1294_vm4, %v1341_v21, %v1343_v22  ;;  %v1777_v41 = vmul.f32 %v4110_v46, %v4078_v35  ;;  %v1778_v55 = vmul.f32 %v4110_v46, %v4072_v33 }
  0x4a   : > { %2697 = vmatmul.bf16.vlgmr.msra.gmra.mxu0 %v2609_v23  ;;  %v1425_v43 = vadd.f32 %v1342_v27, %v1182_v17  ;;  %v1426_v44 = vadd.f32 %v1344_v38, %v1183_v18  ;;  %v1649_v45 = vrot.slane %v1535_v25, 1  ;;  %v1650_v50 = vrot.slane %v1536_v26, 1  ;;  %v3799_v17 = vld [vmem:[%s4018_s16 + $0x10] sm:$0xff]  }
  0x4b   : > { %v1652_v52 = vrot.slane %v1537_v39, 1  ;;  %v1779_v56 = vmul.f32 %v4110_v46, %v4085_v37  ;;  %v1891_v57 = vrot.slane %v1777_v41, 2  ;;  %v2011_v63 = vmul.f32 %v4136_v0, %v4280_v53 }
  0x4c   : > { %v1492_v58 = vadd.f32 %v1460_v8, %v1425_v43  ;;  %v1493_v59 = vadd.f32 %v1461_v24, %v1426_v44  ;;  %v1651_v62 = vsel %vm1051_vm3, %v1649_v45, %v1650_v50  ;;  %v1892_v2 = vrot.slane %v1778_v55, 2  ;;  %v3631_v55 = vld [vmem:[%s4027_s21 + $0x18] sm:$0xff] }
  0x4d   : > { %v1653_v1 = vsel %vm1051_vm3, %v1650_v50, %v1652_v52  ;;  %v1894_v3 = vrot.slane %v1779_v56, 2  ;;  %v2012_v4 = vmul.f32 %v4136_v0, %v4291_v60  ;;  %v2086_v7 = vmul.f32 %v4145_v9, %v4280_v53  ;;  %v3638_v56 = vld [vmem:[%s4027_s21 + $0x50] sm:$0xff]  ;;  %3599 = vmatmul.msk.bf16.gmra.mxu1 %vm2974_vm1, %v3631_v55 }
  0x4e   : > { %v1734_v5 = vadd.f32 %v1651_v62, %v1492_v58  ;;  %v1735_v6 = vadd.f32 %v1653_v1, %v1493_v59  ;;  %v2087_v8 = vmul.f32 %v4145_v9, %v4291_v60  ;;  %v1893_v10 = vsel %vm1294_vm4, %v1891_v57, %v1892_v2  ;;  %3606 = vmatmul.msk.bf16.gmra.mxu3 %vm2974_vm1, %v3638_v56 }
  0x4f   : > { %v1895_v11 = vsel %vm1294_vm4, %v1892_v2, %v1894_v3  ;;  %v2088_v12 = vmul.f32 %v4145_v9, %v4294_v61  ;;  %v2328_v16 = vmul.f32 %v4152_v15, %v4280_v53  ;;  %v2200_v22 = vrot.slane %v2086_v7, 1 }
  0x50   : > { %v1976_v18 = vadd.f32 %v1893_v10, %v1734_v5  ;;  %v1977_v21 = vadd.f32 %v1895_v11, %v1735_v6  ;;  %v2201_v23 = vrot.slane %v2087_v8, 1  ;;  %v2329_v25 = vmul.f32 %v4152_v15, %v4291_v60 }
  0x51   : > { %v2203_v24 = vrot.slane %v2088_v12, 1  ;;  %v2330_v26 = vmul.f32 %v4152_v15, %v4294_v61  ;;  %v2442_v27 = vrot.slane %v2328_v16, 2  ;;  %v3659_v43 = vunpack.c.l.bf16 %v3799_v17 }
  0x52   : > { %v2043_v38 = vadd.f32 %v2011_v63, %v1976_v18  ;;  %v2044_v39 = vadd.f32 %v2012_v4, %v1977_v21  ;;  %v2202_v41 = vsel %vm1051_vm3, %v2200_v22, %v2201_v23  ;;  %v2443_v45 = vrot.slane %v2329_v25, 2 }
  0x53   : > { %v2204_v44 = vsel %vm1051_vm3, %v2201_v23, %v2203_v24  ;;  %v2445_v50 = vrot.slane %v2330_v26, 2  ;;  %v3660_v52 = vunpack.c.h.bf16 %v3799_v17  ;;  %v752_v59 = vrot.slane %v3659_v43, 7 }
  0x54   : > { %v2285_v57 = vadd.f32 %v2202_v41, %v2043_v38  ;;  %v2286_v58 = vadd.f32 %v2204_v44, %v2044_v39  ;;  %v891_v62 = vmul.f32 %v4038_v13, %v4200_v42  ;;  %v2444_v1 = vsel %vm1294_vm4, %v2442_v27, %v2443_v45 }
  0x55   : > { %v2446_v63 = vsel %vm1294_vm4, %v2443_v45, %v2445_v50  ;;  %v753_v2 = vrot.slane %v3660_v52, 7  ;;  %v892_v3 = vmul.f32 %v4038_v13, %v4206_v47  ;;  %v4358_v6 = vsel %vm742_vm2, 0.0, %v752_v59 }
  0x56   : > { %v2527_v4 = vadd.f32 %v2444_v1, %v2285_v57  ;;  %v2528_v5 = vadd.f32 %v2446_v63, %v2286_v58  ;;  %v958_v7 = vmul.f32 %v4046_v19, %v4200_v42  ;;  %v959_v11 = vmul.f32 %v4046_v19, %v4206_v47 }
  0x57   : > { %v4363_v8 = vsel %vm742_vm2, %v752_v59, %v753_v2  ;;  %v4366_v10 = vsel %vm742_vm2, %v753_v2, 0.0  ;;  %v960_v12 = vmul.f32 %v4046_v19, %v4217_v51  ;;  %v1201_v21 = vmul.f32 %v4051_v20, %v4200_v42 }
  0x58   : > { %v2563_v16 = vadd.f32 %v4195_v14, %v2527_v4  ;;  %v2564_v17 = vadd.f32 %v4195_v14, %v2528_v5  ;;  %v1057_v18 = vrot.slane %v958_v7, 1  ;;  %v1058_v22 = vrot.slane %v959_v11, 1 }
  0x59   : > { %v1060_v23 = vrot.slane %v960_v12, 1  ;;  %v1202_v24 = vmul.f32 %v4051_v20, %v4206_v47  ;;  %v1203_v25 = vmul.f32 %v4051_v20, %v4217_v51  ;;  %v1300_v38 = vrot.slane %v1201_v21, 2 }
  0x5a   : > { %v2595_v26 = vmax.f32 %v2563_v16, 0.0  ;;  %v2596_v27 = vmax.f32 %v2564_v17, 0.0  ;;  %v1444_v39 = vmul.f32 %v4066_v31, %v4213_v49  ;;  %v1059_v41 = vsel %vm1051_vm3, %v1057_v18, %v1058_v22 }
  0x5b   : > { %v1061_v43 = vsel %vm1051_vm3, %v1058_v22, %v1060_v23  ;;  %v1301_v44 = vrot.slane %v1202_v24, 2  ;;  %v1303_v42 = vrot.slane %v1203_v25, 2  ;;  %v1166_v50 = vadd.f32 %v1059_v41, %v891_v62  ;;  %v3808_v41 = vld [vmem:[%s4018_s16 + $0x58] sm:$0xff]  }
  0x5c   : > { %v2618_v45 = vpack.c.bf16 %v2596_v27, %v2595_v26  ;;  %v1167_v52 = vadd.f32 %v1061_v43, %v892_v3  ;;  %v1445_v47 = vmul.f32 %v4066_v31, %v4210_v48  ;;  %v1511_v56 = vmul.f32 %v4094_v40, %v4213_v49 }
  0x5d   : > { %v1302_v51 = vsel %vm1294_vm4, %v1300_v38, %v1301_v44  ;;  %v1304_v55 = vsel %vm1294_vm4, %v1301_v44, %v1303_v42  ;;  %v1512_v57 = vmul.f32 %v4094_v40, %v4210_v48  ;;  %v1513_v62 = vmul.f32 %v4094_v40, %v4220_v54 }
  0x5e   : > { %2742 = vmatmul.bf16.gmra.mxu2 %v2618_v45  ;;  %v1409_v58 = vadd.f32 %v1302_v51, %v1166_v50  ;;  %v1410_v59 = vadd.f32 %v1304_v55, %v1167_v52  ;;  %v1753_v1 = vmul.f32 %v4110_v46, %v4213_v49  ;;  %v1609_v63 = vrot.slane %v1511_v56, 1 }
  0x5f   : > { %v1610_v2 = vrot.slane %v1512_v57, 1  ;;  %v1754_v3 = vmul.f32 %v4110_v46, %v4210_v48  ;;  %v1755_v4 = vmul.f32 %v4110_v46, %v4220_v54  ;;  %v1612_v11 = vrot.slane %v1513_v62, 1 }
  0x60   : > { %v1476_v5 = vadd.f32 %v1444_v39, %v1409_v58  ;;  %v1477_v7 = vadd.f32 %v1445_v47, %v1410_v59  ;;  %v1851_v12 = vrot.slane %v1753_v1, 2  ;;  %v1995_v21 = vmul.f32 %v4136_v0, %v4358_v6 }
  0x61   : > { %v1611_v16 = vsel %vm1051_vm3, %v1609_v63, %v1610_v2  ;;  %v1852_v17 = vrot.slane %v1754_v3, 2  ;;  %v1854_v18 = vrot.slane %v1755_v4, 2  ;;  %v1613_v22 = vsel %vm1051_vm3, %v1610_v2, %v1612_v11 }
  0x62   : > { %v1718_v23 = vadd.f32 %v1611_v16, %v1476_v5  ;;  %v1996_v24 = vmul.f32 %v4136_v0, %v4363_v8  ;;  %v2062_v25 = vmul.f32 %v4145_v9, %v4358_v6  ;;  %v1719_v26 = vadd.f32 %v1613_v22, %v1477_v7 }
  0x63   : > { %v1853_v27 = vsel %vm1294_vm4, %v1851_v12, %v1852_v17  ;;  %v1855_v38 = vsel %vm1294_vm4, %v1852_v17, %v1854_v18  ;;  %v2063_v39 = vmul.f32 %v4145_v9, %v4363_v8  ;;  %v2064_v44 = vmul.f32 %v4145_v9, %v4366_v10 }
  0x64   : > { %v1960_v43 = vadd.f32 %v1853_v27, %v1718_v23  ;;  %v2160_v42 = vrot.slane %v2062_v25, 1  ;;  %v2304_v45 = vmul.f32 %v4152_v15, %v4358_v6  ;;  %v1961_v50 = vadd.f32 %v1855_v38, %v1719_v26 }
  0x65   : > { %v2161_v52 = vrot.slane %v2063_v39, 1  ;;  %v2305_v47 = vmul.f32 %v4152_v15, %v4363_v8  ;;  %v2306_v51 = vmul.f32 %v4152_v15, %v4366_v10  ;;  %v2163_v56 = vrot.slane %v2064_v44, 1 }
  0x66   : > { %v2027_v55 = vadd.f32 %v1995_v21, %v1960_v43  ;;  %v2402_v57 = vrot.slane %v2304_v45, 2  ;;  %v3695_v58 = vunpack.c.l.bf16 %v3808_v41  ;;  %v2028_v59 = vadd.f32 %v1996_v24, %v1961_v50 }
  0x67   : > { %v2162_v62 = vsel %vm1051_vm3, %v2160_v42, %v2161_v52  ;;  %v2403_v1 = vrot.slane %v2305_v47, 2  ;;  %v2405_v63 = vrot.slane %v2306_v51, 2  ;;  %v2164_v2 = vsel %vm1051_vm3, %v2161_v52, %v2163_v56 }
  0x68   : > { %v2269_v3 = vadd.f32 %v2162_v62, %v2027_v55  ;;  %v3696_v4 = vunpack.c.h.bf16 %v3808_v41  ;;  %v779_v5 = vrot.slane %v3695_v58, 7  ;;  %v2270_v7 = vadd.f32 %v2164_v2, %v2028_v59 }
  0x69   : > { %v2404_v11 = vsel %vm1294_vm4, %v2402_v57, %v2403_v1  ;;  %v2406_v12 = vsel %vm1294_vm4, %v2403_v1, %v2405_v63  ;;  %v909_v16 = vmul.f32 %v4038_v13, %v4078_v35  ;;  %v910_v22 = vmul.f32 %v4038_v13, %v4072_v33 }
  0x6a   : > { %v2511_v17 = vadd.f32 %v2404_v11, %v2269_v3  ;;  %v780_v18 = vrot.slane %v3696_v4, 7  ;;  %v4428_v21 = vsel %vm742_vm2, 0.0, %v779_v5  ;;  %v2512_v23 = vadd.f32 %v2406_v12, %v2270_v7 }
  0x6b   : > { %v985_v24 = vmul.f32 %v4046_v19, %v4078_v35  ;;  %v986_v25 = vmul.f32 %v4046_v19, %v4072_v33  ;;  %v987_v26 = vmul.f32 %v4046_v19, %v4085_v37  ;;  %v1228_v41 = vmul.f32 %v4051_v20, %v4078_v35 }
  0x6c   : > { %v2547_v27 = vadd.f32 %v4195_v14, %v2511_v17  ;;  %v4440_v38 = vsel %vm742_vm2, %v779_v5, %v780_v18  ;;  %v4443_v39 = vsel %vm742_vm2, %v780_v18, 0.0  ;;  %v2548_v43 = vadd.f32 %v4195_v14, %v2512_v23 }
  0x6d   : > { %v1102_v44 = vrot.slane %v985_v24, 1  ;;  %v1103_v42 = vrot.slane %v986_v25, 1  ;;  %v1105_v45 = vrot.slane %v987_v26, 1  ;;  %v1229_v52 = vmul.f32 %v4051_v20, %v4072_v33 }
  0x6e   : > { %v2579_v50 = vmax.f32 %v2547_v27, 0.0  ;;  %v1230_v47 = vmul.f32 %v4051_v20, %v4085_v37  ;;  %v1345_v51 = vrot.slane %v1228_v41, 2  ;;  %v2580_v55 = vmax.f32 %v2548_v43, 0.0 }
  0x6f   : > { %v1104_v56 = vsel %vm1051_vm3, %v1102_v44, %v1103_v42  ;;  %v1106_v57 = vsel %vm1051_vm3, %v1103_v42, %v1105_v45  ;;  %v1462_v35 = vmul.f32 %v4066_v31, %v4280_v53  ;;  %v1346_v62 = vrot.slane %v1229_v52, 2 }
  0x70   : > { %v1184_v58 = vadd.f32 %v1104_v56, %v909_v16  ;;  %v1185_v59 = vadd.f32 %v1106_v57, %v910_v22  ;;  %v1348_v1 = vrot.slane %v1230_v47, 2  ;;  %v2610_v63 = vpack.c.bf16 %v2580_v55, %v2579_v50 }
  0x71   : > { %v1463_v33 = vmul.f32 %v4066_v31, %v4291_v60  ;;  %v1538_v37 = vmul.f32 %v4094_v40, %v4280_v53  ;;  %v1539_v2 = vmul.f32 %v4094_v40, %v4291_v60  ;;  %v1347_v3 = vsel %vm1294_vm4, %v1345_v51, %v1346_v62 }
  0x72   : > { %v1349_v4 = vsel %vm1294_vm4, %v1346_v62, %v1348_v1  ;;  %v1540_v5 = vmul.f32 %v4094_v40, %v4294_v61  ;;  %v1780_v7 = vmul.f32 %v4110_v46, %v4280_v53  ;;  %2702 = vmatmul.bf16.gmra.mxu0 %v2610_v63  ;;  %v1427_v11 = vadd.f32 %v1347_v3, %v1184_v58  ;;  %v3800_v58 = vld [vmem:[%s4018_s16 + $0x18] sm:$0xff]  }
  0x73   : > { %v1428_v12 = vadd.f32 %v1349_v4, %v1185_v59  ;;  %v1654_v16 = vrot.slane %v1538_v37, 1  ;;  %v1655_v17 = vrot.slane %v1539_v2, 1  ;;  %v1781_v22 = vmul.f32 %v4110_v46, %v4291_v60 }
  0x74   : > { %v1657_v18 = vrot.slane %v1540_v5, 1  ;;  %v1782_v23 = vmul.f32 %v4110_v46, %v4294_v61  ;;  %v1896_v24 = vrot.slane %v1780_v7, 2  ;;  %v1494_v25 = vadd.f32 %v1462_v35, %v1427_v11 }
  0x75   : > { %v1495_v26 = vadd.f32 %v1463_v33, %v1428_v12  ;;  %v1656_v27 = vsel %vm1051_vm3, %v1654_v16, %v1655_v17  ;;  %v2013_v41 = vmul.f32 %v4136_v0, %v4428_v21  ;;  %v1897_v44 = vrot.slane %v1781_v22, 2  ;;  %v3632_v22 = vld [vmem:[%s4027_s21 + $0x20] sm:$0xff] }
  0x76   : > { %v1658_v43 = vsel %vm1051_vm3, %v1655_v17, %v1657_v18  ;;  %v1899_v42 = vrot.slane %v1782_v23, 2  ;;  %v2014_v45 = vmul.f32 %v4136_v0, %v4440_v38  ;;  %v1736_v50 = vadd.f32 %v1656_v27, %v1494_v25  ;;  %v3639_v23 = vld [vmem:[%s4027_s21 + $0x58] sm:$0xff]  ;;  %3600 = vmatmul.msk.bf16.gmra.mxu1 %vm2974_vm1, %v3632_v22 }
  0x77   : > { %v1737_v52 = vadd.f32 %v1658_v43, %v1495_v26  ;;  %v2089_v47 = vmul.f32 %v4145_v9, %v4428_v21  ;;  %v2090_v51 = vmul.f32 %v4145_v9, %v4440_v38  ;;  %v1898_v55 = vsel %vm1294_vm4, %v1896_v24, %v1897_v44  ;;  %3607 = vmatmul.msk.bf16.gmra.mxu3 %vm2974_vm1, %v3639_v23 }
  0x78   : > { %v1900_v56 = vsel %vm1294_vm4, %v1897_v44, %v1899_v42  ;;  %v2091_v57 = vmul.f32 %v4145_v9, %v4443_v39  ;;  %v2331_v35 = vmul.f32 %v4152_v15, %v4428_v21  ;;  %v1978_v59 = vadd.f32 %v1898_v55, %v1736_v50 }
  0x79   : > { %v1979_v62 = vadd.f32 %v1900_v56, %v1737_v52  ;;  %v2205_v1 = vrot.slane %v2089_v47, 1  ;;  %v2206_v63 = vrot.slane %v2090_v51, 1  ;;  %v2332_v37 = vmul.f32 %v4152_v15, %v4440_v38 }
  0x7a   : > { %v2208_v33 = vrot.slane %v2091_v57, 1  ;;  %v2333_v2 = vmul.f32 %v4152_v15, %v4443_v39  ;;  %v2447_v3 = vrot.slane %v2331_v35, 2  ;;  %v2045_v4 = vadd.f32 %v2013_v41, %v1978_v59 }
  0x7b   : > { %v2046_v5 = vadd.f32 %v2014_v45, %v1979_v62  ;;  %v2207_v7 = vsel %vm1051_vm3, %v2205_v1, %v2206_v63  ;;  %v3663_v11 = vunpack.c.l.bf16 %v3800_v58  ;;  %v2448_v16 = vrot.slane %v2332_v37, 2 }
  0x7c   : > { %v2209_v12 = vsel %vm1051_vm3, %v2206_v63, %v2208_v33  ;;  %v2450_v17 = vrot.slane %v2333_v2, 2  ;;  %v3664_v18 = vunpack.c.h.bf16 %v3800_v58  ;;  %v2287_v24 = vadd.f32 %v2207_v7, %v2045_v4  ;;  %v4527_v63 = vld [vmem:[%s5609_s3 + $0x2] ss:$0 sm:$0xff] }
  0x7d   : > { %v2288_v25 = vadd.f32 %v2209_v12, %v2046_v5  ;;  %v755_v26 = vrot.slane %v3663_v11, 7  ;;  %v893_v27 = vmul.f32 %v4038_v13, %v4213_v49  ;;  %v2449_v43 = vsel %vm1294_vm4, %v2447_v3, %v2448_v16 }
  0x7e   : > { %v2451_v41 = vsel %vm1294_vm4, %v2448_v16, %v2450_v17  ;;  %v756_v44 = vrot.slane %v3664_v18, 7  ;;  %v894_v42 = vmul.f32 %v4038_v13, %v4210_v48  ;;  %v2529_v45 = vadd.f32 %v2449_v43, %v2287_v24 }
  0x7f   : > { %v2530_v50 = vadd.f32 %v2451_v41, %v2288_v25  ;;  %v4506_v52 = vsel %vm742_vm2, 0.0, %v755_v26  ;;  %v961_v47 = vmul.f32 %v4046_v19, %v4213_v49  ;;  %v962_v13 = vmul.f32 %v4046_v19, %v4210_v48 }
  0x80   : > { %v4511_v51 = vsel %vm742_vm2, %v755_v26, %v756_v44  ;;  %v4514_v55 = vsel %vm742_vm2, %v756_v44, 0.0  ;;  %v963_v56 = vmul.f32 %v4046_v19, %v4220_v54  ;;  %v2565_v57 = vadd.f32 %v4195_v14, %v2529_v45 }
  0x81   : > { %v2566_v35 = vadd.f32 %v4195_v14, %v2530_v50  ;;  %v1062_v58 = vrot.slane %v961_v47, 1  ;;  %v1204_v59 = vmul.f32 %v4051_v20, %v4213_v49  ;;  %v1063_v62 = vrot.slane %v962_v13, 1 }
  0x82   : > { %v1065_v1 = vrot.slane %v963_v56, 1  ;;  %v1205_v33 = vmul.f32 %v4527_v63, %v4210_v48  ;;  %v1206_v19 = vmul.f32 %v4527_v63, %v4220_v54  ;;  %v2597_v37 = vmax.f32 %v2565_v57, 0.0 }
  0x83   : > { %v2598_v2 = vmax.f32 %v2566_v35, 0.0  ;;  %v1305_v3 = vrot.slane %v1204_v59, 2  ;;  %v1446_v4 = vmul.f32 %v4066_v31, %v4358_v6  ;;  %v1064_v20 = vsel %vm1051_vm3, %v1062_v58, %v1063_v62 }
  0x84   : > { %v1066_v49 = vsel %vm1051_vm3, %v1063_v62, %v1065_v1  ;;  %v1306_v5 = vrot.slane %v1205_v33, 2  ;;  %v1308_v7 = vrot.slane %v1206_v19, 2  ;;  %v1168_v12 = vadd.f32 %v1064_v20, %v893_v27  ;;  %v3809_v19 = vld [vmem:[%s4018_s16 + $0x60] sm:$0xff]  }
  0x85   : > { %v2619_v11 = vpack.c.bf16 %v2598_v2, %v2597_v37  ;;  %v1169_v16 = vadd.f32 %v1066_v49, %v894_v42  ;;  %v1447_v48 = vmul.f32 %v4066_v31, %v4363_v8  ;;  %v1514_v18 = vmul.f32 %v4094_v40, %v4358_v6 }
  0x86   : > { %v1307_v54 = vsel %vm1294_vm4, %v1305_v3, %v1306_v5  ;;  %v1309_v17 = vsel %vm1294_vm4, %v1306_v5, %v1308_v7  ;;  %v1515_v22 = vmul.f32 %v4094_v40, %v4363_v8  ;;  %v1516_v25 = vmul.f32 %v4094_v40, %v4366_v10 }
  0x87   : > { %2747 = vmatmul.bf16.gmra.mxu2 %v2619_v11  ;;  %v1411_v23 = vadd.f32 %v1307_v54, %v1168_v12  ;;  %v1412_v24 = vadd.f32 %v1309_v17, %v1169_v16  ;;  %v1756_v26 = vmul.f32 %v4110_v46, %v4358_v6  ;;  %v1614_v31 = vrot.slane %v1514_v18, 1 }
  0x88   : > { %v1615_v27 = vrot.slane %v1515_v22, 1  ;;  %v1757_v43 = vmul.f32 %v4110_v46, %v4363_v8  ;;  %v1758_v41 = vmul.f32 %v4110_v46, %v4366_v10  ;;  %v1617_v45 = vrot.slane %v1516_v25, 1 }
  0x89   : > { %v1478_v44 = vadd.f32 %v1446_v4, %v1411_v23  ;;  %v1479_v42 = vadd.f32 %v1447_v48, %v1412_v24  ;;  %v1856_v50 = vrot.slane %v1756_v26, 2  ;;  %v1997_v56 = vmul.f32 %v4136_v0, %v4506_v52 }
  0x8a   : > { %v1616_v47 = vsel %vm1051_vm3, %v1614_v31, %v1615_v27  ;;  %v1857_v13 = vrot.slane %v1757_v43, 2  ;;  %v1859_v40 = vrot.slane %v1758_v41, 2  ;;  %v1618_v57 = vsel %vm1051_vm3, %v1615_v27, %v1617_v45 }
  0x8b   : > { %v1720_v35 = vadd.f32 %v1616_v47, %v1478_v44  ;;  %v1998_v58 = vmul.f32 %v4136_v0, %v4511_v51  ;;  %v2065_v46 = vmul.f32 %v4145_v9, %v4506_v52  ;;  %v1721_v59 = vadd.f32 %v1618_v57, %v1479_v42 }
  0x8c   : > { %v1858_v62 = vsel %vm1294_vm4, %v1856_v50, %v1857_v13  ;;  %v1860_v1 = vsel %vm1294_vm4, %v1857_v13, %v1859_v40  ;;  %v2066_v33 = vmul.f32 %v4145_v9, %v4511_v51  ;;  %v2067_v2 = vmul.f32 %v4145_v9, %v4514_v55  ;;  %v4593_v50 = vld [vmem:[%s5609_s3 + $0x1] ss:$0 sm:$0xff] }
  0x8d   : > { %v1962_v37 = vadd.f32 %v1858_v62, %v1720_v35  ;;  %v2165_v3 = vrot.slane %v2065_v46, 1  ;;  %v2307_v0 = vmul.f32 %v4152_v15, %v4506_v52  ;;  %v1963_v4 = vadd.f32 %v1860_v1, %v1721_v59 }
  0x8e   : > { %v2166_v20 = vrot.slane %v2066_v33, 1  ;;  %v2308_v49 = vmul.f32 %v4152_v15, %v4511_v51  ;;  %v2309_v5 = vmul.f32 %v4152_v15, %v4514_v55  ;;  %v2168_v11 = vrot.slane %v2067_v2, 1  ;;  %v4581_v15 = vld [vmem:[%s5609_s3] ss:$0 sm:$0xff] }
  0x8f   : > { %v2029_v7 = vadd.f32 %v1997_v56, %v1962_v37  ;;  %v2407_v12 = vrot.slane %v2307_v0, 2  ;;  %v3699_v16 = vunpack.c.l.bf16 %v3809_v19  ;;  %v2030_v48 = vadd.f32 %v1998_v58, %v1963_v4 }
  0x90   : > { %v2167_v54 = vsel %vm1051_vm3, %v2165_v3, %v2166_v20  ;;  %v2408_v9 = vrot.slane %v2308_v49, 2  ;;  %v2410_v17 = vrot.slane %v2309_v5, 2  ;;  %v2169_v18 = vsel %vm1051_vm3, %v2166_v20, %v2168_v11  ;;  %v4629_v11 = vld [vmem:[%s5609_s3 + $0x5] ss:$0 sm:$0xff] }
  0x91   : > { %v2271_v22 = vadd.f32 %v2167_v54, %v2029_v7  ;;  %v3700_v23 = vunpack.c.h.bf16 %v3809_v19  ;;  %v782_v24 = vrot.slane %v3699_v16, 7  ;;  %v2272_v25 = vadd.f32 %v2169_v18, %v2030_v48 }
  0x92   : > { %v2409_v26 = vsel %vm1294_vm4, %v2407_v12, %v2408_v9  ;;  %v2411_v31 = vsel %vm1294_vm4, %v2408_v9, %v2410_v17  ;;  %v911_v27 = vmul.f32 %v4581_v15, %v4280_v53  ;;  %v912_v42 = vmul.f32 %v4581_v15, %v4291_v60  ;;  %v4642_v17 = vld [vmem:[%s5609_s3 + $0x6] ss:$0 sm:$0xff] }
  0x93   : > { %v2513_v43 = vadd.f32 %v2409_v26, %v2271_v22  ;;  %v783_v41 = vrot.slane %v3700_v23, 7  ;;  %v4586_v44 = vsel %vm742_vm2, 0.0, %v782_v24  ;;  %v2514_v45 = vadd.f32 %v2411_v31, %v2272_v25 }
  0x94   : > { %v988_v47 = vmul.f32 %v4593_v50, %v4280_v53  ;;  %v989_v13 = vmul.f32 %v4593_v50, %v4291_v60  ;;  %v990_v40 = vmul.f32 %v4593_v50, %v4294_v61  ;;  %v1231_v58 = vmul.f32 %v4527_v63, %v4280_v53 }
  0x95   : > { %v2549_v56 = vadd.f32 %v4195_v14, %v2513_v43  ;;  %v4603_v57 = vsel %vm742_vm2, %v782_v24, %v783_v41  ;;  %v4606_v35 = vsel %vm742_vm2, %v783_v41, 0.0  ;;  %v2550_v46 = vadd.f32 %v4195_v14, %v2514_v45  ;;  %v4620_v14 = vld [vmem:[%s5609_s3 + $0x4] ss:$0 sm:$0xff] }
  0x96   : > { %v1107_v59 = vrot.slane %v988_v47, 1  ;;  %v1108_v62 = vrot.slane %v989_v13, 1  ;;  %v1110_v1 = vrot.slane %v990_v40, 1  ;;  %v1232_v19 = vmul.f32 %v4527_v63, %v4291_v60  ;;  %v4654_v47 = vld [vmem:[%s5609_s3 + $0x8] ss:$0 sm:$0xff] }
  0x97   : > { %v2581_v33 = vmax.f32 %v2549_v56, 0.0  ;;  %v1233_v37 = vmul.f32 %v4527_v63, %v4294_v61  ;;  %v1350_v2 = vrot.slane %v1231_v58, 2  ;;  %v2582_v3 = vmax.f32 %v2550_v46, 0.0 }
  0x98   : > { %v1109_v0 = vsel %vm1051_vm3, %v1107_v59, %v1108_v62  ;;  %v1111_v4 = vsel %vm1051_vm3, %v1108_v62, %v1110_v1  ;;  %v1464_v53 = vmul.f32 %v4620_v14, %v4428_v21  ;;  %v1351_v60 = vrot.slane %v1232_v19, 2  ;;  %v4664_v1 = vld [vmem:[%s5609_s3 + $0x9] ss:$0 sm:$0xff] }
  0x99   : > { %v1186_v20 = vadd.f32 %v1109_v0, %v911_v27  ;;  %v1187_v49 = vadd.f32 %v1111_v4, %v912_v42  ;;  %v1353_v5 = vrot.slane %v1233_v37, 2  ;;  %v2611_v7 = vpack.c.bf16 %v2582_v3, %v2581_v33  ;;  %v4677_v0 = vld [vmem:[%s5609_s3 + $0xa] ss:$0 sm:$0xff] }
  0x9a   : > { %v1465_v61 = vmul.f32 %v4620_v14, %v4440_v38  ;;  %v1541_v12 = vmul.f32 %v4629_v11, %v4428_v21  ;;  %v1542_v16 = vmul.f32 %v4629_v11, %v4440_v38  ;;  %v1352_v48 = vsel %vm1294_vm4, %v1350_v2, %v1351_v60 }
  0x9b   : > { %v1354_v54 = vsel %vm1294_vm4, %v1351_v60, %v1353_v5  ;;  %v1543_v9 = vmul.f32 %v4629_v11, %v4443_v39  ;;  %v1783_v18 = vmul.f32 %v4642_v17, %v4428_v21  ;;  %2707 = vmatmul.bf16.gmra.mxu0 %v2611_v7  ;;  %v1429_v22 = vadd.f32 %v1352_v48, %v1186_v20 }
  0x9c   : > { %v1430_v23 = vadd.f32 %v1354_v54, %v1187_v49  ;;  %v1659_v24 = vrot.slane %v1541_v12, 1  ;;  %v1660_v25 = vrot.slane %v1542_v16, 1  ;;  %v1784_v31 = vmul.f32 %v4642_v17, %v4440_v38 }
  0x9d   : > { %v1662_v26 = vrot.slane %v1543_v9, 1  ;;  %v1785_v27 = vmul.f32 %v4642_v17, %v4443_v39  ;;  %v1901_v43 = vrot.slane %v1783_v18, 2  ;;  %v1496_v41 = vadd.f32 %v1464_v53, %v1429_v22  ;;  %v3801_v53 = vld [vmem:[%s4018_s16 + $0x20] sm:$0xff]  }
  0x9e   : > { %v1497_v42 = vadd.f32 %v1465_v61, %v1430_v23  ;;  %v1661_v45 = vsel %vm1051_vm3, %v1659_v24, %v1660_v25  ;;  %v2015_v13 = vmul.f32 %v4654_v47, %v4586_v44  ;;  %v1902_v56 = vrot.slane %v1784_v31, 2  ;;  %v3640_v31 = vld [vmem:[%s4027_s21 + $0x60] sm:$0xff] }
  0x9f   : > { %v1663_v40 = vsel %vm1051_vm3, %v1660_v25, %v1662_v26  ;;  %v1904_v58 = vrot.slane %v1785_v27, 2  ;;  %v2016_v46 = vmul.f32 %v4654_v47, %v4603_v57  ;;  %v1738_v59 = vadd.f32 %v1661_v45, %v1496_v41  ;;  %v3633_v26 = vld [vmem:[%s4027_s21 + $0x28] sm:$0xff]  ;;  %3608 = vmatmul.msk.bf16.gmra.mxu3 %vm2974_vm1, %v3640_v31 }
  0xa0   : > { %v1739_v62 = vadd.f32 %v1663_v40, %v1497_v42  ;;  %v2092_v33 = vmul.f32 %v4664_v1, %v4586_v44  ;;  %v2093_v19 = vmul.f32 %v4664_v1, %v4603_v57  ;;  %v1903_v37 = vsel %vm1294_vm4, %v1901_v43, %v1902_v56  ;;  %3601 = vmatmul.msk.bf16.gmra.mxu1 %vm2974_vm1, %v3633_v26 }
  0xa1   : > { %v1905_v2 = vsel %vm1294_vm4, %v1902_v56, %v1904_v58  ;;  %v2094_v3 = vmul.f32 %v4664_v1, %v4606_v35  ;;  %v2334_v4 = vmul.f32 %v4677_v0, %v4586_v44  ;;  %v1980_v20 = vadd.f32 %v1903_v37, %v1738_v59 }
  0xa2   : > { %v1981_v49 = vadd.f32 %v1905_v2, %v1739_v62  ;;  %v2210_v60 = vrot.slane %v2092_v33, 1  ;;  %v2211_v5 = vrot.slane %v2093_v19, 1  ;;  %v2335_v61 = vmul.f32 %v4677_v0, %v4603_v57 }
  0xa3   : > { %v2213_v7 = vrot.slane %v2094_v3, 1  ;;  %v2336_v12 = vmul.f32 %v4677_v0, %v4606_v35  ;;  %v2452_v16 = vrot.slane %v2334_v4, 2  ;;  %v2047_v48 = vadd.f32 %v2015_v13, %v1980_v20  ;;  %v4716_v3 = vld [vmem:[%s5610_s4] ss:$0 sm:$0xff] }
  0xa4   : > { %v2048_v54 = vadd.f32 %v2016_v46, %v1981_v49  ;;  %v2212_v9 = vsel %vm1051_vm3, %v2210_v60, %v2211_v5  ;;  %v3667_v18 = vunpack.c.l.bf16 %v3801_v53  ;;  %v2453_v23 = vrot.slane %v2335_v61, 2 }
  0xa5   : > { %v2214_v22 = vsel %vm1051_vm3, %v2211_v5, %v2213_v7  ;;  %v2455_v24 = vrot.slane %v2336_v12, 2  ;;  %v3668_v25 = vunpack.c.h.bf16 %v3801_v53  ;;  %v2289_v27 = vadd.f32 %v2212_v9, %v2047_v48 }
  0xa6   : > { %v2290_v43 = vadd.f32 %v2214_v22, %v2048_v54  ;;  %v758_v41 = vrot.slane %v3667_v18, 7  ;;  %v895_v42 = vmul.f32 %v4581_v15, %v4358_v6  ;;  %v2454_v45 = vsel %vm1294_vm4, %v2452_v16, %v2453_v23 }
  0xa7   : > { %v2456_v13 = vsel %vm1294_vm4, %v2453_v23, %v2455_v24  ;;  %v759_v40 = vrot.slane %v3668_v25, 7  ;;  %v896_v56 = vmul.f32 %v4581_v15, %v4363_v8  ;;  %v2531_v58 = vadd.f32 %v2454_v45, %v2289_v27 }
  0xa8   : > { %v2532_v46 = vadd.f32 %v2456_v13, %v2290_v43  ;;  %v4699_v59 = vsel %vm742_vm2, 0.0, %v758_v41  ;;  %v964_v62 = vmul.f32 %v4593_v50, %v4358_v6  ;;  %v965_v37 = vmul.f32 %v4593_v50, %v4363_v8 }
  0xa9   : > { %v4704_v33 = vsel %vm742_vm2, %v758_v41, %v759_v40  ;;  %v4707_v19 = vsel %vm742_vm2, %v759_v40, 0.0  ;;  %v966_v2 = vmul.f32 %v4593_v50, %v4366_v10  ;;  %v2567_v4 = vadd.f32 %v4716_v3, %v2531_v58 }
  0xaa   : > { %v2568_v53 = vadd.f32 %v4716_v3, %v2532_v46  ;;  %v1067_v20 = vrot.slane %v964_v62, 1  ;;  %v1207_v49 = vmul.f32 %v4527_v63, %v4358_v6  ;;  %v1068_v60 = vrot.slane %v965_v37, 1 }
  0xab   : > { %v1070_v5 = vrot.slane %v966_v2, 1  ;;  %v1208_v7 = vmul.f32 %v4527_v63, %v4363_v8  ;;  %v1209_v61 = vmul.f32 %v4527_v63, %v4366_v10  ;;  %v2599_v12 = vmax.f32 %v2567_v4, 0.0 }
  0xac   : > { %v2600_v16 = vmax.f32 %v2568_v53, 0.0  ;;  %v1310_v48 = vrot.slane %v1207_v49, 2  ;;  %v1448_v54 = vmul.f32 %v4620_v14, %v4506_v52  ;;  %v1069_v9 = vsel %vm1051_vm3, %v1067_v20, %v1068_v60 }
  0xad   : > { %v1071_v18 = vsel %vm1051_vm3, %v1068_v60, %v1070_v5  ;;  %v1311_v22 = vrot.slane %v1208_v7, 2  ;;  %v1313_v6 = vrot.slane %v1209_v61, 2  ;;  %v1170_v24 = vadd.f32 %v1069_v9, %v895_v42  ;;  %v3810_v9 = vld [vmem:[%s4018_s16 + $0x68] sm:$0xff]  }
  0xae   : > { %v2620_v23 = vpack.c.bf16 %v2600_v16, %v2599_v12  ;;  %v1171_v25 = vadd.f32 %v1071_v18, %v896_v56  ;;  %v1449_v8 = vmul.f32 %v4620_v14, %v4511_v51  ;;  %v1517_v31 = vmul.f32 %v4629_v11, %v4506_v52 }
  0xaf   : > { %v1312_v10 = vsel %vm1294_vm4, %v1310_v48, %v1311_v22  ;;  %v1314_v26 = vsel %vm1294_vm4, %v1311_v22, %v1313_v6  ;;  %v1518_v27 = vmul.f32 %v4629_v11, %v4511_v51  ;;  %v1519_v42 = vmul.f32 %v4629_v11, %v4514_v55 }
  0xb0   : > { %2752 = vmatmul.bf16.gmra.mxu2 %v2620_v23  ;;  %v1413_v43 = vadd.f32 %v1312_v10, %v1170_v24  ;;  %v1414_v41 = vadd.f32 %v1314_v26, %v1171_v25  ;;  %v1759_v45 = vmul.f32 %v4642_v17, %v4506_v52  ;;  %v1619_v13 = vrot.slane %v1517_v31, 1 }
  0xb1   : > { %v1620_v40 = vrot.slane %v1518_v27, 1  ;;  %v1760_v56 = vmul.f32 %v4642_v17, %v4511_v51  ;;  %v1761_v58 = vmul.f32 %v4642_v17, %v4514_v55  ;;  %v1622_v37 = vrot.slane %v1519_v42, 1 }
  0xb2   : > { %v1480_v46 = vadd.f32 %v1448_v54, %v1413_v43  ;;  %v1481_v62 = vadd.f32 %v1449_v8, %v1414_v41  ;;  %v1861_v2 = vrot.slane %v1759_v45, 2  ;;  %v1999_v49 = vmul.f32 %v4654_v47, %v4699_v59 }
  0xb3   : > { %v1621_v4 = vsel %vm1051_vm3, %v1619_v13, %v1620_v40  ;;  %v1862_v53 = vrot.slane %v1760_v56, 2  ;;  %v1864_v20 = vrot.slane %v1761_v58, 2  ;;  %v1623_v60 = vsel %vm1051_vm3, %v1620_v40, %v1622_v37 }
  0xb4   : > { %v1722_v5 = vadd.f32 %v1621_v4, %v1480_v46  ;;  %v2000_v7 = vmul.f32 %v4654_v47, %v4704_v33  ;;  %v2068_v61 = vmul.f32 %v4664_v1, %v4699_v59  ;;  %v1723_v12 = vadd.f32 %v1623_v60, %v1481_v62 }
  0xb5   : > { %v1863_v16 = vsel %vm1294_vm4, %v1861_v2, %v1862_v53  ;;  %v1865_v48 = vsel %vm1294_vm4, %v1862_v53, %v1864_v20  ;;  %v2069_v54 = vmul.f32 %v4664_v1, %v4704_v33  ;;  %v2070_v22 = vmul.f32 %v4664_v1, %v4707_v19 }
  0xb6   : > { %v1964_v18 = vadd.f32 %v1863_v16, %v1722_v5  ;;  %v2170_v6 = vrot.slane %v2068_v61, 1  ;;  %v2310_v23 = vmul.f32 %v4677_v0, %v4699_v59  ;;  %v1965_v24 = vadd.f32 %v1865_v48, %v1723_v12 }
  0xb7   : > { %v2171_v25 = vrot.slane %v2069_v54, 1  ;;  %v2311_v8 = vmul.f32 %v4677_v0, %v4704_v33  ;;  %v2312_v10 = vmul.f32 %v4677_v0, %v4707_v19  ;;  %v2173_v31 = vrot.slane %v2070_v22, 1 }
  0xb8   : > { %v2031_v26 = vadd.f32 %v1999_v49, %v1964_v18  ;;  %v2412_v27 = vrot.slane %v2310_v23, 2  ;;  %v3703_v43 = vunpack.c.l.bf16 %v3810_v9  ;;  %v2032_v41 = vadd.f32 %v2000_v7, %v1965_v24 }
  0xb9   : > { %v2172_v42 = vsel %vm1051_vm3, %v2170_v6, %v2171_v25  ;;  %v2413_v45 = vrot.slane %v2311_v8, 2  ;;  %v2415_v13 = vrot.slane %v2312_v10, 2  ;;  %v2174_v40 = vsel %vm1051_vm3, %v2171_v25, %v2173_v31 }
  0xba   : > { %v2273_v56 = vadd.f32 %v2172_v42, %v2031_v26  ;;  %v3704_v58 = vunpack.c.h.bf16 %v3810_v9  ;;  %v785_v46 = vrot.slane %v3703_v43, 7  ;;  %v2274_v62 = vadd.f32 %v2174_v40, %v2032_v41 }
  0xbb   : > { %v2414_v37 = vsel %vm1294_vm4, %v2412_v27, %v2413_v45  ;;  %v2416_v2 = vsel %vm1294_vm4, %v2413_v45, %v2415_v13  ;;  %v913_v4 = vmul.f32 %v4581_v15, %v4428_v21  ;;  %v914_v60 = vmul.f32 %v4581_v15, %v4440_v38 }
  0xbc   : > { %v2515_v53 = vadd.f32 %v2414_v37, %v2273_v56  ;;  %v786_v20 = vrot.slane %v3704_v58, 7  ;;  %v4774_v49 = vsel %vm742_vm2, 0.0, %v785_v46  ;;  %v2516_v5 = vadd.f32 %v2416_v2, %v2274_v62 }
  0xbd   : > { %v991_v7 = vmul.f32 %v4593_v50, %v4428_v21  ;;  %v992_v61 = vmul.f32 %v4593_v50, %v4440_v38  ;;  %v993_v12 = vmul.f32 %v4593_v50, %v4443_v39  ;;  %v1234_v9 = vmul.f32 %v4527_v63, %v4428_v21 }
  0xbe   : > { %v2551_v16 = vadd.f32 %v4716_v3, %v2515_v53  ;;  %v4786_v48 = vsel %vm742_vm2, %v785_v46, %v786_v20  ;;  %v4789_v54 = vsel %vm742_vm2, %v786_v20, 0.0  ;;  %v2552_v18 = vadd.f32 %v4716_v3, %v2516_v5 }
  0xbf   : > { %v1112_v22 = vrot.slane %v991_v7, 1  ;;  %v1113_v6 = vrot.slane %v992_v61, 1  ;;  %v1115_v23 = vrot.slane %v993_v12, 1  ;;  %v1235_v25 = vmul.f32 %v4527_v63, %v4440_v38 }
  0xc0   : > { %v2583_v24 = vmax.f32 %v2551_v16, 0.0  ;;  %v1236_v8 = vmul.f32 %v4527_v63, %v4443_v39  ;;  %v1355_v10 = vrot.slane %v1234_v9, 2  ;;  %v2584_v26 = vmax.f32 %v2552_v18, 0.0 }
  0xc1   : > { %v1114_v31 = vsel %vm1051_vm3, %v1112_v22, %v1113_v6  ;;  %v1116_v27 = vsel %vm1051_vm3, %v1113_v6, %v1115_v23  ;;  %v1466_v21 = vmul.f32 %v4620_v14, %v4586_v44  ;;  %v1356_v42 = vrot.slane %v1235_v25, 2 }
  0xc2   : > { %v1188_v43 = vadd.f32 %v1114_v31, %v913_v4  ;;  %v1189_v41 = vadd.f32 %v1116_v27, %v914_v60  ;;  %v1358_v45 = vrot.slane %v1236_v8, 2  ;;  %v2612_v13 = vpack.c.bf16 %v2584_v26, %v2583_v24 }
  0xc3   : > { %v1467_v38 = vmul.f32 %v4620_v14, %v4603_v57  ;;  %v1544_v39 = vmul.f32 %v4629_v11, %v4586_v44  ;;  %v1545_v40 = vmul.f32 %v4629_v11, %v4603_v57  ;;  %v1357_v56 = vsel %vm1294_vm4, %v1355_v10, %v1356_v42 }
  0xc4   : > { %v1359_v58 = vsel %vm1294_vm4, %v1356_v42, %v1358_v45  ;;  %v1546_v46 = vmul.f32 %v4629_v11, %v4606_v35  ;;  %v1786_v62 = vmul.f32 %v4642_v17, %v4586_v44  ;;  %2712 = vmatmul.bf16.gmra.mxu0 %v2612_v13  ;;  %v1431_v37 = vadd.f32 %v1357_v56, %v1188_v43  ;;  %v3802_v43 = vld [vmem:[%s4018_s16 + $0x28] sm:$0xff]  }
  0xc5   : > { %v1432_v2 = vadd.f32 %v1359_v58, %v1189_v41  ;;  %v1664_v4 = vrot.slane %v1544_v39, 1  ;;  %v1665_v53 = vrot.slane %v1545_v40, 1  ;;  %v1787_v60 = vmul.f32 %v4642_v17, %v4603_v57 }
  0xc6   : > { %v1667_v20 = vrot.slane %v1546_v46, 1  ;;  %v1788_v5 = vmul.f32 %v4642_v17, %v4606_v35  ;;  %v1906_v7 = vrot.slane %v1786_v62, 2  ;;  %v1498_v61 = vadd.f32 %v1466_v21, %v1431_v37 }
  0xc7   : > { %v1499_v12 = vadd.f32 %v1467_v38, %v1432_v2  ;;  %v1666_v16 = vsel %vm1051_vm3, %v1664_v4, %v1665_v53  ;;  %v2017_v9 = vmul.f32 %v4654_v47, %v4774_v49  ;;  %v1907_v22 = vrot.slane %v1787_v60, 2  ;;  %v3634_v60 = vld [vmem:[%s4027_s21 + $0x30] sm:$0xff] }
  0xc8   : > { %v1668_v18 = vsel %vm1051_vm3, %v1665_v53, %v1667_v20  ;;  %v1909_v6 = vrot.slane %v1788_v5, 2  ;;  %v2018_v23 = vmul.f32 %v4654_v47, %v4786_v48  ;;  %v1740_v24 = vadd.f32 %v1666_v16, %v1498_v61  ;;  %v3641_v5 = vld [vmem:[%s4027_s21 + $0x68] sm:$0xff]  ;;  %3602 = vmatmul.msk.bf16.gmra.mxu1 %vm2974_vm1, %v3634_v60 }
  0xc9   : > { %v1741_v25 = vadd.f32 %v1668_v18, %v1499_v12  ;;  %v2095_v8 = vmul.f32 %v4664_v1, %v4774_v49  ;;  %v2096_v10 = vmul.f32 %v4664_v1, %v4786_v48  ;;  %v1908_v26 = vsel %vm1294_vm4, %v1906_v7, %v1907_v22  ;;  %3609 = vmatmul.msk.bf16.gmra.mxu3 %vm2974_vm1, %v3641_v5 }
  0xca   : > { %v1910_v31 = vsel %vm1294_vm4, %v1907_v22, %v1909_v6  ;;  %v2097_v27 = vmul.f32 %v4664_v1, %v4789_v54  ;;  %v2337_v21 = vmul.f32 %v4677_v0, %v4774_v49  ;;  %v1982_v41 = vadd.f32 %v1908_v26, %v1740_v24 }
  0xcb   : > { %v1983_v42 = vadd.f32 %v1910_v31, %v1741_v25  ;;  %v2215_v45 = vrot.slane %v2095_v8, 1  ;;  %v2216_v13 = vrot.slane %v2096_v10, 1  ;;  %v2338_v39 = vmul.f32 %v4677_v0, %v4786_v48 }
  0xcc   : > { %v2218_v38 = vrot.slane %v2097_v27, 1  ;;  %v2339_v40 = vmul.f32 %v4677_v0, %v4789_v54  ;;  %v2457_v56 = vrot.slane %v2337_v21, 2  ;;  %v2049_v58 = vadd.f32 %v2017_v9, %v1982_v41 }
  0xcd   : > { %v2050_v46 = vadd.f32 %v2018_v23, %v1983_v42  ;;  %v2217_v62 = vsel %vm1051_vm3, %v2215_v45, %v2216_v13  ;;  %v3671_v37 = vunpack.c.l.bf16 %v3802_v43  ;;  %v2458_v4 = vrot.slane %v2338_v39, 2 }
  0xce   : > { %v2219_v2 = vsel %vm1051_vm3, %v2216_v13, %v2218_v38  ;;  %v2460_v53 = vrot.slane %v2339_v40, 2  ;;  %v3672_v20 = vunpack.c.h.bf16 %v3802_v43  ;;  %v2291_v7 = vadd.f32 %v2217_v62, %v2049_v58 }
  0xcf   : > { %v2292_v61 = vadd.f32 %v2219_v2, %v2050_v46  ;;  %v761_v12 = vrot.slane %v3671_v37, 7  ;;  %v897_v16 = vmul.f32 %v4581_v15, %v4506_v52  ;;  %v2459_v18 = vsel %vm1294_vm4, %v2457_v56, %v2458_v4 }
  0xd0   : > { %v2461_v9 = vsel %vm1294_vm4, %v2458_v4, %v2460_v53  ;;  %v762_v22 = vrot.slane %v3672_v20, 7  ;;  %v898_v6 = vmul.f32 %v4581_v15, %v4511_v51  ;;  %v2533_v23 = vadd.f32 %v2459_v18, %v2291_v7 }
  0xd1   : > { %v2534_v24 = vadd.f32 %v2461_v9, %v2292_v61  ;;  %v4852_v25 = vsel %vm742_vm2, 0.0, %v761_v12  ;;  %v967_v8 = vmul.f32 %v4593_v50, %v4506_v52  ;;  %v968_v31 = vmul.f32 %v4593_v50, %v4511_v51 }
  0xd2   : > { %v4857_v10 = vsel %vm742_vm2, %v761_v12, %v762_v22  ;;  %v4860_v26 = vsel %vm742_vm2, %v762_v22, 0.0  ;;  %v969_v27 = vmul.f32 %v4593_v50, %v4514_v55  ;;  %v2569_v21 = vadd.f32 %v4716_v3, %v2533_v23 }
  0xd3   : > { %v2570_v43 = vadd.f32 %v4716_v3, %v2534_v24  ;;  %v1072_v41 = vrot.slane %v967_v8, 1  ;;  %v1210_v42 = vmul.f32 %v4527_v63, %v4506_v52  ;;  %v1073_v45 = vrot.slane %v968_v31, 1 }
  0xd4   : > { %v1075_v13 = vrot.slane %v969_v27, 1  ;;  %v1211_v38 = vmul.f32 %v4527_v63, %v4511_v51  ;;  %v1212_v39 = vmul.f32 %v4527_v63, %v4514_v55  ;;  %v2601_v40 = vmax.f32 %v2569_v21, 0.0 }
  0xd5   : > { %v2602_v56 = vmax.f32 %v2570_v43, 0.0  ;;  %v1315_v58 = vrot.slane %v1210_v42, 2  ;;  %v1450_v46 = vmul.f32 %v4620_v14, %v4699_v59  ;;  %v1074_v62 = vsel %vm1051_vm3, %v1072_v41, %v1073_v45 }
  0xd6   : > { %v1076_v37 = vsel %vm1051_vm3, %v1073_v45, %v1075_v13  ;;  %v1316_v2 = vrot.slane %v1211_v38, 2  ;;  %v1318_v52 = vrot.slane %v1212_v39, 2  ;;  %v1172_v53 = vadd.f32 %v1074_v62, %v897_v16  ;;  %v3811_v62 = vld [vmem:[%s4018_s16 + $0x70] sm:$0xff]  }
  0xd7   : > { %v2621_v4 = vpack.c.bf16 %v2602_v56, %v2601_v40  ;;  %v1173_v20 = vadd.f32 %v1076_v37, %v898_v6  ;;  %v1451_v51 = vmul.f32 %v4620_v14, %v4704_v33  ;;  %v1520_v5 = vmul.f32 %v4629_v11, %v4699_v59 }
  0xd8   : > { %v1317_v55 = vsel %vm1294_vm4, %v1315_v58, %v1316_v2  ;;  %v1319_v60 = vsel %vm1294_vm4, %v1316_v2, %v1318_v52  ;;  %v1521_v7 = vmul.f32 %v4629_v11, %v4704_v33  ;;  %v1522_v16 = vmul.f32 %v4629_v11, %v4707_v19 }
  0xd9   : > { %2757 = vmatmul.bf16.gmra.mxu2 %v2621_v4  ;;  %v1415_v61 = vadd.f32 %v1317_v55, %v1172_v53  ;;  %v1416_v12 = vadd.f32 %v1319_v60, %v1173_v20  ;;  %v1762_v18 = vmul.f32 %v4642_v17, %v4699_v59  ;;  %v1624_v9 = vrot.slane %v1520_v5, 1 }
  0xda   : > { %v1625_v22 = vrot.slane %v1521_v7, 1  ;;  %v1763_v6 = vmul.f32 %v4642_v17, %v4704_v33  ;;  %v1764_v23 = vmul.f32 %v4642_v17, %v4707_v19  ;;  %v1627_v31 = vrot.slane %v1522_v16, 1 }
  0xdb   : > { %v1482_v24 = vadd.f32 %v1450_v46, %v1415_v61  ;;  %v1483_v8 = vadd.f32 %v1451_v51, %v1416_v12  ;;  %v1866_v27 = vrot.slane %v1762_v18, 2  ;;  %v2001_v42 = vmul.f32 %v4654_v47, %v4852_v25 }
  0xdc   : > { %v1626_v21 = vsel %vm1051_vm3, %v1624_v9, %v1625_v22  ;;  %v1867_v43 = vrot.slane %v1763_v6, 2  ;;  %v1869_v41 = vrot.slane %v1764_v23, 2  ;;  %v1628_v45 = vsel %vm1051_vm3, %v1625_v22, %v1627_v31 }
  0xdd   : > { %v1724_v13 = vadd.f32 %v1626_v21, %v1482_v24  ;;  %v2002_v38 = vmul.f32 %v4654_v47, %v4857_v10  ;;  %v2071_v39 = vmul.f32 %v4664_v1, %v4852_v25  ;;  %v1725_v40 = vadd.f32 %v1628_v45, %v1483_v8 }
  0xde   : > { %v1868_v56 = vsel %vm1294_vm4, %v1866_v27, %v1867_v43  ;;  %v1870_v58 = vsel %vm1294_vm4, %v1867_v43, %v1869_v41  ;;  %v2072_v46 = vmul.f32 %v4664_v1, %v4857_v10  ;;  %v2073_v2 = vmul.f32 %v4664_v1, %v4860_v26 }
  0xdf   : > { %v1966_v37 = vadd.f32 %v1868_v56, %v1724_v13  ;;  %v2175_v52 = vrot.slane %v2071_v39, 1  ;;  %v2313_v4 = vmul.f32 %v4677_v0, %v4852_v25  ;;  %v1967_v53 = vadd.f32 %v1870_v58, %v1725_v40 }
  0xe0   : > { %v2176_v20 = vrot.slane %v2072_v46, 1  ;;  %v2314_v51 = vmul.f32 %v4677_v0, %v4857_v10  ;;  %v2315_v55 = vmul.f32 %v4677_v0, %v4860_v26  ;;  %v2178_v5 = vrot.slane %v2073_v2, 1 }
  0xe1   : > { %v2033_v60 = vadd.f32 %v2001_v42, %v1966_v37  ;;  %v2417_v7 = vrot.slane %v2313_v4, 2  ;;  %v3707_v61 = vunpack.c.l.bf16 %v3811_v62  ;;  %v2034_v12 = vadd.f32 %v2002_v38, %v1967_v53 }
  0xe2   : > { %v2177_v16 = vsel %vm1051_vm3, %v2175_v52, %v2176_v20  ;;  %v2418_v18 = vrot.slane %v2314_v51, 2  ;;  %v2420_v9 = vrot.slane %v2315_v55, 2  ;;  %v2179_v22 = vsel %vm1051_vm3, %v2176_v20, %v2178_v5 }
  0xe3   : > { %v2275_v6 = vadd.f32 %v2177_v16, %v2033_v60  ;;  %v3708_v23 = vunpack.c.h.bf16 %v3811_v62  ;;  %v788_v24 = vrot.slane %v3707_v61, 7  ;;  %v2276_v8 = vadd.f32 %v2179_v22, %v2034_v12 }
  0xe4   : > { %v2419_v31 = vsel %vm1294_vm4, %v2417_v7, %v2418_v18  ;;  %v2421_v27 = vsel %vm1294_vm4, %v2418_v18, %v2420_v9  ;;  %v915_v21 = vmul.f32 %v4581_v15, %v4586_v44  ;;  %v916_v45 = vmul.f32 %v4581_v15, %v4603_v57 }
  0xe5   : > { %v2517_v43 = vadd.f32 %v2419_v31, %v2275_v6  ;;  %v789_v41 = vrot.slane %v3708_v23, 7  ;;  %v4922_v42 = vsel %vm742_vm2, 0.0, %v788_v24  ;;  %v2518_v13 = vadd.f32 %v2421_v27, %v2276_v8 }
  0xe6   : > { %v994_v38 = vmul.f32 %v4593_v50, %v4586_v44  ;;  %v995_v39 = vmul.f32 %v4593_v50, %v4603_v57  ;;  %v996_v40 = vmul.f32 %v4593_v50, %v4606_v35  ;;  %v1237_v62 = vmul.f32 %v4527_v63, %v4586_v44 }
  0xe7   : > { %v2553_v56 = vadd.f32 %v4716_v3, %v2517_v43  ;;  %v4934_v58 = vsel %vm742_vm2, %v788_v24, %v789_v41  ;;  %v4937_v46 = vsel %vm742_vm2, %v789_v41, 0.0  ;;  %v2554_v37 = vadd.f32 %v4716_v3, %v2518_v13 }
  0xe8   : > { %v1117_v2 = vrot.slane %v994_v38, 1  ;;  %v1118_v52 = vrot.slane %v995_v39, 1  ;;  %v1120_v4 = vrot.slane %v996_v40, 1  ;;  %v1238_v20 = vmul.f32 %v4527_v63, %v4603_v57 }
  0xe9   : > { %v2585_v53 = vmax.f32 %v2553_v56, 0.0  ;;  %v1239_v51 = vmul.f32 %v4527_v63, %v4606_v35  ;;  %v1360_v55 = vrot.slane %v1237_v62, 2  ;;  %v2586_v60 = vmax.f32 %v2554_v37, 0.0 }
  0xea   : > { %v1119_v5 = vsel %vm1051_vm3, %v1117_v2, %v1118_v52  ;;  %v1121_v7 = vsel %vm1051_vm3, %v1118_v52, %v1120_v4  ;;  %v1468_v44 = vmul.f32 %v4620_v14, %v4774_v49  ;;  %v1361_v16 = vrot.slane %v1238_v20, 2 }
  0xeb   : > { %v1190_v61 = vadd.f32 %v1119_v5, %v915_v21  ;;  %v1191_v12 = vadd.f32 %v1121_v7, %v916_v45  ;;  %v1363_v18 = vrot.slane %v1239_v51, 2  ;;  %v2613_v9 = vpack.c.bf16 %v2586_v60, %v2585_v53 }
  0xec   : > { %v1469_v57 = vmul.f32 %v4620_v14, %v4786_v48  ;;  %v1547_v63 = vmul.f32 %v4629_v11, %v4774_v49  ;;  %v1548_v35 = vmul.f32 %v4629_v11, %v4786_v48  ;;  %v1362_v22 = vsel %vm1294_vm4, %v1360_v55, %v1361_v16 }
  0xed   : > { %v1364_v6 = vsel %vm1294_vm4, %v1361_v16, %v1363_v18  ;;  %v1549_v23 = vmul.f32 %v4629_v11, %v4789_v54  ;;  %v1789_v24 = vmul.f32 %v4642_v17, %v4774_v49  ;;  %2717 = vmatmul.bf16.gmra.mxu0 %v2613_v9  ;;  %v1433_v8 = vadd.f32 %v1362_v22, %v1190_v61 }
  0xee   : > { %v1434_v31 = vadd.f32 %v1364_v6, %v1191_v12  ;;  %v1669_v27 = vrot.slane %v1547_v63, 1  ;;  %v1670_v21 = vrot.slane %v1548_v35, 1  ;;  %v1790_v41 = vmul.f32 %v4642_v17, %v4786_v48 }
  0xef   : > { %v1672_v43 = vrot.slane %v1549_v23, 1  ;;  %v1791_v45 = vmul.f32 %v4642_v17, %v4789_v54  ;;  %v1911_v13 = vrot.slane %v1789_v24, 2  ;;  %v1500_v38 = vadd.f32 %v1468_v44, %v1433_v8  ;;  %v3803_v44 = vld [vmem:[%s4018_s16 + $0x30] sm:$0xff]  }
  0xf0   : > { %v1501_v39 = vadd.f32 %v1469_v57, %v1434_v31  ;;  %v1671_v40 = vsel %vm1051_vm3, %v1669_v27, %v1670_v21  ;;  %v2019_v56 = vmul.f32 %v4654_v47, %v4922_v42  ;;  %v1912_v37 = vrot.slane %v1790_v41, 2  ;;  %v3642_v41 = vld [vmem:[%s4027_s21 + $0x70] sm:$0xff] }
  0xf1   : > { %v1673_v62 = vsel %vm1051_vm3, %v1670_v21, %v1672_v43  ;;  %v1914_v2 = vrot.slane %v1791_v45, 2  ;;  %v2020_v52 = vmul.f32 %v4654_v47, %v4934_v58  ;;  %v1742_v4 = vadd.f32 %v1671_v40, %v1500_v38  ;;  %v3635_v43 = vld [vmem:[%s4027_s21 + $0x38] sm:$0xff]  ;;  %3610 = vmatmul.msk.bf16.gmra.mxu3 %vm2974_vm1, %v3642_v41 }
  0xf2   : > { %v1743_v53 = vadd.f32 %v1673_v62, %v1501_v39  ;;  %v2098_v20 = vmul.f32 %v4664_v1, %v4922_v42  ;;  %v2099_v51 = vmul.f32 %v4664_v1, %v4934_v58  ;;  %v1913_v55 = vsel %vm1294_vm4, %v1911_v13, %v1912_v37  ;;  %3603 = vmatmul.msk.bf16.gmra.mxu1 %vm2974_vm1, %v3635_v43 }
  0xf3   : > { %v1915_v60 = vsel %vm1294_vm4, %v1912_v37, %v1914_v2  ;;  %v2100_v5 = vmul.f32 %v4664_v1, %v4937_v46  ;;  %v2340_v7 = vmul.f32 %v4677_v0, %v4922_v42  ;;  %v1984_v61 = vadd.f32 %v1913_v55, %v1742_v4 }
  0xf4   : > { %v1985_v12 = vadd.f32 %v1915_v60, %v1743_v53  ;;  %v2220_v16 = vrot.slane %v2098_v20, 1  ;;  %v2221_v18 = vrot.slane %v2099_v51, 1  ;;  %v2341_v57 = vmul.f32 %v4677_v0, %v4934_v58 }
  0xf5   : > { %v2223_v9 = vrot.slane %v2100_v5, 1  ;;  %v2342_v63 = vmul.f32 %v4677_v0, %v4937_v46  ;;  %v2462_v35 = vrot.slane %v2340_v7, 2  ;;  %v2051_v22 = vadd.f32 %v2019_v56, %v1984_v61 }
  0xf6   : > { %v2052_v6 = vadd.f32 %v2020_v52, %v1985_v12  ;;  %v2222_v23 = vsel %vm1051_vm3, %v2220_v16, %v2221_v18  ;;  %v3675_v24 = vunpack.c.l.bf16 %v3803_v44  ;;  %v2463_v31 = vrot.slane %v2341_v57, 2 }
  0xf7   : > { %v2224_v8 = vsel %vm1051_vm3, %v2221_v18, %v2223_v9  ;;  %v2465_v27 = vrot.slane %v2342_v63, 2  ;;  %v3676_v21 = vunpack.c.h.bf16 %v3803_v44  ;;  %v2293_v45 = vadd.f32 %v2222_v23, %v2051_v22  ;;  %v5019_v44 = vld [vmem:[%s5609_s3 + $0x2] ss:$0 sm:$0xff] }
  0xf8   : > { %v2294_v13 = vadd.f32 %v2224_v8, %v2052_v6  ;;  %v764_v38 = vrot.slane %v3675_v24, 7  ;;  %v899_v39 = vmul.f32 %v4581_v15, %v4699_v59  ;;  %v2464_v40 = vsel %vm1294_vm4, %v2462_v35, %v2463_v31 }
  0xf9   : > { %v2466_v56 = vsel %vm1294_vm4, %v2463_v31, %v2465_v27  ;;  %v765_v62 = vrot.slane %v3676_v21, 7  ;;  %v900_v37 = vmul.f32 %v4581_v15, %v4704_v33  ;;  %v2535_v2 = vadd.f32 %v2464_v40, %v2293_v45 }
  0xfa   : > { %v2536_v52 = vadd.f32 %v2466_v56, %v2294_v13  ;;  %v5000_v4 = vsel %vm742_vm2, 0.0, %v764_v38  ;;  %v970_v53 = vmul.f32 %v4593_v50, %v4699_v59  ;;  %v971_v15 = vmul.f32 %v4593_v50, %v4704_v33 }
  0xfb   : > { %v5005_v20 = vsel %vm742_vm2, %v764_v38, %v765_v62  ;;  %v5008_v51 = vsel %vm742_vm2, %v765_v62, 0.0  ;;  %v972_v55 = vmul.f32 %v4593_v50, %v4707_v19  ;;  %v2571_v60 = vadd.f32 %v4716_v3, %v2535_v2 }
  0xfc   : > { %v2572_v5 = vadd.f32 %v4716_v3, %v2536_v52  ;;  %v1077_v7 = vrot.slane %v970_v53, 1  ;;  %v1213_v61 = vmul.f32 %v5019_v44, %v4699_v59  ;;  %v1078_v12 = vrot.slane %v971_v15, 1 }
  0xfd   : > { %v1080_v16 = vrot.slane %v972_v55, 1  ;;  %v1214_v18 = vmul.f32 %v5019_v44, %v4704_v33  ;;  %v1215_v50 = vmul.f32 %v5019_v44, %v4707_v19  ;;  %v2603_v9 = vmax.f32 %v2571_v60, 0.0 }
  0xfe   : > { %v2604_v57 = vmax.f32 %v2572_v5, 0.0  ;;  %v1320_v63 = vrot.slane %v1213_v61, 2  ;;  %v1452_v35 = vmul.f32 %v4620_v14, %v4852_v25  ;;  %v1079_v22 = vsel %vm1051_vm3, %v1077_v7, %v1078_v12 }
  0xff   : > { %v1081_v6 = vsel %vm1051_vm3, %v1078_v12, %v1080_v16  ;;  %v1321_v23 = vrot.slane %v1214_v18, 2  ;;  %v1323_v59 = vrot.slane %v1215_v50, 2  ;;  %v1174_v8 = vadd.f32 %v1079_v22, %v899_v39  ;;  %v3812_v50 = vld [vmem:[%s4018_s16 + $0x78] sm:$0xff]  }
 0x100   : > { %v2622_v24 = vpack.c.bf16 %v2604_v57, %v2603_v9  ;;  %v1175_v31 = vadd.f32 %v1081_v6, %v900_v37  ;;  %v1453_v33 = vmul.f32 %v4620_v14, %v4857_v10  ;;  %v1523_v21 = vmul.f32 %v4629_v11, %v4852_v25 }
 0x101   : > { %v1322_v19 = vsel %vm1294_vm4, %v1320_v63, %v1321_v23  ;;  %v1324_v27 = vsel %vm1294_vm4, %v1321_v23, %v1323_v59  ;;  %v1524_v43 = vmul.f32 %v4629_v11, %v4857_v10  ;;  %v1525_v13 = vmul.f32 %v4629_v11, %v4860_v26 }
 0x102   : > { %2762 = vmatmul.bf16.gmra.mxu2 %v2622_v24  ;;  %v1417_v41 = vadd.f32 %v1322_v19, %v1174_v8  ;;  %v1418_v45 = vadd.f32 %v1324_v27, %v1175_v31  ;;  %v1765_v38 = vmul.f32 %v4642_v17, %v4852_v25  ;;  %v1629_v14 = vrot.slane %v1523_v21, 1 }
 0x103   : > { %v1630_v39 = vrot.slane %v1524_v43, 1  ;;  %v1766_v40 = vmul.f32 %v4642_v17, %v4857_v10  ;;  %v1767_v56 = vmul.f32 %v4642_v17, %v4860_v26  ;;  %v1632_v2 = vrot.slane %v1525_v13, 1 }
 0x104   : > { %v1484_v62 = vadd.f32 %v1452_v35, %v1417_v41  ;;  %v1485_v37 = vadd.f32 %v1453_v33, %v1418_v45  ;;  %v1871_v52 = vrot.slane %v1765_v38, 2  ;;  %v2003_v55 = vmul.f32 %v4654_v47, %v5000_v4 }
 0x105   : > { %v1631_v53 = vsel %vm1051_vm3, %v1629_v14, %v1630_v39  ;;  %v1872_v15 = vrot.slane %v1766_v40, 2  ;;  %v1874_v11 = vrot.slane %v1767_v56, 2  ;;  %v1633_v60 = vsel %vm1051_vm3, %v1630_v39, %v1632_v2 }
 0x106   : > { %v1726_v5 = vadd.f32 %v1631_v53, %v1484_v62  ;;  %v2004_v7 = vmul.f32 %v4654_v47, %v5005_v20  ;;  %v2074_v17 = vmul.f32 %v4664_v1, %v5000_v4  ;;  %v1727_v61 = vadd.f32 %v1633_v60, %v1485_v37 }
 0x107   : > { %v1873_v12 = vsel %vm1294_vm4, %v1871_v52, %v1872_v15  ;;  %v1875_v16 = vsel %vm1294_vm4, %v1872_v15, %v1874_v11  ;;  %v2075_v18 = vmul.f32 %v4664_v1, %v5005_v20  ;;  %v2076_v57 = vmul.f32 %v4664_v1, %v5008_v51  ;;  %v5087_v52 = vld [vmem:[%s5609_s3 + $0x1] ss:$0 sm:$0xff] }
 0x108   : > { %v1968_v9 = vadd.f32 %v1873_v12, %v1726_v5  ;;  %v2180_v63 = vrot.slane %v2074_v17, 1  ;;  %v2316_v47 = vmul.f32 %v4677_v0, %v5000_v4  ;;  %v1969_v35 = vadd.f32 %v1875_v16, %v1727_v61 }
 0x109   : > { %v2181_v22 = vrot.slane %v2075_v18, 1  ;;  %v2317_v6 = vmul.f32 %v4677_v0, %v5005_v20  ;;  %v2318_v23 = vmul.f32 %v4677_v0, %v5008_v51  ;;  %v2183_v24 = vrot.slane %v2076_v57, 1  ;;  %v5075_v0 = vld [vmem:[%s5609_s3] ss:$0 sm:$0xff] }
 0x10a   : > { %v2035_v59 = vadd.f32 %v2003_v55, %v1968_v9  ;;  %v2422_v8 = vrot.slane %v2316_v47, 2  ;;  %v3711_v31 = vunpack.c.l.bf16 %v3812_v50  ;;  %v2036_v33 = vadd.f32 %v2004_v7, %v1969_v35 }
 0x10b   : > { %v2182_v19 = vsel %vm1051_vm3, %v2180_v63, %v2181_v22  ;;  %v2423_v1 = vrot.slane %v2317_v6, 2  ;;  %v2425_v27 = vrot.slane %v2318_v23, 2  ;;  %v2184_v21 = vsel %vm1051_vm3, %v2181_v22, %v2183_v24  ;;  %v5123_v24 = vld [vmem:[%s5609_s3 + $0x5] ss:$0 sm:$0xff] }
 0x10c   : > { %v2277_v43 = vadd.f32 %v2182_v19, %v2035_v59  ;;  %v3712_v41 = vunpack.c.h.bf16 %v3812_v50  ;;  %v791_v45 = vrot.slane %v3711_v31, 7  ;;  %v2278_v13 = vadd.f32 %v2184_v21, %v2036_v33 }
 0x10d   : > { %v2424_v38 = vsel %vm1294_vm4, %v2422_v8, %v2423_v1  ;;  %v2426_v14 = vsel %vm1294_vm4, %v2423_v1, %v2425_v27  ;;  %v917_v39 = vmul.f32 %v5075_v0, %v4774_v49  ;;  %v918_v37 = vmul.f32 %v5075_v0, %v4786_v48  ;;  %v5136_v27 = vld [vmem:[%s5609_s3 + $0x6] ss:$0 sm:$0xff] }
 0x10e   : > { %v2519_v40 = vadd.f32 %v2424_v38, %v2277_v43  ;;  %v792_v56 = vrot.slane %v3712_v41, 7  ;;  %v5080_v62 = vsel %vm742_vm2, 0.0, %v791_v45  ;;  %v2520_v2 = vadd.f32 %v2426_v14, %v2278_v13 }
 0x10f   : > { %v997_v53 = vmul.f32 %v5087_v52, %v4774_v49  ;;  %v998_v15 = vmul.f32 %v5087_v52, %v4786_v48  ;;  %v999_v11 = vmul.f32 %v5087_v52, %v4789_v54  ;;  %v1240_v7 = vmul.f32 %v5019_v44, %v4774_v49 }
 0x110   : > { %v2555_v55 = vadd.f32 %v4716_v3, %v2519_v40  ;;  %v5097_v60 = vsel %vm742_vm2, %v791_v45, %v792_v56  ;;  %v5100_v5 = vsel %vm742_vm2, %v792_v56, 0.0  ;;  %v2556_v17 = vadd.f32 %v4716_v3, %v2520_v2  ;;  %v5114_v3 = vld [vmem:[%s5609_s3 + $0x4] ss:$0 sm:$0xff] }
 0x111   : > { %v1122_v61 = vrot.slane %v997_v53, 1  ;;  %v1123_v12 = vrot.slane %v998_v15, 1  ;;  %v1125_v16 = vrot.slane %v999_v11, 1  ;;  %v1241_v50 = vmul.f32 %v5019_v44, %v4786_v48  ;;  %v5148_v53 = vld [vmem:[%s5609_s3 + $0x8] ss:$0 sm:$0xff] }
 0x112   : > { %v2587_v18 = vmax.f32 %v2555_v55, 0.0  ;;  %v1242_v9 = vmul.f32 %v5019_v44, %v4789_v54  ;;  %v1365_v57 = vrot.slane %v1240_v7, 2  ;;  %v2588_v63 = vmax.f32 %v2556_v17, 0.0 }
 0x113   : > { %v1124_v47 = vsel %vm1051_vm3, %v1122_v61, %v1123_v12  ;;  %v1126_v35 = vsel %vm1051_vm3, %v1123_v12, %v1125_v16  ;;  %v1470_v49 = vmul.f32 %v5114_v3, %v4922_v42  ;;  %v1366_v48 = vrot.slane %v1241_v50, 2  ;;  %v5158_v16 = vld [vmem:[%s5609_s3 + $0x9] ss:$0 sm:$0xff] }
 0x114   : > { %v1192_v22 = vadd.f32 %v1124_v47, %v917_v39  ;;  %v1193_v6 = vadd.f32 %v1126_v35, %v918_v37  ;;  %v1368_v23 = vrot.slane %v1242_v9, 2  ;;  %v2614_v59 = vpack.c.bf16 %v2588_v63, %v2587_v18  ;;  %v5171_v47 = vld [vmem:[%s5609_s3 + $0xa] ss:$0 sm:$0xff] }
 0x115   : > { %v1471_v54 = vmul.f32 %v5114_v3, %v4934_v58  ;;  %v1550_v8 = vmul.f32 %v5123_v24, %v4922_v42  ;;  %v1551_v31 = vmul.f32 %v5123_v24, %v4934_v58  ;;  %v1367_v33 = vsel %vm1294_vm4, %v1365_v57, %v1366_v48 }
 0x116   : > { %v1369_v19 = vsel %vm1294_vm4, %v1366_v48, %v1368_v23  ;;  %v1552_v1 = vmul.f32 %v5123_v24, %v4937_v46  ;;  %v1792_v21 = vmul.f32 %v5136_v27, %v4922_v42  ;;  %2722 = vmatmul.bf16.gmra.mxu0 %v2614_v59  ;;  %v1435_v43 = vadd.f32 %v1367_v33, %v1192_v22  ;;  %v3643_v33 = vld [vmem:[%s4027_s21 + $0x78] sm:$0xff] }
 0x117   : > { %v1436_v41 = vadd.f32 %v1369_v19, %v1193_v6  ;;  %v1674_v45 = vrot.slane %v1550_v8, 1  ;;  %v1675_v13 = vrot.slane %v1551_v31, 1  ;;  %v1793_v14 = vmul.f32 %v5136_v27, %v4934_v58  ;;  %v3636_v31 = vld [vmem:[%s4027_s21 + $0x40] sm:$0xff]  ;;  %3611 = vmatmul.msk.bf16.gmra.mxu3 %vm2974_vm1, %v3643_v33 }
 0x118   : > { %v1677_v38 = vrot.slane %v1552_v1, 1  ;;  %v1794_v39 = vmul.f32 %v5136_v27, %v4937_v46  ;;  %v1916_v40 = vrot.slane %v1792_v21, 2  ;;  %v1502_v56 = vadd.f32 %v1470_v49, %v1435_v43  ;;  %3604 = vmatmul.msk.bf16.gmra.mxu1 %vm2974_vm1, %v3636_v31 }
 0x119   : > { %v1503_v37 = vadd.f32 %v1471_v54, %v1436_v41  ;;  %v1676_v2 = vsel %vm1051_vm3, %v1674_v45, %v1675_v13  ;;  %v2021_v15 = vmul.f32 %v5148_v53, %v5080_v62  ;;  %v1917_v55 = vrot.slane %v1793_v14, 2 }
 0x11a   : > { %v1678_v11 = vsel %vm1051_vm3, %v1675_v13, %v1677_v38  ;;  %v1919_v7 = vrot.slane %v1794_v39, 2  ;;  %v2022_v17 = vmul.f32 %v5148_v53, %v5097_v60  ;;  %v1744_v61 = vadd.f32 %v1676_v2, %v1502_v56 }
 0x11b   : > { %v1745_v12 = vadd.f32 %v1678_v11, %v1503_v37  ;;  %v2101_v18 = vmul.f32 %v5158_v16, %v5080_v62  ;;  %v2102_v50 = vmul.f32 %v5158_v16, %v5097_v60  ;;  %v1918_v9 = vsel %vm1294_vm4, %v1916_v40, %v1917_v55 }
 0x11c   : > { %v1920_v57 = vsel %vm1294_vm4, %v1917_v55, %v1919_v7  ;;  %v2103_v63 = vmul.f32 %v5158_v16, %v5100_v5  ;;  %v2343_v35 = vmul.f32 %v5171_v47, %v5080_v62  ;;  %v1986_v49 = vadd.f32 %v1918_v9, %v1744_v61 }
 0x11d   : > { %v1987_v22 = vadd.f32 %v1920_v57, %v1745_v12  ;;  %v2225_v6 = vrot.slane %v2101_v18, 1  ;;  %v2226_v48 = vrot.slane %v2102_v50, 1  ;;  %v2344_v59 = vmul.f32 %v5171_v47, %v5097_v60  ;;  %v5206_v57 = vld [vmem:[%s5610_s4] ss:$0 sm:$0xff] }
 0x11e   : > { %v2228_v23 = vrot.slane %v2103_v63, 1  ;;  %v2345_v54 = vmul.f32 %v5171_v47, %v5100_v5  ;;  %v2467_v8 = vrot.slane %v2343_v35, 2  ;;  %v2053_v19 = vadd.f32 %v2021_v15, %v1986_v49 }
 0x11f   : > { %v2054_v1 = vadd.f32 %v2022_v17, %v1987_v22  ;;  %v2227_v21 = vsel %vm1051_vm3, %v2225_v6, %v2226_v48  ;;  %v901_v43 = vmul.f32 %v5075_v0, %v4852_v25  ;;  %v2468_v45 = vrot.slane %v2344_v59, 2 }
 0x120   : > { %v2229_v41 = vsel %vm1051_vm3, %v2226_v48, %v2228_v23  ;;  %v2470_v13 = vrot.slane %v2345_v54, 2  ;;  %v902_v38 = vmul.f32 %v5075_v0, %v4857_v10  ;;  %v2295_v14 = vadd.f32 %v2227_v21, %v2053_v19 }
 0x121   : > { %v2296_v39 = vadd.f32 %v2229_v41, %v2054_v1  ;;  %v973_v40 = vmul.f32 %v5087_v52, %v4852_v25  ;;  %v974_v56 = vmul.f32 %v5087_v52, %v4857_v10  ;;  %v2469_v37 = vsel %vm1294_vm4, %v2467_v8, %v2468_v45 }
 0x122   : > { %v2471_v2 = vsel %vm1294_vm4, %v2468_v45, %v2470_v13  ;;  %v975_v15 = vmul.f32 %v5087_v52, %v4860_v26  ;;  %v1216_v11 = vmul.f32 %v5019_v44, %v4852_v25  ;;  %v2537_v55 = vadd.f32 %v2469_v37, %v2295_v14 }
 0x123   : > { %v2538_v7 = vadd.f32 %v2471_v2, %v2296_v39  ;;  %v1082_v17 = vrot.slane %v973_v40, 1  ;;  %v1083_v61 = vrot.slane %v974_v56, 1  ;;  %v1217_v18 = vmul.f32 %v5019_v44, %v4857_v10 }
 0x124   : > { %v1085_v12 = vrot.slane %v975_v15, 1  ;;  %v1218_v50 = vmul.f32 %v5019_v44, %v4860_v26  ;;  %v1325_v9 = vrot.slane %v1216_v11, 2  ;;  %v2573_v63 = vadd.f32 %v5206_v57, %v2537_v55 }
 0x125   : > { %v2574_v25 = vadd.f32 %v5206_v57, %v2538_v7  ;;  %v1084_v35 = vsel %vm1051_vm3, %v1082_v17, %v1083_v61  ;;  %v1454_v49 = vmul.f32 %v5114_v3, %v5000_v4  ;;  %v1326_v6 = vrot.slane %v1217_v18, 2 }
 0x126   : > { %v1086_v10 = vsel %vm1051_vm3, %v1083_v61, %v1085_v12  ;;  %v1176_v22 = vadd.f32 %v1084_v35, %v901_v43  ;;  %v1328_v26 = vrot.slane %v1218_v50, 2  ;;  %v2605_v48 = vmax.f32 %v2573_v63, 0.0 }
 0x127   : > { %v2606_v23 = vmax.f32 %v2574_v25, 0.0  ;;  %v1177_v59 = vadd.f32 %v1086_v10, %v902_v38  ;;  %v1455_v54 = vmul.f32 %v5114_v3, %v5005_v20  ;;  %v1327_v8 = vsel %vm1294_vm4, %v1325_v9, %v1326_v6 }
 0x128   : > { %v1329_v31 = vsel %vm1294_vm4, %v1326_v6, %v1328_v26  ;;  %v1526_v33 = vmul.f32 %v5123_v24, %v5000_v4  ;;  %v1527_v19 = vmul.f32 %v5123_v24, %v5005_v20  ;;  %v1419_v21 = vadd.f32 %v1327_v8, %v1176_v22 }
 0x129   : > { %v2623_v1 = vpack.c.bf16 %v2606_v23, %v2605_v48  ;;  %v1420_v43 = vadd.f32 %v1329_v31, %v1177_v59  ;;  %v1528_v41 = vmul.f32 %v5123_v24, %v5008_v51  ;;  %v1768_v38 = vmul.f32 %v5136_v27, %v5000_v4  ;;  %v3714_v31 = vld [vmem:[%s594_s28] sm:$0xff]  }
 0x12a   : > { %v1634_v45 = vrot.slane %v1526_v33, 1  ;;  %v1635_v13 = vrot.slane %v1527_v19, 1  ;;  %v1769_v14 = vmul.f32 %v5136_v27, %v5005_v20  ;;  %v1486_v39 = vadd.f32 %v1454_v49, %v1419_v21 }
 0x12b   : > { %2767 = vmatmul.bf16.gmra.mxu2 %v2623_v1  ;;  %v1487_v40 = vadd.f32 %v1455_v54, %v1420_v43  ;;  %v1637_v56 = vrot.slane %v1528_v41, 1  ;;  %v1770_v37 = vmul.f32 %v5136_v27, %v5008_v51  ;;  %v1876_v15 = vrot.slane %v1768_v38, 2 }
 0x12c   : > { %v1636_v2 = vsel %vm1051_vm3, %v1634_v45, %v1635_v13  ;;  %v1877_v11 = vrot.slane %v1769_v14, 2  ;;  %v2005_v55 = vmul.f32 %v5148_v53, %v4058_v29  ;;  %v2006_v12 = vmul.f32 %v5148_v53, %v4055_v28  ;;  %v5256_v45 = vpop.f32.mrf.mxu1 }
 0x12d   : > { %v1638_v7 = vsel %vm1051_vm3, %v1635_v13, %v1637_v56  ;;  %v1728_v17 = vadd.f32 %v1636_v2, %v1486_v39  ;;  %v1879_v61 = vrot.slane %v1770_v37, 2  ;;  %v2077_v9 = vmul.f32 %v5158_v16, %v4058_v29 }
 0x12e   : > { %v1729_v18 = vadd.f32 %v1638_v7, %v1487_v40  ;;  %v1878_v50 = vsel %vm1294_vm4, %v1876_v15, %v1877_v11  ;;  %v2078_v63 = vmul.f32 %v5158_v16, %v4055_v28  ;;  %v2079_v49 = vmul.f32 %v5158_v16, %v4061_v30 }
 0x12f   : > { %v1880_v25 = vsel %vm1294_vm4, %v1877_v11, %v1879_v61  ;;  %v1970_v35 = vadd.f32 %v1878_v50, %v1728_v17  ;;  %v2319_v10 = vmul.f32 %v5171_v47, %v4058_v29  ;;  %v2185_v6 = vrot.slane %v2077_v9, 1 }
 0x130   : > { %v1971_v22 = vadd.f32 %v1880_v25, %v1729_v18  ;;  %v2186_v26 = vrot.slane %v2078_v63, 1  ;;  %v2320_v48 = vmul.f32 %v5171_v47, %v4055_v28  ;;  %v2188_v59 = vrot.slane %v2079_v49, 1 }
 0x131   : > { %v2037_v23 = vadd.f32 %v2005_v55, %v1970_v35  ;;  %v2321_v54 = vmul.f32 %v5171_v47, %v4061_v30  ;;  %v2427_v8 = vrot.slane %v2319_v10, 2  ;;  %v3715_v14 = vunpack.c.l.bf16 %v3714_v31 }
 0x132   : > { %v2038_v33 = vadd.f32 %v2006_v12, %v1971_v22  ;;  %v2187_v19 = vsel %vm1051_vm3, %v2185_v6, %v2186_v26  ;;  %v2428_v1 = vrot.slane %v2320_v48, 2  ;;  %v2189_v21 = vsel %vm1051_vm3, %v2186_v26, %v2188_v59 }
 0x133   : > { %v2279_v43 = vadd.f32 %v2187_v19, %v2037_v23  ;;  %v2430_v41 = vrot.slane %v2321_v54, 2  ;;  %v3716_v39 = vunpack.c.h.bf16 %v3714_v31  ;;  %v919_v37 = vmul.f32 %v5075_v0, %v4922_v42 }
 0x134   : > { %v2280_v13 = vadd.f32 %v2189_v21, %v2038_v33  ;;  %v2429_v38 = vsel %vm1294_vm4, %v2427_v8, %v2428_v1  ;;  %v920_v2 = vmul.f32 %v5075_v0, %v4934_v58  ;;  %v704_v11 = vmul.f32 0.0, %v3715_v14 }
 0x135   : > { %v2431_v40 = vsel %vm1294_vm4, %v2428_v1, %v2430_v41  ;;  %v2521_v56 = vadd.f32 %v2429_v38, %v2279_v43  ;;  %v705_v55 = vmul.f32 0.0, %v3716_v39  ;;  %v1000_v7 = vmul.f32 %v5087_v52, %v4922_v42 }
 0x136   : > { %v2522_v15 = vadd.f32 %v2431_v40, %v2280_v13  ;;  %v1001_v61 = vmul.f32 %v5087_v52, %v4934_v58  ;;  %v1002_v12 = vmul.f32 %v5087_v52, %v4937_v46  ;;  %v1243_v18 = vmul.f32 %v5019_v44, %v4922_v42 }
 0x137   : > { %v2557_v17 = vadd.f32 %v5206_v57, %v2521_v56  ;;  %v794_v9 = vrot.slane %v704_v11, 7  ;;  %v795_v63 = vrot.slane %v705_v55, 7  ;;  %v1127_v25 = vrot.slane %v1000_v7, 1 }
 0x138   : > { %v2558_v50 = vadd.f32 %v5206_v57, %v2522_v15  ;;  %v1128_v49 = vrot.slane %v1001_v61, 1  ;;  %v1130_v10 = vrot.slane %v1002_v12, 1  ;;  %v1244_v22 = vmul.f32 %v5019_v44, %v4934_v58  ;;  %v5283_v58 = vpop.f32.mrf.mxu1 }
 0x139   : > { %v2589_v35 = vmax.f32 %v2557_v17, 0.0  ;;  %v796_v26 = vsel %vm742_vm2, %v794_v9, %v795_v63  ;;  %v868_v48 = vsel %vm742_vm2, 0.0, %v794_v9  ;;  %v886_v23 = vsel %vm742_vm2, %v795_v63, 0.0 }
 0x13a   : > { %v2590_v6 = vmax.f32 %v2558_v50, 0.0  ;;  %v1129_v42 = vsel %vm1051_vm3, %v1127_v25, %v1128_v49  ;;  %v1131_v59 = vsel %vm1051_vm3, %v1128_v49, %v1130_v10  ;;  %v1245_v54 = vmul.f32 %v5019_v44, %v4937_v46 }
 0x13b   : > { %v1370_v8 = vrot.slane %v1243_v18, 2  ;;  %v1194_v33 = vadd.f32 %v1129_v42, %v919_v37  ;;  %v1195_v19 = vadd.f32 %v1131_v59, %v920_v2  ;;  %v1371_v1 = vrot.slane %v1244_v22, 2 }
 0x13c   : > { %v2615_v31 = vpack.c.bf16 %v2590_v6, %v2589_v35  ;;  %v1373_v21 = vrot.slane %v1245_v54, 2  ;;  %v1472_v43 = vmul.f32 %v5114_v3, %v5080_v62  ;;  %v1473_v41 = vmul.f32 %v5114_v3, %v5097_v60 }
 0x13d   : > { %v1553_v13 = vmul.f32 %v5123_v24, %v5080_v62  ;;  %v1372_v46 = vsel %vm1294_vm4, %v1370_v8, %v1371_v1  ;;  %v1554_v38 = vmul.f32 %v5123_v24, %v5097_v60  ;;  %v1555_v14 = vmul.f32 %v5123_v24, %v5100_v5 }
 0x13e   : > { %2727 = vmatmul.bf16.gmra.mxu0 %v2615_v31  ;;  %v1795_v39 = vmul.f32 %v5136_v27, %v5080_v62  ;;  %v1374_v40 = vsel %vm1294_vm4, %v1371_v1, %v1373_v21  ;;  %v1437_v56 = vadd.f32 %v1372_v46, %v1194_v33  ;;  %v1796_v2 = vmul.f32 %v5136_v27, %v5097_v60 }
 0x13f   : > { %v1679_v37 = vrot.slane %v1553_v13, 1  ;;  %v1438_v15 = vadd.f32 %v1374_v40, %v1195_v19  ;;  %v1680_v11 = vrot.slane %v1554_v38, 1  ;;  %v1682_v55 = vrot.slane %v1555_v14, 1  ;;  %v5319_v38 = vpop.f32.mrf.mxu0  ;;  %v5323_v40 = vpop.f32.mrf.mxu2 }
 0x140   : > { %v1797_v7 = vmul.f32 %v5136_v27, %v5100_v5  ;;  %v1504_v17 = vadd.f32 %v1472_v43, %v1437_v56  ;;  %v1921_v61 = vrot.slane %v1795_v39, 2  ;;  %v1922_v12 = vrot.slane %v1796_v2, 2  ;;  %v5317_v46 = vpop.f32.mrf.mxu1 }
 0x141   : > { %v2023_v18 = vmul.f32 %v5148_v53, %v868_v48  ;;  %v1505_v50 = vadd.f32 %v1473_v41, %v1438_v15  ;;  %v1681_v62 = vsel %vm1051_vm3, %v1679_v37, %v1680_v11  ;;  %v1683_v9 = vsel %vm1051_vm3, %v1680_v11, %v1682_v55  ;;  %v5330_v15 = vpop.f32.mrf.mxu3 }
 0x142   : > { %v1924_v63 = vrot.slane %v1797_v7, 2  ;;  %v1746_v25 = vadd.f32 %v1681_v62, %v1504_v17  ;;  %v1923_v60 = vsel %vm1294_vm4, %v1921_v61, %v1922_v12  ;;  %v2024_v35 = vmul.f32 %v5148_v53, %v796_v26 }
 0x143   : > { %v2104_v49 = vmul.f32 %v5158_v16, %v868_v48  ;;  %v1747_v10 = vadd.f32 %v1683_v9, %v1505_v50  ;;  %v2105_v22 = vmul.f32 %v5158_v16, %v796_v26  ;;  %v2106_v6 = vmul.f32 %v5158_v16, %v886_v23 }
 0x144   : > { %v1925_v5 = vsel %vm1294_vm4, %v1922_v12, %v1924_v63  ;;  %v1988_v42 = vadd.f32 %v1923_v60, %v1746_v25  ;;  %v2346_v54 = vmul.f32 %v5171_v47, %v868_v48  ;;  %v2347_v8 = vmul.f32 %v5171_v47, %v796_v26 }
 0x145   : > { %v2230_v59 = vrot.slane %v2104_v49, 1  ;;  %v1989_v31 = vadd.f32 %v1925_v5, %v1747_v10  ;;  %v2231_v33 = vrot.slane %v2105_v22, 1  ;;  %v2233_v19 = vrot.slane %v2106_v6, 1 }
 0x146   : > { %v2348_v1 = vmul.f32 %v5171_v47, %v886_v23  ;;  %v2055_v21 = vadd.f32 %v2023_v18, %v1988_v42  ;;  %v2472_v43 = vrot.slane %v2346_v54, 2  ;;  %v2473_v41 = vrot.slane %v2347_v8, 2 }
 0x147   : > { %v903_v13 = vmul.f32 %v5075_v0, %v5000_v4  ;;  %v2056_v14 = vadd.f32 %v2024_v35, %v1989_v31  ;;  %v2232_v48 = vsel %vm1051_vm3, %v2230_v59, %v2231_v33  ;;  %v2234_v26 = vsel %vm1051_vm3, %v2231_v33, %v2233_v19  ;;  %v5357_v33 = vpop.f32.mrf.mxu2 }
 0x148   : > { %v2475_v39 = vrot.slane %v2348_v1, 2  ;;  %v2297_v56 = vadd.f32 %v2232_v48, %v2055_v21  ;;  %v2474_v23 = vsel %vm1294_vm4, %v2472_v43, %v2473_v41  ;;  %v904_v37 = vmul.f32 %v5075_v0, %v5005_v20 }
 0x149   : > { %v976_v2 = vmul.f32 %v5087_v52, %v5000_v4  ;;  %v2298_v11 = vadd.f32 %v2234_v26, %v2056_v14  ;;  %v977_v7 = vmul.f32 %v5087_v52, %v5005_v20  ;;  %v978_v17 = vmul.f32 %v5087_v52, %v5008_v51 }
 0x14a   : > { %v2476_v55 = vsel %vm1294_vm4, %v2473_v41, %v2475_v39  ;;  %v2539_v61 = vadd.f32 %v2474_v23, %v2297_v56  ;;  %v1219_v18 = vmul.f32 %v5019_v44, %v5000_v4  ;;  %v1220_v0 = vmul.f32 %v5019_v44, %v5005_v20  ;;  %v5363_v41 = vpop.f32.mrf.mxu3 }
 0x14b   : > { %v1087_v12 = vrot.slane %v976_v2, 1  ;;  %v2540_v50 = vadd.f32 %v2476_v55, %v2298_v11  ;;  %v1088_v62 = vrot.slane %v977_v7, 1  ;;  %v1090_v9 = vrot.slane %v978_v17, 1 }
 0x14c   : > { %v1221_v63 = vmul.f32 %v5019_v44, %v5008_v51  ;;  %v2575_v25 = vadd.f32 %v5206_v57, %v2539_v61  ;;  %v1330_v60 = vrot.slane %v1219_v18, 2  ;;  %v1331_v35 = vrot.slane %v1220_v0, 2  ;;  %v5350_v51 = vpop.f32.mrf.mxu1  ;;  %v2700_v44 = vpop.f32.mrf.mxu0 }
 0x14d   : > { %v1456_v52 = vmul.f32 %v5114_v3, %v4058_v29  ;;  %v2576_v49 = vadd.f32 %v5206_v57, %v2540_v50  ;;  %v1089_v4 = vsel %vm1051_vm3, %v1087_v12, %v1088_v62  ;;  %v1091_v10 = vsel %vm1051_vm3, %v1088_v62, %v1090_v9 }
 0x14e   : > { %v1333_v20 = vrot.slane %v1221_v63, 2  ;;  %v2607_v5 = vmax.f32 %v2575_v25, 0.0  ;;  %v1178_v22 = vadd.f32 %v1089_v4, %v903_v13  ;;  %v1179_v6 = vadd.f32 %v1091_v10, %v904_v37  ;;  %v5401_v10 = vld [vmem:[%s5616_s10] ss:$0 sm:$0xff] }
 0x14f   : > { %v1332_v42 = vsel %vm1294_vm4, %v1330_v60, %v1331_v35  ;;  %v2608_v59 = vmax.f32 %v2576_v49, 0.0  ;;  %v1457_v8 = vmul.f32 %v5114_v3, %v4055_v28  ;;  %v1529_v31 = vmul.f32 %v5123_v24, %v4058_v29 }
 0x150   : > { %v1334_v54 = vsel %vm1294_vm4, %v1331_v35, %v1333_v20  ;;  %v1421_v19 = vadd.f32 %v1332_v42, %v1178_v22  ;;  %v1530_v21 = vmul.f32 %v5123_v24, %v4055_v28  ;;  %v1531_v43 = vmul.f32 %v5123_v24, %v4061_v30  ;;  %v2743_v35 = vpop.f32.mrf.mxu2 }
 0x151   : > { %v1422_v1 = vadd.f32 %v1334_v54, %v1179_v6  ;;  %v2624_v13 = vpack.c.bf16 %v2608_v59, %v2607_v5  ;;  %v1639_v14 = vrot.slane %v1529_v31, 1  ;;  %v1771_v3 = vmul.f32 %v5136_v27, %v4058_v29 }
 0x152   : > { %v1772_v48 = vmul.f32 %v5136_v27, %v4055_v28  ;;  %v1488_v26 = vadd.f32 %v1456_v52, %v1421_v19  ;;  %v1640_v56 = vrot.slane %v1530_v21, 1  ;;  %v1642_v23 = vrot.slane %v1531_v43, 1 }
 0x153   : > { %v1489_v39 = vadd.f32 %v1457_v8, %v1422_v1  ;;  %2772 = vmatmul.bf16.gmra.mxu2 %v2624_v13  ;;  %v1773_v37 = vmul.f32 %v5136_v27, %v4061_v30  ;;  %v1881_v2 = vrot.slane %v1771_v3, 2  ;;  %v2007_v11 = vmul.f32 %v5148_v53, %v4075_v34 }
 0x154   : > { %v1882_v24 = vrot.slane %v1772_v48, 2  ;;  %v1641_v55 = vsel %vm1051_vm3, %v1639_v14, %v1640_v56  ;;  %v1643_v29 = vsel %vm1051_vm3, %v1640_v56, %v1642_v23  ;;  %v2008_v28 = vmul.f32 %v5148_v53, %v4069_v32  ;;  %v5386_v62 = vpop.f32.mrf.mxu1  ;;  %v2703_v53 = vpop.f32.mrf.mxu0  ;;  %v5423_v14 = vld [vmem:[%s5617_s11] ss:$0 sm:$0xff] }
 0x155   : > { %v2080_v7 = vmul.f32 %v5158_v16, %v4075_v34  ;;  %v1730_v17 = vadd.f32 %v1641_v55, %v1488_v26  ;;  %v1731_v61 = vadd.f32 %v1643_v29, %v1489_v39  ;;  %v1884_v30 = vrot.slane %v1773_v37, 2 }
 0x156   : > { %v1883_v12 = vsel %vm1294_vm4, %v1881_v2, %v1882_v24  ;;  %v2081_v27 = vmul.f32 %v5158_v16, %v4069_v32  ;;  %v2082_v18 = vmul.f32 %v5158_v16, %v4082_v36  ;;  %v2322_v50 = vmul.f32 %v5171_v47, %v4075_v34  ;;  %v5396_v16 = vld [vmem:[%s5612_s6] ss:$0 sm:$0xff] }
 0x157   : > { %v2190_v0 = vrot.slane %v2080_v7, 1  ;;  %v1885_v9 = vsel %vm1294_vm4, %v1882_v24, %v1884_v30  ;;  %v1972_v63 = vadd.f32 %v1883_v12, %v1730_v17  ;;  %v2323_v25 = vmul.f32 %v5171_v47, %v4069_v32 }
 0x158   : > { %v2324_v60 = vmul.f32 %v5171_v47, %v4082_v36  ;;  %v1973_v52 = vadd.f32 %v1885_v9, %v1731_v61  ;;  %v2191_v34 = vrot.slane %v2081_v27, 1  ;;  %v2193_v49 = vrot.slane %v2082_v18, 1  ;;  %v5406_v36 = vld [vmem:[%s5613_s7] ss:$0 sm:$0xff]  ;;  %v5408_v47 = vpop.f32.mrf.mxu3  ;;  %v2745_v2 = vpop.f32.mrf.mxu2 }
 0x159   : > { %v2432_v4 = vrot.slane %v2322_v50, 2  ;;  %v2039_v20 = vadd.f32 %v2007_v11, %v1972_v63  ;;  %v2433_v32 = vrot.slane %v2323_v25, 2  ;;  %v2782_v31 = vmul.f32 %v5396_v16, %v5319_v38 }
 0x15a   : > { %v2435_v5 = vrot.slane %v2324_v60, 2  ;;  %v2040_v22 = vadd.f32 %v2008_v28, %v1973_v52  ;;  %v2192_v6 = vsel %vm1051_vm3, %v2190_v0, %v2191_v34  ;;  %v2194_v42 = vsel %vm1051_vm3, %v2191_v34, %v2193_v49 }
 0x15b   : > { %v2281_v59 = vadd.f32 %v2192_v6, %v2039_v20  ;;  %v2434_v54 = vsel %vm1294_vm4, %v2432_v4, %v2433_v32  ;;  %v2783_v1 = vmul.f32 %v5396_v16, %v2700_v44  ;;  %v3120_v21 = vmul.f32 %v5401_v10, %v5256_v45 }
 0x15c   : > { %v2436_v8 = vsel %vm1294_vm4, %v2433_v32, %v2435_v5  ;;  %v2282_v19 = vadd.f32 %v2194_v42, %v2040_v22  ;;  %v2818_v13 = vadd.f32 %v5406_v36, %v2782_v31  ;;  %v3121_v3 = vmul.f32 %v5401_v10, %v5283_v58  ;;  %v5428_v26 = vpop.f32.mrf.mxu1  ;;  %v2705_v39 = vpop.f32.mrf.mxu0 }
 0x15d   : > { %v2523_v43 = vadd.f32 %v2434_v54, %v2281_v59  ;;  %v2819_v38 = vadd.f32 %v5406_v36, %v2783_v1  ;;  %v2784_v44 = vmul.f32 %v5396_v16, %v2703_v53  ;;  %v3122_v56 = vmul.f32 %v5401_v10, %v5317_v46 }
 0x15e   : > { %v2524_v48 = vadd.f32 %v2436_v8, %v2282_v19  ;;  %v3152_v23 = vadd.f32 %v3120_v21, %v2818_v13  ;;  %v3138_v37 = vmul.f32 %v5401_v10, %v5330_v15  ;;  %v2800_v55 = vmul.f32 %v5396_v16, %v2743_v35 }
 0x15f   : > { %v2559_v45 = vadd.f32 %v5206_v57, %v2523_v43  ;;  %v3153_v24 = vadd.f32 %v3121_v3, %v2819_v38  ;;  %v2820_v11 = vadd.f32 %v5406_v36, %v2784_v44  ;;  %v2785_v7 = vmul.f32 %v5396_v16, %v2705_v39 }
 0x160   : > { %v2560_v58 = vadd.f32 %v5206_v57, %v2524_v48  ;;  %v3188_v28 = vadd.f32 %v5423_v14, %v3152_v23  ;;  %v2836_v15 = vadd.f32 %v5406_v36, %v2800_v55  ;;  %v3123_v57 = vmul.f32 %v5401_v10, %v5350_v51  ;;  %v3088_v27 = vpop.f32.mrf.mxu3  ;;  %v2748_v32 = vpop.f32.mrf.mxu2 }
 0x161   : > { %v2591_v29 = vmax.f32 %v2559_v45, 0.0  ;;  %v3189_v46 = vadd.f32 %v5423_v14, %v3153_v24  ;;  %v3154_v61 = vadd.f32 %v3122_v56, %v2820_v11  ;;  %v2821_v12 = vadd.f32 %v5406_v36, %v2785_v7 }
 0x162   : > { %v2592_v17 = vmax.f32 %v2560_v58, 0.0  ;;  %v2801_v30 = vmul.f32 %v5396_v16, %v2745_v2  ;;  %v3220_v0 = vmax.f32 %v3188_v28, 0.0  ;;  %v3170_v53 = vadd.f32 %v3138_v37, %v2836_v15 }
 0x163   : > { %v3221_v50 = vmax.f32 %v3189_v46, 0.0  ;;  %v3190_v9 = vadd.f32 %v5423_v14, %v3154_v61  ;;  %v3139_v51 = vmul.f32 %v5401_v10, %v5363_v41  ;;  %v3155_v63 = vadd.f32 %v3123_v57, %v2821_v12 }
 0x164   : > { %v2616_v18 = vpack.c.bf16 %v2592_v17, %v2591_v29  ;;  %v2837_v25 = vadd.f32 %v5406_v36, %v2801_v30  ;;  %v3051_v35 = vpop.f32.mrf.mxu1  ;;  %v2708_v52 = vpop.f32.mrf.mxu0  ;;  %v3206_v34 = vadd.f32 %v5423_v14, %v3170_v53  ;;  %v2802_v5 = vmul.f32 %v5396_v16, %v2748_v32 }
 0x165   : > { %v3720_v60 = vpack.c.bf16 %v3221_v50, %v3220_v0  ;;  %v3191_v49 = vadd.f32 %v5423_v14, %v3155_v63  ;;  %v2786_v20 = vmul.f32 %v5396_v16, %v2708_v52  ;;  %v3222_v41 = vmax.f32 %v3190_v9, 0.0 }
 0x166   : > { %2732 = vmatmul.bf16.gmra.mxu0 %v2616_v18  ;;  %v3171_v4 = vadd.f32 %v3139_v51, %v2837_v25  ;;  %v3238_v42 = vmax.f32 %v3206_v34, 0.0  ;;  %v3140_v31 = vmul.f32 %v5401_v10, %v5408_v47  ;;  %v2838_v19 = vadd.f32 %v5406_v36, %v2802_v5 }
 0x167   : > { %3721 = vst [vmem:[%s5451_s25] sm:$0xff] %v3720_v60   ;;  %v3223_v22 = vmax.f32 %v3191_v49, 0.0  ;;  %v2822_v8 = vadd.f32 %v5406_v36, %v2786_v20  ;;  %v3124_v1 = vmul.f32 %v5401_v10, %v5386_v62  ;;  %v3125_v47 = vmul.f32 %v5401_v10, %v5428_v26 }
 0x168   : > { %v3207_v6 = vadd.f32 %v5423_v14, %v3171_v4  ;;  %v3091_v43 = vpop.f32.mrf.mxu3  ;;  %v2750_v44 = vpop.f32.mrf.mxu2  ;;  %v3172_v39 = vadd.f32 %v3140_v31, %v2838_v19  ;;  %v3141_v62 = vmul.f32 %v5401_v10, %v3088_v27  ;;  %v3126_v53 = vmul.f32 %v5401_v10, %v3051_v35 }
 0x169   : > { %v3725_v59 = vpack.c.bf16 %v3223_v22, %v3222_v41  ;;  %v3156_v48 = vadd.f32 %v3124_v1, %v2822_v8  ;;  %v2803_v45 = vmul.f32 %v5396_v16, %v2750_v44  ;;  %v3142_v0 = vmul.f32 %v5401_v10, %v3091_v43 }
 0x16a   : > { %v3239_v54 = vmax.f32 %v3207_v6, 0.0  ;;  %v3208_v58 = vadd.f32 %v5423_v14, %v3172_v39 }
 0x16b   : > { %3813 = vst [vmem:[%s5451_s25 + $0x8] sm:$0xff] %v3725_v59   ;;  %v2839_v23 = vadd.f32 %v5406_v36, %v2803_v45  ;;  %v3192_v37 = vadd.f32 %v5423_v14, %v3156_v48 }
 0x16c   : > { %v3765_v21 = vpack.c.bf16 %v3239_v54, %v3238_v42  ;;  %v3053_v13 = vpop.f32.mrf.mxu1  ;;  %v2710_v3 = vpop.f32.mrf.mxu0  ;;  %v3240_v15 = vmax.f32 %v3208_v58, 0.0 }
 0x16d   : > { %v2787_v38 = vmul.f32 %v5396_v16, %v2710_v3  ;;  %v3173_v24 = vadd.f32 %v3141_v62, %v2839_v23  ;;  %v3224_v28 = vmax.f32 %v3192_v37, 0.0  ;;  %v3127_v49 = vmul.f32 %v5401_v10, %v3053_v13 }
 0x16e   : > { %3821 = vst [vmem:[%s5451_s25 + $0x48] sm:$0xff] %v3765_v21  }
 0x16f   : > { %v2823_v56 = vadd.f32 %v5406_v36, %v2787_v38  ;;  %v3209_v29 = vadd.f32 %v5423_v14, %v3173_v24 }
 0x170   : > { %v2753_v46 = vpop.f32.mrf.mxu2  ;;  %v3093_v61 = vpop.f32.mrf.mxu3 }
 0x171   : > { %v3157_v2 = vadd.f32 %v3125_v47, %v2823_v56  ;;  %v3241_v57 = vmax.f32 %v3209_v29, 0.0  ;;  %v2804_v12 = vmul.f32 %v5396_v16, %v2753_v46  ;;  %v3143_v32 = vmul.f32 %v5401_v10, %v3093_v61 }
 0x173   : > { %v3193_v11 = vadd.f32 %v5423_v14, %v3157_v2  ;;  %v3770_v27 = vpack.c.bf16 %v3241_v57, %v3240_v15  ;;  %v2840_v50 = vadd.f32 %v5406_v36, %v2804_v12 }
 0x174   : > { %v3056_v55 = vpop.f32.mrf.mxu1  ;;  %v2713_v26 = vpop.f32.mrf.mxu0 }
 0x175   : > { %v3225_v7 = vmax.f32 %v3193_v11, 0.0  ;;  %v2788_v17 = vmul.f32 %v5396_v16, %v2713_v26  ;;  %3822 = vst [vmem:[%s5451_s25 + $0x50] sm:$0xff] %v3770_v27   ;;  %v3174_v52 = vadd.f32 %v3142_v0, %v2840_v50  ;;  %v3128_v56 = vmul.f32 %v5401_v10, %v3056_v55 }
 0x177   : > { %v3730_v30 = vpack.c.bf16 %v3225_v7, %v3224_v28  ;;  %v2824_v18 = vadd.f32 %v5406_v36, %v2788_v17  ;;  %v3210_v22 = vadd.f32 %v5423_v14, %v3174_v52 }
 0x178   : > { %v2755_v60 = vpop.f32.mrf.mxu2  ;;  %v3096_v20 = vpop.f32.mrf.mxu3 }
 0x179   : > { %3814 = vst [vmem:[%s5451_s25 + $0x10] sm:$0xff] %v3730_v30   ;;  %v3158_v63 = vadd.f32 %v3126_v53, %v2824_v18  ;;  %v2805_v34 = vmul.f32 %v5396_v16, %v2755_v60  ;;  %v3242_v43 = vmax.f32 %v3210_v22, 0.0  ;;  %v3144_v45 = vmul.f32 %v5401_v10, %v3096_v20 }
 0x17b   : > { %v2841_v5 = vadd.f32 %v5406_v36, %v2805_v34  ;;  %v3194_v35 = vadd.f32 %v5423_v14, %v3158_v63 }
 0x17c   : > { %v3058_v9 = vpop.f32.mrf.mxu1  ;;  %v2715_v51 = vpop.f32.mrf.mxu0 }
 0x17d   : > { %v2789_v25 = vmul.f32 %v5396_v16, %v2715_v51  ;;  %v3175_v6 = vadd.f32 %v3143_v32, %v2841_v5  ;;  %v3226_v31 = vmax.f32 %v3194_v35, 0.0  ;;  %v3129_v29 = vmul.f32 %v5401_v10, %v3058_v9 }
 0x17f   : > { %v2825_v4 = vadd.f32 %v5406_v36, %v2789_v25  ;;  %v3211_v54 = vadd.f32 %v5423_v14, %v3175_v6 }
 0x180   : > { %v2758_v21 = vpop.f32.mrf.mxu2  ;;  %v3098_v39 = vpop.f32.mrf.mxu3 }
 0x181   : > { %v3159_v41 = vadd.f32 %v3127_v49, %v2825_v4  ;;  %v3243_v13 = vmax.f32 %v3211_v54, 0.0  ;;  %v2806_v3 = vmul.f32 %v5396_v16, %v2758_v21  ;;  %v3145_v28 = vmul.f32 %v5401_v10, %v3098_v39 }
 0x183   : > { %v3195_v42 = vadd.f32 %v5423_v14, %v3159_v41  ;;  %v3775_v38 = vpack.c.bf16 %v3243_v13, %v3242_v43  ;;  %v2842_v47 = vadd.f32 %v5406_v36, %v2806_v3 }
 0x184   : > { %v3061_v59 = vpop.f32.mrf.mxu1  ;;  %v2718_v8 = vpop.f32.mrf.mxu0 }
 0x185   : > { %v3227_v19 = vmax.f32 %v3195_v42, 0.0  ;;  %v2790_v1 = vmul.f32 %v5396_v16, %v2718_v8  ;;  %3823 = vst [vmem:[%s5451_s25 + $0x58] sm:$0xff] %v3775_v38   ;;  %v3176_v24 = vadd.f32 %v3144_v45, %v2842_v47  ;;  %v3130_v4 = vmul.f32 %v5401_v10, %v3061_v59 }
 0x187   : > { %v3735_v48 = vpack.c.bf16 %v3227_v19, %v3226_v31  ;;  %v2826_v44 = vadd.f32 %v5406_v36, %v2790_v1  ;;  %v3212_v46 = vadd.f32 %v5423_v14, %v3176_v24 }
 0x188   : > { %v2760_v58 = vpop.f32.mrf.mxu2  ;;  %v3101_v57 = vpop.f32.mrf.mxu3 }
 0x189   : > { %3815 = vst [vmem:[%s5451_s25 + $0x18] sm:$0xff] %v3735_v48   ;;  %v3160_v37 = vadd.f32 %v3128_v56, %v2826_v44  ;;  %v2807_v11 = vmul.f32 %v5396_v16, %v2760_v58  ;;  %v3244_v9 = vmax.f32 %v3212_v46, 0.0  ;;  %v3146_v34 = vmul.f32 %v5401_v10, %v3101_v57 }
 0x18b   : > { %v2843_v7 = vadd.f32 %v5406_v36, %v2807_v11  ;;  %v3196_v17 = vadd.f32 %v5423_v14, %v3160_v37 }
 0x18c   : > { %v3063_v62 = vpop.f32.mrf.mxu1  ;;  %v2720_v23 = vpop.f32.mrf.mxu0 }
 0x18d   : > { %v2791_v2 = vmul.f32 %v5396_v16, %v2720_v23  ;;  %v3177_v61 = vadd.f32 %v3145_v28, %v2843_v7  ;;  %v3228_v18 = vmax.f32 %v3196_v17, 0.0  ;;  %v3131_v54 = vmul.f32 %v5401_v10, %v3063_v62 }
 0x18e   : > { %v2798_v17 = vmul.f32 %v5396_v16, %v5323_v40 }
 0x18f   : > { %v2827_v26 = vadd.f32 %v5406_v36, %v2791_v2  ;;  %v3213_v30 = vadd.f32 %v5423_v14, %v3177_v61 }
 0x190   : > { %v2763_v53 = vpop.f32.mrf.mxu2  ;;  %v3103_v35 = vpop.f32.mrf.mxu3 }
 0x191   : > { %v3161_v55 = vadd.f32 %v3129_v29, %v2827_v26  ;;  %v3245_v51 = vmax.f32 %v3213_v30, 0.0  ;;  %v2808_v63 = vmul.f32 %v5396_v16, %v2763_v53  ;;  %v3147_v31 = vmul.f32 %v5401_v10, %v3103_v35 }
 0x193   : > { %v3197_v15 = vadd.f32 %v5423_v14, %v3161_v55  ;;  %v3780_v60 = vpack.c.bf16 %v3245_v51, %v3244_v9  ;;  %v2844_v49 = vadd.f32 %v5406_v36, %v2808_v63 }
 0x194   : > { %v5517_v12 = vpop.f32.mrf.mxu1  ;;  %v2723_v27 = vpop.f32.mrf.mxu0 }
 0x195   : > { %v3229_v0 = vmax.f32 %v3197_v15, 0.0  ;;  %v2792_v50 = vmul.f32 %v5396_v16, %v2723_v27  ;;  %3824 = vst [vmem:[%s5451_s25 + $0x60] sm:$0xff] %v3780_v60   ;;  %v3178_v6 = vadd.f32 %v3146_v34, %v2844_v49  ;;  %v2834_v27 = vadd.f32 %v5406_v36, %v2798_v17 }
 0x196   : > { %v3132_v34 = vmul.f32 %v5401_v10, %v5517_v12 }
 0x197   : > { %v3740_v25 = vpack.c.bf16 %v3229_v0, %v3228_v18  ;;  %v2828_v52 = vadd.f32 %v5406_v36, %v2792_v50  ;;  %v3214_v21 = vadd.f32 %v5423_v14, %v3178_v6  ;;  %v2799_v18 = vmul.f32 %v5396_v16, %v5357_v33 }
 0x198   : > { %v2765_v22 = vpop.f32.mrf.mxu2  ;;  %v3106_v62 = vpop.f32.mrf.mxu3 }
 0x199   : > { %3816 = vst [vmem:[%s5451_s25 + $0x20] sm:$0xff] %v3740_v25   ;;  %v3162_v5 = vadd.f32 %v3130_v4, %v2828_v52  ;;  %v2809_v42 = vmul.f32 %v5396_v16, %v2765_v22  ;;  %v3246_v39 = vmax.f32 %v3214_v21, 0.0  ;;  %v3148_v58 = vmul.f32 %v5401_v10, %v3106_v62 }
 0x19a   : > { %v2835_v63 = vadd.f32 %v5406_v36, %v2799_v18 }
 0x19b   : > { %v2845_v59 = vadd.f32 %v5406_v36, %v2809_v42  ;;  %v3198_v19 = vadd.f32 %v5423_v14, %v3162_v5 }
 0x19c   : > { %v5528_v20 = vpop.f32.mrf.mxu1  ;;  %v2725_v32 = vpop.f32.mrf.mxu0 }
 0x19d   : > { %v2793_v41 = vmul.f32 %v5396_v16, %v2725_v32  ;;  %v3179_v43 = vadd.f32 %v3147_v31, %v2845_v59  ;;  %v3230_v38 = vmax.f32 %v3198_v19, 0.0 }
 0x19f   : > { %v2829_v8 = vadd.f32 %v5406_v36, %v2793_v41  ;;  %v3215_v48 = vadd.f32 %v5423_v14, %v3179_v43  ;;  %v3133_v41 = vmul.f32 %v5401_v10, %v5528_v20 }
 0x1a0   : > { %v3108_v11 = vpop.f32.mrf.mxu3 }
 0x1a1   : > { %v3163_v1 = vadd.f32 %v3131_v54, %v2829_v8  ;;  %v3247_v45 = vmax.f32 %v3215_v48, 0.0  ;;  %v3149_v55 = vmul.f32 %v5401_v10, %v3108_v11 }
 0x1a3   : > { %v3199_v13 = vadd.f32 %v5423_v14, %v3163_v1  ;;  %v3785_v56 = vpack.c.bf16 %v3247_v45, %v3246_v39 }
 0x1a4   : > { %v5539_v3 = vpop.f32.mrf.mxu1 }
 0x1a5   : > { %v3231_v44 = vmax.f32 %v3199_v13, 0.0  ;;  %3825 = vst [vmem:[%s5451_s25 + $0x68] sm:$0xff] %v3785_v56  }
 0x1a7   : > { %v3745_v47 = vpack.c.bf16 %v3231_v44, %v3230_v38 }
 0x1a8   : > { %v3111_v21 = vpop.f32.mrf.mxu3 }
 0x1a9   : > { %3817 = vst [vmem:[%s5451_s25 + $0x28] sm:$0xff] %v3745_v47   ;;  %v3150_v20 = vmul.f32 %v5401_v10, %v3111_v21 }
 0x1ac   : > { %v5544_v37 = vpop.f32.mrf.mxu1 }
 0x1ae   : > { %v2768_v23 = vpop.f32.mrf.mxu2 }
 0x1af   : > { %v2810_v2 = vmul.f32 %v5396_v16, %v2768_v23 }
 0x1b0   : > { %v3113_v38 = vpop.f32.mrf.mxu3 }
 0x1b1   : > { %v2846_v24 = vadd.f32 %v5406_v36, %v2810_v2  ;;  %v3151_v47 = vmul.f32 %v5401_v10, %v3113_v38 }
 0x1b3   : > { %v3180_v26 = vadd.f32 %v3148_v58, %v2846_v24 }
 0x1b4   : > { %v3076_v28 = vpop.f32.mrf.mxu1 }
 0x1b5   : > { %v3136_v61 = vmul.f32 %v5401_v10, %v3076_v28  ;;  %v3216_v57 = vadd.f32 %v5423_v14, %v3180_v26 }
 0x1b6   : > { %v2770_v29 = vpop.f32.mrf.mxu2 }
 0x1b7   : > { %v2811_v7 = vmul.f32 %v5396_v16, %v2770_v29  ;;  %v3168_v50 = vadd.f32 %v3136_v61, %v2834_v27  ;;  %v3248_v53 = vmax.f32 %v3216_v57, 0.0  ;;  %v3135_v61 = vmul.f32 %v5401_v10, %v5544_v37 }
 0x1b9   : > { %v2847_v46 = vadd.f32 %v5406_v36, %v2811_v7  ;;  %v3204_v33 = vadd.f32 %v5423_v14, %v3168_v50  ;;  %v3134_v7 = vmul.f32 %v5401_v10, %v5539_v3 }
 0x1bb   : > { %v2728_v15 = vpop.f32.mrf.mxu0  ;;  %v3181_v30 = vadd.f32 %v3149_v55, %v2847_v46  ;;  %v3236_v22 = vmax.f32 %v3204_v33, 0.0 }
 0x1bc   : > { %v2794_v0 = vmul.f32 %v5396_v16, %v2728_v15  ;;  %v3078_v51 = vpop.f32.mrf.mxu1 }
 0x1bd   : > { %v3217_v40 = vadd.f32 %v5423_v14, %v3181_v30  ;;  %v3137_v60 = vmul.f32 %v5401_v10, %v3078_v51 }
 0x1be   : > { %v2830_v25 = vadd.f32 %v5406_v36, %v2794_v0 }
 0x1bf   : > { %v3249_v9 = vmax.f32 %v3217_v40, 0.0  ;;  %v3169_v49 = vadd.f32 %v3137_v60, %v2835_v63 }
 0x1c0   : > { %v3164_v32 = vadd.f32 %v3132_v34, %v2830_v25 }
 0x1c1   : > { %v3790_v52 = vpack.c.bf16 %v3249_v9, %v3248_v53  ;;  %v3205_v35 = vadd.f32 %v5423_v14, %v3169_v49 }
 0x1c2   : > { %v3200_v12 = vadd.f32 %v5423_v14, %v3164_v32 }
 0x1c3   : > { %v2730_v4 = vpop.f32.mrf.mxu0  ;;  %3826 = vst [vmem:[%s5451_s25 + $0x70] sm:$0xff] %v3790_v52   ;;  %v3237_v42 = vmax.f32 %v3205_v35, 0.0 }
 0x1c4   : > { %v2795_v5 = vmul.f32 %v5396_v16, %v2730_v4  ;;  %v3232_v59 = vmax.f32 %v3200_v12, 0.0 }
 0x1c5   : > { %v3760_v8 = vpack.c.bf16 %v3237_v42, %v3236_v22 }
 0x1c6   : > { %v2831_v6 = vadd.f32 %v5406_v36, %v2795_v5 }
 0x1c7   : > { %3820 = vst [vmem:[%s5451_s25 + $0x40] sm:$0xff] %v3760_v8  }
 0x1c8   : > { %v3165_v54 = vadd.f32 %v3133_v41, %v2831_v6 }
 0x1ca   : > { %v3201_v31 = vadd.f32 %v5423_v14, %v3165_v54 }
 0x1cc   : > { %v3233_v19 = vmax.f32 %v3201_v31, 0.0 }
 0x1ce   : > { %v3750_v1 = vpack.c.bf16 %v3233_v19, %v3232_v59 }
 0x1d0   : > { %3818 = vst [vmem:[%s5451_s25 + $0x30] sm:$0xff] %v3750_v1  }
 0x1d6   : > { %v2773_v43 = vpop.f32.mrf.mxu2 }
 0x1d7   : > { %v2812_v13 = vmul.f32 %v5396_v16, %v2773_v43 }
 0x1d9   : > { %v2848_v48 = vadd.f32 %v5406_v36, %v2812_v13 }
 0x1db   : > { %v3182_v39 = vadd.f32 %v3150_v20, %v2848_v48 }
 0x1dd   : > { %v3218_v23 = vadd.f32 %v5423_v14, %v3182_v39 }
 0x1de   : > { %v2775_v44 = vpop.f32.mrf.mxu2 }
 0x1df   : > { %v2813_v45 = vmul.f32 %v5396_v16, %v2775_v44  ;;  %v3250_v11 = vmax.f32 %v3218_v23, 0.0 }
 0x1e1   : > { %v2849_v56 = vadd.f32 %v5406_v36, %v2813_v45 }
 0x1e3   : > { %v2733_v62 = vpop.f32.mrf.mxu0  ;;  %v3183_v2 = vadd.f32 %v3151_v47, %v2849_v56 }
 0x1e4   : > { %v2796_v58 = vmul.f32 %v5396_v16, %v2733_v62 }
 0x1e5   : > { %v3219_v24 = vadd.f32 %v5423_v14, %v3183_v2 }
 0x1e6   : > { %v2832_v26 = vadd.f32 %v5406_v36, %v2796_v58 }
 0x1e7   : > { %v3251_v29 = vmax.f32 %v3219_v24, 0.0 }
 0x1e8   : > { %v3166_v55 = vadd.f32 %v3134_v7, %v2832_v26 }
 0x1e9   : > { %v3795_v28 = vpack.c.bf16 %v3251_v29, %v3250_v11 }
 0x1ea   : > { %v3202_v57 = vadd.f32 %v5423_v14, %v3166_v55 }
 0x1eb   : > { %v2735_v17 = vpop.f32.mrf.mxu0  ;;  %3827 = vst [vmem:[%s5451_s25 + $0x78] sm:$0xff] %v3795_v28  }
 0x1ec   : > { %v2797_v46 = vmul.f32 %v5396_v16, %v2735_v17  ;;  %v3234_v18 = vmax.f32 %v3202_v57, 0.0 }
 0x1ee   : > { %v2833_v15 = vadd.f32 %v5406_v36, %v2797_v46 }
 0x1f0   : > { %v3167_v30 = vadd.f32 %v3135_v61, %v2833_v15 }
 0x1f2   : > { %v3203_v27 = vadd.f32 %v5423_v14, %v3167_v30 }
 0x1f4   : > { %v3235_v0 = vmax.f32 %v3203_v27, 0.0 }
 0x1f6   : > { %v3755_v40 = vpack.c.bf16 %v3235_v0, %v3234_v18 }
 0x1f8   : > { %3819 = vst [vmem:[%s5451_s25 + $0x38] sm:$0xff] %v3755_v40  }
 0x1f9 PF: > { %s22_s23 = sadd.s32 1, %s3918_s23   ;;  %s5619_s21 = smov %s3914_s22 }
 0x1fa   : > { %p19_p5 = scmp.ge.s32.totalorder %s22_s23, 4   ;;  %s5620_s22 = smov %s5622_s24 }
 0x1fc   :  { %21 = sbr.rel (!%p19_p5) target bundleno = 2 (0x2), region = 109 }

// kernel: forward.12
= control target key start
LH: loop header
LB: loop body
LE: loop exit
PB: predicated region body
PF: predicated region fallthrough
CT: control target
= control target key end

     0   :  { %s3334_s27 = smov 0   ;;  %s3336_s28 = smov 0   ;;  %s4821_s0 = inlined_call_operand.vmem [shape: bf16[2,16,16,128], index: 0, kind: input, shape index: {}, may-alias: {0,1,2}]   ;;  %s4822_s1 = inlined_call_operand.vmem [shape: bf16[2,16,16,128], index: 1, kind: input, shape index: {}, may-alias: {0,1,2}]   ;;  %s4823_s2 = inlined_call_operand.vmem [shape: bf16[2,16,16,128], index: 2, kind: input, shape index: {}, may-alias: {0,1,2}]   ;;  %s4824_s3 = inlined_call_operand.vmem [shape: f32[3,3,128], index: 3, kind: input, shape index: {}]   ;;  %s4825_s4 = inlined_call_operand.vmem [shape: f32[1,128], index: 4, kind: input, shape index: {}]   ;;  %s4826_s5 = inlined_call_operand.vmem [shape: bf16[128,128], index: 5, kind: input, shape index: {}]   ;;  %s4827_s6 = inlined_call_operand.vmem [shape: f32[1,128], index: 6, kind: input, shape index: {}]   ;;  %s4828_s7 = inlined_call_operand.vmem [shape: f32[1,128], index: 7, kind: input, shape index: {}]   ;;  %s4829_s8 = inlined_call_operand.vmem [shape: bf16[2,16,16,128], index: 8, kind: output, shape index: {}]  }
   0x1   :  { %s3338_s29 = smov 0  }
   0x2 LB: > { %s30_s30 = sadd.s32 1, %s3283_s28  ;;  %p2940_p0 = scmp.ge.s32.totalorder %s3287_s29, 1  ;;  %s3287_s29 = sphi %s3338_s29, %s18_s29   ;;  %s3283_s28 = sphi %s3336_s28, %s4879_s28   ;;  %s3279_s27 = sphi %s3334_s27, %s4878_s27  }
   0x3   : > { %p32_p1 = scmp.ge.s32.totalorder %s30_s30, 2  ;;  %p348_p2 = scmp.lt.s32.totalorder %s3287_s29, 3 }
   0x5   : > { %s4881_s30 = smov (%p32_p1, %s30_s30), 0  ;;  %p349_p3 = pnand %p2940_p0, %p348_p2 }
   0x7   : > { %352 = sbr.rel (%p349_p3) target bundleno = 503 (0x1f7), region = 52 }
   0xc   : > { %v3001_v0 = vld [vmem:[%s4826_s5 + $0x38] sm:$0xff]  ;;  %p422_p4 = scmp.lt.s32.totalorder %s3279_s27, 1  ;;  %v3000_v1 = vld [vmem:[%s4826_s5 + $0x30] sm:$0xff]  ;;  %v2999_v2 = vld [vmem:[%s4826_s5 + $0x28] sm:$0xff]  ;;  %vm594_vm0 = vcmask 1040384   ;;  %vm903_vm1 = vcmask 1046528  }
   0xd   : > { %3185 = vmatpush.bf16.msra.mxu1 %v3001_v0  ;;  %3186 = vmatpush.bf16.msra.mxu2 %v3001_v0  ;;  %v2998_v10 = vld [vmem:[%s4826_s5 + $0x20] sm:$0xff]  ;;  %vm1146_vm2 = vcmask 1045504   ;;  %v2997_v37 = vld [vmem:[%s4826_s5 + $0x18] sm:$0xff]  ;;  %v2996_v55 = vld [vmem:[%s4826_s5 + $0x10] sm:$0xff] }
   0xe   : > { %s4883_s27 = smov (!%p422_p4, %s3279_s27), 1  ;;  %3187 = vmatpush.bf16.msra.mxu3 %v3001_v0  ;;  %2541 = vmatpush.bf16.msra.mxu0 %v3001_v0  ;;  %v3378_v13 = vld [vmem:[%s4824_s3] ss:$0 sm:$0xff]  ;;  %v3383_v18 = vld [vmem:[%s4824_s3 + $0x1] ss:$0 sm:$0xff] }
   0xf   : > { %s3358_s13 = sshll.u32 %s4883_s27, 7  ;;  %v3388_v21 = vld [vmem:[%s4824_s3 + $0x2] ss:$0 sm:$0xff]  ;;  %v3405_v26 = vld [vmem:[%s4824_s3 + $0x4] ss:$0 sm:$0xff] }
  0x10   : > { %s3367_s18 = scalar_lea.vmem %s4822_s1, %s3358_s13  ;;  %v3422_v31 = vld [vmem:[%s4824_s3 + $0x5] ss:$0 sm:$0xff]  ;;  %v3457_v50 = vld [vmem:[%s4824_s3 + $0x6] ss:$0 sm:$0xff]  ;;  %v3473_v59 = vld [vmem:[%s4824_s3 + $0x8] ss:$0 sm:$0xff]  ;;  %s430_s16 = scalar_lea.vmem %s4821_s0, %s3358_s13 }
  0x11   : > { %3188 = vmatpush.bf16.msra.mxu1 %v3000_v1  ;;  %3189 = vmatpush.bf16.msra.mxu2 %v3000_v1  ;;  %v3157_v3 = vld [vmem:[%s3367_s18 + $0x18] sm:$0xff]   ;;  %v3158_v4 = vld [vmem:[%s3367_s18 + $0x20] sm:$0xff]   ;;  %v3159_v5 = vld [vmem:[%s3367_s18 + $0x28] sm:$0xff]   ;;  %s2992_s11 = sadd.s32 120, %s3358_s13  ;;  %s4745_s14 = scalar_lea.vmem %s4829_s8, %s3358_s13 }
  0x12   : > { %3190 = vmatpush.bf16.msra.mxu3 %v3000_v1  ;;  %2542 = vmatpush.bf16.msra.mxu0 %v3000_v1  ;;  %v3020_v6 = vunpack.c.l.bf16 %v3157_v3  ;;  %v3021_v7 = vunpack.c.h.bf16 %v3157_v3  ;;  %v3024_v8 = vunpack.c.l.bf16 %v3158_v4  ;;  %v3025_v9 = vunpack.c.h.bf16 %v3158_v4  ;;  %v3425_v32 = vld [vmem:[%s3367_s18 + $0x38] sm:$0xff]   ;;  %s458_s17 = scalar_lea.vmem %s4823_s2, %s2992_s11 }
  0x13   : > { %v3028_v11 = vunpack.c.l.bf16 %v3159_v5  ;;  %v3029_v12 = vunpack.c.h.bf16 %v3159_v5  ;;  %v3036_v41 = vunpack.c.l.bf16 %v3425_v32  ;;  %v3037_v60 = vunpack.c.h.bf16 %v3425_v32  ;;  %v3483_v5 = vld [vmem:[%s4824_s3 + $0x9] ss:$0 sm:$0xff] }
  0x14   : > { %v607_v14 = vrot.slane %v3020_v6, 7  ;;  %v608_v15 = vrot.slane %v3021_v7, 7  ;;  %v610_v16 = vrot.slane %v3024_v8, 7  ;;  %v611_v17 = vrot.slane %v3025_v9, 7 }
  0x15   : > { %3191 = vmatpush.bf16.msra.mxu1 %v2999_v2  ;;  %3192 = vmatpush.bf16.msra.mxu2 %v2999_v2  ;;  %v613_v19 = vrot.slane %v3028_v11, 7  ;;  %v614_v20 = vrot.slane %v3029_v12, 7 }
  0x16   : > { %3193 = vmatpush.bf16.msra.mxu3 %v2999_v2  ;;  %2543 = vmatpush.bf16.msra.mxu0 %v2999_v2  ;;  %v3391_v22 = vsel %vm594_vm0, %v607_v14, %v608_v15  ;;  %v3394_v23 = vsel %vm594_vm0, %v610_v16, %v611_v17  ;;  %v3397_v24 = vsel %vm594_vm0, 0.0, %v607_v14  ;;  %v3400_v25 = vsel %vm594_vm0, 0.0, %v610_v16  ;;  %v3499_v16 = vld [vmem:[%s4824_s3 + $0xa] ss:$0 sm:$0xff] }
  0x17   : > { %4854 = vst [vmem:[#allocation2_spill] sm:$0xff] %v3391_v22  ;;  %v3408_v27 = vsel %vm594_vm0, %v613_v19, %v614_v20  ;;  %v3411_v28 = vsel %vm594_vm0, 0.0, %v613_v19  ;;  %v3414_v29 = vsel %vm594_vm0, %v608_v15, 0.0  ;;  %v3417_v30 = vsel %vm594_vm0, %v611_v17, 0.0 }
  0x18   : > { %4855 = vst [vmem:[#allocation3_spill] sm:$0xff] %v3394_v23  ;;  %v3428_v33 = vsel %vm594_vm0, %v614_v20, 0.0  ;;  %v749_v34 = vmul.f32 %v3378_v13, %v3397_v24  ;;  %v750_v35 = vmul.f32 %v3378_v13, %v3391_v22  ;;  %v819_v36 = vmul.f32 %v3383_v18, %v3397_v24 }
  0x19   : > { %4856 = vst [vmem:[#allocation4_spill] sm:$0xff] %v3397_v24  ;;  %3194 = vmatpush.bf16.msra.mxu1 %v2998_v10  ;;  %3195 = vmatpush.bf16.msra.mxu2 %v2998_v10  ;;  %v820_v38 = vmul.f32 %v3383_v18, %v3391_v22  ;;  %v821_v39 = vmul.f32 %v3383_v18, %v3414_v29 }
  0x1a   : > { %4857 = vst [vmem:[#allocation5_spill] sm:$0xff] %v3400_v25  ;;  %v1062_v40 = vmul.f32 %v3388_v21, %v3397_v24  ;;  %3196 = vmatpush.bf16.msra.mxu3 %v2998_v10  ;;  %2544 = vmatpush.bf16.msra.mxu0 %v2998_v10  ;;  %v924_v42 = vrot.slane %v819_v36, 1  ;;  %v1063_v43 = vmul.f32 %v3388_v21, %v3391_v22  ;;  %v2995_v10 = vld [vmem:[%s4826_s5 + $0x8] sm:$0xff] }
  0x1b   : > { %4858 = vst [vmem:[#allocation6_spill] sm:$0xff] %v3414_v29  ;;  %v1064_v44 = vmul.f32 %v3388_v21, %v3414_v29  ;;  %v1302_v45 = vmul.f32 %v3405_v26, %v3400_v25  ;;  %v925_v46 = vrot.slane %v820_v38, 1  ;;  %v927_v47 = vrot.slane %v821_v39, 1  ;;  %v3162_v39 = vld [vmem:[%s3367_s18 + $0x40] sm:$0xff]  }
  0x1c   : > { %4859 = vst [vmem:[#allocation7_spill] sm:$0xff] %v3417_v30  ;;  %v1167_v48 = vrot.slane %v1062_v40, 2  ;;  %v1303_v49 = vmul.f32 %v3405_v26, %v3394_v23  ;;  %v1168_v51 = vrot.slane %v1063_v43, 2  ;;  %v1372_v53 = vmul.f32 %v3422_v31, %v3400_v25 }
  0x1d   : > { %v1170_v52 = vrot.slane %v1064_v44, 2  ;;  %v1373_v54 = vmul.f32 %v3422_v31, %v3394_v23  ;;  %3197 = vmatpush.bf16.msra.mxu1 %v2997_v37  ;;  %3198 = vmatpush.bf16.msra.mxu2 %v2997_v37  ;;  %v926_v56 = vsel %vm903_vm1, %v924_v42, %v925_v46  ;;  %v928_v57 = vsel %vm903_vm1, %v925_v46, %v927_v47 }
  0x1e   : > { %v1374_v58 = vmul.f32 %v3422_v31, %v3417_v30  ;;  %3199 = vmatpush.bf16.msra.mxu3 %v2997_v37  ;;  %2545 = vmatpush.bf16.msra.mxu0 %v2997_v37  ;;  %v1024_v61 = vadd.f32 %v926_v56, %v749_v34  ;;  %v1025_v62 = vadd.f32 %v928_v57, %v750_v35  ;;  %v1476_v0 = vrot.slane %v1372_v53, 1 }
  0x1f   : > { %v1169_v63 = vsel %vm1146_vm2, %v1167_v48, %v1168_v51  ;;  %v1171_v1 = vsel %vm1146_vm2, %v1168_v51, %v1170_v52  ;;  %v1477_v2 = vrot.slane %v1373_v54, 1  ;;  %v1614_v4 = vmul.f32 %v3457_v50, %v3400_v25 }
  0x20   : > { %v1479_v3 = vrot.slane %v1374_v58, 1  ;;  %v1267_v6 = vadd.f32 %v1169_v63, %v1024_v61  ;;  %v1268_v7 = vadd.f32 %v1171_v1, %v1025_v62  ;;  %v1615_v8 = vmul.f32 %v3457_v50, %v3394_v23 }
  0x21   : > { %v1616_v9 = vmul.f32 %v3457_v50, %v3417_v30  ;;  %3200 = vmatpush.bf16.msra.mxu1 %v2996_v55  ;;  %3201 = vmatpush.bf16.msra.mxu2 %v2996_v55  ;;  %v1478_v11 = vsel %vm903_vm1, %v1476_v0, %v1477_v2  ;;  %v1718_v14 = vrot.slane %v1614_v4, 2  ;;  %v1853_v15 = vmul.f32 %v3473_v59, %v3411_v28 }
  0x22   : > { %v1480_v12 = vsel %vm903_vm1, %v1477_v2, %v1479_v3  ;;  %3202 = vmatpush.bf16.msra.mxu3 %v2996_v55  ;;  %2546 = vmatpush.bf16.msra.mxu0 %v2996_v55  ;;  %v1334_v17 = vadd.f32 %v1302_v45, %v1267_v6  ;;  %v1335_v19 = vadd.f32 %v1303_v49, %v1268_v7  ;;  %v1719_v20 = vrot.slane %v1615_v8, 2  ;;  %v2994_v45 = vld [vmem:[%s4826_s5] sm:$0xff]  ;;  %v3163_v55 = vld [vmem:[%s3367_s18 + $0x48] sm:$0xff]  }
  0x23   : > { %v1721_v34 = vrot.slane %v1616_v9, 2  ;;  %v1854_v35 = vmul.f32 %v3473_v59, %v3408_v27  ;;  %v1923_v36 = vmul.f32 %v3483_v5, %v3411_v28  ;;  %v1924_v37 = vmul.f32 %v3483_v5, %v3408_v27 }
  0x24   : > { %v1925_v38 = vmul.f32 %v3483_v5, %v3428_v33  ;;  %v1576_v40 = vadd.f32 %v1478_v11, %v1334_v17  ;;  %v1577_v42 = vadd.f32 %v1480_v12, %v1335_v19  ;;  %v1720_v43 = vsel %vm1146_vm2, %v1718_v14, %v1719_v20 }
  0x25   : > { %v1722_v44 = vsel %vm1146_vm2, %v1719_v20, %v1721_v34  ;;  %3203 = vmatpush.bf16.msra.mxu1 %v2995_v10  ;;  %3204 = vmatpush.bf16.msra.mxu2 %v2995_v10  ;;  %v2027_v46 = vrot.slane %v1923_v36, 1  ;;  %v2028_v47 = vrot.slane %v1924_v37, 1  ;;  %v2165_v49 = vmul.f32 %v3499_v16, %v3411_v28 }
  0x26   : > { %v2030_v48 = vrot.slane %v1925_v38, 1  ;;  %3205 = vmatpush.bf16.msra.mxu3 %v2995_v10  ;;  %2547 = vmatpush.bf16.msra.mxu0 %v2995_v10  ;;  %v1818_v51 = vadd.f32 %v1720_v43, %v1576_v40  ;;  %v1819_v52 = vadd.f32 %v1722_v44, %v1577_v42  ;;  %v2166_v53 = vmul.f32 %v3499_v16, %v3408_v27  ;;  %v3530_v10 = vld [vmem:[%s4825_s4] ss:$0 sm:$0xff] }
  0x27   : > { %v3040_v54 = vunpack.c.l.bf16 %v3162_v39  ;;  %v2029_v56 = vsel %vm903_vm1, %v2027_v46, %v2028_v47  ;;  %v2167_v58 = vmul.f32 %v3499_v16, %v3428_v33  ;;  %v2269_v61 = vrot.slane %v2165_v49, 2 }
  0x28   : > { %v2031_v57 = vsel %vm903_vm1, %v2028_v47, %v2030_v48  ;;  %v1885_v62 = vadd.f32 %v1853_v15, %v1818_v51  ;;  %v1886_v63 = vadd.f32 %v1854_v35, %v1819_v52  ;;  %v2270_v0 = vrot.slane %v2166_v53, 2 }
  0x29   : > { %v3041_v1 = vunpack.c.h.bf16 %v3162_v39  ;;  %3206 = vmatpush.bf16.msra.mxu1 %v2994_v45  ;;  %3207 = vmatpush.bf16.msra.mxu2 %v2994_v45  ;;  %v2272_v2 = vrot.slane %v2167_v58, 2  ;;  %v3044_v3 = vunpack.c.l.bf16 %v3163_v55  ;;  %v3045_v4 = vunpack.c.h.bf16 %v3163_v55 }
  0x2a   : > { %v619_v6 = vrot.slane %v3036_v41, 7  ;;  %3208 = vmatpush.bf16.msra.mxu3 %v2994_v45  ;;  %2548 = vmatpush.bf16.msra.mxu0 %v2994_v45  ;;  %v2127_v7 = vadd.f32 %v2029_v56, %v1885_v62  ;;  %v2128_v8 = vadd.f32 %v2031_v57, %v1886_v63  ;;  %v2271_v9 = vsel %vm1146_vm2, %v2269_v61, %v2270_v0 }
  0x2b   : > { %v620_v11 = vrot.slane %v3037_v60, 7  ;;  %v2273_v12 = vsel %vm1146_vm2, %v2270_v0, %v2272_v2  ;;  %v622_v14 = vrot.slane %v3040_v54, 7  ;;  %v623_v15 = vrot.slane %v3041_v1, 7 }
  0x2c   : > { %v625_v17 = vrot.slane %v3044_v3, 7  ;;  %v2369_v41 = vadd.f32 %v2271_v9, %v2127_v7  ;;  %v2370_v19 = vadd.f32 %v2273_v12, %v2128_v8  ;;  %v626_v34 = vrot.slane %v3045_v4, 7 }
  0x2d   : > { %v3536_v20 = vsel %vm594_vm0, %v619_v6, %v620_v11  ;;  %v3539_v35 = vsel %vm594_vm0, %v622_v14, %v623_v15  ;;  %v3542_v36 = vsel %vm594_vm0, 0.0, %v619_v6  ;;  %v3545_v32 = vsel %vm594_vm0, 0.0, %v622_v14 }
  0x2e   : > { %4860 = vst [vmem:[#allocation8_spill] sm:$0xff] %v3539_v35  ;;  %v3548_v60 = vsel %vm594_vm0, 0.0, %v625_v17  ;;  %v2405_v37 = vadd.f32 %v3530_v10, %v2369_v41  ;;  %v2406_v38 = vadd.f32 %v3530_v10, %v2370_v19  ;;  %v3553_v39 = vsel %vm594_vm0, %v625_v17, %v626_v34 }
  0x2f   : > { %v3556_v40 = vsel %vm594_vm0, %v620_v11, 0.0  ;;  %v3559_v42 = vsel %vm594_vm0, %v623_v15, 0.0  ;;  %v3562_v43 = vsel %vm594_vm0, %v626_v34, 0.0  ;;  %v757_v44 = vmul.f32 %v3378_v13, %v3542_v36 }
  0x30   : > { %4861 = vst [vmem:[#allocation9_spill] sm:$0xff] %v3559_v42  ;;  %v758_v45 = vmul.f32 %v3378_v13, %v3536_v20  ;;  %v2437_v46 = vmax.f32 %v2405_v37, 0.0  ;;  %v2438_v47 = vmax.f32 %v2406_v38, 0.0  ;;  %v831_v48 = vmul.f32 %v3383_v18, %v3542_v36 }
  0x31   : > { %v832_v49 = vmul.f32 %v3383_v18, %v3536_v20  ;;  %v833_v51 = vmul.f32 %v3383_v18, %v3556_v40  ;;  %v1074_v52 = vmul.f32 %v3388_v21, %v3542_v36  ;;  %v1075_v53 = vmul.f32 %v3388_v21, %v3536_v20 }
  0x32   : > { %v1076_v54 = vmul.f32 %v3388_v21, %v3556_v40  ;;  %v2465_v55 = vpack.c.bf16 %v2438_v47, %v2437_v46  ;;  %v944_v56 = vrot.slane %v831_v48, 1  ;;  %v1310_v58 = vmul.f32 %v3405_v26, %v3545_v32 }
  0x33   : > { %v945_v57 = vrot.slane %v832_v49, 1  ;;  %v947_v61 = vrot.slane %v833_v51, 1  ;;  %v1187_v62 = vrot.slane %v1074_v52, 2  ;;  %v1188_v63 = vrot.slane %v1075_v53, 2 }
  0x34   : > { %v1190_v0 = vrot.slane %v1076_v54, 2  ;;  %2569 = vmatmul.bf16.vlgmr.msra.gmra.mxu1 %v2465_v55  ;;  %v1311_v2 = vmul.f32 %v3405_v26, %v3539_v35  ;;  %v1384_v3 = vmul.f32 %v3422_v31, %v3545_v32  ;;  %v1385_v4 = vmul.f32 %v3422_v31, %v3539_v35 }
  0x35   : > { %v946_v1 = vsel %vm903_vm1, %v944_v56, %v945_v57  ;;  %v948_v6 = vsel %vm903_vm1, %v945_v57, %v947_v61  ;;  %v1189_v8 = vsel %vm1146_vm2, %v1187_v62, %v1188_v63  ;;  %v1386_v12 = vmul.f32 %v3422_v31, %v3559_v42  ;;  %v3165_v61 = vld [vmem:[%s3367_s18 + $0x58] sm:$0xff]  }
  0x36   : > { %v1032_v7 = vadd.f32 %v946_v1, %v757_v44  ;;  %v1191_v9 = vsel %vm1146_vm2, %v1188_v63, %v1190_v0  ;;  %v1033_v11 = vadd.f32 %v948_v6, %v758_v45  ;;  %v1496_v14 = vrot.slane %v1384_v3, 1 }
  0x37   : > { %v1497_v15 = vrot.slane %v1385_v4, 1  ;;  %v1626_v41 = vmul.f32 %v3457_v50, %v3545_v32  ;;  %v1627_v19 = vmul.f32 %v3457_v50, %v3539_v35  ;;  %v1628_v34 = vmul.f32 %v3457_v50, %v3559_v42 }
  0x38   : > { %v1275_v17 = vadd.f32 %v1189_v8, %v1032_v7  ;;  %v1276_v37 = vadd.f32 %v1191_v9, %v1033_v11  ;;  %v1499_v44 = vrot.slane %v1386_v12, 1  ;;  %v1861_v45 = vmul.f32 %v3473_v59, %v3548_v60  ;;  %v3166_v7 = vld [vmem:[%s3367_s18 + $0x60] sm:$0xff]  }
  0x39   : > { %v1498_v38 = vsel %vm903_vm1, %v1496_v14, %v1497_v15  ;;  %v1738_v47 = vrot.slane %v1626_v41, 2  ;;  %v1739_v48 = vrot.slane %v1627_v19, 2  ;;  %v1741_v49 = vrot.slane %v1628_v34, 2  ;;  %v3167_v19 = vld [vmem:[%s3367_s18 + $0x68] sm:$0xff]  }
  0x3a   : > { %v1342_v46 = vadd.f32 %v1310_v58, %v1275_v17  ;;  %v1343_v51 = vadd.f32 %v1311_v2, %v1276_v37  ;;  %v1500_v52 = vsel %vm903_vm1, %v1497_v15, %v1499_v44  ;;  %v1862_v53 = vmul.f32 %v3473_v59, %v3553_v39 }
  0x3b   : > { %v1935_v54 = vmul.f32 %v3483_v5, %v3548_v60  ;;  %v1740_v56 = vsel %vm1146_vm2, %v1738_v47, %v1739_v48  ;;  %v1742_v57 = vsel %vm1146_vm2, %v1739_v48, %v1741_v49  ;;  %v1936_v58 = vmul.f32 %v3483_v5, %v3553_v39 }
  0x3c   : > { %v1584_v55 = vadd.f32 %v1498_v38, %v1342_v46  ;;  %v1585_v62 = vadd.f32 %v1500_v52, %v1343_v51  ;;  %v1937_v63 = vmul.f32 %v3483_v5, %v3562_v43  ;;  %v2177_v1 = vmul.f32 %v3499_v16, %v3548_v60 }
  0x3d   : > { %v2047_v0 = vrot.slane %v1935_v54, 1  ;;  %v2048_v3 = vrot.slane %v1936_v58, 1  ;;  %v2178_v4 = vmul.f32 %v3499_v16, %v3553_v39  ;;  %v2179_v6 = vmul.f32 %v3499_v16, %v3562_v43 }
  0x3e   : > { %v1826_v2 = vadd.f32 %v1740_v56, %v1584_v55  ;;  %v1827_v8 = vadd.f32 %v1742_v57, %v1585_v62  ;;  %v2050_v9 = vrot.slane %v1937_v63, 1  ;;  %v2289_v11 = vrot.slane %v2177_v1, 2 }
  0x3f   : > { %v3052_v12 = vunpack.c.l.bf16 %v3165_v61  ;;  %v2049_v15 = vsel %vm903_vm1, %v2047_v0, %v2048_v3  ;;  %v2290_v17 = vrot.slane %v2178_v4, 2  ;;  %v2292_v41 = vrot.slane %v2179_v6, 2 }
  0x40   : > { %v1893_v14 = vadd.f32 %v1861_v45, %v1826_v2  ;;  %v1894_v34 = vadd.f32 %v1862_v53, %v1827_v8  ;;  %v2051_v37 = vsel %vm903_vm1, %v2048_v3, %v2050_v9  ;;  %v3053_v38 = vunpack.c.h.bf16 %v3165_v61 }
  0x41   : > { %v3056_v44 = vunpack.c.l.bf16 %v3166_v7  ;;  %v2291_v47 = vsel %vm1146_vm2, %v2289_v11, %v2290_v17  ;;  %v2293_v48 = vsel %vm1146_vm2, %v2290_v17, %v2292_v41  ;;  %v3057_v49 = vunpack.c.h.bf16 %v3166_v7 }
  0x42   : > { %v2135_v46 = vadd.f32 %v2049_v15, %v1893_v14  ;;  %v2136_v51 = vadd.f32 %v2051_v37, %v1894_v34  ;;  %v3060_v52 = vunpack.c.l.bf16 %v3167_v19  ;;  %v3061_v54 = vunpack.c.h.bf16 %v3167_v19 }
  0x43   : > { %v631_v45 = vrot.slane %v3052_v12, 7  ;;  %v632_v56 = vrot.slane %v3053_v38, 7  ;;  %v634_v57 = vrot.slane %v3056_v44, 7  ;;  %v635_v58 = vrot.slane %v3057_v49, 7 }
  0x44   : > { %v2377_v55 = vadd.f32 %v2291_v47, %v2135_v46  ;;  %v2378_v62 = vadd.f32 %v2293_v48, %v2136_v51  ;;  %v637_v53 = vrot.slane %v3060_v52, 7  ;;  %v638_v63 = vrot.slane %v3061_v54, 7 }
  0x45   : > { %v3628_v61 = vsel %vm594_vm0, 0.0, %v631_v45  ;;  %v3632_v1 = vsel %vm594_vm0, %v631_v45, %v632_v56  ;;  %v3635_v2 = vsel %vm594_vm0, %v634_v57, %v635_v58  ;;  %v3638_v3 = vsel %vm594_vm0, 0.0, %v634_v57 }
  0x46   : > { %v2413_v0 = vadd.f32 %v3530_v10, %v2377_v55  ;;  %4862 = vst [vmem:[#allocation10_spill] sm:$0xff] %v3635_v2  ;;  %v2414_v4 = vadd.f32 %v3530_v10, %v2378_v62  ;;  %v3642_v6 = vsel %vm594_vm0, %v637_v53, %v638_v63  ;;  %v3645_v7 = vsel %vm594_vm0, 0.0, %v637_v53 }
  0x47   : > { %4863 = vst [vmem:[#allocation11_spill] sm:$0xff] %v3638_v3  ;;  %v3648_v8 = vsel %vm594_vm0, %v632_v56, 0.0  ;;  %v3651_v11 = vsel %vm594_vm0, %v635_v58, 0.0  ;;  %v3654_v12 = vsel %vm594_vm0, %v638_v63, 0.0  ;;  %v765_v14 = vmul.f32 %v3378_v13, %v3628_v61 }
  0x48   : > { %4864 = vst [vmem:[#allocation12_spill] sm:$0xff] %v3648_v8  ;;  %v2445_v9 = vmax.f32 %v2413_v0, 0.0  ;;  %v2446_v15 = vmax.f32 %v2414_v4, 0.0  ;;  %v766_v17 = vmul.f32 %v3378_v13, %v3632_v1  ;;  %v843_v41 = vmul.f32 %v3383_v18, %v3628_v61 }
  0x49   : > { %4865 = vst [vmem:[#allocation13_spill] sm:$0xff] %v3651_v11  ;;  %v844_v19 = vmul.f32 %v3383_v18, %v3632_v1  ;;  %v845_v34 = vmul.f32 %v3383_v18, %v3648_v8  ;;  %v1086_v37 = vmul.f32 %v3388_v21, %v3628_v61  ;;  %v1087_v38 = vmul.f32 %v3388_v21, %v3632_v1 }
  0x4a   : > { %v1088_v44 = vmul.f32 %v3388_v21, %v3648_v8  ;;  %v2469_v46 = vpack.c.bf16 %v2446_v15, %v2445_v9  ;;  %v964_v47 = vrot.slane %v843_v41, 1  ;;  %v1318_v49 = vmul.f32 %v3405_v26, %v3638_v3 }
  0x4b   : > { %v965_v48 = vrot.slane %v844_v19, 1  ;;  %v967_v51 = vrot.slane %v845_v34, 1  ;;  %v1207_v52 = vrot.slane %v1086_v37, 2  ;;  %v1208_v54 = vrot.slane %v1087_v38, 2 }
  0x4c   : > { %v1210_v45 = vrot.slane %v1088_v44, 2  ;;  %2589 = vmatmul.bf16.vlgmr.msra.gmra.mxu2 %v2469_v46  ;;  %v1319_v56 = vmul.f32 %v3405_v26, %v3635_v2  ;;  %v1396_v57 = vmul.f32 %v3422_v31, %v3638_v3  ;;  %v1397_v58 = vmul.f32 %v3422_v31, %v3635_v2 }
  0x4d   : > { %v966_v55 = vsel %vm903_vm1, %v964_v47, %v965_v48  ;;  %v968_v62 = vsel %vm903_vm1, %v965_v48, %v967_v51  ;;  %v1209_v63 = vsel %vm1146_vm2, %v1207_v52, %v1208_v54  ;;  %v1398_v9 = vmul.f32 %v3422_v31, %v3651_v11 }
  0x4e   : > { %v1040_v53 = vadd.f32 %v966_v55, %v765_v14  ;;  %v1211_v0 = vsel %vm1146_vm2, %v1208_v54, %v1210_v45  ;;  %v1041_v4 = vadd.f32 %v968_v62, %v766_v17  ;;  %v1516_v15 = vrot.slane %v1396_v57, 1 }
  0x4f   : > { %v1517_v41 = vrot.slane %v1397_v58, 1  ;;  %v1638_v34 = vmul.f32 %v3457_v50, %v3638_v3  ;;  %v1639_v37 = vmul.f32 %v3457_v50, %v3635_v2  ;;  %v1640_v14 = vmul.f32 %v3457_v50, %v3651_v11 }
  0x50   : > { %v1283_v19 = vadd.f32 %v1209_v63, %v1040_v53  ;;  %v1284_v38 = vadd.f32 %v1211_v0, %v1041_v4  ;;  %v1519_v46 = vrot.slane %v1398_v9, 1  ;;  %v1869_v17 = vmul.f32 %v3473_v59, %v3645_v7  ;;  %v3003_v63 = vld [vmem:[%s430_s16] sm:$0xff]  }
  0x51   : > { %v1518_v44 = vsel %vm903_vm1, %v1516_v15, %v1517_v41  ;;  %v1758_v48 = vrot.slane %v1638_v34, 2  ;;  %v1759_v51 = vrot.slane %v1639_v37, 2  ;;  %v1761_v52 = vrot.slane %v1640_v14, 2 }
  0x52   : > { %v1350_v47 = vadd.f32 %v1318_v49, %v1283_v19  ;;  %v1351_v54 = vadd.f32 %v1319_v56, %v1284_v38  ;;  %v1520_v45 = vsel %vm903_vm1, %v1517_v41, %v1519_v46  ;;  %v1870_v55 = vmul.f32 %v3473_v59, %v3642_v6  ;;  %v3007_v46 = vld [vmem:[%s3367_s18] sm:$0xff]  }
  0x53   : > { %v1947_v57 = vmul.f32 %v3483_v5, %v3645_v7  ;;  %v1760_v62 = vsel %vm1146_vm2, %v1758_v48, %v1759_v51  ;;  %v1762_v53 = vsel %vm1146_vm2, %v1759_v51, %v1761_v52  ;;  %v1948_v49 = vmul.f32 %v3483_v5, %v3642_v6 }
  0x54   : > { %v1592_v58 = vadd.f32 %v1518_v44, %v1350_v47  ;;  %v1593_v0 = vadd.f32 %v1520_v45, %v1351_v54  ;;  %v1949_v56 = vmul.f32 %v3483_v5, %v3654_v12  ;;  %v2189_v9 = vmul.f32 %v3499_v16, %v3645_v7  ;;  %v3155_v54 = vld [vmem:[%s3367_s18 + $0x8] sm:$0xff]  }
  0x55   : > { %v2067_v4 = vrot.slane %v1947_v57, 1  ;;  %v2068_v41 = vrot.slane %v1948_v49, 1  ;;  %v2190_v19 = vmul.f32 %v3499_v16, %v3642_v6  ;;  %v2191_v34 = vmul.f32 %v3499_v16, %v3654_v12 }
  0x56   : > { %v1834_v15 = vadd.f32 %v1760_v62, %v1592_v58  ;;  %v1835_v37 = vadd.f32 %v1762_v53, %v1593_v0  ;;  %v2070_v14 = vrot.slane %v1949_v56, 1  ;;  %v2309_v38 = vrot.slane %v2189_v9, 2 }
  0x57   : > { %v3004_v44 = vunpack.c.l.bf16 %v3003_v63  ;;  %v2069_v48 = vsel %vm903_vm1, %v2067_v4, %v2068_v41  ;;  %v2310_v51 = vrot.slane %v2190_v19, 2  ;;  %v2312_v52 = vrot.slane %v2191_v34, 2 }
  0x58   : > { %v1901_v47 = vadd.f32 %v1869_v17, %v1834_v15  ;;  %v1902_v45 = vadd.f32 %v1870_v55, %v1835_v37  ;;  %v2071_v57 = vsel %vm903_vm1, %v2068_v41, %v2070_v14  ;;  %v3005_v58 = vunpack.c.h.bf16 %v3003_v63 }
  0x59   : > { %v485_v62 = vmul.f32 0.0, %v3004_v44  ;;  %v2311_v29 = vsel %vm1146_vm2, %v2309_v38, %v2310_v51  ;;  %v2313_v53 = vsel %vm1146_vm2, %v2310_v51, %v2312_v52  ;;  %v3008_v0 = vunpack.c.l.bf16 %v3007_v46 }
  0x5a   : > { %v2143_v49 = vadd.f32 %v2069_v48, %v1901_v47  ;;  %v2144_v56 = vadd.f32 %v2071_v57, %v1902_v45  ;;  %v486_v9 = vmul.f32 0.0, %v3005_v58  ;;  %v3009_v22 = vunpack.c.h.bf16 %v3007_v46 }
  0x5b   : > { %v3012_v17 = vunpack.c.l.bf16 %v3155_v54  ;;  %v3013_v4 = vunpack.c.h.bf16 %v3155_v54  ;;  %v595_v19 = vrot.slane %v485_v62, 7  ;;  %v598_v34 = vrot.slane %v3008_v0, 7 }
  0x5c   : > { %v2385_v15 = vadd.f32 %v2311_v29, %v2143_v49  ;;  %v2386_v24 = vadd.f32 %v2313_v53, %v2144_v56  ;;  %v596_v55 = vrot.slane %v486_v9, 7  ;;  %v599_v37 = vrot.slane %v3009_v22, 7 }
  0x5d   : > { %v601_v41 = vrot.slane %v3012_v17, 7  ;;  %v602_v14 = vrot.slane %v3013_v4, 7  ;;  %v703_v38 = vsel %vm594_vm0, 0.0, %v595_v19  ;;  %v3725_v44 = vsel %vm594_vm0, 0.0, %v598_v34 }
  0x5e   : > { %v2421_v63 = vadd.f32 %v3530_v10, %v2385_v15  ;;  %v2422_v47 = vadd.f32 %v3530_v10, %v2386_v24  ;;  %v597_v46 = vsel %vm594_vm0, %v595_v19, %v596_v55  ;;  %v3730_v29 = vsel %vm594_vm0, %v598_v34, %v599_v37 }
  0x5f   : > { %v3733_v48 = vsel %vm594_vm0, 0.0, %v601_v41  ;;  %v3736_v51 = vsel %vm594_vm0, %v601_v41, %v602_v14  ;;  %v721_v52 = vsel %vm594_vm0, %v596_v55, 0.0  ;;  %v3740_v54 = vsel %vm594_vm0, %v599_v37, 0.0 }
  0x60   : > { %v2453_v22 = vmax.f32 %v2421_v63, 0.0  ;;  %v2454_v45 = vmax.f32 %v2422_v47, 0.0  ;;  %v3743_v24 = vsel %vm594_vm0, %v602_v14, 0.0  ;;  %v741_v57 = vmul.f32 %v3378_v13, %v703_v38 }
  0x61   : > { %v742_v58 = vmul.f32 %v3378_v13, %v597_v46  ;;  %v807_v62 = vmul.f32 %v3383_v18, %v703_v38  ;;  %v808_v49 = vmul.f32 %v3383_v18, %v597_v46  ;;  %v809_v53 = vmul.f32 %v3383_v18, %v721_v52 }
  0x62   : > { %v1050_v0 = vmul.f32 %v3388_v21, %v703_v38  ;;  %v2473_v56 = vpack.c.bf16 %v2454_v45, %v2453_v22  ;;  %v1051_v9 = vmul.f32 %v3388_v21, %v597_v46  ;;  %v1052_v17 = vmul.f32 %v3388_v21, %v721_v52 }
  0x63   : > { %v1294_v15 = vmul.f32 %v3405_v26, %v3725_v44  ;;  %v904_v4 = vrot.slane %v807_v62, 1  ;;  %v905_v19 = vrot.slane %v808_v49, 1  ;;  %v907_v34 = vrot.slane %v809_v53, 1 }
  0x64   : > { %v1147_v55 = vrot.slane %v1050_v0, 2  ;;  %2609 = vmatmul.bf16.vlgmr.msra.gmra.mxu3 %v2473_v56  ;;  %v1148_v37 = vrot.slane %v1051_v9, 2  ;;  %v1150_v41 = vrot.slane %v1052_v17, 2  ;;  %v1295_v63 = vmul.f32 %v3405_v26, %v3730_v29 }
  0x65   : > { %v1360_v14 = vmul.f32 %v3422_v31, %v3725_v44  ;;  %v906_v38 = vsel %vm903_vm1, %v904_v4, %v905_v19  ;;  %v908_v47 = vsel %vm903_vm1, %v905_v19, %v907_v34  ;;  %v1361_v46 = vmul.f32 %v3422_v31, %v3730_v29 }
  0x66   : > { %v1362_v22 = vmul.f32 %v3422_v31, %v3740_v54  ;;  %v1016_v52 = vadd.f32 %v906_v38, %v741_v57  ;;  %v1017_v45 = vadd.f32 %v908_v47, %v742_v58  ;;  %v1149_v62 = vsel %vm1146_vm2, %v1147_v55, %v1148_v37 }
  0x67   : > { %v1151_v49 = vsel %vm1146_vm2, %v1148_v37, %v1150_v41  ;;  %v1456_v53 = vrot.slane %v1360_v14, 1  ;;  %v1457_v0 = vrot.slane %v1361_v46, 1  ;;  %v1602_v9 = vmul.f32 %v3457_v50, %v3725_v44 }
  0x68   : > { %v1459_v56 = vrot.slane %v1362_v22, 1  ;;  %v1259_v17 = vadd.f32 %v1149_v62, %v1016_v52  ;;  %v1260_v4 = vadd.f32 %v1151_v49, %v1017_v45  ;;  %v1603_v19 = vmul.f32 %v3457_v50, %v3730_v29 }
  0x69   : > { %v1604_v34 = vmul.f32 %v3457_v50, %v3740_v54  ;;  %v1458_v57 = vsel %vm903_vm1, %v1456_v53, %v1457_v0  ;;  %v1698_v55 = vrot.slane %v1602_v9, 2  ;;  %v1845_v37 = vmul.f32 %v3473_v59, %v3733_v48 }
  0x6a   : > { %v1460_v58 = vsel %vm903_vm1, %v1457_v0, %v1459_v56  ;;  %v1326_v41 = vadd.f32 %v1294_v15, %v1259_v17  ;;  %v1327_v14 = vadd.f32 %v1295_v63, %v1260_v4  ;;  %v1699_v38 = vrot.slane %v1603_v19, 2  ;;  %v3160_v63 = vld [vmem:[%s3367_s18 + $0x30] sm:$0xff]  }
  0x6b   : > { %v1701_v47 = vrot.slane %v1604_v34, 2  ;;  %v1846_v46 = vmul.f32 %v3473_v59, %v3736_v51  ;;  %v1911_v22 = vmul.f32 %v3483_v5, %v3733_v48  ;;  %v1912_v52 = vmul.f32 %v3483_v5, %v3736_v51 }
  0x6c   : > { %v1913_v45 = vmul.f32 %v3483_v5, %v3743_v24  ;;  %v1568_v62 = vadd.f32 %v1458_v57, %v1326_v41  ;;  %v1569_v49 = vadd.f32 %v1460_v58, %v1327_v14  ;;  %v1700_v53 = vsel %vm1146_vm2, %v1698_v55, %v1699_v38 }
  0x6d   : > { %v1702_v15 = vsel %vm1146_vm2, %v1699_v38, %v1701_v47  ;;  %v2007_v0 = vrot.slane %v1911_v22, 1  ;;  %v2008_v56 = vrot.slane %v1912_v52, 1  ;;  %v2153_v17 = vmul.f32 %v3499_v16, %v3733_v48 }
  0x6e   : > { %v2010_v9 = vrot.slane %v1913_v45, 1  ;;  %v1810_v4 = vadd.f32 %v1700_v53, %v1568_v62  ;;  %v1811_v19 = vadd.f32 %v1702_v15, %v1569_v49  ;;  %v2154_v34 = vmul.f32 %v3499_v16, %v3736_v51 }
  0x6f   : > { %v2155_v57 = vmul.f32 %v3499_v16, %v3743_v24  ;;  %v2009_v58 = vsel %vm903_vm1, %v2007_v0, %v2008_v56  ;;  %v2249_v41 = vrot.slane %v2153_v17, 2  ;;  %v3032_v14 = vunpack.c.l.bf16 %v3160_v63 }
  0x70   : > { %v2011_v55 = vsel %vm903_vm1, %v2008_v56, %v2010_v9  ;;  %v1877_v38 = vadd.f32 %v1845_v37, %v1810_v4  ;;  %v1878_v47 = vadd.f32 %v1846_v46, %v1811_v19  ;;  %v2250_v22 = vrot.slane %v2154_v34, 2 }
  0x71   : > { %v2252_v52 = vrot.slane %v2155_v57, 2  ;;  %v3033_v45 = vunpack.c.h.bf16 %v3160_v63  ;;  %v616_v8 = vrot.slane %v3032_v14, 7  ;;  %v751_v62 = vmul.f32 %v3378_v13, %v3400_v25 }
  0x72   : > { %v752_v49 = vmul.f32 %v3378_v13, %v3394_v23  ;;  %v2119_v53 = vadd.f32 %v2009_v58, %v1877_v38  ;;  %v2120_v15 = vadd.f32 %v2011_v55, %v1878_v47  ;;  %v2251_v0 = vsel %vm1146_vm2, %v2249_v41, %v2250_v22 }
  0x73   : > { %v2253_v56 = vsel %vm1146_vm2, %v2250_v22, %v2252_v52  ;;  %v617_v9 = vrot.slane %v3033_v45, 7  ;;  %v3803_v37 = vsel %vm594_vm0, 0.0, %v616_v8  ;;  %v822_v46 = vmul.f32 %v3383_v18, %v3400_v25 }
  0x74   : > { %v823_v63 = vmul.f32 %v3383_v18, %v3394_v23  ;;  %v2361_v17 = vadd.f32 %v2251_v0, %v2119_v53  ;;  %v2362_v4 = vadd.f32 %v2253_v56, %v2120_v15  ;;  %v824_v13 = vmul.f32 %v3383_v18, %v3417_v30 }
  0x75   : > { %v1065_v19 = vmul.f32 %v3388_v21, %v3400_v25  ;;  %v3814_v34 = vsel %vm594_vm0, %v616_v8, %v617_v9  ;;  %v3817_v57 = vsel %vm594_vm0, %v617_v9, 0.0  ;;  %v929_v58 = vrot.slane %v822_v46, 1  ;;  %v3926_v25 = vld [vmem:[%s4824_s3 + $0x5] ss:$0 sm:$0xff] }
  0x76   : > { %v930_v55 = vrot.slane %v823_v63, 1  ;;  %v2397_v41 = vadd.f32 %v3530_v10, %v2361_v17  ;;  %v2398_v14 = vadd.f32 %v3530_v10, %v2362_v4  ;;  %v932_v38 = vrot.slane %v824_v13, 1 }
  0x77   : > { %v1066_v47 = vmul.f32 %v3388_v21, %v3394_v23  ;;  %v1067_v22 = vmul.f32 %v3388_v21, %v3417_v30  ;;  %v1172_v8 = vrot.slane %v1065_v19, 2  ;;  %v1304_v52 = vmul.f32 %v3405_v26, %v3411_v28 }
  0x78   : > { %v931_v18 = vsel %vm903_vm1, %v929_v58, %v930_v55  ;;  %v2429_v45 = vmax.f32 %v2397_v41, 0.0  ;;  %v2430_v53 = vmax.f32 %v2398_v14, 0.0  ;;  %v933_v15 = vsel %vm903_vm1, %v930_v55, %v932_v38 }
  0x79   : > { %v1026_v0 = vadd.f32 %v931_v18, %v751_v62  ;;  %v1027_v56 = vadd.f32 %v933_v15, %v752_v49  ;;  %v1173_v9 = vrot.slane %v1066_v47, 2  ;;  %v1175_v46 = vrot.slane %v1067_v22, 2 }
  0x7a   : > { %v1305_v63 = vmul.f32 %v3405_v26, %v3408_v27  ;;  %v2461_v17 = vpack.c.bf16 %v2430_v53, %v2429_v45  ;;  %v1375_v4 = vmul.f32 %v3422_v31, %v3411_v28  ;;  %v1376_v21 = vmul.f32 %v3422_v31, %v3408_v27 }
  0x7b   : > { %v1377_v13 = vmul.f32 %v3422_v31, %v3428_v33  ;;  %v1174_v19 = vsel %vm1146_vm2, %v1172_v8, %v1173_v9  ;;  %v1176_v62 = vsel %vm1146_vm2, %v1173_v9, %v1175_v46  ;;  %v1617_v49 = vmul.f32 %v3457_v50, %v3411_v28 }
  0x7c   : > { %v1618_v26 = vmul.f32 %v3457_v50, %v3408_v27  ;;  %2549 = vmatmul.bf16.vlgmr.msra.gmra.mxu0 %v2461_v17  ;;  %v1269_v58 = vadd.f32 %v1174_v19, %v1026_v0  ;;  %v1270_v55 = vadd.f32 %v1176_v62, %v1027_v56  ;;  %v1481_v41 = vrot.slane %v1375_v4, 1  ;;  %v3164_v62 = vld [vmem:[%s3367_s18 + $0x50] sm:$0xff]  }
  0x7d   : > { %v1482_v14 = vrot.slane %v1376_v21, 1  ;;  %v1484_v38 = vrot.slane %v1377_v13, 1  ;;  %v1619_v47 = vmul.f32 %v3457_v50, %v3428_v33  ;;  %v1723_v31 = vrot.slane %v1617_v49, 2 }
  0x7e   : > { %v1724_v18 = vrot.slane %v1618_v26, 2  ;;  %v1336_v22 = vadd.f32 %v1304_v52, %v1269_v58  ;;  %v1337_v8 = vadd.f32 %v1305_v63, %v1270_v55  ;;  %v1855_v53 = vmul.f32 %v3473_v59, %v3803_v37 }
  0x7f   : > { %v1483_v45 = vsel %vm903_vm1, %v1481_v41, %v1482_v14  ;;  %v1485_v15 = vsel %vm903_vm1, %v1482_v14, %v1484_v38  ;;  %v1726_v56 = vrot.slane %v1619_v47, 2  ;;  %v1856_v9 = vmul.f32 %v3473_v59, %v3814_v34 }
  0x80   : > { %v1725_v0 = vsel %vm1146_vm2, %v1723_v31, %v1724_v18  ;;  %v1578_v46 = vadd.f32 %v1483_v45, %v1336_v22  ;;  %v1579_v17 = vadd.f32 %v1485_v15, %v1337_v8  ;;  %v1926_v52 = vmul.f32 %v3483_v5, %v3803_v37 }
  0x81   : > { %v1927_v63 = vmul.f32 %v3483_v5, %v3814_v34  ;;  %v1727_v4 = vsel %vm1146_vm2, %v1724_v18, %v1726_v56  ;;  %v1928_v21 = vmul.f32 %v3483_v5, %v3817_v57  ;;  %v2168_v13 = vmul.f32 %v3499_v16, %v3803_v37 }
  0x82   : > { %v2169_v19 = vmul.f32 %v3499_v16, %v3814_v34  ;;  %v1820_v49 = vadd.f32 %v1725_v0, %v1578_v46  ;;  %v1821_v26 = vadd.f32 %v1727_v4, %v1579_v17  ;;  %v2032_v58 = vrot.slane %v1926_v52, 1 }
  0x83   : > { %v2033_v55 = vrot.slane %v1927_v63, 1  ;;  %v2035_v41 = vrot.slane %v1928_v21, 1  ;;  %v2170_v14 = vmul.f32 %v3499_v16, %v3817_v57  ;;  %v2274_v38 = vrot.slane %v2168_v13, 2  ;;  %v3872_v63 = vld [vmem:[%s4824_s3] ss:$0 sm:$0xff] }
  0x84   : > { %v2275_v47 = vrot.slane %v2169_v19, 2  ;;  %v1887_v31 = vadd.f32 %v1855_v53, %v1820_v49  ;;  %v1888_v18 = vadd.f32 %v1856_v9, %v1821_v26  ;;  %v3048_v8 = vunpack.c.l.bf16 %v3164_v62  ;;  %v3882_v13 = vld [vmem:[%s4824_s3 + $0x1] ss:$0 sm:$0xff] }
  0x85   : > { %v2034_v22 = vsel %vm903_vm1, %v2032_v58, %v2033_v55  ;;  %v2036_v45 = vsel %vm903_vm1, %v2033_v55, %v2035_v41  ;;  %v2277_v56 = vrot.slane %v2170_v14, 2  ;;  %v3049_v0 = vunpack.c.h.bf16 %v3164_v62 }
  0x86   : > { %v2276_v15 = vsel %vm1146_vm2, %v2274_v38, %v2275_v47  ;;  %v2129_v46 = vadd.f32 %v2034_v22, %v1887_v31  ;;  %v2130_v17 = vadd.f32 %v2036_v45, %v1888_v18  ;;  %v628_v52 = vrot.slane %v3048_v8, 7  ;;  %v3904_v22 = vld [vmem:[%s4824_s3 + $0x2] ss:$0 sm:$0xff] }
  0x87   : > { %v759_v53 = vmul.f32 %v3872_v63, %v3545_v32  ;;  %v2278_v9 = vsel %vm1146_vm2, %v2275_v47, %v2277_v56  ;;  %v629_v4 = vrot.slane %v3049_v0, 7  ;;  %v760_v21 = vmul.f32 %v3872_v63, %v3539_v35  ;;  %v3915_v0 = vld [vmem:[%s4824_s3 + $0x4] ss:$0 sm:$0xff] }
  0x88   : > { %v834_v19 = vmul.f32 %v3882_v13, %v3545_v32  ;;  %v2371_v62 = vadd.f32 %v2276_v15, %v2129_v46  ;;  %v2372_v49 = vadd.f32 %v2278_v9, %v2130_v17  ;;  %v3887_v26 = vsel %vm594_vm0, 0.0, %v628_v52 }
  0x89   : > { %v835_v58 = vmul.f32 %v3882_v13, %v3539_v35  ;;  %v3892_v55 = vsel %vm594_vm0, %v628_v52, %v629_v4  ;;  %v3895_v41 = vsel %vm594_vm0, %v629_v4, 0.0  ;;  %v836_v14 = vmul.f32 %v3882_v13, %v3559_v42 }
  0x8a   : > { %v949_v38 = vrot.slane %v834_v19, 1  ;;  %v2407_v47 = vadd.f32 %v3530_v10, %v2371_v62  ;;  %v2408_v31 = vadd.f32 %v3530_v10, %v2372_v49  ;;  %v1077_v8 = vmul.f32 %v3904_v22, %v3545_v32 }
  0x8b   : > { %v950_v18 = vrot.slane %v835_v58, 1  ;;  %v952_v45 = vrot.slane %v836_v14, 1  ;;  %v1078_v15 = vmul.f32 %v3904_v22, %v3539_v35  ;;  %v1079_v56 = vmul.f32 %v3904_v22, %v3559_v42 }
  0x8c   : > { %v1312_v46 = vmul.f32 %v3915_v0, %v3548_v60  ;;  %v2439_v17 = vmax.f32 %v2407_v47, 0.0  ;;  %v2440_v52 = vmax.f32 %v2408_v31, 0.0  ;;  %v1192_v4 = vrot.slane %v1077_v8, 2 }
  0x8d   : > { %v951_v9 = vsel %vm903_vm1, %v949_v38, %v950_v18  ;;  %v953_v19 = vsel %vm903_vm1, %v950_v18, %v952_v45  ;;  %v1193_v49 = vrot.slane %v1078_v15, 2  ;;  %v1195_v58 = vrot.slane %v1079_v56, 2 }
  0x8e   : > { %v1034_v62 = vadd.f32 %v951_v9, %v759_v53  ;;  %v2466_v14 = vpack.c.bf16 %v2440_v52, %v2439_v17  ;;  %v1035_v30 = vadd.f32 %v953_v19, %v760_v21  ;;  %v1313_v23 = vmul.f32 %v3915_v0, %v3553_v39 }
  0x8f   : > { %v1387_v47 = vmul.f32 %v3926_v25, %v3548_v60  ;;  %v1194_v38 = vsel %vm1146_vm2, %v1192_v4, %v1193_v49  ;;  %v1196_v31 = vsel %vm1146_vm2, %v1193_v49, %v1195_v58  ;;  %v1388_v53 = vmul.f32 %v3926_v25, %v3553_v39 }
  0x90   : > { %v1389_v21 = vmul.f32 %v3926_v25, %v3562_v43  ;;  %2574 = vmatmul.bf16.gmra.mxu1 %v2466_v14  ;;  %v1277_v18 = vadd.f32 %v1194_v38, %v1034_v62  ;;  %v1278_v8 = vadd.f32 %v1196_v31, %v1035_v30  ;;  %v1629_v15 = vmul.f32 %v3457_v50, %v3548_v60 }
  0x91   : > { %v1501_v45 = vrot.slane %v1387_v47, 1  ;;  %v1502_v56 = vrot.slane %v1388_v53, 1  ;;  %v1630_v52 = vmul.f32 %v3457_v50, %v3553_v39  ;;  %v1631_v9 = vmul.f32 %v3457_v50, %v3562_v43 }
  0x92   : > { %v1504_v17 = vrot.slane %v1389_v21, 1  ;;  %v1344_v4 = vadd.f32 %v1312_v46, %v1277_v18  ;;  %v1345_v19 = vadd.f32 %v1313_v23, %v1278_v8  ;;  %v1743_v49 = vrot.slane %v1629_v15, 2  ;;  %v3168_v8 = vld [vmem:[%s3367_s18 + $0x70] sm:$0xff]  }
  0x93   : > { %v1863_v62 = vmul.f32 %v3473_v59, %v3887_v26  ;;  %v1503_v30 = vsel %vm903_vm1, %v1501_v45, %v1502_v56  ;;  %v1744_v14 = vrot.slane %v1630_v52, 2  ;;  %v1746_v47 = vrot.slane %v1631_v9, 2 }
  0x94   : > { %v1505_v58 = vsel %vm903_vm1, %v1502_v56, %v1504_v17  ;;  %v1586_v38 = vadd.f32 %v1503_v30, %v1344_v4  ;;  %v1864_v53 = vmul.f32 %v3473_v59, %v3892_v55  ;;  %v1938_v50 = vmul.f32 %v3483_v5, %v3887_v26 }
  0x95   : > { %v1587_v31 = vadd.f32 %v1505_v58, %v1345_v19  ;;  %v1745_v23 = vsel %vm1146_vm2, %v1743_v49, %v1744_v14  ;;  %v1747_v46 = vsel %vm1146_vm2, %v1744_v14, %v1746_v47  ;;  %v1939_v21 = vmul.f32 %v3483_v5, %v3892_v55 }
  0x96   : > { %v1940_v18 = vmul.f32 %v3483_v5, %v3895_v41  ;;  %v1828_v45 = vadd.f32 %v1745_v23, %v1586_v38  ;;  %v2052_v56 = vrot.slane %v1938_v50, 1  ;;  %v2180_v59 = vmul.f32 %v3499_v16, %v3887_v26 }
  0x97   : > { %v1829_v15 = vadd.f32 %v1747_v46, %v1587_v31  ;;  %v2053_v17 = vrot.slane %v1939_v21, 1  ;;  %v2181_v9 = vmul.f32 %v3499_v16, %v3892_v55  ;;  %v2182_v4 = vmul.f32 %v3499_v16, %v3895_v41 }
  0x98   : > { %v2055_v52 = vrot.slane %v1940_v18, 1  ;;  %v1895_v19 = vadd.f32 %v1863_v62, %v1828_v45  ;;  %v2294_v30 = vrot.slane %v2180_v59, 2  ;;  %v3064_v58 = vunpack.c.l.bf16 %v3168_v8 }
  0x99   : > { %v1896_v49 = vadd.f32 %v1864_v53, %v1829_v15  ;;  %v2054_v5 = vsel %vm903_vm1, %v2052_v56, %v2053_v17  ;;  %v2295_v47 = vrot.slane %v2181_v9, 2  ;;  %v2297_v38 = vrot.slane %v2182_v4, 2 }
  0x9a   : > { %v2056_v14 = vsel %vm903_vm1, %v2053_v17, %v2055_v52  ;;  %v2137_v31 = vadd.f32 %v2054_v5, %v1895_v19  ;;  %v3065_v23 = vunpack.c.h.bf16 %v3168_v8  ;;  %v640_v46 = vrot.slane %v3064_v58, 7 }
  0x9b   : > { %v2138_v50 = vadd.f32 %v2056_v14, %v1896_v49  ;;  %v2296_v21 = vsel %vm1146_vm2, %v2294_v30, %v2295_v47  ;;  %v2298_v18 = vsel %vm1146_vm2, %v2295_v47, %v2297_v38  ;;  %v767_v16 = vmul.f32 %v3872_v63, %v3638_v3 }
  0x9c   : > { %v768_v62 = vmul.f32 %v3872_v63, %v3635_v2  ;;  %v2379_v53 = vadd.f32 %v2296_v21, %v2137_v31  ;;  %v641_v15 = vrot.slane %v3065_v23, 7  ;;  %v3972_v56 = vsel %vm594_vm0, 0.0, %v640_v46 }
  0x9d   : > { %v2380_v45 = vadd.f32 %v2298_v18, %v2138_v50  ;;  %v846_v8 = vmul.f32 %v3882_v13, %v3638_v3  ;;  %v847_v59 = vmul.f32 %v3882_v13, %v3635_v2  ;;  %v848_v17 = vmul.f32 %v3882_v13, %v3651_v11 }
  0x9e   : > { %v1089_v52 = vmul.f32 %v3904_v22, %v3638_v3  ;;  %v2415_v9 = vadd.f32 %v3530_v10, %v2379_v53  ;;  %v3985_v19 = vsel %vm594_vm0, %v640_v46, %v641_v15  ;;  %v3988_v49 = vsel %vm594_vm0, %v641_v15, 0.0 }
  0x9f   : > { %v2416_v4 = vadd.f32 %v3530_v10, %v2380_v45  ;;  %v969_v30 = vrot.slane %v846_v8, 1  ;;  %v970_v58 = vrot.slane %v847_v59, 1  ;;  %v972_v5 = vrot.slane %v848_v17, 1 }
  0xa0   : > { %v1090_v14 = vmul.f32 %v3904_v22, %v3635_v2  ;;  %v2447_v47 = vmax.f32 %v2415_v9, 0.0  ;;  %v1091_v31 = vmul.f32 %v3904_v22, %v3651_v11  ;;  %v1212_v50 = vrot.slane %v1089_v52, 2 }
  0xa1   : > { %v2448_v38 = vmax.f32 %v2416_v4, 0.0  ;;  %v971_v10 = vsel %vm903_vm1, %v969_v30, %v970_v58  ;;  %v973_v23 = vsel %vm903_vm1, %v970_v58, %v972_v5  ;;  %v1320_v21 = vmul.f32 %v3915_v0, %v3645_v7 }
  0xa2   : > { %v1213_v46 = vrot.slane %v1090_v14, 2  ;;  %v1042_v53 = vadd.f32 %v971_v10, %v767_v16  ;;  %v1043_v45 = vadd.f32 %v973_v23, %v768_v62  ;;  %v1215_v15 = vrot.slane %v1091_v31, 2  ;;  %v4011_v62 = vld [vmem:[%s4824_s3 + $0x6] ss:$0 sm:$0xff] }
  0xa3   : > { %v2470_v18 = vpack.c.bf16 %v2448_v38, %v2447_v47  ;;  %v1321_v59 = vmul.f32 %v3915_v0, %v3642_v6  ;;  %v1399_v17 = vmul.f32 %v3926_v25, %v3645_v7  ;;  %v1400_v52 = vmul.f32 %v3926_v25, %v3642_v6 }
  0xa4   : > { %v1214_v8 = vsel %vm1146_vm2, %v1212_v50, %v1213_v46  ;;  %v1216_v9 = vsel %vm1146_vm2, %v1213_v46, %v1215_v15  ;;  %v1401_v16 = vmul.f32 %v3926_v25, %v3654_v12  ;;  %v1641_v30 = vmul.f32 %v4011_v62, %v3645_v7 }
  0xa5   : > { %2594 = vmatmul.bf16.gmra.mxu2 %v2470_v18  ;;  %v1285_v4 = vadd.f32 %v1214_v8, %v1042_v53  ;;  %v1286_v58 = vadd.f32 %v1216_v9, %v1043_v45  ;;  %v1521_v5 = vrot.slane %v1399_v17, 1  ;;  %v1522_v14 = vrot.slane %v1400_v52, 1  ;;  %v4023_v53 = vld [vmem:[%s4824_s3 + $0x8] ss:$0 sm:$0xff]  ;;  %v4034_v9 = vld [vmem:[%s4824_s3 + $0x9] ss:$0 sm:$0xff] }
  0xa6   : > { %v1642_v47 = vmul.f32 %v4011_v62, %v3642_v6  ;;  %v1524_v31 = vrot.slane %v1401_v16, 1  ;;  %v1643_v50 = vmul.f32 %v4011_v62, %v3654_v12  ;;  %v1763_v10 = vrot.slane %v1641_v30, 2 }
  0xa7   : > { %v1352_v38 = vadd.f32 %v1320_v21, %v1285_v4  ;;  %v1353_v23 = vadd.f32 %v1321_v59, %v1286_v58  ;;  %v1523_v46 = vsel %vm903_vm1, %v1521_v5, %v1522_v14  ;;  %v1871_v45 = vmul.f32 %v4023_v53, %v3972_v56 }
  0xa8   : > { %v1764_v18 = vrot.slane %v1642_v47, 2  ;;  %v1525_v21 = vsel %vm903_vm1, %v1522_v14, %v1524_v31  ;;  %v1766_v8 = vrot.slane %v1643_v50, 2  ;;  %v1872_v17 = vmul.f32 %v4023_v53, %v3985_v19  ;;  %v4046_v14 = vld [vmem:[%s4824_s3 + $0xa] ss:$0 sm:$0xff] }
  0xa9   : > { %v1594_v15 = vadd.f32 %v1523_v46, %v1352_v38  ;;  %v1595_v59 = vadd.f32 %v1525_v21, %v1353_v23  ;;  %v1950_v4 = vmul.f32 %v4034_v9, %v3972_v56  ;;  %v1951_v16 = vmul.f32 %v4034_v9, %v3985_v19  ;;  %v3156_v38 = vld [vmem:[%s3367_s18 + $0x10] sm:$0xff]  }
  0xaa   : > { %v1765_v52 = vsel %vm1146_vm2, %v1763_v10, %v1764_v18  ;;  %v1767_v30 = vsel %vm1146_vm2, %v1764_v18, %v1766_v8  ;;  %v1952_v5 = vmul.f32 %v4034_v9, %v3988_v49  ;;  %v2192_v47 = vmul.f32 %v4046_v14, %v3972_v56 }
  0xab   : > { %v1836_v58 = vadd.f32 %v1765_v52, %v1594_v15  ;;  %v1837_v31 = vadd.f32 %v1767_v30, %v1595_v59  ;;  %v2072_v50 = vrot.slane %v1950_v4, 1  ;;  %v2073_v10 = vrot.slane %v1951_v16, 1 }
  0xac   : > { %v2193_v23 = vmul.f32 %v4046_v14, %v3985_v19  ;;  %v2075_v18 = vrot.slane %v1952_v5, 1  ;;  %v2194_v21 = vmul.f32 %v4046_v14, %v3988_v49  ;;  %v2314_v15 = vrot.slane %v2192_v47, 2 }
  0xad   : > { %v1903_v46 = vadd.f32 %v1871_v45, %v1836_v58  ;;  %v1904_v8 = vadd.f32 %v1872_v17, %v1837_v31  ;;  %v2074_v52 = vsel %vm903_vm1, %v2072_v50, %v2073_v10  ;;  %v3016_v2 = vunpack.c.l.bf16 %v3156_v38 }
  0xae   : > { %v2315_v11 = vrot.slane %v2193_v23, 2  ;;  %v2076_v3 = vsel %vm903_vm1, %v2073_v10, %v2075_v18  ;;  %v2317_v59 = vrot.slane %v2194_v21, 2  ;;  %v3017_v4 = vunpack.c.h.bf16 %v3156_v38  ;;  %v4073_v38 = vld [vmem:[%s4825_s4] ss:$0 sm:$0xff] }
  0xaf   : > { %v2145_v42 = vadd.f32 %v2074_v52, %v1903_v46  ;;  %v2146_v16 = vadd.f32 %v2076_v3, %v1904_v8  ;;  %v604_v35 = vrot.slane %v3016_v2, 7  ;;  %v743_v45 = vmul.f32 %v3872_v63, %v3725_v44 }
  0xb0   : > { %v2316_v30 = vsel %vm1146_vm2, %v2314_v15, %v2315_v11  ;;  %v2318_v58 = vsel %vm1146_vm2, %v2315_v11, %v2317_v59  ;;  %v605_v17 = vrot.slane %v3017_v4, 7  ;;  %v744_v47 = vmul.f32 %v3872_v63, %v3730_v29 }
  0xb1   : > { %v2387_v5 = vadd.f32 %v2316_v30, %v2145_v42  ;;  %v2388_v31 = vadd.f32 %v2318_v58, %v2146_v16  ;;  %v4064_v50 = vsel %vm594_vm0, 0.0, %v604_v35  ;;  %v810_v3 = vmul.f32 %v3882_v13, %v3725_v44 }
  0xb2   : > { %v811_v2 = vmul.f32 %v3882_v13, %v3730_v29  ;;  %v4077_v11 = vsel %vm594_vm0, %v604_v35, %v605_v17  ;;  %v4080_v10 = vsel %vm594_vm0, %v605_v17, 0.0  ;;  %v812_v23 = vmul.f32 %v3882_v13, %v3740_v54 }
  0xb3   : > { %v2423_v42 = vadd.f32 %v4073_v38, %v2387_v5  ;;  %v2424_v46 = vadd.f32 %v4073_v38, %v2388_v31  ;;  %v909_v18 = vrot.slane %v810_v3, 1  ;;  %v1053_v15 = vmul.f32 %v3904_v22, %v3725_v44 }
  0xb4   : > { %v910_v21 = vrot.slane %v811_v2, 1  ;;  %v912_v52 = vrot.slane %v812_v23, 1  ;;  %v1054_v59 = vmul.f32 %v3904_v22, %v3730_v29  ;;  %v1055_v35 = vmul.f32 %v3904_v22, %v3740_v54 }
  0xb5   : > { %v2455_v8 = vmax.f32 %v2423_v42, 0.0  ;;  %v2456_v4 = vmax.f32 %v2424_v46, 0.0  ;;  %v1152_v30 = vrot.slane %v1053_v15, 2  ;;  %v1296_v58 = vmul.f32 %v3915_v0, %v3733_v48 }
  0xb6   : > { %v911_v16 = vsel %vm903_vm1, %v909_v18, %v910_v21  ;;  %v913_v5 = vsel %vm903_vm1, %v910_v21, %v912_v52  ;;  %v1153_v31 = vrot.slane %v1054_v59, 2  ;;  %v1155_v44 = vrot.slane %v1055_v35, 2 }
  0xb7   : > { %v1018_v17 = vadd.f32 %v911_v16, %v743_v45  ;;  %v2474_v3 = vpack.c.bf16 %v2456_v4, %v2455_v8  ;;  %v1019_v2 = vadd.f32 %v913_v5, %v744_v47  ;;  %v1297_v29 = vmul.f32 %v3915_v0, %v3736_v51 }
  0xb8   : > { %v1363_v54 = vmul.f32 %v3926_v25, %v3733_v48  ;;  %v1154_v42 = vsel %vm1146_vm2, %v1152_v30, %v1153_v31  ;;  %v1156_v23 = vsel %vm1146_vm2, %v1153_v31, %v1155_v44  ;;  %v1364_v46 = vmul.f32 %v3926_v25, %v3736_v51 }
  0xb9   : > { %v1365_v45 = vmul.f32 %v3926_v25, %v3743_v24  ;;  %2614 = vmatmul.bf16.gmra.mxu3 %v2474_v3  ;;  %v1261_v18 = vadd.f32 %v1154_v42, %v1018_v17  ;;  %v1262_v21 = vadd.f32 %v1156_v23, %v1019_v2  ;;  %v1605_v15 = vmul.f32 %v4011_v62, %v3733_v48 }
  0xba   : > { %v1461_v47 = vrot.slane %v1363_v54, 1  ;;  %v1462_v8 = vrot.slane %v1364_v46, 1  ;;  %v1606_v59 = vmul.f32 %v4011_v62, %v3736_v51  ;;  %v1607_v35 = vmul.f32 %v4011_v62, %v3743_v24 }
  0xbb   : > { %v1464_v52 = vrot.slane %v1365_v45, 1  ;;  %v1328_v4 = vadd.f32 %v1296_v58, %v1261_v18  ;;  %v1329_v16 = vadd.f32 %v1297_v29, %v1262_v21  ;;  %v1703_v30 = vrot.slane %v1605_v15, 2 }
  0xbc   : > { %v1847_v5 = vmul.f32 %v4023_v53, %v4064_v50  ;;  %v1463_v17 = vsel %vm903_vm1, %v1461_v47, %v1462_v8  ;;  %v1704_v44 = vrot.slane %v1606_v59, 2  ;;  %v1706_v3 = vrot.slane %v1607_v35, 2 }
  0xbd   : > { %v1465_v31 = vsel %vm903_vm1, %v1462_v8, %v1464_v52  ;;  %v1570_v2 = vadd.f32 %v1463_v17, %v1328_v4  ;;  %v1848_v42 = vmul.f32 %v4023_v53, %v4077_v11  ;;  %v1914_v23 = vmul.f32 %v4034_v9, %v4064_v50 }
  0xbe   : > { %v1571_v54 = vadd.f32 %v1465_v31, %v1329_v16  ;;  %v1705_v58 = vsel %vm1146_vm2, %v1703_v30, %v1704_v44  ;;  %v1707_v29 = vsel %vm1146_vm2, %v1704_v44, %v1706_v3  ;;  %v1915_v46 = vmul.f32 %v4034_v9, %v4077_v11 }
  0xbf   : > { %v1916_v45 = vmul.f32 %v4034_v9, %v4080_v10  ;;  %v1812_v18 = vadd.f32 %v1705_v58, %v1570_v2  ;;  %v2012_v47 = vrot.slane %v1914_v23, 1  ;;  %v2156_v15 = vmul.f32 %v4046_v14, %v4064_v50 }
  0xc0   : > { %v1813_v21 = vadd.f32 %v1707_v29, %v1571_v54  ;;  %v2013_v8 = vrot.slane %v1915_v46, 1  ;;  %v2157_v59 = vmul.f32 %v4046_v14, %v4077_v11  ;;  %v2158_v35 = vmul.f32 %v4046_v14, %v4080_v10 }
  0xc1   : > { %v2015_v52 = vrot.slane %v1916_v45, 1  ;;  %v1879_v4 = vadd.f32 %v1847_v5, %v1812_v18  ;;  %v2254_v30 = vrot.slane %v2156_v15, 2  ;;  %v753_v17 = vmul.f32 %v3872_v63, %v3411_v28 }
  0xc2   : > { %v1880_v16 = vadd.f32 %v1848_v42, %v1813_v21  ;;  %v2014_v31 = vsel %vm903_vm1, %v2012_v47, %v2013_v8  ;;  %v2255_v3 = vrot.slane %v2157_v59, 2  ;;  %v2257_v2 = vrot.slane %v2158_v35, 2 }
  0xc3   : > { %v2016_v44 = vsel %vm903_vm1, %v2013_v8, %v2015_v52  ;;  %v2121_v54 = vadd.f32 %v2014_v31, %v1879_v4  ;;  %v754_v58 = vmul.f32 %v3872_v63, %v3408_v27  ;;  %v825_v29 = vmul.f32 %v3882_v13, %v3411_v28 }
  0xc4   : > { %v2122_v23 = vadd.f32 %v2016_v44, %v1880_v16  ;;  %v2256_v5 = vsel %vm1146_vm2, %v2254_v30, %v2255_v3  ;;  %v2258_v42 = vsel %vm1146_vm2, %v2255_v3, %v2257_v2  ;;  %v826_v46 = vmul.f32 %v3882_v13, %v3408_v27 }
  0xc5   : > { %v827_v45 = vmul.f32 %v3882_v13, %v3428_v33  ;;  %v2363_v18 = vadd.f32 %v2256_v5, %v2121_v54  ;;  %v934_v47 = vrot.slane %v825_v29, 1  ;;  %v1068_v15 = vmul.f32 %v3904_v22, %v3411_v28 }
  0xc6   : > { %v2364_v21 = vadd.f32 %v2258_v42, %v2122_v23  ;;  %v935_v8 = vrot.slane %v826_v46, 1  ;;  %v1069_v59 = vmul.f32 %v3904_v22, %v3408_v27  ;;  %v1070_v35 = vmul.f32 %v3904_v22, %v3428_v33 }
  0xc7   : > { %v937_v52 = vrot.slane %v827_v45, 1  ;;  %v2399_v4 = vadd.f32 %v4073_v38, %v2363_v18  ;;  %v1177_v30 = vrot.slane %v1068_v15, 2  ;;  %v1306_v31 = vmul.f32 %v3915_v0, %v3803_v37 }
  0xc8   : > { %v2400_v16 = vadd.f32 %v4073_v38, %v2364_v21  ;;  %v936_v44 = vsel %vm903_vm1, %v934_v47, %v935_v8  ;;  %v1178_v3 = vrot.slane %v1069_v59, 2  ;;  %v1180_v2 = vrot.slane %v1070_v35, 2 }
  0xc9   : > { %v938_v28 = vsel %vm903_vm1, %v935_v8, %v937_v52  ;;  %v2431_v54 = vmax.f32 %v2399_v4, 0.0  ;;  %v1028_v27 = vadd.f32 %v936_v44, %v753_v17  ;;  %v1307_v42 = vmul.f32 %v3915_v0, %v3814_v34 }
  0xca   : > { %v2432_v23 = vmax.f32 %v2400_v16, 0.0  ;;  %v1029_v29 = vadd.f32 %v938_v28, %v754_v58  ;;  %v1179_v33 = vsel %vm1146_vm2, %v1177_v30, %v1178_v3  ;;  %v1181_v5 = vsel %vm1146_vm2, %v1178_v3, %v1180_v2 }
  0xcb   : > { %v1378_v46 = vmul.f32 %v3926_v25, %v3803_v37  ;;  %v1271_v18 = vadd.f32 %v1179_v33, %v1028_v27  ;;  %v1379_v47 = vmul.f32 %v3926_v25, %v3814_v34  ;;  %v1380_v17 = vmul.f32 %v3926_v25, %v3817_v57 }
  0xcc   : > { %v2462_v45 = vpack.c.bf16 %v2432_v23, %v2431_v54  ;;  %v1272_v21 = vadd.f32 %v1181_v5, %v1029_v29  ;;  %v1620_v15 = vmul.f32 %v4011_v62, %v3803_v37  ;;  %v1621_v8 = vmul.f32 %v4011_v62, %v3814_v34 }
  0xcd   : > { %v1486_v58 = vrot.slane %v1378_v46, 1  ;;  %v1338_v52 = vadd.f32 %v1306_v31, %v1271_v18  ;;  %v1487_v35 = vrot.slane %v1379_v47, 1  ;;  %v1622_v4 = vmul.f32 %v4011_v62, %v3817_v57 }
  0xce   : > { %2554 = vmatmul.bf16.gmra.mxu0 %v2462_v45  ;;  %v1339_v59 = vadd.f32 %v1307_v42, %v1272_v21  ;;  %v1489_v16 = vrot.slane %v1380_v17, 1  ;;  %v1728_v30 = vrot.slane %v1620_v15, 2  ;;  %v1729_v44 = vrot.slane %v1621_v8, 2 }
  0xcf   : > { %v1857_v28 = vmul.f32 %v4023_v53, %v3542_v36  ;;  %v1488_v3 = vsel %vm903_vm1, %v1486_v58, %v1487_v35  ;;  %v1731_v2 = vrot.slane %v1622_v4, 2  ;;  %v1858_v54 = vmul.f32 %v4023_v53, %v3536_v20 }
  0xd0   : > { %v1929_v31 = vmul.f32 %v4034_v9, %v3542_v36  ;;  %v1490_v23 = vsel %vm903_vm1, %v1487_v35, %v1489_v16  ;;  %v1580_v27 = vadd.f32 %v1488_v3, %v1338_v52  ;;  %v1730_v29 = vsel %vm1146_vm2, %v1728_v30, %v1729_v44 }
  0xd1   : > { %v1930_v33 = vmul.f32 %v4034_v9, %v3536_v20  ;;  %v1581_v5 = vadd.f32 %v1490_v23, %v1339_v59  ;;  %v1732_v42 = vsel %vm1146_vm2, %v1729_v44, %v1731_v2  ;;  %v1931_v46 = vmul.f32 %v4034_v9, %v3556_v40 }
  0xd2   : > { %v2037_v45 = vrot.slane %v1929_v31, 1  ;;  %v1822_v18 = vadd.f32 %v1730_v29, %v1580_v27  ;;  %v2171_v47 = vmul.f32 %v4046_v14, %v3542_v36  ;;  %v2172_v17 = vmul.f32 %v4046_v14, %v3536_v20 }
  0xd3   : > { %v2038_v21 = vrot.slane %v1930_v33, 1  ;;  %v1823_v58 = vadd.f32 %v1732_v42, %v1581_v5  ;;  %v2040_v15 = vrot.slane %v1931_v46, 1  ;;  %v2173_v8 = vmul.f32 %v4046_v14, %v3556_v40 }
  0xd4   : > { %v761_v52 = vmul.f32 %v3872_v63, %v3548_v60  ;;  %v1889_v59 = vadd.f32 %v1857_v28, %v1822_v18  ;;  %v2279_v4 = vrot.slane %v2171_v47, 2  ;;  %v2280_v16 = vrot.slane %v2172_v17, 2 }
  0xd5   : > { %v2039_v35 = vsel %vm903_vm1, %v2037_v45, %v2038_v21  ;;  %v1890_v30 = vadd.f32 %v1858_v54, %v1823_v58  ;;  %v2041_v44 = vsel %vm903_vm1, %v2038_v21, %v2040_v15  ;;  %v2282_v3 = vrot.slane %v2173_v8, 2 }
  0xd6   : > { %v762_v2 = vmul.f32 %v3872_v63, %v3553_v39  ;;  %v2131_v31 = vadd.f32 %v2039_v35, %v1889_v59  ;;  %v2281_v23 = vsel %vm1146_vm2, %v2279_v4, %v2280_v16  ;;  %v837_v27 = vmul.f32 %v3882_v13, %v3548_v60 }
  0xd7   : > { %v838_v28 = vmul.f32 %v3882_v13, %v3553_v39  ;;  %v2132_v29 = vadd.f32 %v2041_v44, %v1890_v30  ;;  %v2283_v33 = vsel %vm1146_vm2, %v2280_v16, %v2282_v3  ;;  %v839_v54 = vmul.f32 %v3882_v13, %v3562_v43 }
  0xd8   : > { %v1080_v5 = vmul.f32 %v3904_v22, %v3548_v60  ;;  %v2373_v42 = vadd.f32 %v2281_v23, %v2131_v31  ;;  %v954_v46 = vrot.slane %v837_v27, 1  ;;  %v1081_v18 = vmul.f32 %v3904_v22, %v3553_v39 }
  0xd9   : > { %v955_v45 = vrot.slane %v838_v28, 1  ;;  %v2374_v21 = vadd.f32 %v2283_v33, %v2132_v29  ;;  %v957_v47 = vrot.slane %v839_v54, 1  ;;  %v1082_v17 = vmul.f32 %v3904_v22, %v3562_v43 }
  0xda   : > { %v1197_v58 = vrot.slane %v1080_v5, 2  ;;  %v2409_v15 = vadd.f32 %v4073_v38, %v2373_v42  ;;  %v1198_v59 = vrot.slane %v1081_v18, 2  ;;  %v1314_v60 = vmul.f32 %v3915_v0, %v3887_v26 }
  0xdb   : > { %v956_v8 = vsel %vm903_vm1, %v954_v46, %v955_v45  ;;  %v2410_v35 = vadd.f32 %v4073_v38, %v2374_v21  ;;  %v958_v4 = vsel %vm903_vm1, %v955_v45, %v957_v47  ;;  %v1200_v39 = vrot.slane %v1082_v17, 2 }
  0xdc   : > { %v1036_v16 = vadd.f32 %v956_v8, %v761_v52  ;;  %v2441_v30 = vmax.f32 %v2409_v15, 0.0  ;;  %v1037_v44 = vadd.f32 %v958_v4, %v762_v2  ;;  %v1199_v3 = vsel %vm1146_vm2, %v1197_v58, %v1198_v59 }
  0xdd   : > { %v1315_v43 = vmul.f32 %v3915_v0, %v3892_v55  ;;  %v2442_v31 = vmax.f32 %v2410_v35, 0.0  ;;  %v1201_v23 = vsel %vm1146_vm2, %v1198_v59, %v1200_v39  ;;  %v1390_v28 = vmul.f32 %v3926_v25, %v3887_v26 }
  0xde   : > { %v1279_v27 = vadd.f32 %v1199_v3, %v1036_v16  ;;  %v1280_v29 = vadd.f32 %v1201_v23, %v1037_v44  ;;  %v1391_v33 = vmul.f32 %v3926_v25, %v3892_v55  ;;  %v1392_v52 = vmul.f32 %v3926_v25, %v3895_v41  ;;  %v3169_v3 = vld [vmem:[%s3367_s18 + $0x78] sm:$0xff]  }
  0xdf   : > { %v1632_v2 = vmul.f32 %v4011_v62, %v3887_v26  ;;  %v2467_v54 = vpack.c.bf16 %v2442_v31, %v2441_v30  ;;  %v1506_v42 = vrot.slane %v1390_v28, 1  ;;  %v1633_v46 = vmul.f32 %v4011_v62, %v3892_v55  ;;  %v4866_v31 = vld [vmem:[#allocation12_spill] sm:$0xff] }
  0xe0   : > { %v1346_v5 = vadd.f32 %v1314_v60, %v1279_v27  ;;  %v1347_v45 = vadd.f32 %v1315_v43, %v1280_v29  ;;  %v1507_v18 = vrot.slane %v1391_v33, 1  ;;  %v1509_v21 = vrot.slane %v1392_v52, 1 }
  0xe1   : > { %v1634_v47 = vmul.f32 %v4011_v62, %v3895_v41  ;;  %2579 = vmatmul.bf16.gmra.mxu1 %v2467_v54  ;;  %v1748_v17 = vrot.slane %v1632_v2, 2  ;;  %v1749_v58 = vrot.slane %v1633_v46, 2  ;;  %v1865_v15 = vmul.f32 %v4023_v53, %v3628_v61 }
  0xe2   : > { %v1866_v8 = vmul.f32 %v4023_v53, %v3632_v1  ;;  %v1508_v59 = vsel %vm903_vm1, %v1506_v42, %v1507_v18  ;;  %v1510_v60 = vsel %vm903_vm1, %v1507_v18, %v1509_v21  ;;  %v1941_v4 = vmul.f32 %v4034_v9, %v3628_v61 }
  0xe3   : > { %v1751_v35 = vrot.slane %v1634_v47, 2  ;;  %v1588_v16 = vadd.f32 %v1508_v59, %v1346_v5  ;;  %v1589_v39 = vadd.f32 %v1510_v60, %v1347_v45  ;;  %v1750_v30 = vsel %vm1146_vm2, %v1748_v17, %v1749_v58 }
  0xe4   : > { %v1942_v44 = vmul.f32 %v4034_v9, %v3632_v1  ;;  %v1943_v23 = vmul.f32 %v4034_v9, %v4866_v31  ;;  %v2057_v27 = vrot.slane %v1941_v4, 1  ;;  %v2183_v28 = vmul.f32 %v4046_v14, %v3628_v61 }
  0xe5   : > { %v1752_v43 = vsel %vm1146_vm2, %v1749_v58, %v1751_v35  ;;  %v1830_v29 = vadd.f32 %v1750_v30, %v1588_v16  ;;  %v2184_v2 = vmul.f32 %v4046_v14, %v3632_v1  ;;  %v2185_v5 = vmul.f32 %v4046_v14, %v4866_v31 }
  0xe6   : > { %v1831_v33 = vadd.f32 %v1752_v43, %v1589_v39  ;;  %v2058_v52 = vrot.slane %v1942_v44, 1  ;;  %v2060_v54 = vrot.slane %v1943_v23, 1  ;;  %v2299_v42 = vrot.slane %v2183_v28, 2 }
  0xe7   : > { %v3068_v46 = vunpack.c.l.bf16 %v3169_v3  ;;  %v1897_v45 = vadd.f32 %v1865_v15, %v1830_v29  ;;  %v2300_v47 = vrot.slane %v2184_v2, 2  ;;  %v2302_v58 = vrot.slane %v2185_v5, 2 }
  0xe8   : > { %v1898_v18 = vadd.f32 %v1866_v8, %v1831_v33  ;;  %v2059_v21 = vsel %vm903_vm1, %v2057_v27, %v2058_v52  ;;  %v2061_v17 = vsel %vm903_vm1, %v2058_v52, %v2060_v54  ;;  %v3069_v59 = vunpack.c.h.bf16 %v3169_v3 }
  0xe9   : > { %v643_v60 = vrot.slane %v3068_v46, 7  ;;  %v2139_v35 = vadd.f32 %v2059_v21, %v1897_v45  ;;  %v2301_v16 = vsel %vm1146_vm2, %v2299_v42, %v2300_v47  ;;  %v769_v39 = vmul.f32 %v3872_v63, %v3645_v7 }
  0xea   : > { %v2140_v4 = vadd.f32 %v2061_v17, %v1898_v18  ;;  %v2303_v30 = vsel %vm1146_vm2, %v2300_v47, %v2302_v58  ;;  %v644_v44 = vrot.slane %v3069_v59, 7  ;;  %v770_v8 = vmul.f32 %v3872_v63, %v3642_v6 }
  0xeb   : > { %v4263_v15 = vsel %vm594_vm0, 0.0, %v643_v60  ;;  %v2381_v43 = vadd.f32 %v2301_v16, %v2139_v35  ;;  %v849_v3 = vmul.f32 %v3882_v13, %v3645_v7  ;;  %v850_v27 = vmul.f32 %v3882_v13, %v3642_v6 }
  0xec   : > { %v2382_v23 = vadd.f32 %v2303_v30, %v2140_v4  ;;  %v4272_v28 = vsel %vm594_vm0, %v643_v60, %v644_v44  ;;  %v4275_v29 = vsel %vm594_vm0, %v644_v44, 0.0  ;;  %v851_v33 = vmul.f32 %v3882_v13, %v3654_v12 }
  0xed   : > { %v1092_v52 = vmul.f32 %v3904_v22, %v3645_v7  ;;  %v2417_v2 = vadd.f32 %v4073_v38, %v2381_v43  ;;  %v974_v5 = vrot.slane %v849_v3, 1  ;;  %v975_v42 = vrot.slane %v850_v27, 1 }
  0xee   : > { %v2418_v54 = vadd.f32 %v4073_v38, %v2382_v23  ;;  %v977_v46 = vrot.slane %v851_v33, 1  ;;  %v1093_v45 = vmul.f32 %v3904_v22, %v3642_v6  ;;  %v1094_v18 = vmul.f32 %v3904_v22, %v3654_v12 }
  0xef   : > { %v1217_v21 = vrot.slane %v1092_v52, 2  ;;  %v2449_v47 = vmax.f32 %v2417_v2, 0.0  ;;  %v976_v58 = vsel %vm903_vm1, %v974_v5, %v975_v42  ;;  %v1322_v7 = vmul.f32 %v3915_v0, %v3972_v56 }
  0xf0   : > { %v2450_v17 = vmax.f32 %v2418_v54, 0.0  ;;  %v978_v59 = vsel %vm903_vm1, %v975_v42, %v977_v46  ;;  %v1044_v60 = vadd.f32 %v976_v58, %v769_v39  ;;  %v1218_v35 = vrot.slane %v1093_v45, 2 }
  0xf1   : > { %v1220_v4 = vrot.slane %v1094_v18, 2  ;;  %v1045_v30 = vadd.f32 %v978_v59, %v770_v8  ;;  %v1323_v6 = vmul.f32 %v3915_v0, %v3985_v19  ;;  %v1402_v12 = vmul.f32 %v3926_v25, %v3972_v56 }
  0xf2   : > { %v2471_v16 = vpack.c.bf16 %v2450_v17, %v2449_v47  ;;  %v1219_v44 = vsel %vm1146_vm2, %v1217_v21, %v1218_v35  ;;  %v1403_v23 = vmul.f32 %v3926_v25, %v3985_v19  ;;  %v1404_v39 = vmul.f32 %v3926_v25, %v3988_v49 }
  0xf3   : > { %v1221_v43 = vsel %vm1146_vm2, %v1218_v35, %v1220_v4  ;;  %v1287_v3 = vadd.f32 %v1219_v44, %v1044_v60  ;;  %v1526_v8 = vrot.slane %v1402_v12, 1  ;;  %v1644_v33 = vmul.f32 %v4011_v62, %v3972_v56 }
  0xf4   : > { %2599 = vmatmul.bf16.gmra.mxu2 %v2471_v16  ;;  %v1288_v27 = vadd.f32 %v1221_v43, %v1045_v30  ;;  %v1527_v52 = vrot.slane %v1403_v23, 1  ;;  %v1529_v2 = vrot.slane %v1404_v39, 1  ;;  %v1645_v54 = vmul.f32 %v4011_v62, %v3985_v19 }
  0xf5   : > { %v1646_v5 = vmul.f32 %v4011_v62, %v3988_v49  ;;  %v1354_v42 = vadd.f32 %v1322_v7, %v1287_v3  ;;  %v1768_v45 = vrot.slane %v1644_v33, 2  ;;  %v1873_v18 = vmul.f32 %v4023_v53, %v4263_v15 }
  0xf6   : > { %v1355_v46 = vadd.f32 %v1323_v6, %v1288_v27  ;;  %v1528_v21 = vsel %vm903_vm1, %v1526_v8, %v1527_v52  ;;  %v1530_v47 = vsel %vm903_vm1, %v1527_v52, %v1529_v2  ;;  %v1769_v17 = vrot.slane %v1645_v54, 2 }
  0xf7   : > { %v1771_v58 = vrot.slane %v1646_v5, 2  ;;  %v1596_v59 = vadd.f32 %v1528_v21, %v1354_v42  ;;  %v1874_v35 = vmul.f32 %v4023_v53, %v4272_v28  ;;  %v1953_v4 = vmul.f32 %v4034_v9, %v4263_v15 }
  0xf8   : > { %v1597_v60 = vadd.f32 %v1530_v47, %v1355_v46  ;;  %v1770_v7 = vsel %vm1146_vm2, %v1768_v45, %v1769_v17  ;;  %v1954_v30 = vmul.f32 %v4034_v9, %v4272_v28  ;;  %v1955_v6 = vmul.f32 %v4034_v9, %v4275_v29 }
  0xf9   : > { %v1772_v16 = vsel %vm1146_vm2, %v1769_v17, %v1771_v58  ;;  %v1838_v12 = vadd.f32 %v1770_v7, %v1596_v59  ;;  %v2077_v43 = vrot.slane %v1953_v4, 1  ;;  %v2195_v23 = vmul.f32 %v4046_v14, %v4263_v15 }
  0xfa   : > { %v1839_v44 = vadd.f32 %v1772_v16, %v1597_v60  ;;  %v2078_v39 = vrot.slane %v1954_v30, 1  ;;  %v2080_v3 = vrot.slane %v1955_v6, 1  ;;  %v2196_v27 = vmul.f32 %v4046_v14, %v4272_v28 }
  0xfb   : > { %v2197_v8 = vmul.f32 %v4046_v14, %v4275_v29  ;;  %v1905_v33 = vadd.f32 %v1873_v18, %v1838_v12  ;;  %v2319_v2 = vrot.slane %v2195_v23, 2  ;;  %v745_v54 = vmul.f32 %v3872_v63, %v3733_v48 }
  0xfc   : > { %v1906_v52 = vadd.f32 %v1874_v35, %v1839_v44  ;;  %v2079_v5 = vsel %vm903_vm1, %v2077_v43, %v2078_v39  ;;  %v2081_v42 = vsel %vm903_vm1, %v2078_v39, %v2080_v3  ;;  %v2320_v46 = vrot.slane %v2196_v27, 2 }
  0xfd   : > { %v2322_v45 = vrot.slane %v2197_v8, 2  ;;  %v2147_v21 = vadd.f32 %v2079_v5, %v1905_v33  ;;  %v746_v17 = vmul.f32 %v3872_v63, %v3736_v51  ;;  %v813_v58 = vmul.f32 %v3882_v13, %v3733_v48 }
  0xfe   : > { %v2148_v47 = vadd.f32 %v2081_v42, %v1906_v52  ;;  %v2321_v18 = vsel %vm1146_vm2, %v2319_v2, %v2320_v46  ;;  %v814_v60 = vmul.f32 %v3882_v13, %v3736_v51  ;;  %v815_v35 = vmul.f32 %v3882_v13, %v3743_v24 }
  0xff   : > { %v2323_v59 = vsel %vm1146_vm2, %v2320_v46, %v2322_v45  ;;  %v2389_v4 = vadd.f32 %v2321_v18, %v2147_v21  ;;  %v914_v16 = vrot.slane %v813_v58, 1  ;;  %v1056_v30 = vmul.f32 %v3904_v22, %v3733_v48 }
 0x100   : > { %v2390_v7 = vadd.f32 %v2323_v59, %v2148_v47  ;;  %v915_v63 = vrot.slane %v814_v60, 1  ;;  %v917_v6 = vrot.slane %v815_v35, 1  ;;  %v1057_v12 = vmul.f32 %v3904_v22, %v3736_v51 }
 0x101   : > { %v1058_v44 = vmul.f32 %v3904_v22, %v3743_v24  ;;  %v2425_v43 = vadd.f32 %v4073_v38, %v2389_v4  ;;  %v1157_v39 = vrot.slane %v1056_v30, 2  ;;  %v1298_v13 = vmul.f32 %v3915_v0, %v4064_v50  ;;  %v4867_v30 = vld [vmem:[#allocation4_spill] sm:$0xff] }
 0x102   : > { %v2426_v23 = vadd.f32 %v4073_v38, %v2390_v7  ;;  %v916_v3 = vsel %vm903_vm1, %v914_v16, %v915_v63  ;;  %v918_v48 = vsel %vm903_vm1, %v915_v63, %v917_v6  ;;  %v1158_v27 = vrot.slane %v1057_v12, 2  ;;  %v4868_v12 = vld [vmem:[#allocation2_spill] sm:$0xff] }
 0x103   : > { %v1160_v8 = vrot.slane %v1058_v44, 2  ;;  %v2457_v33 = vmax.f32 %v2425_v43, 0.0  ;;  %v1020_v51 = vadd.f32 %v916_v3, %v745_v54  ;;  %v1021_v2 = vadd.f32 %v918_v48, %v746_v17 }
 0x104   : > { %v2458_v52 = vmax.f32 %v2426_v23, 0.0  ;;  %v1159_v24 = vsel %vm1146_vm2, %v1157_v39, %v1158_v27  ;;  %v1299_v5 = vmul.f32 %v3915_v0, %v4077_v11  ;;  %v1366_v42 = vmul.f32 %v3926_v25, %v4064_v50 }
 0x105   : > { %v1161_v22 = vsel %vm1146_vm2, %v1158_v27, %v1160_v8  ;;  %v1263_v45 = vadd.f32 %v1159_v24, %v1020_v51  ;;  %v1367_v47 = vmul.f32 %v3926_v25, %v4077_v11  ;;  %v1368_v54 = vmul.f32 %v3926_v25, %v4080_v10  ;;  %v4869_v8 = vld [vmem:[#allocation6_spill] sm:$0xff] }
 0x106   : > { %v2475_v46 = vpack.c.bf16 %v2458_v52, %v2457_v33  ;;  %v1264_v21 = vadd.f32 %v1161_v22, %v1021_v2  ;;  %v1466_v17 = vrot.slane %v1366_v42, 1  ;;  %v1608_v58 = vmul.f32 %v4011_v62, %v4064_v50 }
 0x107   : > { %v1609_v18 = vmul.f32 %v4011_v62, %v4077_v11  ;;  %v1330_v0 = vadd.f32 %v1298_v13, %v1263_v45  ;;  %v1467_v60 = vrot.slane %v1367_v47, 1  ;;  %v1610_v35 = vmul.f32 %v4011_v62, %v4080_v10  ;;  %v4392_v45 = vld [vmem:[%s4824_s3] ss:$0 sm:$0xff] }
 0x108   : > { %2619 = vmatmul.bf16.gmra.mxu3 %v2475_v46  ;;  %v1331_v59 = vadd.f32 %v1299_v5, %v1264_v21  ;;  %v1469_v4 = vrot.slane %v1368_v54, 1  ;;  %v1708_v7 = vrot.slane %v1608_v58, 2  ;;  %v1849_v25 = vmul.f32 %v4023_v53, %v4867_v30 }
 0x109   : > { %v1709_v16 = vrot.slane %v1609_v18, 2  ;;  %v1468_v63 = vsel %vm903_vm1, %v1466_v17, %v1467_v60  ;;  %v1711_v6 = vrot.slane %v1610_v35, 2  ;;  %v1850_v44 = vmul.f32 %v4023_v53, %v4868_v12 }
 0x10a   : > { %v1917_v43 = vmul.f32 %v4034_v9, %v4867_v30  ;;  %v1470_v23 = vsel %vm903_vm1, %v1467_v60, %v1469_v4  ;;  %v1572_v39 = vadd.f32 %v1468_v63, %v1330_v0  ;;  %v1918_v3 = vmul.f32 %v4034_v9, %v4868_v12 }
 0x10b   : > { %v1710_v13 = vsel %vm1146_vm2, %v1708_v7, %v1709_v16  ;;  %v1573_v48 = vadd.f32 %v1470_v23, %v1331_v59  ;;  %v1712_v27 = vsel %vm1146_vm2, %v1709_v16, %v1711_v6  ;;  %v1919_v33 = vmul.f32 %v4034_v9, %v4869_v8  ;;  %v4404_v7 = vld [vmem:[%s4824_s3 + $0x1] ss:$0 sm:$0xff] }
 0x10c   : > { %v2017_v52 = vrot.slane %v1917_v43, 1  ;;  %v1814_v51 = vadd.f32 %v1710_v13, %v1572_v39  ;;  %v2018_v2 = vrot.slane %v1918_v3, 1  ;;  %v2159_v24 = vmul.f32 %v4046_v14, %v4867_v30  ;;  %v4416_v43 = vld [vmem:[%s4824_s3 + $0x2] ss:$0 sm:$0xff] }
 0x10d   : > { %v2160_v22 = vmul.f32 %v4046_v14, %v4868_v12  ;;  %v1815_v5 = vadd.f32 %v1712_v27, %v1573_v48  ;;  %v2020_v42 = vrot.slane %v1919_v33, 1  ;;  %v2161_v46 = vmul.f32 %v4046_v14, %v4869_v8 }
 0x10e   : > { %v755_v21 = vmul.f32 %v4392_v45, %v3803_v37  ;;  %v1881_v47 = vadd.f32 %v1849_v25, %v1814_v51  ;;  %v2019_v54 = vsel %vm903_vm1, %v2017_v52, %v2018_v2  ;;  %v2259_v17 = vrot.slane %v2159_v24, 2 }
 0x10f   : > { %v2260_v58 = vrot.slane %v2160_v22, 2  ;;  %v1882_v18 = vadd.f32 %v1850_v44, %v1815_v5  ;;  %v2021_v0 = vsel %vm903_vm1, %v2018_v2, %v2020_v42  ;;  %v2262_v59 = vrot.slane %v2161_v46, 2 }
 0x110   : > { %v756_v60 = vmul.f32 %v4392_v45, %v3814_v34  ;;  %v2123_v35 = vadd.f32 %v2019_v54, %v1881_v47  ;;  %v828_v16 = vmul.f32 %v4404_v7, %v3803_v37  ;;  %v829_v25 = vmul.f32 %v4404_v7, %v3814_v34 }
 0x111   : > { %v2261_v4 = vsel %vm1146_vm2, %v2259_v17, %v2260_v58  ;;  %v2124_v63 = vadd.f32 %v2021_v0, %v1882_v18  ;;  %v2263_v6 = vsel %vm1146_vm2, %v2260_v58, %v2262_v59  ;;  %v830_v44 = vmul.f32 %v4404_v7, %v3817_v57 }
 0x112   : > { %v1071_v23 = vmul.f32 %v4416_v43, %v3803_v37  ;;  %v2365_v39 = vadd.f32 %v2261_v4, %v2123_v35  ;;  %v939_v13 = vrot.slane %v828_v16, 1  ;;  %v940_v3 = vrot.slane %v829_v25, 1  ;;  %v4429_v37 = vld [vmem:[%s4824_s3 + $0x4] ss:$0 sm:$0xff]  ;;  %v4442_v35 = vld [vmem:[%s4824_s3 + $0x5] ss:$0 sm:$0xff] }
 0x113   : > { %v1072_v48 = vmul.f32 %v4416_v43, %v3814_v34  ;;  %v2366_v27 = vadd.f32 %v2263_v6, %v2124_v63  ;;  %v942_v33 = vrot.slane %v830_v44, 1  ;;  %v1073_v52 = vmul.f32 %v4416_v43, %v3817_v57 }
 0x114   : > { %v1182_v51 = vrot.slane %v1071_v23, 2  ;;  %v2401_v2 = vadd.f32 %v4073_v38, %v2365_v39  ;;  %v941_v24 = vsel %vm903_vm1, %v939_v13, %v940_v3  ;;  %v1308_v5 = vmul.f32 %v4429_v37, %v3542_v36 }
 0x115   : > { %v1183_v22 = vrot.slane %v1072_v48, 2  ;;  %v2402_v34 = vadd.f32 %v4073_v38, %v2366_v27  ;;  %v943_v42 = vsel %vm903_vm1, %v940_v3, %v942_v33  ;;  %v1030_v46 = vadd.f32 %v941_v24, %v755_v21 }
 0x116   : > { %v1185_v57 = vrot.slane %v1073_v52, 2  ;;  %v2433_v47 = vmax.f32 %v2401_v2, 0.0  ;;  %v1031_v54 = vadd.f32 %v943_v42, %v756_v60  ;;  %v1309_v58 = vmul.f32 %v4429_v37, %v3536_v20 }
 0x117   : > { %v1184_v17 = vsel %vm1146_vm2, %v1182_v51, %v1183_v22  ;;  %v2434_v18 = vmax.f32 %v2402_v34, 0.0  ;;  %v1381_v21 = vmul.f32 %v4442_v35, %v3542_v36  ;;  %v1382_v60 = vmul.f32 %v4442_v35, %v3536_v20  ;;  %v4870_v51 = vld [vmem:[#allocation8_spill] sm:$0xff] }
 0x118   : > { %v1186_v0 = vsel %vm1146_vm2, %v1183_v22, %v1185_v57  ;;  %v1273_v59 = vadd.f32 %v1184_v17, %v1030_v46  ;;  %v1383_v16 = vmul.f32 %v4442_v35, %v3556_v40  ;;  %v1623_v25 = vmul.f32 %v4011_v62, %v3542_v36  ;;  %v4871_v46 = vld [vmem:[#allocation9_spill] sm:$0xff] }
 0x119   : > { %v1274_v4 = vadd.f32 %v1186_v0, %v1031_v54  ;;  %v2463_v63 = vpack.c.bf16 %v2434_v18, %v2433_v47  ;;  %v1491_v44 = vrot.slane %v1381_v21, 1  ;;  %v1624_v23 = vmul.f32 %v4011_v62, %v3536_v20 }
 0x11a   : > { %v1340_v6 = vadd.f32 %v1308_v5, %v1273_v59  ;;  %v1492_v13 = vrot.slane %v1382_v60, 1  ;;  %v1494_v3 = vrot.slane %v1383_v16, 1  ;;  %v1625_v48 = vmul.f32 %v4011_v62, %v3556_v40 }
 0x11b   : > { %v1341_v39 = vadd.f32 %v1309_v58, %v1274_v4  ;;  %2559 = vmatmul.bf16.gmra.mxu0 %v2463_v63  ;;  %v1733_v27 = vrot.slane %v1623_v25, 2  ;;  %v1734_v33 = vrot.slane %v1624_v23, 2  ;;  %v1859_v52 = vmul.f32 %v4023_v53, %v3545_v32 }
 0x11c   : > { %v1860_v36 = vmul.f32 %v4023_v53, %v4870_v51  ;;  %v1493_v2 = vsel %vm903_vm1, %v1491_v44, %v1492_v13  ;;  %v1495_v24 = vsel %vm903_vm1, %v1492_v13, %v1494_v3  ;;  %v1736_v20 = vrot.slane %v1625_v48, 2 }
 0x11d   : > { %v1932_v22 = vmul.f32 %v4034_v9, %v3545_v32  ;;  %v1582_v5 = vadd.f32 %v1493_v2, %v1340_v6  ;;  %v1583_v34 = vadd.f32 %v1495_v24, %v1341_v39  ;;  %v1735_v40 = vsel %vm1146_vm2, %v1733_v27, %v1734_v33 }
 0x11e   : > { %v1933_v62 = vmul.f32 %v4034_v9, %v4870_v51  ;;  %v1737_v42 = vsel %vm1146_vm2, %v1734_v33, %v1736_v20  ;;  %v1934_v53 = vmul.f32 %v4034_v9, %v4871_v46  ;;  %v2174_v47 = vmul.f32 %v4046_v14, %v3545_v32 }
 0x11f   : > { %v2042_v57 = vrot.slane %v1932_v22, 1  ;;  %v1824_v54 = vadd.f32 %v1735_v40, %v1582_v5  ;;  %v1825_v17 = vadd.f32 %v1737_v42, %v1583_v34  ;;  %v2175_v18 = vmul.f32 %v4046_v14, %v4870_v51 }
 0x120   : > { %v2043_v58 = vrot.slane %v1933_v62, 1  ;;  %v2045_v0 = vrot.slane %v1934_v53, 1  ;;  %v2176_v59 = vmul.f32 %v4046_v14, %v4871_v46  ;;  %v2284_v21 = vrot.slane %v2174_v47, 2 }
 0x121   : > { %v763_v4 = vmul.f32 %v4392_v45, %v3887_v26  ;;  %v1891_v60 = vadd.f32 %v1859_v52, %v1824_v54  ;;  %v1892_v9 = vadd.f32 %v1860_v36, %v1825_v17  ;;  %v2285_v25 = vrot.slane %v2175_v18, 2 }
 0x122   : > { %v2044_v16 = vsel %vm903_vm1, %v2042_v57, %v2043_v58  ;;  %v2046_v32 = vsel %vm903_vm1, %v2043_v58, %v2045_v0  ;;  %v2287_v63 = vrot.slane %v2176_v59, 2  ;;  %v764_v6 = vmul.f32 %v4392_v45, %v3892_v55 }
 0x123   : > { %v840_v44 = vmul.f32 %v4404_v7, %v3887_v26  ;;  %v2133_v23 = vadd.f32 %v2044_v16, %v1891_v60  ;;  %v2134_v14 = vadd.f32 %v2046_v32, %v1892_v9  ;;  %v2286_v39 = vsel %vm1146_vm2, %v2284_v21, %v2285_v25 }
 0x124   : > { %v841_v13 = vmul.f32 %v4404_v7, %v3892_v55  ;;  %v2288_v3 = vsel %vm1146_vm2, %v2285_v25, %v2287_v63  ;;  %v842_v48 = vmul.f32 %v4404_v7, %v3895_v41  ;;  %v1083_v33 = vmul.f32 %v4416_v43, %v3887_v26 }
 0x125   : > { %v959_v27 = vrot.slane %v840_v44, 1  ;;  %v2375_v52 = vadd.f32 %v2286_v39, %v2133_v23  ;;  %v2376_v51 = vadd.f32 %v2288_v3, %v2134_v14  ;;  %v1084_v2 = vmul.f32 %v4416_v43, %v3892_v55  ;;  %v4531_v39 = vld [vmem:[%s4824_s3 + $0x8] ss:$0 sm:$0xff]  ;;  %v4873_v3 = vld [vmem:[#allocation10_spill] sm:$0xff] }
 0x126   : > { %v960_v36 = vrot.slane %v841_v13, 1  ;;  %v962_v24 = vrot.slane %v842_v48, 1  ;;  %v1085_v20 = vmul.f32 %v4416_v43, %v3895_v41  ;;  %v1202_v22 = vrot.slane %v1083_v33, 2 }
 0x127   : > { %v1316_v5 = vmul.f32 %v4429_v37, %v3628_v61  ;;  %v2411_v34 = vadd.f32 %v4073_v38, %v2375_v52  ;;  %v2412_v40 = vadd.f32 %v4073_v38, %v2376_v51  ;;  %v1203_v62 = vrot.slane %v1084_v2, 2  ;;  %v4541_v52 = vld [vmem:[%s4824_s3 + $0x9] ss:$0 sm:$0xff] }
 0x128   : > { %v961_v26 = vsel %vm903_vm1, %v959_v27, %v960_v36  ;;  %v963_v42 = vsel %vm903_vm1, %v960_v36, %v962_v24  ;;  %v1205_v55 = vrot.slane %v1085_v20, 2  ;;  %v1317_v53 = vmul.f32 %v4429_v37, %v3632_v1  ;;  %v4874_v20 = vld [vmem:[#allocation13_spill] sm:$0xff] }
 0x129   : > { %v1038_v46 = vadd.f32 %v961_v26, %v763_v4  ;;  %v2443_v41 = vmax.f32 %v2411_v34, 0.0  ;;  %v2444_v57 = vmax.f32 %v2412_v40, 0.0  ;;  %v1039_v47 = vadd.f32 %v963_v42, %v764_v6  ;;  %v4516_v4 = vld [vmem:[%s4824_s3 + $0x6] ss:$0 sm:$0xff] }
 0x12a   : > { %v1204_v54 = vsel %vm1146_vm2, %v1202_v22, %v1203_v62  ;;  %v1206_v17 = vsel %vm1146_vm2, %v1203_v62, %v1205_v55  ;;  %v1393_v38 = vmul.f32 %v4442_v35, %v3628_v61  ;;  %v1394_v18 = vmul.f32 %v4442_v35, %v3632_v1  ;;  %v4554_v62 = vld [vmem:[%s4824_s3 + $0xa] ss:$0 sm:$0xff] }
 0x12b   : > { %v1281_v58 = vadd.f32 %v1204_v54, %v1038_v46  ;;  %v2468_v0 = vpack.c.bf16 %v2444_v57, %v2443_v41  ;;  %v1282_v59 = vadd.f32 %v1206_v17, %v1039_v47  ;;  %v1395_v21 = vmul.f32 %v4442_v35, %v4866_v31 }
 0x12c   : > { %v1635_v60 = vmul.f32 %v4516_v4, %v3628_v61  ;;  %v1511_v16 = vrot.slane %v1393_v38, 1  ;;  %v1512_v25 = vrot.slane %v1394_v18, 1  ;;  %v1636_v32 = vmul.f32 %v4516_v4, %v3632_v1  ;;  %v4872_v1 = vld [vmem:[#allocation11_spill] sm:$0xff] }
 0x12d   : > { %v1348_v9 = vadd.f32 %v1316_v5, %v1281_v58  ;;  %2584 = vmatmul.bf16.gmra.mxu1 %v2468_v0  ;;  %v1349_v63 = vadd.f32 %v1317_v53, %v1282_v59  ;;  %v1514_v6 = vrot.slane %v1395_v21, 1  ;;  %v1637_v44 = vmul.f32 %v4516_v4, %v4866_v31  ;;  %v3071_v5 = vld [vmem:[%s458_s17] sm:$0xff]  }
 0x12e   : > { %v1753_v23 = vrot.slane %v1635_v60, 2  ;;  %v1513_v14 = vsel %vm903_vm1, %v1511_v16, %v1512_v25  ;;  %v1754_v61 = vrot.slane %v1636_v32, 2  ;;  %v1867_v13 = vmul.f32 %v4531_v39, %v4872_v1 }
 0x12f   : > { %v1868_v48 = vmul.f32 %v4531_v39, %v4873_v3  ;;  %v1515_v31 = vsel %vm903_vm1, %v1512_v25, %v1514_v6  ;;  %v1590_v27 = vadd.f32 %v1513_v14, %v1348_v9  ;;  %v1756_v33 = vrot.slane %v1637_v44, 2 }
 0x130   : > { %v1944_v51 = vmul.f32 %v4541_v52, %v4872_v1  ;;  %v1591_v36 = vadd.f32 %v1515_v31, %v1349_v63  ;;  %v1755_v2 = vsel %vm1146_vm2, %v1753_v23, %v1754_v61  ;;  %v1945_v24 = vmul.f32 %v4541_v52, %v4873_v3 }
 0x131   : > { %v1946_v22 = vmul.f32 %v4541_v52, %v4874_v20  ;;  %v1757_v34 = vsel %vm1146_vm2, %v1754_v61, %v1756_v33  ;;  %v1832_v40 = vadd.f32 %v1755_v2, %v1590_v27  ;;  %v2186_v42 = vmul.f32 %v4554_v62, %v4872_v1 }
 0x132   : > { %v2062_v26 = vrot.slane %v1944_v51, 1  ;;  %v1833_v46 = vadd.f32 %v1757_v34, %v1591_v36  ;;  %v2063_v55 = vrot.slane %v1945_v24, 1  ;;  %v2187_v41 = vmul.f32 %v4554_v62, %v4873_v3 }
 0x133   : > { %v2065_v53 = vrot.slane %v1946_v22, 1  ;;  %v1899_v57 = vadd.f32 %v1867_v13, %v1832_v40  ;;  %v2188_v47 = vmul.f32 %v4554_v62, %v4874_v20  ;;  %v2304_v54 = vrot.slane %v2186_v42, 2 }
 0x134   : > { %v3072_v17 = vunpack.c.l.bf16 %v3071_v5  ;;  %v1900_v58 = vadd.f32 %v1868_v48, %v1833_v46  ;;  %v2064_v38 = vsel %vm903_vm1, %v2062_v26, %v2063_v55  ;;  %v2305_v0 = vrot.slane %v2187_v41, 2  ;;  %v4579_v48 = vld [vmem:[%s4825_s4] ss:$0 sm:$0xff] }
 0x135   : > { %v2066_v18 = vsel %vm903_vm1, %v2063_v55, %v2065_v53  ;;  %v2141_v59 = vadd.f32 %v2064_v38, %v1899_v57  ;;  %v2307_v21 = vrot.slane %v2188_v47, 2  ;;  %v3073_v60 = vunpack.c.h.bf16 %v3071_v5 }
 0x136   : > { %v556_v9 = vmul.f32 0.0, %v3072_v17  ;;  %v2142_v16 = vadd.f32 %v2066_v18, %v1900_v58  ;;  %v2306_v25 = vsel %vm1146_vm2, %v2304_v54, %v2305_v0  ;;  %v771_v32 = vmul.f32 %v4392_v45, %v3972_v56 }
 0x137   : > { %v772_v63 = vmul.f32 %v4392_v45, %v3985_v19  ;;  %v2308_v6 = vsel %vm1146_vm2, %v2305_v0, %v2307_v21  ;;  %v2383_v44 = vadd.f32 %v2306_v25, %v2141_v59  ;;  %v557_v23 = vmul.f32 0.0, %v3073_v60 }
 0x138   : > { %v646_v14 = vrot.slane %v556_v9, 7  ;;  %v2384_v61 = vadd.f32 %v2308_v6, %v2142_v16  ;;  %v852_v1 = vmul.f32 %v4404_v7, %v3972_v56  ;;  %v853_v13 = vmul.f32 %v4404_v7, %v3985_v19 }
 0x139   : > { %v854_v3 = vmul.f32 %v4404_v7, %v3988_v49  ;;  %v2419_v31 = vadd.f32 %v4579_v48, %v2383_v44  ;;  %v647_v27 = vrot.slane %v557_v23, 7  ;;  %v1095_v51 = vmul.f32 %v4416_v43, %v3972_v56 }
 0x13a   : > { %v720_v33 = vsel %vm594_vm0, 0.0, %v646_v14  ;;  %v2420_v36 = vadd.f32 %v4579_v48, %v2384_v61  ;;  %v979_v2 = vrot.slane %v852_v1, 1  ;;  %v980_v24 = vrot.slane %v853_v13, 1 }
 0x13b   : > { %v982_v20 = vrot.slane %v854_v3, 1  ;;  %v2451_v22 = vmax.f32 %v2419_v31, 0.0  ;;  %v648_v5 = vsel %vm594_vm0, %v646_v14, %v647_v27  ;;  %v738_v34 = vsel %vm594_vm0, %v647_v27, 0.0 }
 0x13c   : > { %v1096_v40 = vmul.f32 %v4416_v43, %v3985_v19  ;;  %v2452_v26 = vmax.f32 %v2420_v36, 0.0  ;;  %v981_v42 = vsel %vm903_vm1, %v979_v2, %v980_v24  ;;  %v1097_v56 = vmul.f32 %v4416_v43, %v3988_v49 }
 0x13d   : > { %v983_v46 = vsel %vm903_vm1, %v980_v24, %v982_v20  ;;  %v1046_v55 = vadd.f32 %v981_v42, %v771_v32  ;;  %v1222_v41 = vrot.slane %v1095_v51, 2  ;;  %v1324_v17 = vmul.f32 %v4429_v37, %v4263_v15 }
 0x13e   : > { %v1047_v53 = vadd.f32 %v983_v46, %v772_v63  ;;  %v1223_v57 = vrot.slane %v1096_v40, 2  ;;  %v2472_v47 = vpack.c.bf16 %v2452_v26, %v2451_v22  ;;  %v1225_v54 = vrot.slane %v1097_v56, 2 }
 0x13f   : > { %v1325_v19 = vmul.f32 %v4429_v37, %v4272_v28  ;;  %v1405_v38 = vmul.f32 %v4442_v35, %v4263_v15  ;;  %v1406_v49 = vmul.f32 %v4442_v35, %v4272_v28  ;;  %v1407_v18 = vmul.f32 %v4442_v35, %v4275_v29 }
 0x140   : > { %v1224_v58 = vsel %vm1146_vm2, %v1222_v41, %v1223_v57  ;;  %2604 = vmatmul.bf16.gmra.mxu2 %v2472_v47  ;;  %v1226_v0 = vsel %vm1146_vm2, %v1223_v57, %v1225_v54  ;;  %v1647_v21 = vmul.f32 %v4516_v4, %v4263_v15  ;;  %v1648_v60 = vmul.f32 %v4516_v4, %v4272_v28  ;;  %v4624_v57 = vpop.f32.mrf.mxu1  ;;  %v4626_v47 = vpop.f32.mrf.mxu0 }
 0x141   : > { %v1289_v59 = vadd.f32 %v1224_v58, %v1046_v55  ;;  %v1290_v9 = vadd.f32 %v1226_v0, %v1047_v53  ;;  %v1531_v16 = vrot.slane %v1405_v38, 1  ;;  %v1532_v25 = vrot.slane %v1406_v49, 1  ;;  %v4634_v58 = vpop.f32.mrf.mxu3 }
 0x142   : > { %v1534_v32 = vrot.slane %v1407_v18, 1  ;;  %v1649_v6 = vmul.f32 %v4516_v4, %v4275_v29  ;;  %v1773_v44 = vrot.slane %v1647_v21, 2  ;;  %v1774_v23 = vrot.slane %v1648_v60, 2 }
 0x143   : > { %v1356_v63 = vadd.f32 %v1324_v17, %v1289_v59  ;;  %v1357_v14 = vadd.f32 %v1325_v19, %v1290_v9  ;;  %v1533_v61 = vsel %vm903_vm1, %v1531_v16, %v1532_v25  ;;  %v1875_v15 = vmul.f32 %v4531_v39, %v720_v33  ;;  %v4632_v19 = vpop.f32.mrf.mxu2 }
 0x144   : > { %v1535_v1 = vsel %vm903_vm1, %v1532_v25, %v1534_v32  ;;  %v1775_v28 = vsel %vm1146_vm2, %v1773_v44, %v1774_v23  ;;  %v1776_v3 = vrot.slane %v1649_v6, 2  ;;  %v1876_v31 = vmul.f32 %v4531_v39, %v648_v5 }
 0x145   : > { %v1598_v13 = vadd.f32 %v1533_v61, %v1356_v63  ;;  %v1599_v27 = vadd.f32 %v1535_v1, %v1357_v14  ;;  %v1956_v51 = vmul.f32 %v4541_v52, %v720_v33  ;;  %v1957_v29 = vmul.f32 %v4541_v52, %v648_v5 }
 0x146   : > { %v1958_v36 = vmul.f32 %v4541_v52, %v738_v34  ;;  %v1777_v2 = vsel %vm1146_vm2, %v1774_v23, %v1776_v3  ;;  %v2198_v20 = vmul.f32 %v4554_v62, %v720_v33  ;;  %v2199_v22 = vmul.f32 %v4554_v62, %v648_v5 }
 0x147   : > { %v1840_v24 = vadd.f32 %v1775_v28, %v1598_v13  ;;  %v1841_v40 = vadd.f32 %v1777_v2, %v1599_v27  ;;  %v2082_v26 = vrot.slane %v1956_v51, 1  ;;  %v2083_v42 = vrot.slane %v1957_v29, 1 }
 0x148   : > { %v2085_v46 = vrot.slane %v1958_v36, 1  ;;  %v2200_v55 = vmul.f32 %v4554_v62, %v738_v34  ;;  %v2324_v53 = vrot.slane %v2198_v20, 2  ;;  %v2325_v41 = vrot.slane %v2199_v22, 2  ;;  %v4663_v29 = vpop.f32.mrf.mxu1  ;;  %v4665_v36 = vpop.f32.mrf.mxu0 }
 0x149   : > { %v1907_v56 = vadd.f32 %v1875_v15, %v1840_v24  ;;  %v1908_v54 = vadd.f32 %v1876_v31, %v1841_v40  ;;  %v2084_v17 = vsel %vm903_vm1, %v2082_v26, %v2083_v42  ;;  %v747_v5 = vmul.f32 %v4392_v45, %v4064_v50 }
 0x14a   : > { %v2086_v33 = vsel %vm903_vm1, %v2083_v42, %v2085_v46  ;;  %v2326_v34 = vsel %vm1146_vm2, %v2324_v53, %v2325_v41  ;;  %v2327_v49 = vrot.slane %v2200_v55, 2  ;;  %v748_v18 = vmul.f32 %v4392_v45, %v4077_v11 }
 0x14b   : > { %v2149_v38 = vadd.f32 %v2084_v17, %v1907_v56  ;;  %v2150_v0 = vadd.f32 %v2086_v33, %v1908_v54  ;;  %v816_v59 = vmul.f32 %v4404_v7, %v4064_v50  ;;  %v817_v21 = vmul.f32 %v4404_v7, %v4077_v11  ;;  %v4673_v40 = vpop.f32.mrf.mxu2  ;;  %v4678_v56 = vpop.f32.mrf.mxu3  ;;  %v4875_v33 = vld [vmem:[#allocation5_spill] sm:$0xff] }
 0x14c   : > { %v818_v60 = vmul.f32 %v4404_v7, %v4080_v10  ;;  %v2328_v9 = vsel %vm1146_vm2, %v2325_v41, %v2327_v49  ;;  %v1059_v25 = vmul.f32 %v4416_v43, %v4064_v50  ;;  %v1060_v32 = vmul.f32 %v4416_v43, %v4077_v11  ;;  %v4876_v49 = vld [vmem:[#allocation3_spill] sm:$0xff] }
 0x14d   : > { %v2391_v16 = vadd.f32 %v2326_v34, %v2149_v38  ;;  %v2392_v45 = vadd.f32 %v2328_v9, %v2150_v0  ;;  %v919_v63 = vrot.slane %v816_v59, 1  ;;  %v920_v6 = vrot.slane %v817_v21, 1 }
 0x14e   : > { %v922_v44 = vrot.slane %v818_v60, 1  ;;  %v1061_v14 = vmul.f32 %v4416_v43, %v4080_v10  ;;  %v1162_v61 = vrot.slane %v1059_v25, 2  ;;  %v1163_v7 = vrot.slane %v1060_v32, 2 }
 0x14f   : > { %v2427_v23 = vadd.f32 %v4579_v48, %v2391_v16  ;;  %v2428_v1 = vadd.f32 %v4579_v48, %v2392_v45  ;;  %v921_v15 = vsel %vm903_vm1, %v919_v63, %v920_v6  ;;  %v1300_v11 = vmul.f32 %v4429_v37, %v4867_v30  ;;  %v4877_v16 = vld [vmem:[#allocation7_spill] sm:$0xff] }
 0x150   : > { %v923_v50 = vsel %vm903_vm1, %v920_v6, %v922_v44  ;;  %v1022_v28 = vadd.f32 %v921_v15, %v747_v5  ;;  %v1164_v31 = vsel %vm1146_vm2, %v1162_v61, %v1163_v7  ;;  %v1165_v51 = vrot.slane %v1061_v14, 2  ;;  %v4708_v44 = vld [vmem:[%s4828_s7] ss:$0 sm:$0xff] }
 0x151   : > { %v2459_v13 = vmax.f32 %v2427_v23, 0.0  ;;  %v1023_v3 = vadd.f32 %v923_v50, %v748_v18  ;;  %v2460_v27 = vmax.f32 %v2428_v1, 0.0  ;;  %v1301_v10 = vmul.f32 %v4429_v37, %v4868_v12 }
 0x152   : > { %v1369_v43 = vmul.f32 %v4442_v35, %v4867_v30  ;;  %v1265_v2 = vadd.f32 %v1164_v31, %v1022_v28  ;;  %v1370_v24 = vmul.f32 %v4442_v35, %v4868_v12  ;;  %v1371_v20 = vmul.f32 %v4442_v35, %v4869_v8 }
 0x153   : > { %v1611_v22 = vmul.f32 %v4516_v4, %v4867_v30  ;;  %v2476_v37 = vpack.c.bf16 %v2460_v27, %v2459_v13  ;;  %v1166_v26 = vsel %vm1146_vm2, %v1163_v7, %v1165_v51  ;;  %v1612_v46 = vmul.f32 %v4516_v4, %v4868_v12  ;;  %v2555_v13 = vpop.f32.mrf.mxu0  ;;  %v2595_v51 = vpop.f32.mrf.mxu2 }
 0x154   : > { %v1471_v42 = vrot.slane %v1369_v43, 1  ;;  %v1266_v55 = vadd.f32 %v1166_v26, %v1023_v3  ;;  %v1332_v53 = vadd.f32 %v1300_v11, %v1265_v2  ;;  %v1472_v41 = vrot.slane %v1370_v24, 1  ;;  %v2575_v11 = vpop.f32.mrf.mxu1  ;;  %v2615_v24 = vpop.f32.mrf.mxu3 }
 0x155   : > { %v1474_v54 = vrot.slane %v1371_v20, 1  ;;  %2624 = vmatmul.bf16.gmra.mxu3 %v2476_v37  ;;  %v1613_v35 = vmul.f32 %v4516_v4, %v4869_v8  ;;  %v1713_v30 = vrot.slane %v1611_v22, 2  ;;  %v1714_v17 = vrot.slane %v1612_v46, 2  ;;  %v4694_v4 = vld [vmem:[%s4827_s6] ss:$0 sm:$0xff] }
 0x156   : > { %v1851_v5 = vmul.f32 %v4531_v39, %v4875_v33  ;;  %v1333_v38 = vadd.f32 %v1301_v10, %v1266_v55  ;;  %v1473_v34 = vsel %vm903_vm1, %v1471_v42, %v1472_v41  ;;  %v1852_v18 = vmul.f32 %v4531_v39, %v4876_v49 }
 0x157   : > { %v1475_v12 = vsel %vm903_vm1, %v1472_v41, %v1474_v54  ;;  %v1574_v0 = vadd.f32 %v1473_v34, %v1332_v53  ;;  %v1715_v59 = vsel %vm1146_vm2, %v1713_v30, %v1714_v17  ;;  %v1716_v21 = vrot.slane %v1613_v35, 2 }
 0x158   : > { %v1920_v8 = vmul.f32 %v4541_v52, %v4875_v33  ;;  %v1575_v60 = vadd.f32 %v1475_v12, %v1333_v38  ;;  %v1921_v9 = vmul.f32 %v4541_v52, %v4876_v49  ;;  %v1922_v25 = vmul.f32 %v4541_v52, %v4877_v16 }
 0x159   : > { %v2162_v39 = vmul.f32 %v4554_v62, %v4875_v33  ;;  %v1717_v32 = vsel %vm1146_vm2, %v1714_v17, %v1716_v21  ;;  %v1816_v45 = vadd.f32 %v1715_v59, %v1574_v0  ;;  %v2163_v6 = vmul.f32 %v4554_v62, %v4876_v49 }
 0x15a   : > { %v2022_v63 = vrot.slane %v1920_v8, 1  ;;  %v1817_v23 = vadd.f32 %v1717_v32, %v1575_v60  ;;  %v2023_v14 = vrot.slane %v1921_v9, 1  ;;  %v2025_v61 = vrot.slane %v1922_v25, 1 }
 0x15b   : > { %v2164_v52 = vmul.f32 %v4554_v62, %v4877_v16  ;;  %v1883_v7 = vadd.f32 %v1851_v5, %v1816_v45  ;;  %v2264_v1 = vrot.slane %v2162_v39, 2  ;;  %v2265_v15 = vrot.slane %v2163_v6, 2  ;;  %v2557_v8 = vpop.f32.mrf.mxu0  ;;  %v2597_v25 = vpop.f32.mrf.mxu2 }
 0x15c   : > { %v2642_v50 = vmul.f32 %v4694_v4, %v4624_v57  ;;  %v1884_v28 = vadd.f32 %v1852_v18, %v1817_v23  ;;  %v2024_v3 = vsel %vm903_vm1, %v2022_v63, %v2023_v14  ;;  %v2026_v31 = vsel %vm903_vm1, %v2023_v14, %v2025_v61  ;;  %v2617_v6 = vpop.f32.mrf.mxu3 }
 0x15d   : > { %v2267_v27 = vrot.slane %v2164_v52, 2  ;;  %v2125_v10 = vadd.f32 %v2024_v3, %v1883_v7  ;;  %v2266_v43 = vsel %vm1146_vm2, %v2264_v1, %v2265_v15  ;;  %v2634_v2 = vmul.f32 %v4694_v4, %v4626_v47 }
 0x15e   : > { %v2678_v62 = vadd.f32 %v4708_v44, %v2642_v50  ;;  %v2126_v20 = vadd.f32 %v2026_v31, %v1884_v28  ;;  %v2650_v22 = vmul.f32 %v4694_v4, %v4632_v19  ;;  %v2658_v37 = vmul.f32 %v4694_v4, %v4634_v58 }
 0x15f   : > { %v2268_v57 = vsel %vm1146_vm2, %v2265_v15, %v2267_v27  ;;  %v2367_v26 = vadd.f32 %v2266_v43, %v2125_v10  ;;  %v2670_v42 = vadd.f32 %v4708_v44, %v2634_v2  ;;  %v2643_v46 = vmul.f32 %v4694_v4, %v4663_v29 }
 0x160   : > { %v2368_v55 = vadd.f32 %v2268_v57, %v2126_v20  ;;  %v2710_v53 = vmax.f32 %v2678_v62, 0.0  ;;  %v2686_v47 = vadd.f32 %v4708_v44, %v2650_v22  ;;  %v2635_v41 = vmul.f32 %v4694_v4, %v4665_v36 }
 0x161   : > { %v2403_v54 = vadd.f32 %v4579_v48, %v2367_v26  ;;  %v2694_v19 = vadd.f32 %v4708_v44, %v2658_v37  ;;  %v2679_v58 = vadd.f32 %v4708_v44, %v2643_v46  ;;  %v2651_v35 = vmul.f32 %v4694_v4, %v4673_v40 }
 0x162   : > { %v2404_v30 = vadd.f32 %v4579_v48, %v2368_v55  ;;  %v2702_v29 = vmax.f32 %v2670_v42, 0.0  ;;  %v2718_v17 = vmax.f32 %v2686_v47, 0.0  ;;  %v2671_v33 = vadd.f32 %v4708_v44, %v2635_v41 }
 0x163   : > { %v2435_v5 = vmax.f32 %v2403_v54, 0.0  ;;  %v2711_v38 = vmax.f32 %v2679_v58, 0.0  ;;  %v2687_v34 = vadd.f32 %v4708_v44, %v2651_v35  ;;  %v2659_v36 = vmul.f32 %v4694_v4, %v4678_v56  ;;  %v2577_v56 = vpop.f32.mrf.mxu1 }
 0x164   : > { %v2436_v12 = vmax.f32 %v2404_v30, 0.0  ;;  %v2703_v40 = vmax.f32 %v2671_v33, 0.0  ;;  %v2644_v48 = vmul.f32 %v4694_v4, %v2575_v11  ;;  %v2636_v49 = vmul.f32 %v4694_v4, %v2555_v13 }
 0x165   : > { %v3097_v18 = vpack.c.bf16 %v2711_v38, %v2710_v53  ;;  %v2719_v0 = vmax.f32 %v2687_v34, 0.0  ;;  %v2695_v59 = vadd.f32 %v4708_v44, %v2659_v36  ;;  %v2652_v21 = vmul.f32 %v4694_v4, %v2595_v51 }
 0x166   : > { %v2464_v60 = vpack.c.bf16 %v2436_v12, %v2435_v5  ;;  %v2726_v9 = vmax.f32 %v2694_v19, 0.0  ;;  %v3077_v16 = vpack.c.bf16 %v2703_v40, %v2702_v29  ;;  %v2680_v45 = vadd.f32 %v4708_v44, %v2644_v48 }
 0x167   : > { %3173 = vst [vmem:[%s4745_s14 + $0x20] sm:$0xff] %v3097_v18   ;;  %v3117_v39 = vpack.c.bf16 %v2719_v0, %v2718_v17  ;;  %v2727_v32 = vmax.f32 %v2695_v59, 0.0  ;;  %v2660_v63 = vmul.f32 %v4694_v4, %v2615_v24  ;;  %v2672_v23 = vadd.f32 %v4708_v44, %v2636_v49 }
 0x168   : > { %2564 = vmatmul.bf16.gmra.mxu0 %v2464_v60  ;;  %3078 = vst [vmem:[%s4745_s14] sm:$0xff] %v3077_v16   ;;  %v2645_v14 = vmul.f32 %v4694_v4, %v2577_v56  ;;  %v2637_v61 = vmul.f32 %v4694_v4, %v2557_v8  ;;  %v2688_v7 = vadd.f32 %v4708_v44, %v2652_v21  ;;  %v2712_v28 = vmax.f32 %v2680_v45, 0.0 }
 0x169   : > { %3177 = vst [vmem:[%s4745_s14 + $0x40] sm:$0xff] %v3117_v39   ;;  %v3137_v52 = vpack.c.bf16 %v2727_v32, %v2726_v9  ;;  %v2653_v1 = vmul.f32 %v4694_v4, %v2597_v25  ;;  %v2696_v15 = vadd.f32 %v4708_v44, %v2660_v63  ;;  %v2661_v13 = vmul.f32 %v4694_v4, %v2617_v6 }
 0x16a   : > { %v2681_v50 = vadd.f32 %v4708_v44, %v2645_v14  ;;  %v2673_v11 = vadd.f32 %v4708_v44, %v2637_v61  ;;  %v2704_v31 = vmax.f32 %v2672_v23, 0.0  ;;  %v2720_v43 = vmax.f32 %v2688_v7, 0.0 }
 0x16b   : > { %3181 = vst [vmem:[%s4745_s14 + $0x60] sm:$0xff] %v3137_v52   ;;  %v2689_v3 = vadd.f32 %v4708_v44, %v2653_v1  ;;  %v2697_v10 = vadd.f32 %v4708_v44, %v2661_v13  ;;  %v2728_v2 = vmax.f32 %v2696_v15, 0.0  ;;  %v2580_v26 = vpop.f32.mrf.mxu1 }
 0x16c   : > { %v2713_v27 = vmax.f32 %v2681_v50, 0.0  ;;  %v2705_v51 = vmax.f32 %v2673_v11, 0.0  ;;  %v2646_v42 = vmul.f32 %v4694_v4, %v2580_v26 }
 0x16d   : > { %v2721_v62 = vmax.f32 %v2689_v3, 0.0  ;;  %v2729_v57 = vmax.f32 %v2697_v10, 0.0 }
 0x16e   : > { %v3102_v24 = vpack.c.bf16 %v2713_v27, %v2712_v28  ;;  %v3082_v20 = vpack.c.bf16 %v2705_v51, %v2704_v31  ;;  %v2682_v55 = vadd.f32 %v4708_v44, %v2646_v42 }
 0x16f   : > { %v3122_v22 = vpack.c.bf16 %v2721_v62, %v2720_v43  ;;  %v3142_v37 = vpack.c.bf16 %v2729_v57, %v2728_v2 }
 0x170   : > { %3174 = vst [vmem:[%s4745_s14 + $0x28] sm:$0xff] %v3102_v24   ;;  %v2714_v54 = vmax.f32 %v2682_v55, 0.0 }
 0x171   : > { %3170 = vst [vmem:[%s4745_s14 + $0x8] sm:$0xff] %v3082_v20  }
 0x172   : > { %3178 = vst [vmem:[%s4745_s14 + $0x48] sm:$0xff] %v3122_v22  }
 0x173   : > { %3182 = vst [vmem:[%s4745_s14 + $0x68] sm:$0xff] %v3142_v37   ;;  %v2582_v46 = vpop.f32.mrf.mxu1 }
 0x174   : > { %v2647_v53 = vmul.f32 %v4694_v4, %v2582_v46 }
 0x176   : > { %v2683_v41 = vadd.f32 %v4708_v44, %v2647_v53 }
 0x177   : > { %v2600_v47 = vpop.f32.mrf.mxu2 }
 0x178   : > { %v2715_v19 = vmax.f32 %v2683_v41, 0.0  ;;  %v2654_v35 = vmul.f32 %v4694_v4, %v2600_v47 }
 0x17a   : > { %v3107_v58 = vpack.c.bf16 %v2715_v19, %v2714_v54  ;;  %v2690_v29 = vadd.f32 %v4708_v44, %v2654_v35 }
 0x17c   : > { %3175 = vst [vmem:[%s4745_s14 + $0x30] sm:$0xff] %v3107_v58   ;;  %v2722_v38 = vmax.f32 %v2690_v29, 0.0 }
 0x17f   : > { %v2602_v30 = vpop.f32.mrf.mxu2 }
 0x180   : > { %v2655_v33 = vmul.f32 %v4694_v4, %v2602_v30 }
 0x182   : > { %v2691_v5 = vadd.f32 %v4708_v44, %v2655_v33 }
 0x184   : > { %v2723_v34 = vmax.f32 %v2691_v5, 0.0 }
 0x186   : > { %v3127_v12 = vpack.c.bf16 %v2723_v34, %v2722_v38 }
 0x188   : > { %3179 = vst [vmem:[%s4745_s14 + $0x50] sm:$0xff] %v3127_v12  }
 0x18b   : > { %v2620_v17 = vpop.f32.mrf.mxu3 }
 0x18c   : > { %v2662_v36 = vmul.f32 %v4694_v4, %v2620_v17 }
 0x18e   : > { %v2698_v48 = vadd.f32 %v4708_v44, %v2662_v36 }
 0x190   : > { %v2730_v0 = vmax.f32 %v2698_v48, 0.0 }
 0x193   : > { %v2622_v40 = vpop.f32.mrf.mxu3 }
 0x194   : > { %v2663_v49 = vmul.f32 %v4694_v4, %v2622_v40 }
 0x196   : > { %v2699_v18 = vadd.f32 %v4708_v44, %v2663_v49 }
 0x198   : > { %v2731_v59 = vmax.f32 %v2699_v18, 0.0  ;;  %v2560_v21 = vpop.f32.mrf.mxu0 }
 0x199   : > { %v2638_v8 = vmul.f32 %v4694_v4, %v2560_v21 }
 0x19a   : > { %v3147_v56 = vpack.c.bf16 %v2731_v59, %v2730_v0 }
 0x19b   : > { %v2674_v9 = vadd.f32 %v4708_v44, %v2638_v8 }
 0x19c   : > { %3183 = vst [vmem:[%s4745_s14 + $0x70] sm:$0xff] %v3147_v56  }
 0x19d   : > { %v2706_v39 = vmax.f32 %v2674_v9, 0.0 }
 0x1a0   : > { %v2562_v60 = vpop.f32.mrf.mxu0 }
 0x1a1   : > { %v2639_v16 = vmul.f32 %v4694_v4, %v2562_v60 }
 0x1a3   : > { %v2675_v25 = vadd.f32 %v4708_v44, %v2639_v16 }
 0x1a5   : > { %v2707_v32 = vmax.f32 %v2675_v25, 0.0 }
 0x1a7   : > { %v3087_v45 = vpack.c.bf16 %v2707_v32, %v2706_v39 }
 0x1a9   : > { %3171 = vst [vmem:[%s4745_s14 + $0x10] sm:$0xff] %v3087_v45  }
 0x1aa   : > { %v2585_v63 = vpop.f32.mrf.mxu1 }
 0x1ab   : > { %v2648_v6 = vmul.f32 %v4694_v4, %v2585_v63 }
 0x1ad   : > { %v2684_v61 = vadd.f32 %v4708_v44, %v2648_v6 }
 0x1af   : > { %v2716_v15 = vmax.f32 %v2684_v61, 0.0 }
 0x1b2   : > { %v2587_v14 = vpop.f32.mrf.mxu1 }
 0x1b3   : > { %v2649_v52 = vmul.f32 %v4694_v4, %v2587_v14 }
 0x1b5   : > { %v2685_v7 = vadd.f32 %v4708_v44, %v2649_v52 }
 0x1b7   : > { %v2717_v50 = vmax.f32 %v2685_v7, 0.0 }
 0x1b9   : > { %v3112_v11 = vpack.c.bf16 %v2717_v50, %v2716_v15 }
 0x1bb   : > { %3176 = vst [vmem:[%s4745_s14 + $0x38] sm:$0xff] %v3112_v11  }
 0x1c3   : > { %v2605_v23 = vpop.f32.mrf.mxu2 }
 0x1c4   : > { %v2656_v1 = vmul.f32 %v4694_v4, %v2605_v23 }
 0x1c6   : > { %v2692_v28 = vadd.f32 %v4708_v44, %v2656_v1 }
 0x1c8   : > { %v2724_v27 = vmax.f32 %v2692_v28, 0.0 }
 0x1cb   : > { %v2607_v13 = vpop.f32.mrf.mxu2 }
 0x1cc   : > { %v2657_v3 = vmul.f32 %v4694_v4, %v2607_v13 }
 0x1ce   : > { %v2693_v31 = vadd.f32 %v4708_v44, %v2657_v3 }
 0x1d0   : > { %v2725_v51 = vmax.f32 %v2693_v31, 0.0 }
 0x1d2   : > { %v3132_v43 = vpack.c.bf16 %v2725_v51, %v2724_v27 }
 0x1d4   : > { %3180 = vst [vmem:[%s4745_s14 + $0x58] sm:$0xff] %v3132_v43  }
 0x1d8   : > { %v2625_v10 = vpop.f32.mrf.mxu3 }
 0x1d9   : > { %v2664_v62 = vmul.f32 %v4694_v4, %v2625_v10 }
 0x1db   : > { %v2700_v24 = vadd.f32 %v4708_v44, %v2664_v62 }
 0x1dd   : > { %v2732_v37 = vmax.f32 %v2700_v24, 0.0 }
 0x1e0   : > { %v2627_v2 = vpop.f32.mrf.mxu3 }
 0x1e1   : > { %v2665_v20 = vmul.f32 %v4694_v4, %v2627_v2 }
 0x1e3   : > { %v2701_v57 = vadd.f32 %v4708_v44, %v2665_v20 }
 0x1e5   : > { %v2565_v22 = vpop.f32.mrf.mxu0  ;;  %v2733_v26 = vmax.f32 %v2701_v57, 0.0 }
 0x1e6   : > { %v2640_v46 = vmul.f32 %v4694_v4, %v2565_v22 }
 0x1e7   : > { %v3152_v42 = vpack.c.bf16 %v2733_v26, %v2732_v37 }
 0x1e8   : > { %v2676_v53 = vadd.f32 %v4708_v44, %v2640_v46 }
 0x1e9   : > { %3184 = vst [vmem:[%s4745_s14 + $0x78] sm:$0xff] %v3152_v42  }
 0x1ea   : > { %v2708_v54 = vmax.f32 %v2676_v53, 0.0 }
 0x1ed   : > { %v2567_v55 = vpop.f32.mrf.mxu0 }
 0x1ee   : > { %v2641_v47 = vmul.f32 %v4694_v4, %v2567_v55 }
 0x1f0   : > { %v2677_v41 = vadd.f32 %v4708_v44, %v2641_v47 }
 0x1f2   : > { %v2709_v19 = vmax.f32 %v2677_v41, 0.0 }
 0x1f4   : > { %v3092_v58 = vpack.c.bf16 %v2709_v19, %v2708_v54 }
 0x1f6   : > { %3172 = vst [vmem:[%s4745_s14 + $0x18] sm:$0xff] %v3092_v58  }
 0x1f7 PF: > { %s18_s29 = sadd.s32 1, %s3287_s29   ;;  %s4878_s27 = smov %s3283_s28 }
 0x1f8   : > { %p15_p5 = scmp.ge.s32.totalorder %s18_s29, 4   ;;  %s4879_s28 = smov %s4881_s30 }
 0x1fa   :  { %17 = sbr.rel (!%p15_p5) target bundleno = 2 (0x2), region = 90 }

// kernel: forward.13
= control target key start
LH: loop header
LB: loop body
LE: loop exit
PB: predicated region body
PF: predicated region fallthrough
CT: control target
= control target key end

     0   :  { %s3478_s13 = smov 0   ;;  %s3480_s14 = smov 0   ;;  %s5063_s0 = inlined_call_operand.vmem [shape: bf16[2,16,16,128], index: 0, kind: input, shape index: {}, may-alias: {0,1,2}]   ;;  %s5064_s1 = inlined_call_operand.vmem [shape: bf16[2,16,16,128], index: 1, kind: input, shape index: {}, may-alias: {0,1,2}]   ;;  %s5065_s2 = inlined_call_operand.vmem [shape: bf16[2,16,16,128], index: 2, kind: input, shape index: {}, may-alias: {0,1,2}]   ;;  %s5066_s3 = inlined_call_operand.vmem [shape: f32[3,3,128], index: 3, kind: input, shape index: {}]   ;;  %s5067_s4 = inlined_call_operand.vmem [shape: f32[1,128], index: 4, kind: input, shape index: {}]   ;;  %s5068_s5 = inlined_call_operand.vmem [shape: bf16[128,128], index: 5, kind: input, shape index: {}]   ;;  %s5069_s6 = inlined_call_operand.vmem [shape: f32[1,128], index: 6, kind: input, shape index: {}]   ;;  %s5070_s7 = inlined_call_operand.vmem [shape: f32[1,128], index: 7, kind: input, shape index: {}]   ;;  %s5071_s8 = inlined_call_operand.vmem [shape: bf16[128,2], index: 8, kind: input, shape index: {}]   ;;  %s5072_s9 = inlined_call_operand.vmem [shape: f32[1,2], index: 9, kind: input, shape index: {}]   ;;  %s5073_s10 = inlined_call_operand.vmem [shape: f32[2,16,16,2], index: 10, kind: output, shape index: {}]  }
   0x1   :  { %s3482_s15 = smov 0  }
   0x2 LB: > { %s32_s16 = sadd.s32 1, %s3417_s14  ;;  %p3136_p0 = scmp.ge.s32.totalorder %s3421_s15, 1  ;;  %s3421_s15 = sphi %s3482_s15, %s20_s15   ;;  %s3417_s14 = sphi %s3480_s14, %s5075_s14   ;;  %s3413_s13 = sphi %s3478_s13, %s5074_s13  }
   0x3   : > { %p34_p1 = scmp.ge.s32.totalorder %s32_s16, 2  ;;  %p398_p2 = scmp.lt.s32.totalorder %s3421_s15, 3 }
   0x5   : > { %s5077_s16 = smov (%p34_p1, %s32_s16), 0  ;;  %p399_p3 = pnand %p3136_p0, %p398_p2 }
   0x6   : > { %p476_p4 = scmp.lt.s32.totalorder (!%p399_p3), %s3413_s13, 1 }
   0x7   : > { %402 = sbr.rel (%p399_p3) target bundleno = 636 (0x27c), region = 60 }
   0xc   : > { %v3229_v0 = vld [vmem:[%s5068_s5 + $0x38] sm:$0xff]  ;;  %v3228_v1 = vld [vmem:[%s5068_s5 + $0x30] sm:$0xff]  ;;  %s5079_s13 = smov (!%p476_p4, %s3413_s13), 1  ;;  %v3227_v2 = vld [vmem:[%s5068_s5 + $0x28] sm:$0xff]  ;;  %vm648_vm0 = vcmask 1040384   ;;  %vm957_vm1 = vcmask 1046528  }
   0xd   : > { %3326 = vmatpush.bf16.msra.mxu2 %v3229_v0  ;;  %2595 = vmatpush.bf16.msra.mxu0 %v3229_v0  ;;  %s3505_s21 = sshll.u32 %s5079_s13, 7  ;;  %v3226_v10 = vld [vmem:[%s5068_s5 + $0x20] sm:$0xff]  ;;  %vm1200_vm2 = vcmask 1045504   ;;  %v3225_v37 = vld [vmem:[%s5068_s5 + $0x18] sm:$0xff]  ;;  %v3224_v55 = vld [vmem:[%s5068_s5 + $0x10] sm:$0xff]  ;;  %vm2961_vm3 = vcmask 15360  }
   0xe   : > { %s3514_s26 = scalar_lea.vmem %s5064_s1, %s3505_s21  ;;  %v3525_v13 = vld [vmem:[%s5066_s3] ss:$0 sm:$0xff]  ;;  %v3530_v18 = vld [vmem:[%s5066_s3 + $0x1] ss:$0 sm:$0xff]  ;;  %s484_s19 = scalar_lea.vmem %s5063_s0, %s3505_s21  ;;  %v3539_v21 = vld [vmem:[%s5066_s3 + $0x2] ss:$0 sm:$0xff] }
   0xf   : > { %v3317_v3 = vld [vmem:[%s3514_s26 + $0x38] sm:$0xff]   ;;  %v3318_v4 = vld [vmem:[%s3514_s26 + $0x40] sm:$0xff]   ;;  %v3319_v5 = vld [vmem:[%s3514_s26 + $0x48] sm:$0xff]   ;;  %s3220_s17 = sadd.s32 120, %s3505_s21 }
  0x10   : > { %v3272_v6 = vunpack.c.l.bf16 %v3317_v3  ;;  %v3273_v7 = vunpack.c.h.bf16 %v3317_v3  ;;  %v3276_v8 = vunpack.c.l.bf16 %v3318_v4  ;;  %v3277_v9 = vunpack.c.h.bf16 %v3318_v4  ;;  %v3556_v26 = vld [vmem:[%s5066_s3 + $0x4] ss:$0 sm:$0xff]  ;;  %v3573_v31 = vld [vmem:[%s5066_s3 + $0x5] ss:$0 sm:$0xff]  ;;  %v3607_v50 = vld [vmem:[%s5066_s3 + $0x6] ss:$0 sm:$0xff]  ;;  %s512_s22 = scalar_lea.vmem %s5065_s2, %s3220_s17 }
  0x11   : > { %3327 = vmatpush.bf16.msra.mxu2 %v3228_v1  ;;  %2596 = vmatpush.bf16.msra.mxu0 %v3228_v1  ;;  %v3280_v11 = vunpack.c.l.bf16 %v3319_v5  ;;  %v3281_v12 = vunpack.c.h.bf16 %v3319_v5  ;;  %v3575_v32 = vld [vmem:[%s484_s19] sm:$0xff]   ;;  %v3623_v59 = vld [vmem:[%s5066_s3 + $0x8] ss:$0 sm:$0xff]  ;;  %v3633_v5 = vld [vmem:[%s5066_s3 + $0x9] ss:$0 sm:$0xff]  ;;  %s3221_s19 = sshll.u32 %s5079_s13, 8 }
  0x12   : > { %v673_v14 = vrot.slane %v3272_v6, 7  ;;  %v674_v15 = vrot.slane %v3273_v7, 7  ;;  %v676_v16 = vrot.slane %v3276_v8, 7  ;;  %v677_v17 = vrot.slane %v3277_v9, 7  ;;  %s4951_s23 = scalar_lea.vmem %s5073_s10, %s3221_s19 }
  0x13   : > { %v679_v19 = vrot.slane %v3280_v11, 7  ;;  %v680_v20 = vrot.slane %v3281_v12, 7  ;;  %v3240_v41 = vunpack.c.l.bf16 %v3575_v32  ;;  %v3241_v60 = vunpack.c.h.bf16 %v3575_v32  ;;  %v3681_v32 = vld [vmem:[%s5067_s4] ss:$0 sm:$0xff] }
  0x14   : > { %v3542_v22 = vsel %vm648_vm0, %v673_v14, %v674_v15  ;;  %v3545_v23 = vsel %vm648_vm0, %v676_v16, %v677_v17  ;;  %v3548_v24 = vsel %vm648_vm0, 0.0, %v673_v14  ;;  %v3551_v25 = vsel %vm648_vm0, 0.0, %v676_v16  ;;  %v3649_v16 = vld [vmem:[%s5066_s3 + $0xa] ss:$0 sm:$0xff] }
  0x15   : > { %3328 = vmatpush.bf16.msra.mxu2 %v3227_v2  ;;  %2597 = vmatpush.bf16.msra.mxu0 %v3227_v2  ;;  %v3559_v27 = vsel %vm648_vm0, %v679_v19, %v680_v20  ;;  %v3562_v28 = vsel %vm648_vm0, 0.0, %v679_v19  ;;  %v3565_v29 = vsel %vm648_vm0, %v674_v15, 0.0  ;;  %v3568_v30 = vsel %vm648_vm0, %v677_v17, 0.0 }
  0x16   : > { %v3578_v33 = vsel %vm648_vm0, %v680_v20, 0.0  ;;  %v811_v34 = vmul.f32 %v3525_v13, %v3548_v24  ;;  %v812_v35 = vmul.f32 %v3525_v13, %v3542_v22  ;;  %v885_v36 = vmul.f32 %v3530_v18, %v3548_v24 }
  0x17   : > { %v886_v38 = vmul.f32 %v3530_v18, %v3542_v22  ;;  %v887_v39 = vmul.f32 %v3530_v18, %v3565_v29  ;;  %v1128_v40 = vmul.f32 %v3539_v21, %v3548_v24  ;;  %v1129_v43 = vmul.f32 %v3539_v21, %v3542_v22 }
  0x18   : > { %v998_v42 = vrot.slane %v885_v36, 1  ;;  %v1130_v44 = vmul.f32 %v3539_v21, %v3565_v29  ;;  %v1364_v45 = vmul.f32 %v3556_v26, %v3551_v25  ;;  %v1365_v49 = vmul.f32 %v3556_v26, %v3545_v23 }
  0x19   : > { %3329 = vmatpush.bf16.msra.mxu2 %v3226_v10  ;;  %2598 = vmatpush.bf16.msra.mxu0 %v3226_v10  ;;  %v999_v46 = vrot.slane %v886_v38, 1  ;;  %v1001_v47 = vrot.slane %v887_v39, 1  ;;  %v1241_v48 = vrot.slane %v1128_v40, 2  ;;  %v1242_v51 = vrot.slane %v1129_v43, 2  ;;  %v3223_v10 = vld [vmem:[%s5068_s5 + $0x8] sm:$0xff] }
  0x1a   : > { %v1244_v52 = vrot.slane %v1130_v44, 2  ;;  %v1438_v53 = vmul.f32 %v3573_v31, %v3551_v25  ;;  %v1439_v54 = vmul.f32 %v3573_v31, %v3545_v23  ;;  %v1440_v58 = vmul.f32 %v3573_v31, %v3568_v30  ;;  %v3222_v44 = vld [vmem:[%s5068_s5] sm:$0xff] }
  0x1b   : > { %v1000_v56 = vsel %vm957_vm1, %v998_v42, %v999_v46  ;;  %v1002_v57 = vsel %vm957_vm1, %v999_v46, %v1001_v47  ;;  %v1243_v63 = vsel %vm1200_vm2, %v1241_v48, %v1242_v51  ;;  %v1680_v4 = vmul.f32 %v3607_v50, %v3551_v25 }
  0x1c   : > { %v1086_v61 = vadd.f32 %v1000_v56, %v811_v34  ;;  %v1087_v62 = vadd.f32 %v1002_v57, %v812_v35  ;;  %v1245_v0 = vsel %vm1200_vm2, %v1242_v51, %v1244_v52  ;;  %v1550_v1 = vrot.slane %v1438_v53, 1 }
  0x1d   : > { %3330 = vmatpush.bf16.msra.mxu2 %v3225_v37  ;;  %2599 = vmatpush.bf16.msra.mxu0 %v3225_v37  ;;  %v1551_v2 = vrot.slane %v1439_v54, 1  ;;  %v1553_v3 = vrot.slane %v1440_v58, 1  ;;  %v1681_v8 = vmul.f32 %v3607_v50, %v3545_v23  ;;  %v1682_v9 = vmul.f32 %v3607_v50, %v3568_v30  ;;  %v3243_v54 = vld [vmem:[%s3514_s26] sm:$0xff]  }
  0x1e   : > { %v1329_v6 = vadd.f32 %v1243_v63, %v1086_v61  ;;  %v1330_v7 = vadd.f32 %v1245_v0, %v1087_v62  ;;  %v1792_v14 = vrot.slane %v1680_v4, 2  ;;  %v1915_v15 = vmul.f32 %v3623_v59, %v3562_v28 }
  0x1f   : > { %v1552_v11 = vsel %vm957_vm1, %v1550_v1, %v1551_v2  ;;  %v1554_v12 = vsel %vm957_vm1, %v1551_v2, %v1553_v3  ;;  %v1793_v20 = vrot.slane %v1681_v8, 2  ;;  %v1795_v34 = vrot.slane %v1682_v9, 2 }
  0x20   : > { %v1396_v17 = vadd.f32 %v1364_v45, %v1329_v6  ;;  %v1397_v19 = vadd.f32 %v1365_v49, %v1330_v7  ;;  %v1916_v35 = vmul.f32 %v3623_v59, %v3559_v27  ;;  %v1989_v36 = vmul.f32 %v3633_v5, %v3562_v28 }
  0x21   : > { %3331 = vmatpush.bf16.msra.mxu2 %v3224_v55  ;;  %2600 = vmatpush.bf16.msra.mxu0 %v3224_v55  ;;  %v1990_v37 = vmul.f32 %v3633_v5, %v3559_v27  ;;  %v1991_v38 = vmul.f32 %v3633_v5, %v3578_v33  ;;  %v1794_v42 = vsel %vm1200_vm2, %v1792_v14, %v1793_v20  ;;  %v3311_v55 = vld [vmem:[%s3514_s26 + $0x8] sm:$0xff]   ;;  %v539_v61 = vmul.f32 0.0, %v3240_v41 }
  0x22   : > { %v1638_v39 = vadd.f32 %v1552_v11, %v1396_v17  ;;  %v1639_v40 = vadd.f32 %v1554_v12, %v1397_v19  ;;  %v1796_v43 = vsel %vm1200_vm2, %v1793_v20, %v1795_v34  ;;  %v2101_v45 = vrot.slane %v1989_v36, 1 }
  0x23   : > { %v2102_v46 = vrot.slane %v1990_v37, 1  ;;  %v2104_v47 = vrot.slane %v1991_v38, 1  ;;  %v2231_v48 = vmul.f32 %v3649_v16, %v3562_v28  ;;  %v2232_v52 = vmul.f32 %v3649_v16, %v3559_v27 }
  0x24   : > { %v1880_v49 = vadd.f32 %v1794_v42, %v1638_v39  ;;  %v1881_v51 = vadd.f32 %v1796_v43, %v1639_v40  ;;  %v2233_v53 = vmul.f32 %v3649_v16, %v3578_v33  ;;  %v540_v2 = vmul.f32 0.0, %v3241_v60 }
  0x25   : > { %3332 = vmatpush.bf16.msra.mxu2 %v3223_v10  ;;  %2601 = vmatpush.bf16.msra.mxu0 %v3223_v10  ;;  %v2103_v56 = vsel %vm957_vm1, %v2101_v45, %v2102_v46  ;;  %v2105_v57 = vsel %vm957_vm1, %v2102_v46, %v2104_v47  ;;  %v2343_v58 = vrot.slane %v2231_v48, 2  ;;  %v2344_v0 = vrot.slane %v2232_v52, 2 }
  0x26   : > { %v1947_v62 = vadd.f32 %v1915_v15, %v1880_v49  ;;  %v1948_v63 = vadd.f32 %v1916_v35, %v1881_v51  ;;  %v2346_v1 = vrot.slane %v2233_v53, 2  ;;  %v3244_v3 = vunpack.c.l.bf16 %v3243_v54 }
  0x27   : > { %v3245_v4 = vunpack.c.h.bf16 %v3243_v54  ;;  %v3248_v6 = vunpack.c.l.bf16 %v3311_v55  ;;  %v2345_v9 = vsel %vm1200_vm2, %v2343_v58, %v2344_v0  ;;  %v3249_v41 = vunpack.c.h.bf16 %v3311_v55 }
  0x28   : > { %v2189_v7 = vadd.f32 %v2103_v56, %v1947_v62  ;;  %v2190_v8 = vadd.f32 %v2105_v57, %v1948_v63  ;;  %v2347_v10 = vsel %vm1200_vm2, %v2344_v0, %v2346_v1  ;;  %v649_v11 = vrot.slane %v539_v61, 7 }
  0x29   : > { %3333 = vmatpush.bf16.msra.mxu2 %v3222_v44  ;;  %2602 = vmatpush.bf16.msra.mxu0 %v3222_v44  ;;  %v650_v12 = vrot.slane %v540_v2, 7  ;;  %v652_v14 = vrot.slane %v3244_v3, 7  ;;  %v653_v17 = vrot.slane %v3245_v4, 7  ;;  %v655_v19 = vrot.slane %v3248_v6, 7 }
  0x2a   : > { %v2431_v15 = vadd.f32 %v2345_v9, %v2189_v7  ;;  %v2432_v60 = vadd.f32 %v2347_v10, %v2190_v8  ;;  %v656_v34 = vrot.slane %v3249_v41, 7  ;;  %v757_v35 = vsel %vm648_vm0, 0.0, %v649_v11 }
  0x2b   : > { %v651_v20 = vsel %vm648_vm0, %v649_v11, %v650_v12  ;;  %v3686_v36 = vsel %vm648_vm0, 0.0, %v652_v14  ;;  %v3691_v39 = vsel %vm648_vm0, %v652_v14, %v653_v17  ;;  %v3694_v40 = vsel %vm648_vm0, 0.0, %v655_v19 }
  0x2c   : > { %v2467_v37 = vadd.f32 %v3681_v32, %v2431_v15  ;;  %v2468_v38 = vadd.f32 %v3681_v32, %v2432_v60  ;;  %v3697_v42 = vsel %vm648_vm0, %v655_v19, %v656_v34  ;;  %v775_v43 = vsel %vm648_vm0, %v650_v12, 0.0 }
  0x2d   : > { %v3701_v44 = vsel %vm648_vm0, %v653_v17, 0.0  ;;  %v3704_v45 = vsel %vm648_vm0, %v656_v34, 0.0  ;;  %v795_v48 = vmul.f32 %v3525_v13, %v757_v35  ;;  %v796_v49 = vmul.f32 %v3525_v13, %v651_v20 }
  0x2e   : > { %v2499_v46 = vmax.f32 %v2467_v37, 0.0  ;;  %v2500_v47 = vmax.f32 %v2468_v38, 0.0  ;;  %v861_v51 = vmul.f32 %v3530_v18, %v757_v35  ;;  %v862_v52 = vmul.f32 %v3530_v18, %v651_v20 }
  0x2f   : > { %v863_v53 = vmul.f32 %v3530_v18, %v775_v43  ;;  %v1104_v54 = vmul.f32 %v3539_v21, %v757_v35  ;;  %v1105_v56 = vmul.f32 %v3539_v21, %v651_v20  ;;  %v1106_v57 = vmul.f32 %v3539_v21, %v775_v43 }
  0x30   : > { %v2523_v55 = vpack.c.bf16 %v2500_v47, %v2499_v46  ;;  %v1348_v58 = vmul.f32 %v3556_v26, %v3686_v36  ;;  %v958_v61 = vrot.slane %v861_v51, 1  ;;  %v959_v62 = vrot.slane %v862_v52, 1 }
  0x31   : > { %v961_v63 = vrot.slane %v863_v53, 1  ;;  %v1201_v0 = vrot.slane %v1104_v54, 2  ;;  %v1202_v1 = vrot.slane %v1105_v56, 2  ;;  %v1204_v2 = vrot.slane %v1106_v57, 2 }
  0x32   : > { %2643 = vmatmul.bf16.vlgmr.msra.gmra.mxu2 %v2523_v55  ;;  %v1349_v3 = vmul.f32 %v3556_v26, %v3691_v39  ;;  %v1414_v4 = vmul.f32 %v3573_v31, %v3686_v36  ;;  %v960_v6 = vsel %vm957_vm1, %v958_v61, %v959_v62  ;;  %v1415_v8 = vmul.f32 %v3573_v31, %v3691_v39 }
  0x33   : > { %v962_v7 = vsel %vm957_vm1, %v959_v62, %v961_v63  ;;  %v1416_v9 = vmul.f32 %v3573_v31, %v3701_v44  ;;  %v1070_v10 = vadd.f32 %v960_v6, %v795_v48  ;;  %v1203_v11 = vsel %vm1200_vm2, %v1201_v0, %v1202_v1  ;;  %v3320_v62 = vld [vmem:[%s3514_s26 + $0x50] sm:$0xff]  }
  0x34   : > { %v1071_v41 = vadd.f32 %v962_v7, %v796_v49  ;;  %v1205_v12 = vsel %vm1200_vm2, %v1202_v1, %v1204_v2  ;;  %v1510_v14 = vrot.slane %v1414_v4, 1  ;;  %v1511_v15 = vrot.slane %v1415_v8, 1 }
  0x35   : > { %v1513_v60 = vrot.slane %v1416_v9, 1  ;;  %v1656_v17 = vmul.f32 %v3607_v50, %v3686_v36  ;;  %v1313_v19 = vadd.f32 %v1203_v11, %v1070_v10  ;;  %v1657_v34 = vmul.f32 %v3607_v50, %v3691_v39 }
  0x36   : > { %v1314_v20 = vadd.f32 %v1205_v12, %v1071_v41  ;;  %v1658_v35 = vmul.f32 %v3607_v50, %v3701_v44  ;;  %v1512_v37 = vsel %vm957_vm1, %v1510_v14, %v1511_v15  ;;  %v1899_v46 = vmul.f32 %v3623_v59, %v3694_v40 }
  0x37   : > { %v1514_v38 = vsel %vm957_vm1, %v1511_v15, %v1513_v60  ;;  %v1752_v43 = vrot.slane %v1656_v17, 2  ;;  %v1380_v47 = vadd.f32 %v1348_v58, %v1313_v19  ;;  %v1753_v49 = vrot.slane %v1657_v34, 2 }
  0x38   : > { %v1381_v48 = vadd.f32 %v1349_v3, %v1314_v20  ;;  %v1755_v51 = vrot.slane %v1658_v35, 2  ;;  %v1900_v52 = vmul.f32 %v3623_v59, %v3697_v42  ;;  %v1965_v53 = vmul.f32 %v3633_v5, %v3694_v40 }
  0x39   : > { %v1966_v54 = vmul.f32 %v3633_v5, %v3697_v42  ;;  %v1967_v55 = vmul.f32 %v3633_v5, %v3704_v45  ;;  %v1622_v56 = vadd.f32 %v1512_v37, %v1380_v47  ;;  %v1754_v61 = vsel %vm1200_vm2, %v1752_v43, %v1753_v49 }
  0x3a   : > { %v1623_v57 = vadd.f32 %v1514_v38, %v1381_v48  ;;  %v1756_v58 = vsel %vm1200_vm2, %v1753_v49, %v1755_v51  ;;  %v2061_v63 = vrot.slane %v1965_v53, 1  ;;  %v2207_v2 = vmul.f32 %v3649_v16, %v3694_v40 }
  0x3b   : > { %v2062_v0 = vrot.slane %v1966_v54, 1  ;;  %v2064_v1 = vrot.slane %v1967_v55, 1  ;;  %v1864_v3 = vadd.f32 %v1754_v61, %v1622_v56  ;;  %v2208_v6 = vmul.f32 %v3649_v16, %v3697_v42 }
  0x3c   : > { %v1865_v4 = vadd.f32 %v1756_v58, %v1623_v57  ;;  %v2209_v7 = vmul.f32 %v3649_v16, %v3704_v45  ;;  %v2303_v10 = vrot.slane %v2207_v2, 2  ;;  %v3284_v41 = vunpack.c.l.bf16 %v3320_v62 }
  0x3d   : > { %v2063_v8 = vsel %vm957_vm1, %v2061_v63, %v2062_v0  ;;  %v2065_v9 = vsel %vm957_vm1, %v2062_v0, %v2064_v1  ;;  %v1931_v11 = vadd.f32 %v1899_v46, %v1864_v3  ;;  %v2304_v14 = vrot.slane %v2208_v6, 2 }
  0x3e   : > { %v1932_v12 = vadd.f32 %v1900_v52, %v1865_v4  ;;  %v2306_v15 = vrot.slane %v2209_v7, 2  ;;  %v3285_v60 = vunpack.c.h.bf16 %v3320_v62  ;;  %v682_v17 = vrot.slane %v3284_v41, 7 }
  0x3f   : > { %v813_v19 = vmul.f32 %v3525_v13, %v3551_v25  ;;  %v814_v20 = vmul.f32 %v3525_v13, %v3545_v23  ;;  %v2173_v34 = vadd.f32 %v2063_v8, %v1931_v11  ;;  %v2305_v37 = vsel %vm1200_vm2, %v2303_v10, %v2304_v14 }
  0x40   : > { %v2174_v35 = vadd.f32 %v2065_v9, %v1932_v12  ;;  %v2307_v38 = vsel %vm1200_vm2, %v2304_v14, %v2306_v15  ;;  %v683_v43 = vrot.slane %v3285_v60, 7  ;;  %v3764_v46 = vsel %vm648_vm0, 0.0, %v682_v17 }
  0x41   : > { %v888_v47 = vmul.f32 %v3530_v18, %v3551_v25  ;;  %v889_v48 = vmul.f32 %v3530_v18, %v3545_v23  ;;  %v2415_v49 = vadd.f32 %v2305_v37, %v2173_v34  ;;  %v890_v52 = vmul.f32 %v3530_v18, %v3568_v30 }
  0x42   : > { %v2416_v51 = vadd.f32 %v2307_v38, %v2174_v35  ;;  %v1131_v53 = vmul.f32 %v3539_v21, %v3551_v25  ;;  %v3775_v54 = vsel %vm648_vm0, %v682_v17, %v683_v43  ;;  %v3778_v55 = vsel %vm648_vm0, %v683_v43, 0.0 }
  0x43   : > { %v1003_v56 = vrot.slane %v888_v47, 1  ;;  %v1004_v57 = vrot.slane %v889_v48, 1  ;;  %v2451_v61 = vadd.f32 %v3681_v32, %v2415_v49  ;;  %v1006_v62 = vrot.slane %v890_v52, 1 }
  0x44   : > { %v2452_v58 = vadd.f32 %v3681_v32, %v2416_v51  ;;  %v1132_v63 = vmul.f32 %v3539_v21, %v3545_v23  ;;  %v1133_v1 = vmul.f32 %v3539_v21, %v3568_v30  ;;  %v1246_v2 = vrot.slane %v1131_v53, 2 }
  0x45   : > { %v1005_v0 = vsel %vm957_vm1, %v1003_v56, %v1004_v57  ;;  %v1366_v3 = vmul.f32 %v3556_v26, %v3562_v28  ;;  %v2483_v4 = vmax.f32 %v2451_v61, 0.0  ;;  %v1007_v7 = vsel %vm957_vm1, %v1004_v57, %v1006_v62 }
  0x46   : > { %v2484_v6 = vmax.f32 %v2452_v58, 0.0  ;;  %v1088_v8 = vadd.f32 %v1005_v0, %v813_v19  ;;  %v1089_v9 = vadd.f32 %v1007_v7, %v814_v20  ;;  %v1247_v10 = vrot.slane %v1132_v63, 2 }
  0x47   : > { %v1249_v41 = vrot.slane %v1133_v1, 2  ;;  %v1367_v11 = vmul.f32 %v3556_v26, %v3559_v27  ;;  %v1441_v14 = vmul.f32 %v3573_v31, %v3562_v28  ;;  %v1442_v15 = vmul.f32 %v3573_v31, %v3559_v27 }
  0x48   : > { %v2515_v12 = vpack.c.bf16 %v2484_v6, %v2483_v4  ;;  %v1443_v60 = vmul.f32 %v3573_v31, %v3578_v33  ;;  %v1248_v17 = vsel %vm1200_vm2, %v1246_v2, %v1247_v10  ;;  %v1683_v20 = vmul.f32 %v3607_v50, %v3562_v28 }
  0x49   : > { %v1250_v19 = vsel %vm1200_vm2, %v1247_v10, %v1249_v41  ;;  %v1684_v34 = vmul.f32 %v3607_v50, %v3559_v27  ;;  %v1331_v35 = vadd.f32 %v1248_v17, %v1088_v8  ;;  %v1555_v38 = vrot.slane %v1441_v14, 1 }
  0x4a   : > { %2603 = vmatmul.bf16.vlgmr.msra.gmra.mxu0 %v2515_v12  ;;  %v1332_v37 = vadd.f32 %v1250_v19, %v1089_v9  ;;  %v1556_v43 = vrot.slane %v1442_v15, 1  ;;  %v1558_v47 = vrot.slane %v1443_v60, 1  ;;  %v1685_v48 = vmul.f32 %v3607_v50, %v3578_v33  ;;  %v3312_v9 = vld [vmem:[%s3514_s26 + $0x10] sm:$0xff]  }
  0x4b   : > { %v1797_v49 = vrot.slane %v1683_v20, 2  ;;  %v1798_v51 = vrot.slane %v1684_v34, 2  ;;  %v1398_v52 = vadd.f32 %v1366_v3, %v1331_v35  ;;  %v1917_v57 = vmul.f32 %v3623_v59, %v3764_v46 }
  0x4c   : > { %v1399_v53 = vadd.f32 %v1367_v11, %v1332_v37  ;;  %v1557_v56 = vsel %vm957_vm1, %v1555_v38, %v1556_v43  ;;  %v1559_v61 = vsel %vm957_vm1, %v1556_v43, %v1558_v47  ;;  %v1800_v62 = vrot.slane %v1685_v48, 2 }
  0x4d   : > { %v1799_v58 = vsel %vm1200_vm2, %v1797_v49, %v1798_v51  ;;  %v1918_v63 = vmul.f32 %v3623_v59, %v3775_v54  ;;  %v1640_v0 = vadd.f32 %v1557_v56, %v1398_v52  ;;  %v1992_v2 = vmul.f32 %v3633_v5, %v3764_v46 }
  0x4e   : > { %v1641_v1 = vadd.f32 %v1559_v61, %v1399_v53  ;;  %v1993_v3 = vmul.f32 %v3633_v5, %v3775_v54  ;;  %v1801_v4 = vsel %vm1200_vm2, %v1798_v51, %v1800_v62  ;;  %v1994_v6 = vmul.f32 %v3633_v5, %v3778_v55 }
  0x4f   : > { %v2234_v7 = vmul.f32 %v3649_v16, %v3764_v46  ;;  %v2235_v8 = vmul.f32 %v3649_v16, %v3775_v54  ;;  %v1882_v10 = vadd.f32 %v1799_v58, %v1640_v0  ;;  %v2106_v11 = vrot.slane %v1992_v2, 1 }
  0x50   : > { %v1883_v41 = vadd.f32 %v1801_v4, %v1641_v1  ;;  %v2107_v12 = vrot.slane %v1993_v3, 1  ;;  %v2109_v14 = vrot.slane %v1994_v6, 1  ;;  %v2236_v15 = vmul.f32 %v3649_v16, %v3778_v55 }
  0x51   : > { %v2348_v60 = vrot.slane %v2234_v7, 2  ;;  %v2349_v17 = vrot.slane %v2235_v8, 2  ;;  %v1949_v19 = vadd.f32 %v1917_v57, %v1882_v10  ;;  %v3252_v35 = vunpack.c.l.bf16 %v3312_v9 }
  0x52   : > { %v1950_v20 = vadd.f32 %v1918_v63, %v1883_v41  ;;  %v2108_v34 = vsel %vm957_vm1, %v2106_v11, %v2107_v12  ;;  %v2110_v37 = vsel %vm957_vm1, %v2107_v12, %v2109_v14  ;;  %v2351_v43 = vrot.slane %v2236_v15, 2 }
  0x53   : > { %v2350_v38 = vsel %vm1200_vm2, %v2348_v60, %v2349_v17  ;;  %v3253_v47 = vunpack.c.h.bf16 %v3312_v9  ;;  %v2191_v48 = vadd.f32 %v2108_v34, %v1949_v19  ;;  %v658_v51 = vrot.slane %v3252_v35, 7 }
  0x54   : > { %v2192_v49 = vadd.f32 %v2110_v37, %v1950_v20  ;;  %v797_v52 = vmul.f32 %v3525_v13, %v3686_v36  ;;  %v2352_v53 = vsel %vm1200_vm2, %v2349_v17, %v2351_v43  ;;  %v798_v57 = vmul.f32 %v3525_v13, %v3691_v39 }
  0x55   : > { %v659_v56 = vrot.slane %v3253_v47, 7  ;;  %v864_v61 = vmul.f32 %v3530_v18, %v3686_v36  ;;  %v2433_v58 = vadd.f32 %v2350_v38, %v2191_v48  ;;  %v3838_v63 = vsel %vm648_vm0, 0.0, %v658_v51 }
  0x56   : > { %v2434_v62 = vadd.f32 %v2352_v53, %v2192_v49  ;;  %v865_v0 = vmul.f32 %v3530_v18, %v3691_v39  ;;  %v866_v3 = vmul.f32 %v3530_v18, %v3701_v44  ;;  %v1107_v9 = vmul.f32 %v3539_v21, %v3686_v36 }
  0x57   : > { %v3843_v1 = vsel %vm648_vm0, %v658_v51, %v659_v56  ;;  %v3846_v2 = vsel %vm648_vm0, %v659_v56, 0.0  ;;  %v963_v4 = vrot.slane %v864_v61, 1  ;;  %v2469_v6 = vadd.f32 %v3681_v32, %v2433_v58 }
  0x58   : > { %v2470_v7 = vadd.f32 %v3681_v32, %v2434_v62  ;;  %v964_v8 = vrot.slane %v865_v0, 1  ;;  %v966_v10 = vrot.slane %v866_v3, 1  ;;  %v1108_v41 = vmul.f32 %v3539_v21, %v3691_v39 }
  0x59   : > { %v1109_v11 = vmul.f32 %v3539_v21, %v3701_v44  ;;  %v1350_v12 = vmul.f32 %v3556_v26, %v3694_v40  ;;  %v2501_v14 = vmax.f32 %v2469_v6, 0.0  ;;  %v1206_v17 = vrot.slane %v1107_v9, 2 }
  0x5a   : > { %v2502_v15 = vmax.f32 %v2470_v7, 0.0  ;;  %v965_v60 = vsel %vm957_vm1, %v963_v4, %v964_v8  ;;  %v967_v19 = vsel %vm957_vm1, %v964_v8, %v966_v10  ;;  %v1207_v34 = vrot.slane %v1108_v41, 2 }
  0x5b   : > { %v1072_v20 = vadd.f32 %v965_v60, %v797_v52  ;;  %v1209_v36 = vrot.slane %v1109_v11, 2  ;;  %v1073_v37 = vadd.f32 %v967_v19, %v798_v57  ;;  %v1351_v39 = vmul.f32 %v3556_v26, %v3697_v42  ;;  %v3321_v19 = vld [vmem:[%s3514_s26 + $0x58] sm:$0xff]  }
  0x5c   : > { %v2524_v35 = vpack.c.bf16 %v2502_v15, %v2501_v14  ;;  %v1417_v44 = vmul.f32 %v3573_v31, %v3694_v40  ;;  %v1208_v38 = vsel %vm1200_vm2, %v1206_v17, %v1207_v34  ;;  %v1418_v47 = vmul.f32 %v3573_v31, %v3697_v42 }
  0x5d   : > { %v1210_v43 = vsel %vm1200_vm2, %v1207_v34, %v1209_v36  ;;  %v1419_v48 = vmul.f32 %v3573_v31, %v3704_v45  ;;  %v1315_v49 = vadd.f32 %v1208_v38, %v1072_v20  ;;  %v1659_v53 = vmul.f32 %v3607_v50, %v3694_v40 }
  0x5e   : > { %2648 = vmatmul.bf16.gmra.mxu2 %v2524_v35  ;;  %v1316_v51 = vadd.f32 %v1210_v43, %v1073_v37  ;;  %v1515_v52 = vrot.slane %v1417_v44, 1  ;;  %v1516_v56 = vrot.slane %v1418_v47, 1  ;;  %v1660_v61 = vmul.f32 %v3607_v50, %v3697_v42 }
  0x5f   : > { %v1518_v57 = vrot.slane %v1419_v48, 1  ;;  %v1661_v58 = vmul.f32 %v3607_v50, %v3704_v45  ;;  %v1382_v62 = vadd.f32 %v1350_v12, %v1315_v49  ;;  %v1757_v3 = vrot.slane %v1659_v53, 2 }
  0x60   : > { %v1383_v0 = vadd.f32 %v1351_v39, %v1316_v51  ;;  %v1901_v4 = vmul.f32 %v3623_v59, %v3838_v63  ;;  %v1517_v6 = vsel %vm957_vm1, %v1515_v52, %v1516_v56  ;;  %v1758_v8 = vrot.slane %v1660_v61, 2 }
  0x61   : > { %v1519_v7 = vsel %vm957_vm1, %v1516_v56, %v1518_v57  ;;  %v1760_v9 = vrot.slane %v1661_v58, 2  ;;  %v1624_v10 = vadd.f32 %v1517_v6, %v1382_v62  ;;  %v1902_v11 = vmul.f32 %v3623_v59, %v3843_v1 }
  0x62   : > { %v1625_v41 = vadd.f32 %v1519_v7, %v1383_v0  ;;  %v1968_v12 = vmul.f32 %v3633_v5, %v3838_v63  ;;  %v1759_v14 = vsel %vm1200_vm2, %v1757_v3, %v1758_v8  ;;  %v1969_v60 = vmul.f32 %v3633_v5, %v3843_v1 }
  0x63   : > { %v1761_v15 = vsel %vm1200_vm2, %v1758_v8, %v1760_v9  ;;  %v1970_v17 = vmul.f32 %v3633_v5, %v3846_v2  ;;  %v1866_v20 = vadd.f32 %v1759_v14, %v1624_v10  ;;  %v2210_v35 = vmul.f32 %v3649_v16, %v3838_v63 }
  0x64   : > { %v1867_v34 = vadd.f32 %v1761_v15, %v1625_v41  ;;  %v2066_v36 = vrot.slane %v1968_v12, 1  ;;  %v2067_v37 = vrot.slane %v1969_v60, 1  ;;  %v2211_v44 = vmul.f32 %v3649_v16, %v3843_v1 }
  0x65   : > { %v2069_v39 = vrot.slane %v1970_v17, 1  ;;  %v2212_v38 = vmul.f32 %v3649_v16, %v3846_v2  ;;  %v1933_v43 = vadd.f32 %v1901_v4, %v1866_v20  ;;  %v2308_v48 = vrot.slane %v2210_v35, 2 }
  0x66   : > { %v1934_v47 = vadd.f32 %v1902_v11, %v1867_v34  ;;  %v3288_v49 = vunpack.c.l.bf16 %v3321_v19  ;;  %v2068_v51 = vsel %vm957_vm1, %v2066_v36, %v2067_v37  ;;  %v2309_v53 = vrot.slane %v2211_v44, 2 }
  0x67   : > { %v2070_v52 = vsel %vm957_vm1, %v2067_v37, %v2069_v39  ;;  %v2311_v56 = vrot.slane %v2212_v38, 2  ;;  %v2175_v57 = vadd.f32 %v2068_v51, %v1933_v43  ;;  %v3289_v58 = vunpack.c.h.bf16 %v3321_v19 }
  0x68   : > { %v2176_v61 = vadd.f32 %v2070_v52, %v1934_v47  ;;  %v685_v62 = vrot.slane %v3288_v49, 7  ;;  %v2310_v0 = vsel %vm1200_vm2, %v2308_v48, %v2309_v53  ;;  %v815_v4 = vmul.f32 %v3525_v13, %v3562_v28 }
  0x69   : > { %v2312_v3 = vsel %vm1200_vm2, %v2309_v53, %v2311_v56  ;;  %v816_v6 = vmul.f32 %v3525_v13, %v3559_v27  ;;  %v2417_v7 = vadd.f32 %v2310_v0, %v2175_v57  ;;  %v686_v9 = vrot.slane %v3289_v58, 7 }
  0x6a   : > { %v2418_v8 = vadd.f32 %v2312_v3, %v2176_v61  ;;  %v3908_v10 = vsel %vm648_vm0, 0.0, %v685_v62  ;;  %v891_v41 = vmul.f32 %v3530_v18, %v3562_v28  ;;  %v892_v11 = vmul.f32 %v3530_v18, %v3559_v27 }
  0x6b   : > { %v893_v12 = vmul.f32 %v3530_v18, %v3578_v33  ;;  %v1134_v14 = vmul.f32 %v3539_v21, %v3562_v28  ;;  %v2453_v15 = vadd.f32 %v3681_v32, %v2417_v7  ;;  %v3921_v17 = vsel %vm648_vm0, %v685_v62, %v686_v9 }
  0x6c   : > { %v2454_v60 = vadd.f32 %v3681_v32, %v2418_v8  ;;  %v3924_v19 = vsel %vm648_vm0, %v686_v9, 0.0  ;;  %v1008_v20 = vrot.slane %v891_v41, 1  ;;  %v1009_v34 = vrot.slane %v892_v11, 1 }
  0x6d   : > { %v1011_v36 = vrot.slane %v893_v12, 1  ;;  %v1135_v35 = vmul.f32 %v3539_v21, %v3559_v27  ;;  %v2485_v37 = vmax.f32 %v2453_v15, 0.0  ;;  %v1136_v28 = vmul.f32 %v3539_v21, %v3578_v33 }
  0x6e   : > { %v2486_v39 = vmax.f32 %v2454_v60, 0.0  ;;  %v1251_v44 = vrot.slane %v1134_v14, 2  ;;  %v1010_v38 = vsel %vm957_vm1, %v1008_v20, %v1009_v34  ;;  %v1368_v48 = vmul.f32 %v3556_v26, %v3764_v46 }
  0x6f   : > { %v1012_v43 = vsel %vm957_vm1, %v1009_v34, %v1011_v36  ;;  %v1252_v47 = vrot.slane %v1135_v35, 2  ;;  %v1090_v51 = vadd.f32 %v1010_v38, %v815_v4  ;;  %v1254_v53 = vrot.slane %v1136_v28, 2 }
  0x70   : > { %v2516_v49 = vpack.c.bf16 %v2486_v39, %v2485_v37  ;;  %v1091_v52 = vadd.f32 %v1012_v43, %v816_v6  ;;  %v1369_v56 = vmul.f32 %v3556_v26, %v3775_v54  ;;  %v1444_v33 = vmul.f32 %v3573_v31, %v3764_v46 }
  0x71   : > { %v1253_v27 = vsel %vm1200_vm2, %v1251_v44, %v1252_v47  ;;  %v1445_v57 = vmul.f32 %v3573_v31, %v3775_v54  ;;  %v1255_v61 = vsel %vm1200_vm2, %v1252_v47, %v1254_v53  ;;  %v1446_v62 = vmul.f32 %v3573_v31, %v3778_v55 }
  0x72   : > { %2608 = vmatmul.bf16.gmra.mxu0 %v2516_v49  ;;  %v1333_v58 = vadd.f32 %v1253_v27, %v1090_v51  ;;  %v1686_v0 = vmul.f32 %v3607_v50, %v3764_v46  ;;  %v1334_v3 = vadd.f32 %v1255_v61, %v1091_v52  ;;  %v1560_v4 = vrot.slane %v1444_v33, 1  ;;  %v3313_v49 = vld [vmem:[%s3514_s26 + $0x18] sm:$0xff]  }
  0x73   : > { %v1561_v6 = vrot.slane %v1445_v57, 1  ;;  %v1687_v7 = vmul.f32 %v3607_v50, %v3775_v54  ;;  %v1563_v9 = vrot.slane %v1446_v62, 1  ;;  %v1688_v41 = vmul.f32 %v3607_v50, %v3778_v55 }
  0x74   : > { %v1400_v8 = vadd.f32 %v1368_v48, %v1333_v58  ;;  %v1802_v11 = vrot.slane %v1686_v0, 2  ;;  %v1401_v12 = vadd.f32 %v1369_v56, %v1334_v3  ;;  %v1919_v60 = vmul.f32 %v3623_v59, %v3908_v10 }
  0x75   : > { %v1562_v14 = vsel %vm957_vm1, %v1560_v4, %v1561_v6  ;;  %v1803_v15 = vrot.slane %v1687_v7, 2  ;;  %v1564_v20 = vsel %vm957_vm1, %v1561_v6, %v1563_v9  ;;  %v1805_v36 = vrot.slane %v1688_v41, 2 }
  0x76   : > { %v1642_v34 = vadd.f32 %v1562_v14, %v1400_v8  ;;  %v1920_v35 = vmul.f32 %v3623_v59, %v3921_v17  ;;  %v1643_v37 = vadd.f32 %v1564_v20, %v1401_v12  ;;  %v1995_v28 = vmul.f32 %v3633_v5, %v3908_v10 }
  0x77   : > { %v1804_v39 = vsel %vm1200_vm2, %v1802_v11, %v1803_v15  ;;  %v1996_v44 = vmul.f32 %v3633_v5, %v3921_v17  ;;  %v1806_v38 = vsel %vm1200_vm2, %v1803_v15, %v1805_v36  ;;  %v1997_v47 = vmul.f32 %v3633_v5, %v3924_v19 }
  0x78   : > { %v1884_v43 = vadd.f32 %v1804_v39, %v1642_v34  ;;  %v2237_v48 = vmul.f32 %v3649_v16, %v3908_v10  ;;  %v1885_v51 = vadd.f32 %v1806_v38, %v1643_v37  ;;  %v2111_v52 = vrot.slane %v1995_v28, 1 }
  0x79   : > { %v2112_v53 = vrot.slane %v1996_v44, 1  ;;  %v2238_v27 = vmul.f32 %v3649_v16, %v3921_v17  ;;  %v2114_v33 = vrot.slane %v1997_v47, 1  ;;  %v2239_v57 = vmul.f32 %v3649_v16, %v3924_v19 }
  0x7a   : > { %v1951_v56 = vadd.f32 %v1919_v60, %v1884_v43  ;;  %v2353_v61 = vrot.slane %v2237_v48, 2  ;;  %v1952_v58 = vadd.f32 %v1920_v35, %v1885_v51  ;;  %v3256_v3 = vunpack.c.l.bf16 %v3313_v49 }
  0x7b   : > { %v2113_v62 = vsel %vm957_vm1, %v2111_v52, %v2112_v53  ;;  %v2354_v0 = vrot.slane %v2238_v27, 2  ;;  %v2115_v4 = vsel %vm957_vm1, %v2112_v53, %v2114_v33  ;;  %v2356_v7 = vrot.slane %v2239_v57, 2 }
  0x7c   : > { %v2193_v6 = vadd.f32 %v2113_v62, %v1951_v56  ;;  %v3257_v8 = vunpack.c.h.bf16 %v3313_v49  ;;  %v2194_v9 = vadd.f32 %v2115_v4, %v1952_v58  ;;  %v661_v11 = vrot.slane %v3256_v3, 7 }
  0x7d   : > { %v2355_v41 = vsel %vm1200_vm2, %v2353_v61, %v2354_v0  ;;  %v799_v12 = vmul.f32 %v3525_v13, %v3694_v40  ;;  %v2357_v14 = vsel %vm1200_vm2, %v2354_v0, %v2356_v7  ;;  %v800_v20 = vmul.f32 %v3525_v13, %v3697_v42 }
  0x7e   : > { %v2435_v15 = vadd.f32 %v2355_v41, %v2193_v6  ;;  %v662_v60 = vrot.slane %v3257_v8, 7  ;;  %v2436_v34 = vadd.f32 %v2357_v14, %v2194_v9  ;;  %v3980_v36 = vsel %vm648_vm0, 0.0, %v661_v11 }
  0x7f   : > { %v867_v35 = vmul.f32 %v3530_v18, %v3694_v40  ;;  %v868_v37 = vmul.f32 %v3530_v18, %v3697_v42  ;;  %v869_v13 = vmul.f32 %v3530_v18, %v3704_v45  ;;  %v1110_v48 = vmul.f32 %v3539_v21, %v3694_v40 }
  0x80   : > { %v2471_v39 = vadd.f32 %v3681_v32, %v2435_v15  ;;  %v3988_v28 = vsel %vm648_vm0, %v661_v11, %v662_v60  ;;  %v3991_v44 = vsel %vm648_vm0, %v662_v60, 0.0  ;;  %v2472_v38 = vadd.f32 %v3681_v32, %v2436_v34 }
  0x81   : > { %v968_v43 = vrot.slane %v867_v35, 1  ;;  %v969_v47 = vrot.slane %v868_v37, 1  ;;  %v971_v51 = vrot.slane %v869_v13, 1  ;;  %v1111_v52 = vmul.f32 %v3539_v21, %v3697_v42 }
  0x82   : > { %v2503_v49 = vmax.f32 %v2471_v39, 0.0  ;;  %v1112_v53 = vmul.f32 %v3539_v21, %v3704_v45  ;;  %v2504_v27 = vmax.f32 %v2472_v38, 0.0  ;;  %v1211_v33 = vrot.slane %v1110_v48, 2 }
  0x83   : > { %v970_v56 = vsel %vm957_vm1, %v968_v43, %v969_v47  ;;  %v1352_v18 = vmul.f32 %v3556_v26, %v3838_v63  ;;  %v972_v57 = vsel %vm957_vm1, %v969_v47, %v971_v51  ;;  %v1212_v58 = vrot.slane %v1111_v52, 2  ;;  %v3322_v52 = vld [vmem:[%s3514_s26 + $0x60] sm:$0xff]  }
  0x84   : > { %v1074_v61 = vadd.f32 %v970_v56, %v799_v12  ;;  %v1214_v40 = vrot.slane %v1112_v53, 2  ;;  %v2525_v62 = vpack.c.bf16 %v2504_v27, %v2503_v49  ;;  %v1075_v0 = vadd.f32 %v972_v57, %v800_v20 }
  0x85   : > { %v1353_v42 = vmul.f32 %v3556_v26, %v3843_v1  ;;  %v1420_v21 = vmul.f32 %v3573_v31, %v3838_v63  ;;  %v1213_v45 = vsel %vm1200_vm2, %v1211_v33, %v1212_v58  ;;  %v1421_v4 = vmul.f32 %v3573_v31, %v3843_v1 }
  0x86   : > { %v1215_v3 = vsel %vm1200_vm2, %v1212_v58, %v1214_v40  ;;  %v1422_v6 = vmul.f32 %v3573_v31, %v3846_v2  ;;  %2653 = vmatmul.bf16.gmra.mxu2 %v2525_v62  ;;  %v1317_v7 = vadd.f32 %v1213_v45, %v1074_v61  ;;  %v1662_v26 = vmul.f32 %v3607_v50, %v3838_v63 }
  0x87   : > { %v1318_v8 = vadd.f32 %v1215_v3, %v1075_v0  ;;  %v1520_v9 = vrot.slane %v1420_v21, 1  ;;  %v1521_v41 = vrot.slane %v1421_v4, 1  ;;  %v1663_v12 = vmul.f32 %v3607_v50, %v3843_v1 }
  0x88   : > { %v1523_v11 = vrot.slane %v1422_v6, 1  ;;  %v1664_v14 = vmul.f32 %v3607_v50, %v3846_v2  ;;  %v1384_v15 = vadd.f32 %v1352_v18, %v1317_v7  ;;  %v1762_v20 = vrot.slane %v1662_v26, 2 }
  0x89   : > { %v1385_v60 = vadd.f32 %v1353_v42, %v1318_v8  ;;  %v1903_v31 = vmul.f32 %v3623_v59, %v3980_v36  ;;  %v1522_v34 = vsel %vm957_vm1, %v1520_v9, %v1521_v41  ;;  %v1763_v37 = vrot.slane %v1663_v12, 2 }
  0x8a   : > { %v1524_v35 = vsel %vm957_vm1, %v1521_v41, %v1523_v11  ;;  %v1765_v39 = vrot.slane %v1664_v14, 2  ;;  %v1626_v13 = vadd.f32 %v1522_v34, %v1384_v15  ;;  %v1904_v43 = vmul.f32 %v3623_v59, %v3988_v28 }
  0x8b   : > { %v1627_v38 = vadd.f32 %v1524_v35, %v1385_v60  ;;  %v1971_v50 = vmul.f32 %v3633_v5, %v3980_v36  ;;  %v1764_v47 = vsel %vm1200_vm2, %v1762_v20, %v1763_v37  ;;  %v1972_v49 = vmul.f32 %v3633_v5, %v3988_v28  ;;  %v4062_v60 = vld [vmem:[%s5066_s3 + $0x1] ss:$0 sm:$0xff]  ;;  %v4073_v35 = vld [vmem:[%s5066_s3 + $0x2] ss:$0 sm:$0xff] }
  0x8c   : > { %v1766_v48 = vsel %vm1200_vm2, %v1763_v37, %v1765_v39  ;;  %v1973_v51 = vmul.f32 %v3633_v5, %v3991_v44  ;;  %v1868_v53 = vadd.f32 %v1764_v47, %v1626_v13  ;;  %v2213_v59 = vmul.f32 %v3649_v16, %v3980_v36 }
  0x8d   : > { %v1869_v27 = vadd.f32 %v1766_v48, %v1627_v38  ;;  %v2071_v56 = vrot.slane %v1971_v50, 1  ;;  %v2072_v33 = vrot.slane %v1972_v49, 1  ;;  %v2214_v57 = vmul.f32 %v3649_v16, %v3988_v28 }
  0x8e   : > { %v2074_v18 = vrot.slane %v1973_v51, 1  ;;  %v2215_v61 = vmul.f32 %v3649_v16, %v3991_v44  ;;  %v1935_v58 = vadd.f32 %v1903_v31, %v1868_v53  ;;  %v2313_v62 = vrot.slane %v2213_v59, 2  ;;  %v4050_v16 = vld [vmem:[%s5066_s3] ss:$0 sm:$0xff]  ;;  %v4094_v59 = vld [vmem:[%s5066_s3 + $0x4] ss:$0 sm:$0xff] }
  0x8f   : > { %v1936_v40 = vadd.f32 %v1904_v43, %v1869_v27  ;;  %v3292_v0 = vunpack.c.l.bf16 %v3322_v52  ;;  %v2073_v5 = vsel %vm957_vm1, %v2071_v56, %v2072_v33  ;;  %v2314_v21 = vrot.slane %v2214_v57, 2 }
  0x90   : > { %v2075_v42 = vsel %vm957_vm1, %v2072_v33, %v2074_v18  ;;  %v2316_v45 = vrot.slane %v2215_v61, 2  ;;  %v2177_v3 = vadd.f32 %v2073_v5, %v1935_v58  ;;  %v3293_v6 = vunpack.c.h.bf16 %v3322_v52 }
  0x91   : > { %v2178_v4 = vadd.f32 %v2075_v42, %v1936_v40  ;;  %v688_v7 = vrot.slane %v3292_v0, 7  ;;  %v2315_v8 = vsel %vm1200_vm2, %v2313_v62, %v2314_v21  ;;  %v817_v26 = vmul.f32 %v4050_v16, %v3764_v46  ;;  %v4104_v40 = vld [vmem:[%s5066_s3 + $0x5] ss:$0 sm:$0xff] }
  0x92   : > { %v2317_v9 = vsel %vm1200_vm2, %v2314_v21, %v2316_v45  ;;  %v818_v41 = vmul.f32 %v4050_v16, %v3775_v54  ;;  %v2419_v11 = vadd.f32 %v2315_v8, %v2177_v3  ;;  %v689_v14 = vrot.slane %v3293_v6, 7  ;;  %v4116_v45 = vld [vmem:[%s5066_s3 + $0x6] ss:$0 sm:$0xff] }
  0x93   : > { %v2420_v12 = vadd.f32 %v2317_v9, %v2178_v4  ;;  %v4057_v15 = vsel %vm648_vm0, 0.0, %v688_v7  ;;  %v894_v20 = vmul.f32 %v4062_v60, %v3764_v46  ;;  %v895_v31 = vmul.f32 %v4062_v60, %v3775_v54 }
  0x94   : > { %v896_v34 = vmul.f32 %v4062_v60, %v3778_v55  ;;  %v1137_v37 = vmul.f32 %v4073_v35, %v3764_v46  ;;  %v2455_v39 = vadd.f32 %v3681_v32, %v2419_v11  ;;  %v4080_v38 = vsel %vm648_vm0, %v688_v7, %v689_v14 }
  0x95   : > { %v2456_v13 = vadd.f32 %v3681_v32, %v2420_v12  ;;  %v4083_v43 = vsel %vm648_vm0, %v689_v14, 0.0  ;;  %v1013_v50 = vrot.slane %v894_v20, 1  ;;  %v1014_v47 = vrot.slane %v895_v31, 1  ;;  %v4128_v31 = vld [vmem:[%s5066_s3 + $0x8] ss:$0 sm:$0xff] }
  0x96   : > { %v1016_v48 = vrot.slane %v896_v34, 1  ;;  %v1138_v49 = vmul.f32 %v4073_v35, %v3775_v54  ;;  %v2487_v51 = vmax.f32 %v2455_v39, 0.0  ;;  %v1139_v46 = vmul.f32 %v4073_v35, %v3778_v55 }
  0x97   : > { %v2488_v52 = vmax.f32 %v2456_v13, 0.0  ;;  %v1256_v53 = vrot.slane %v1137_v37, 2  ;;  %v1015_v32 = vsel %vm957_vm1, %v1013_v50, %v1014_v47  ;;  %v1370_v33 = vmul.f32 %v4094_v59, %v3908_v10 }
  0x98   : > { %v1017_v27 = vsel %vm957_vm1, %v1014_v47, %v1016_v48  ;;  %v1257_v56 = vrot.slane %v1138_v49, 2  ;;  %v1092_v18 = vadd.f32 %v1015_v32, %v817_v26  ;;  %v1259_v61 = vrot.slane %v1139_v46, 2  ;;  %v4139_v49 = vld [vmem:[%s5066_s3 + $0x9] ss:$0 sm:$0xff] }
  0x99   : > { %v2517_v54 = vpack.c.bf16 %v2488_v52, %v2487_v51  ;;  %v1093_v57 = vadd.f32 %v1017_v27, %v818_v41  ;;  %v1371_v58 = vmul.f32 %v4094_v59, %v3921_v17  ;;  %v1447_v62 = vmul.f32 %v4104_v40, %v3908_v10  ;;  %v4151_v27 = vld [vmem:[%s5066_s3 + $0xa] ss:$0 sm:$0xff] }
  0x9a   : > { %v1258_v55 = vsel %vm1200_vm2, %v1256_v53, %v1257_v56  ;;  %v1448_v0 = vmul.f32 %v4104_v40, %v3921_v17  ;;  %v1260_v5 = vsel %vm1200_vm2, %v1257_v56, %v1259_v61  ;;  %v1449_v21 = vmul.f32 %v4104_v40, %v3924_v19 }
  0x9b   : > { %2613 = vmatmul.bf16.gmra.mxu0 %v2517_v54  ;;  %v1335_v42 = vadd.f32 %v1258_v55, %v1092_v18  ;;  %v1689_v3 = vmul.f32 %v4116_v45, %v3908_v10  ;;  %v1336_v4 = vadd.f32 %v1260_v5, %v1093_v57  ;;  %v1565_v6 = vrot.slane %v1447_v62, 1 }
  0x9c   : > { %v1566_v7 = vrot.slane %v1448_v0, 1  ;;  %v1690_v8 = vmul.f32 %v4116_v45, %v3921_v17  ;;  %v1568_v26 = vrot.slane %v1449_v21, 1  ;;  %v1691_v41 = vmul.f32 %v4116_v45, %v3924_v19 }
  0x9d   : > { %v1402_v9 = vadd.f32 %v1370_v33, %v1335_v42  ;;  %v1807_v11 = vrot.slane %v1689_v3, 2  ;;  %v1403_v12 = vadd.f32 %v1371_v58, %v1336_v4  ;;  %v1921_v34 = vmul.f32 %v4128_v31, %v4057_v15  ;;  %v3314_v33 = vld [vmem:[%s3514_s26 + $0x20] sm:$0xff]  }
  0x9e   : > { %v1567_v14 = vsel %vm957_vm1, %v1565_v6, %v1566_v7  ;;  %v1808_v20 = vrot.slane %v1690_v8, 2  ;;  %v1569_v37 = vsel %vm957_vm1, %v1566_v7, %v1568_v26  ;;  %v1810_v13 = vrot.slane %v1691_v41, 2 }
  0x9f   : > { %v1644_v39 = vadd.f32 %v1567_v14, %v1402_v9  ;;  %v1922_v50 = vmul.f32 %v4128_v31, %v4080_v38  ;;  %v1645_v47 = vadd.f32 %v1569_v37, %v1403_v12  ;;  %v1998_v51 = vmul.f32 %v4139_v49, %v4057_v15 }
  0xa0   : > { %v1809_v48 = vsel %vm1200_vm2, %v1807_v11, %v1808_v20  ;;  %v1999_v52 = vmul.f32 %v4139_v49, %v4080_v38  ;;  %v1811_v46 = vsel %vm1200_vm2, %v1808_v20, %v1810_v13  ;;  %v2000_v32 = vmul.f32 %v4139_v49, %v4083_v43 }
  0xa1   : > { %v1886_v53 = vadd.f32 %v1809_v48, %v1644_v39  ;;  %v2240_v56 = vmul.f32 %v4151_v27, %v4057_v15  ;;  %v1887_v54 = vadd.f32 %v1811_v46, %v1645_v47  ;;  %v2116_v18 = vrot.slane %v1998_v51, 1  ;;  %v4178_v47 = vld [vmem:[%s5067_s4] ss:$0 sm:$0xff] }
  0xa2   : > { %v2117_v57 = vrot.slane %v1999_v52, 1  ;;  %v2241_v61 = vmul.f32 %v4151_v27, %v4080_v38  ;;  %v2119_v58 = vrot.slane %v2000_v32, 1  ;;  %v2242_v62 = vmul.f32 %v4151_v27, %v4083_v43 }
  0xa3   : > { %v1953_v55 = vadd.f32 %v1921_v34, %v1886_v53  ;;  %v2358_v0 = vrot.slane %v2240_v56, 2  ;;  %v1954_v5 = vadd.f32 %v1922_v50, %v1887_v54  ;;  %v3260_v3 = vunpack.c.l.bf16 %v3314_v33 }
  0xa4   : > { %v2118_v42 = vsel %vm957_vm1, %v2116_v18, %v2117_v57  ;;  %v2359_v21 = vrot.slane %v2241_v61, 2  ;;  %v2120_v4 = vsel %vm957_vm1, %v2117_v57, %v2119_v58  ;;  %v2361_v7 = vrot.slane %v2242_v62, 2 }
  0xa5   : > { %v2195_v6 = vadd.f32 %v2118_v42, %v1953_v55  ;;  %v3261_v8 = vunpack.c.h.bf16 %v3314_v33  ;;  %v2196_v9 = vadd.f32 %v2120_v4, %v1954_v5  ;;  %v664_v41 = vrot.slane %v3260_v3, 7 }
  0xa6   : > { %v2360_v26 = vsel %vm1200_vm2, %v2358_v0, %v2359_v21  ;;  %v801_v11 = vmul.f32 %v4050_v16, %v3838_v63  ;;  %v2362_v12 = vsel %vm1200_vm2, %v2359_v21, %v2361_v7  ;;  %v802_v34 = vmul.f32 %v4050_v16, %v3843_v1 }
  0xa7   : > { %v2437_v14 = vadd.f32 %v2360_v26, %v2195_v6  ;;  %v665_v20 = vrot.slane %v3261_v8, 7  ;;  %v2438_v37 = vadd.f32 %v2362_v12, %v2196_v9  ;;  %v4169_v39 = vsel %vm648_vm0, 0.0, %v664_v41 }
  0xa8   : > { %v870_v13 = vmul.f32 %v4062_v60, %v3838_v63  ;;  %v871_v50 = vmul.f32 %v4062_v60, %v3843_v1  ;;  %v872_v46 = vmul.f32 %v4062_v60, %v3846_v2  ;;  %v1113_v33 = vmul.f32 %v4073_v35, %v3838_v63 }
  0xa9   : > { %v2473_v48 = vadd.f32 %v4178_v47, %v2437_v14  ;;  %v4182_v51 = vsel %vm648_vm0, %v664_v41, %v665_v20  ;;  %v4185_v52 = vsel %vm648_vm0, %v665_v20, 0.0  ;;  %v2474_v53 = vadd.f32 %v4178_v47, %v2438_v37 }
  0xaa   : > { %v973_v32 = vrot.slane %v870_v13, 1  ;;  %v974_v56 = vrot.slane %v871_v50, 1  ;;  %v976_v18 = vrot.slane %v872_v46, 1  ;;  %v1114_v57 = vmul.f32 %v4073_v35, %v3843_v1 }
  0xab   : > { %v2505_v54 = vmax.f32 %v2473_v48, 0.0  ;;  %v1115_v61 = vmul.f32 %v4073_v35, %v3846_v2  ;;  %v2506_v55 = vmax.f32 %v2474_v53, 0.0  ;;  %v1216_v62 = vrot.slane %v1113_v33, 2 }
  0xac   : > { %v975_v58 = vsel %vm957_vm1, %v973_v32, %v974_v56  ;;  %v1354_v0 = vmul.f32 %v4094_v59, %v3980_v36  ;;  %v977_v5 = vsel %vm957_vm1, %v974_v56, %v976_v18  ;;  %v1217_v21 = vrot.slane %v1114_v57, 2 }
  0xad   : > { %v1076_v42 = vadd.f32 %v975_v58, %v801_v11  ;;  %v1219_v63 = vrot.slane %v1115_v61, 2  ;;  %v2526_v3 = vpack.c.bf16 %v2506_v55, %v2505_v54  ;;  %v1077_v4 = vadd.f32 %v977_v5, %v802_v34  ;;  %v3323_v5 = vld [vmem:[%s3514_s26 + $0x68] sm:$0xff]  }
  0xae   : > { %v1355_v1 = vmul.f32 %v4094_v59, %v3988_v28  ;;  %v1423_v2 = vmul.f32 %v4104_v40, %v3980_v36  ;;  %v1218_v6 = vsel %vm1200_vm2, %v1216_v62, %v1217_v21  ;;  %v1424_v8 = vmul.f32 %v4104_v40, %v3988_v28 }
  0xaf   : > { %v1220_v7 = vsel %vm1200_vm2, %v1217_v21, %v1219_v63  ;;  %v1425_v9 = vmul.f32 %v4104_v40, %v3991_v44  ;;  %2658 = vmatmul.bf16.gmra.mxu2 %v2526_v3  ;;  %v1319_v26 = vadd.f32 %v1218_v6, %v1076_v42  ;;  %v1665_v12 = vmul.f32 %v4116_v45, %v3980_v36 }
  0xb0   : > { %v1320_v41 = vadd.f32 %v1220_v7, %v1077_v4  ;;  %v1525_v11 = vrot.slane %v1423_v2, 1  ;;  %v1526_v14 = vrot.slane %v1424_v8, 1  ;;  %v1666_v34 = vmul.f32 %v4116_v45, %v3988_v28 }
  0xb1   : > { %v1528_v20 = vrot.slane %v1425_v9, 1  ;;  %v1667_v37 = vmul.f32 %v4116_v45, %v3991_v44  ;;  %v1386_v13 = vadd.f32 %v1354_v0, %v1319_v26  ;;  %v1767_v48 = vrot.slane %v1665_v12, 2 }
  0xb2   : > { %v1387_v50 = vadd.f32 %v1355_v1, %v1320_v41  ;;  %v1905_v46 = vmul.f32 %v4128_v31, %v4169_v39  ;;  %v1527_v53 = vsel %vm957_vm1, %v1525_v11, %v1526_v14  ;;  %v1768_v56 = vrot.slane %v1666_v34, 2 }
  0xb3   : > { %v1529_v32 = vsel %vm957_vm1, %v1526_v14, %v1528_v20  ;;  %v1770_v33 = vrot.slane %v1667_v37, 2  ;;  %v1628_v54 = vadd.f32 %v1527_v53, %v1386_v13  ;;  %v1906_v57 = vmul.f32 %v4128_v31, %v4182_v51 }
  0xb4   : > { %v1629_v18 = vadd.f32 %v1529_v32, %v1387_v50  ;;  %v1974_v61 = vmul.f32 %v4139_v49, %v4169_v39  ;;  %v1769_v55 = vsel %vm1200_vm2, %v1767_v48, %v1768_v56  ;;  %v1975_v62 = vmul.f32 %v4139_v49, %v4182_v51 }
  0xb5   : > { %v1771_v58 = vsel %vm1200_vm2, %v1768_v56, %v1770_v33  ;;  %v1976_v0 = vmul.f32 %v4139_v49, %v4185_v52  ;;  %v1870_v42 = vadd.f32 %v1769_v55, %v1628_v54  ;;  %v2216_v3 = vmul.f32 %v4151_v27, %v4169_v39 }
  0xb6   : > { %v1871_v21 = vadd.f32 %v1771_v58, %v1629_v18  ;;  %v2076_v63 = vrot.slane %v1974_v61, 1  ;;  %v2077_v4 = vrot.slane %v1975_v62, 1  ;;  %v2217_v2 = vmul.f32 %v4151_v27, %v4182_v51 }
  0xb7   : > { %v2079_v1 = vrot.slane %v1976_v0, 1  ;;  %v2218_v6 = vmul.f32 %v4151_v27, %v4185_v52  ;;  %v1937_v7 = vadd.f32 %v1905_v46, %v1870_v42  ;;  %v2318_v9 = vrot.slane %v2216_v3, 2 }
  0xb8   : > { %v1938_v8 = vadd.f32 %v1906_v57, %v1871_v21  ;;  %v3296_v26 = vunpack.c.l.bf16 %v3323_v5  ;;  %v2078_v41 = vsel %vm957_vm1, %v2076_v63, %v2077_v4  ;;  %v2319_v12 = vrot.slane %v2217_v2, 2 }
  0xb9   : > { %v2080_v11 = vsel %vm957_vm1, %v2077_v4, %v2079_v1  ;;  %v2321_v14 = vrot.slane %v2218_v6, 2  ;;  %v2179_v20 = vadd.f32 %v2078_v41, %v1937_v7  ;;  %v3297_v37 = vunpack.c.h.bf16 %v3323_v5 }
  0xba   : > { %v2180_v34 = vadd.f32 %v2080_v11, %v1938_v8  ;;  %v691_v13 = vrot.slane %v3296_v26, 7  ;;  %v2320_v50 = vsel %vm1200_vm2, %v2318_v9, %v2319_v12  ;;  %v819_v46 = vmul.f32 %v4050_v16, %v3908_v10 }
  0xbb   : > { %v2322_v48 = vsel %vm1200_vm2, %v2319_v12, %v2321_v14  ;;  %v820_v53 = vmul.f32 %v4050_v16, %v3921_v17  ;;  %v2421_v32 = vadd.f32 %v2320_v50, %v2179_v20  ;;  %v692_v33 = vrot.slane %v3297_v37, 7 }
  0xbc   : > { %v2422_v56 = vadd.f32 %v2322_v48, %v2180_v34  ;;  %v4246_v54 = vsel %vm648_vm0, 0.0, %v691_v13  ;;  %v897_v18 = vmul.f32 %v4062_v60, %v3908_v10  ;;  %v898_v57 = vmul.f32 %v4062_v60, %v3921_v17 }
  0xbd   : > { %v899_v61 = vmul.f32 %v4062_v60, %v3924_v19  ;;  %v1140_v55 = vmul.f32 %v4073_v35, %v3908_v10  ;;  %v2457_v58 = vadd.f32 %v4178_v47, %v2421_v32  ;;  %v4259_v0 = vsel %vm648_vm0, %v691_v13, %v692_v33 }
  0xbe   : > { %v2458_v62 = vadd.f32 %v4178_v47, %v2422_v56  ;;  %v4262_v5 = vsel %vm648_vm0, %v692_v33, 0.0  ;;  %v1018_v42 = vrot.slane %v897_v18, 1  ;;  %v1019_v21 = vrot.slane %v898_v57, 1 }
  0xbf   : > { %v1021_v63 = vrot.slane %v899_v61, 1  ;;  %v1141_v3 = vmul.f32 %v4073_v35, %v3921_v17  ;;  %v2489_v4 = vmax.f32 %v2457_v58, 0.0  ;;  %v1142_v10 = vmul.f32 %v4073_v35, %v3924_v19 }
  0xc0   : > { %v2490_v1 = vmax.f32 %v2458_v62, 0.0  ;;  %v1261_v2 = vrot.slane %v1140_v55, 2  ;;  %v1020_v6 = vsel %vm957_vm1, %v1018_v42, %v1019_v21  ;;  %v1372_v9 = vmul.f32 %v4094_v59, %v4057_v15 }
  0xc1   : > { %v1022_v7 = vsel %vm957_vm1, %v1019_v21, %v1021_v63  ;;  %v1262_v8 = vrot.slane %v1141_v3, 2  ;;  %v1094_v41 = vadd.f32 %v1020_v6, %v819_v46  ;;  %v1264_v12 = vrot.slane %v1142_v10, 2 }
  0xc2   : > { %v2518_v26 = vpack.c.bf16 %v2490_v1, %v2489_v4  ;;  %v1095_v11 = vadd.f32 %v1022_v7, %v820_v53  ;;  %v1373_v14 = vmul.f32 %v4094_v59, %v4080_v38  ;;  %v1450_v19 = vmul.f32 %v4104_v40, %v4057_v15 }
  0xc3   : > { %v1263_v17 = vsel %vm1200_vm2, %v1261_v2, %v1262_v8  ;;  %v1451_v20 = vmul.f32 %v4104_v40, %v4080_v38  ;;  %v1265_v34 = vsel %vm1200_vm2, %v1262_v8, %v1264_v12  ;;  %v1452_v13 = vmul.f32 %v4104_v40, %v4083_v43 }
  0xc4   : > { %2618 = vmatmul.bf16.gmra.mxu0 %v2518_v26  ;;  %v1337_v37 = vadd.f32 %v1263_v17, %v1094_v41  ;;  %v1692_v50 = vmul.f32 %v4116_v45, %v4057_v15  ;;  %v1338_v48 = vadd.f32 %v1265_v34, %v1095_v11  ;;  %v1570_v46 = vrot.slane %v1450_v19, 1  ;;  %v3315_v26 = vld [vmem:[%s3514_s26 + $0x28] sm:$0xff]  }
  0xc5   : > { %v1571_v53 = vrot.slane %v1451_v20, 1  ;;  %v1693_v32 = vmul.f32 %v4116_v45, %v4080_v38  ;;  %v1573_v33 = vrot.slane %v1452_v13, 1  ;;  %v1694_v18 = vmul.f32 %v4116_v45, %v4083_v43 }
  0xc6   : > { %v1404_v56 = vadd.f32 %v1372_v9, %v1337_v37  ;;  %v1812_v57 = vrot.slane %v1692_v50, 2  ;;  %v1405_v61 = vadd.f32 %v1373_v14, %v1338_v48  ;;  %v1923_v62 = vmul.f32 %v4128_v31, %v4246_v54 }
  0xc7   : > { %v1572_v55 = vsel %vm957_vm1, %v1570_v46, %v1571_v53  ;;  %v1813_v58 = vrot.slane %v1693_v32, 2  ;;  %v1574_v42 = vsel %vm957_vm1, %v1571_v53, %v1573_v33  ;;  %v1815_v63 = vrot.slane %v1694_v18, 2 }
  0xc8   : > { %v1646_v21 = vadd.f32 %v1572_v55, %v1404_v56  ;;  %v1924_v3 = vmul.f32 %v4128_v31, %v4259_v0  ;;  %v1647_v4 = vadd.f32 %v1574_v42, %v1405_v61  ;;  %v2001_v10 = vmul.f32 %v4139_v49, %v4246_v54 }
  0xc9   : > { %v1814_v1 = vsel %vm1200_vm2, %v1812_v57, %v1813_v58  ;;  %v2002_v2 = vmul.f32 %v4139_v49, %v4259_v0  ;;  %v1816_v6 = vsel %vm1200_vm2, %v1813_v58, %v1815_v63  ;;  %v2003_v8 = vmul.f32 %v4139_v49, %v4262_v5 }
  0xca   : > { %v1888_v7 = vadd.f32 %v1814_v1, %v1646_v21  ;;  %v2243_v9 = vmul.f32 %v4151_v27, %v4246_v54  ;;  %v1889_v41 = vadd.f32 %v1816_v6, %v1647_v4  ;;  %v2121_v11 = vrot.slane %v2001_v10, 1 }
  0xcb   : > { %v2122_v12 = vrot.slane %v2002_v2, 1  ;;  %v2244_v17 = vmul.f32 %v4151_v27, %v4259_v0  ;;  %v2124_v19 = vrot.slane %v2003_v8, 1  ;;  %v2245_v20 = vmul.f32 %v4151_v27, %v4262_v5 }
  0xcc   : > { %v1955_v14 = vadd.f32 %v1923_v62, %v1888_v7  ;;  %v2363_v34 = vrot.slane %v2243_v9, 2  ;;  %v1956_v37 = vadd.f32 %v1924_v3, %v1889_v41  ;;  %v3264_v48 = vunpack.c.l.bf16 %v3315_v26 }
  0xcd   : > { %v2123_v13 = vsel %vm957_vm1, %v2121_v11, %v2122_v12  ;;  %v2364_v50 = vrot.slane %v2244_v17, 2  ;;  %v2125_v46 = vsel %vm957_vm1, %v2122_v12, %v2124_v19  ;;  %v2366_v32 = vrot.slane %v2245_v20, 2 }
  0xce   : > { %v2197_v53 = vadd.f32 %v2123_v13, %v1955_v14  ;;  %v3265_v56 = vunpack.c.h.bf16 %v3315_v26  ;;  %v2198_v33 = vadd.f32 %v2125_v46, %v1956_v37  ;;  %v667_v57 = vrot.slane %v3264_v48, 7 }
  0xcf   : > { %v2365_v18 = vsel %vm1200_vm2, %v2363_v34, %v2364_v50  ;;  %v803_v61 = vmul.f32 %v4050_v16, %v3980_v36  ;;  %v2367_v55 = vsel %vm1200_vm2, %v2364_v50, %v2366_v32  ;;  %v804_v42 = vmul.f32 %v4050_v16, %v3988_v28 }
  0xd0   : > { %v2439_v58 = vadd.f32 %v2365_v18, %v2197_v53  ;;  %v668_v62 = vrot.slane %v3265_v56, 7  ;;  %v2440_v21 = vadd.f32 %v2367_v55, %v2198_v33  ;;  %v4318_v63 = vsel %vm648_vm0, 0.0, %v667_v57 }
  0xd1   : > { %v873_v3 = vmul.f32 %v4062_v60, %v3980_v36  ;;  %v874_v4 = vmul.f32 %v4062_v60, %v3988_v28  ;;  %v875_v6 = vmul.f32 %v4062_v60, %v3991_v44  ;;  %v1116_v26 = vmul.f32 %v4073_v35, %v3980_v36 }
  0xd2   : > { %v2475_v1 = vadd.f32 %v4178_v47, %v2439_v58  ;;  %v4326_v10 = vsel %vm648_vm0, %v667_v57, %v668_v62  ;;  %v4329_v2 = vsel %vm648_vm0, %v668_v62, 0.0  ;;  %v2476_v7 = vadd.f32 %v4178_v47, %v2440_v21 }
  0xd3   : > { %v978_v8 = vrot.slane %v873_v3, 1  ;;  %v979_v9 = vrot.slane %v874_v4, 1  ;;  %v981_v11 = vrot.slane %v875_v6, 1  ;;  %v1117_v12 = vmul.f32 %v4073_v35, %v3988_v28 }
  0xd4   : > { %v2507_v41 = vmax.f32 %v2475_v1, 0.0  ;;  %v1118_v17 = vmul.f32 %v4073_v35, %v3991_v44  ;;  %v2508_v14 = vmax.f32 %v2476_v7, 0.0  ;;  %v1221_v20 = vrot.slane %v1116_v26, 2 }
  0xd5   : > { %v980_v19 = vsel %vm957_vm1, %v978_v8, %v979_v9  ;;  %v1356_v34 = vmul.f32 %v4094_v59, %v4169_v39  ;;  %v982_v37 = vsel %vm957_vm1, %v979_v9, %v981_v11  ;;  %v1222_v50 = vrot.slane %v1117_v12, 2 }
  0xd6   : > { %v1078_v13 = vadd.f32 %v980_v19, %v803_v61  ;;  %v1224_v36 = vrot.slane %v1118_v17, 2  ;;  %v2527_v48 = vpack.c.bf16 %v2508_v14, %v2507_v41  ;;  %v1079_v46 = vadd.f32 %v982_v37, %v804_v42  ;;  %v3324_v37 = vld [vmem:[%s3514_s26 + $0x70] sm:$0xff]  }
  0xd7   : > { %v1357_v28 = vmul.f32 %v4094_v59, %v4182_v51  ;;  %v1426_v44 = vmul.f32 %v4104_v40, %v4169_v39  ;;  %v1223_v53 = vsel %vm1200_vm2, %v1221_v20, %v1222_v50  ;;  %v1427_v56 = vmul.f32 %v4104_v40, %v4182_v51 }
  0xd8   : > { %v1225_v32 = vsel %vm1200_vm2, %v1222_v50, %v1224_v36  ;;  %v1428_v33 = vmul.f32 %v4104_v40, %v4185_v52  ;;  %2663 = vmatmul.bf16.gmra.mxu2 %v2527_v48  ;;  %v1321_v18 = vadd.f32 %v1223_v53, %v1078_v13  ;;  %v1668_v55 = vmul.f32 %v4116_v45, %v4169_v39 }
  0xd9   : > { %v1322_v57 = vadd.f32 %v1225_v32, %v1079_v46  ;;  %v1530_v61 = vrot.slane %v1426_v44, 1  ;;  %v1531_v58 = vrot.slane %v1427_v56, 1  ;;  %v1669_v42 = vmul.f32 %v4116_v45, %v4182_v51 }
  0xda   : > { %v1533_v62 = vrot.slane %v1428_v33, 1  ;;  %v1670_v21 = vmul.f32 %v4116_v45, %v4185_v52  ;;  %v1388_v3 = vadd.f32 %v1356_v34, %v1321_v18  ;;  %v1772_v1 = vrot.slane %v1668_v55, 2 }
  0xdb   : > { %v1389_v4 = vadd.f32 %v1357_v28, %v1322_v57  ;;  %v1907_v6 = vmul.f32 %v4128_v31, %v4318_v63  ;;  %v1532_v7 = vsel %vm957_vm1, %v1530_v61, %v1531_v58  ;;  %v1773_v9 = vrot.slane %v1669_v42, 2 }
  0xdc   : > { %v1534_v8 = vsel %vm957_vm1, %v1531_v58, %v1533_v62  ;;  %v1775_v26 = vrot.slane %v1670_v21, 2  ;;  %v1630_v41 = vadd.f32 %v1532_v7, %v1388_v3  ;;  %v1908_v12 = vmul.f32 %v4128_v31, %v4326_v10 }
  0xdd   : > { %v1631_v11 = vadd.f32 %v1534_v8, %v1389_v4  ;;  %v1977_v17 = vmul.f32 %v4139_v49, %v4318_v63  ;;  %v1774_v14 = vsel %vm1200_vm2, %v1772_v1, %v1773_v9  ;;  %v1978_v20 = vmul.f32 %v4139_v49, %v4326_v10 }
  0xde   : > { %v1776_v19 = vsel %vm1200_vm2, %v1773_v9, %v1775_v26  ;;  %v1979_v34 = vmul.f32 %v4139_v49, %v4329_v2  ;;  %v1872_v13 = vadd.f32 %v1774_v14, %v1630_v41  ;;  %v2219_v48 = vmul.f32 %v4151_v27, %v4318_v63 }
  0xdf   : > { %v1873_v50 = vadd.f32 %v1776_v19, %v1631_v11  ;;  %v2081_v36 = vrot.slane %v1977_v17, 1  ;;  %v2082_v46 = vrot.slane %v1978_v20, 1  ;;  %v2220_v44 = vmul.f32 %v4151_v27, %v4326_v10 }
  0xe0   : > { %v2084_v28 = vrot.slane %v1979_v34, 1  ;;  %v2221_v53 = vmul.f32 %v4151_v27, %v4329_v2  ;;  %v1939_v32 = vadd.f32 %v1907_v6, %v1872_v13  ;;  %v2323_v33 = vrot.slane %v2219_v48, 2 }
  0xe1   : > { %v1940_v56 = vadd.f32 %v1908_v12, %v1873_v50  ;;  %v3300_v18 = vunpack.c.l.bf16 %v3324_v37  ;;  %v2083_v57 = vsel %vm957_vm1, %v2081_v36, %v2082_v46  ;;  %v2324_v55 = vrot.slane %v2220_v44, 2 }
  0xe2   : > { %v2085_v61 = vsel %vm957_vm1, %v2082_v46, %v2084_v28  ;;  %v2326_v58 = vrot.slane %v2221_v53, 2  ;;  %v2181_v62 = vadd.f32 %v2083_v57, %v1939_v32  ;;  %v3301_v21 = vunpack.c.h.bf16 %v3324_v37 }
  0xe3   : > { %v2182_v42 = vadd.f32 %v2085_v61, %v1940_v56  ;;  %v694_v3 = vrot.slane %v3300_v18, 7  ;;  %v2325_v4 = vsel %vm1200_vm2, %v2323_v33, %v2324_v55  ;;  %v821_v6 = vmul.f32 %v4050_v16, %v4057_v15 }
  0xe4   : > { %v2327_v1 = vsel %vm1200_vm2, %v2324_v55, %v2326_v58  ;;  %v822_v7 = vmul.f32 %v4050_v16, %v4080_v38  ;;  %v2423_v8 = vadd.f32 %v2325_v4, %v2181_v62  ;;  %v695_v26 = vrot.slane %v3301_v21, 7 }
  0xe5   : > { %v2424_v9 = vadd.f32 %v2327_v1, %v2182_v42  ;;  %v4390_v41 = vsel %vm648_vm0, 0.0, %v694_v3  ;;  %v900_v11 = vmul.f32 %v4062_v60, %v4057_v15  ;;  %v901_v12 = vmul.f32 %v4062_v60, %v4080_v38 }
  0xe6   : > { %v902_v17 = vmul.f32 %v4062_v60, %v4083_v43  ;;  %v1143_v14 = vmul.f32 %v4073_v35, %v4057_v15  ;;  %v2459_v19 = vadd.f32 %v4178_v47, %v2423_v8  ;;  %v4403_v34 = vsel %vm648_vm0, %v694_v3, %v695_v26 }
  0xe7   : > { %v2460_v20 = vadd.f32 %v4178_v47, %v2424_v9  ;;  %v4406_v37 = vsel %vm648_vm0, %v695_v26, 0.0  ;;  %v1023_v13 = vrot.slane %v900_v11, 1  ;;  %v1024_v50 = vrot.slane %v901_v12, 1 }
  0xe8   : > { %v1026_v36 = vrot.slane %v902_v17, 1  ;;  %v1144_v48 = vmul.f32 %v4073_v35, %v4080_v38  ;;  %v2491_v46 = vmax.f32 %v2459_v19, 0.0  ;;  %v1145_v15 = vmul.f32 %v4073_v35, %v4083_v43 }
  0xe9   : > { %v2492_v28 = vmax.f32 %v2460_v20, 0.0  ;;  %v1266_v44 = vrot.slane %v1143_v14, 2  ;;  %v1025_v53 = vsel %vm957_vm1, %v1023_v13, %v1024_v50  ;;  %v1374_v33 = vmul.f32 %v4094_v59, %v4246_v54 }
  0xea   : > { %v1027_v32 = vsel %vm957_vm1, %v1024_v50, %v1026_v36  ;;  %v1267_v56 = vrot.slane %v1144_v48, 2  ;;  %v1096_v57 = vadd.f32 %v1025_v53, %v821_v6  ;;  %v1269_v55 = vrot.slane %v1145_v15, 2 }
  0xeb   : > { %v2519_v18 = vpack.c.bf16 %v2492_v28, %v2491_v46  ;;  %v1097_v61 = vadd.f32 %v1027_v32, %v822_v7  ;;  %v1375_v58 = vmul.f32 %v4094_v59, %v4259_v0  ;;  %v1453_v43 = vmul.f32 %v4104_v40, %v4246_v54 }
  0xec   : > { %v1268_v38 = vsel %vm1200_vm2, %v1266_v44, %v1267_v56  ;;  %v1454_v62 = vmul.f32 %v4104_v40, %v4259_v0  ;;  %v1270_v42 = vsel %vm1200_vm2, %v1267_v56, %v1269_v55  ;;  %v1455_v3 = vmul.f32 %v4104_v40, %v4262_v5 }
  0xed   : > { %2623 = vmatmul.bf16.gmra.mxu0 %v2519_v18  ;;  %v1339_v21 = vadd.f32 %v1268_v38, %v1096_v57  ;;  %v1695_v4 = vmul.f32 %v4116_v45, %v4246_v54  ;;  %v1340_v1 = vadd.f32 %v1270_v42, %v1097_v61  ;;  %v1575_v6 = vrot.slane %v1453_v43, 1  ;;  %v3316_v18 = vld [vmem:[%s3514_s26 + $0x30] sm:$0xff]  }
  0xee   : > { %v1576_v7 = vrot.slane %v1454_v62, 1  ;;  %v1696_v8 = vmul.f32 %v4116_v45, %v4259_v0  ;;  %v1578_v26 = vrot.slane %v1455_v3, 1  ;;  %v1697_v11 = vmul.f32 %v4116_v45, %v4262_v5 }
  0xef   : > { %v1406_v9 = vadd.f32 %v1374_v33, %v1339_v21  ;;  %v1817_v12 = vrot.slane %v1695_v4, 2  ;;  %v1407_v17 = vadd.f32 %v1375_v58, %v1340_v1  ;;  %v1925_v20 = vmul.f32 %v4128_v31, %v4390_v41 }
  0xf0   : > { %v1577_v14 = vsel %vm957_vm1, %v1575_v6, %v1576_v7  ;;  %v1818_v19 = vrot.slane %v1696_v8, 2  ;;  %v1579_v13 = vsel %vm957_vm1, %v1576_v7, %v1578_v26  ;;  %v1820_v36 = vrot.slane %v1697_v11, 2 }
  0xf1   : > { %v1648_v50 = vadd.f32 %v1577_v14, %v1406_v9  ;;  %v1926_v48 = vmul.f32 %v4128_v31, %v4403_v34  ;;  %v1649_v46 = vadd.f32 %v1579_v13, %v1407_v17  ;;  %v2004_v15 = vmul.f32 %v4139_v49, %v4390_v41 }
  0xf2   : > { %v1819_v28 = vsel %vm1200_vm2, %v1817_v12, %v1818_v19  ;;  %v2005_v44 = vmul.f32 %v4139_v49, %v4403_v34  ;;  %v1821_v53 = vsel %vm1200_vm2, %v1818_v19, %v1820_v36  ;;  %v2006_v56 = vmul.f32 %v4139_v49, %v4406_v37 }
  0xf3   : > { %v1890_v32 = vadd.f32 %v1819_v28, %v1648_v50  ;;  %v2246_v33 = vmul.f32 %v4151_v27, %v4390_v41  ;;  %v1891_v57 = vadd.f32 %v1821_v53, %v1649_v46  ;;  %v2126_v61 = vrot.slane %v2004_v15, 1 }
  0xf4   : > { %v2127_v55 = vrot.slane %v2005_v44, 1  ;;  %v2247_v38 = vmul.f32 %v4151_v27, %v4403_v34  ;;  %v2129_v43 = vrot.slane %v2006_v56, 1  ;;  %v2248_v62 = vmul.f32 %v4151_v27, %v4406_v37 }
  0xf5   : > { %v1957_v58 = vadd.f32 %v1925_v20, %v1890_v32  ;;  %v2368_v42 = vrot.slane %v2246_v33, 2  ;;  %v1958_v21 = vadd.f32 %v1926_v48, %v1891_v57  ;;  %v3268_v1 = vunpack.c.l.bf16 %v3316_v18 }
  0xf6   : > { %v2128_v3 = vsel %vm957_vm1, %v2126_v61, %v2127_v55  ;;  %v2369_v4 = vrot.slane %v2247_v38, 2  ;;  %v2130_v6 = vsel %vm957_vm1, %v2127_v55, %v2129_v43  ;;  %v2371_v8 = vrot.slane %v2248_v62, 2 }
  0xf7   : > { %v2199_v7 = vadd.f32 %v2128_v3, %v1957_v58  ;;  %v3269_v9 = vunpack.c.h.bf16 %v3316_v18  ;;  %v2200_v26 = vadd.f32 %v2130_v6, %v1958_v21  ;;  %v670_v12 = vrot.slane %v3268_v1, 7 }
  0xf8   : > { %v2370_v11 = vsel %vm1200_vm2, %v2368_v42, %v2369_v4  ;;  %v805_v17 = vmul.f32 %v4050_v16, %v4169_v39  ;;  %v2372_v14 = vsel %vm1200_vm2, %v2369_v4, %v2371_v8  ;;  %v806_v13 = vmul.f32 %v4050_v16, %v4182_v51 }
  0xf9   : > { %v2441_v19 = vadd.f32 %v2370_v11, %v2199_v7  ;;  %v671_v20 = vrot.slane %v3269_v9, 7  ;;  %v2442_v50 = vadd.f32 %v2372_v14, %v2200_v26  ;;  %v4462_v36 = vsel %vm648_vm0, 0.0, %v670_v12 }
  0xfa   : > { %v876_v48 = vmul.f32 %v4062_v60, %v4169_v39  ;;  %v877_v46 = vmul.f32 %v4062_v60, %v4182_v51  ;;  %v878_v53 = vmul.f32 %v4062_v60, %v4185_v52  ;;  %v1119_v18 = vmul.f32 %v4073_v35, %v4169_v39 }
  0xfb   : > { %v2477_v28 = vadd.f32 %v4178_v47, %v2441_v19  ;;  %v4470_v15 = vsel %vm648_vm0, %v670_v12, %v671_v20  ;;  %v4473_v44 = vsel %vm648_vm0, %v671_v20, 0.0  ;;  %v2478_v32 = vadd.f32 %v4178_v47, %v2442_v50 }
  0xfc   : > { %v983_v56 = vrot.slane %v876_v48, 1  ;;  %v984_v33 = vrot.slane %v877_v46, 1  ;;  %v986_v61 = vrot.slane %v878_v53, 1  ;;  %v1120_v55 = vmul.f32 %v4073_v35, %v4182_v51 }
  0xfd   : > { %v2509_v57 = vmax.f32 %v2477_v28, 0.0  ;;  %v1121_v38 = vmul.f32 %v4073_v35, %v4185_v52  ;;  %v2510_v58 = vmax.f32 %v2478_v32, 0.0  ;;  %v1226_v62 = vrot.slane %v1119_v18, 2 }
  0xfe   : > { %v985_v43 = vsel %vm957_vm1, %v983_v56, %v984_v33  ;;  %v1358_v42 = vmul.f32 %v4094_v59, %v4318_v63  ;;  %v987_v21 = vsel %vm957_vm1, %v984_v33, %v986_v61  ;;  %v1227_v4 = vrot.slane %v1120_v55, 2 }
  0xff   : > { %v1080_v3 = vadd.f32 %v985_v43, %v805_v17  ;;  %v1229_v39 = vrot.slane %v1121_v38, 2  ;;  %v2528_v1 = vpack.c.bf16 %v2510_v58, %v2509_v57  ;;  %v1081_v6 = vadd.f32 %v987_v21, %v806_v13  ;;  %v3325_v21 = vld [vmem:[%s3514_s26 + $0x78] sm:$0xff]  }
 0x100   : > { %v1359_v51 = vmul.f32 %v4094_v59, %v4326_v10  ;;  %v1429_v52 = vmul.f32 %v4104_v40, %v4318_v63  ;;  %v1228_v7 = vsel %vm1200_vm2, %v1226_v62, %v1227_v4  ;;  %v1430_v9 = vmul.f32 %v4104_v40, %v4326_v10 }
 0x101   : > { %v1230_v8 = vsel %vm1200_vm2, %v1227_v4, %v1229_v39  ;;  %v1431_v26 = vmul.f32 %v4104_v40, %v4329_v2  ;;  %2668 = vmatmul.bf16.gmra.mxu2 %v2528_v1  ;;  %v1323_v11 = vadd.f32 %v1228_v7, %v1080_v3  ;;  %v1671_v14 = vmul.f32 %v4116_v45, %v4318_v63 }
 0x102   : > { %v1324_v12 = vadd.f32 %v1230_v8, %v1081_v6  ;;  %v1535_v17 = vrot.slane %v1429_v52, 1  ;;  %v1536_v19 = vrot.slane %v1430_v9, 1  ;;  %v1672_v13 = vmul.f32 %v4116_v45, %v4326_v10 }
 0x103   : > { %v1538_v20 = vrot.slane %v1431_v26, 1  ;;  %v1673_v50 = vmul.f32 %v4116_v45, %v4329_v2  ;;  %v1390_v48 = vadd.f32 %v1358_v42, %v1323_v11  ;;  %v1777_v28 = vrot.slane %v1671_v14, 2 }
 0x104   : > { %v1391_v46 = vadd.f32 %v1359_v51, %v1324_v12  ;;  %v1909_v53 = vmul.f32 %v4128_v31, %v4462_v36  ;;  %v1537_v32 = vsel %vm957_vm1, %v1535_v17, %v1536_v19  ;;  %v1778_v33 = vrot.slane %v1672_v13, 2 }
 0x105   : > { %v1539_v56 = vsel %vm957_vm1, %v1536_v19, %v1538_v20  ;;  %v1780_v18 = vrot.slane %v1673_v50, 2  ;;  %v1632_v57 = vadd.f32 %v1537_v32, %v1390_v48  ;;  %v1910_v55 = vmul.f32 %v4128_v31, %v4470_v15 }
 0x106   : > { %v1633_v61 = vadd.f32 %v1539_v56, %v1391_v46  ;;  %v1980_v38 = vmul.f32 %v4139_v49, %v4462_v36  ;;  %v1779_v58 = vsel %vm1200_vm2, %v1777_v28, %v1778_v33  ;;  %v1981_v62 = vmul.f32 %v4139_v49, %v4470_v15 }
 0x107   : > { %v1781_v43 = vsel %vm1200_vm2, %v1778_v33, %v1780_v18  ;;  %v1982_v42 = vmul.f32 %v4139_v49, %v4473_v44  ;;  %v1874_v3 = vadd.f32 %v1779_v58, %v1632_v57  ;;  %v2222_v1 = vmul.f32 %v4151_v27, %v4462_v36 }
 0x108   : > { %v1875_v4 = vadd.f32 %v1781_v43, %v1633_v61  ;;  %v2086_v39 = vrot.slane %v1980_v38, 1  ;;  %v2087_v6 = vrot.slane %v1981_v62, 1  ;;  %v2223_v52 = vmul.f32 %v4151_v27, %v4470_v15 }
 0x109   : > { %v2089_v51 = vrot.slane %v1982_v42, 1  ;;  %v2224_v7 = vmul.f32 %v4151_v27, %v4473_v44  ;;  %v1941_v8 = vadd.f32 %v1909_v53, %v1874_v3  ;;  %v2328_v26 = vrot.slane %v2222_v1, 2 }
 0x10a   : > { %v1942_v9 = vadd.f32 %v1910_v55, %v1875_v4  ;;  %v3304_v11 = vunpack.c.l.bf16 %v3325_v21  ;;  %v2088_v12 = vsel %vm957_vm1, %v2086_v39, %v2087_v6  ;;  %v2329_v14 = vrot.slane %v2223_v52, 2 }
 0x10b   : > { %v2090_v17 = vsel %vm957_vm1, %v2087_v6, %v2089_v51  ;;  %v2331_v19 = vrot.slane %v2224_v7, 2  ;;  %v2183_v20 = vadd.f32 %v2088_v12, %v1941_v8  ;;  %v3305_v50 = vunpack.c.h.bf16 %v3325_v21 }
 0x10c   : > { %v2184_v13 = vadd.f32 %v2090_v17, %v1942_v9  ;;  %v697_v48 = vrot.slane %v3304_v11, 7  ;;  %v2330_v46 = vsel %vm1200_vm2, %v2328_v26, %v2329_v14  ;;  %v823_v53 = vmul.f32 %v4050_v16, %v4246_v54 }
 0x10d   : > { %v2332_v28 = vsel %vm1200_vm2, %v2329_v14, %v2331_v19  ;;  %v824_v32 = vmul.f32 %v4050_v16, %v4259_v0  ;;  %v2425_v56 = vadd.f32 %v2330_v46, %v2183_v20  ;;  %v698_v18 = vrot.slane %v3305_v50, 7 }
 0x10e   : > { %v2426_v33 = vadd.f32 %v2332_v28, %v2184_v13  ;;  %v4534_v57 = vsel %vm648_vm0, 0.0, %v697_v48  ;;  %v903_v61 = vmul.f32 %v4062_v60, %v4246_v54  ;;  %v904_v55 = vmul.f32 %v4062_v60, %v4259_v0 }
 0x10f   : > { %v905_v38 = vmul.f32 %v4062_v60, %v4262_v5  ;;  %v1146_v58 = vmul.f32 %v4073_v35, %v4246_v54  ;;  %v2461_v16 = vadd.f32 %v4178_v47, %v2425_v56  ;;  %v4547_v62 = vsel %vm648_vm0, %v697_v48, %v698_v18  ;;  %v4555_v60 = vld [vmem:[%s5066_s3 + $0x2] ss:$0 sm:$0xff] }
 0x110   : > { %v2462_v43 = vadd.f32 %v4178_v47, %v2426_v33  ;;  %v4550_v42 = vsel %vm648_vm0, %v698_v18, 0.0  ;;  %v1028_v21 = vrot.slane %v903_v61, 1  ;;  %v1029_v3 = vrot.slane %v904_v55, 1 }
 0x111   : > { %v1031_v4 = vrot.slane %v905_v38, 1  ;;  %v1147_v35 = vmul.f32 %v4555_v60, %v4259_v0  ;;  %v2493_v54 = vmax.f32 %v2461_v16, 0.0  ;;  %v1148_v1 = vmul.f32 %v4555_v60, %v4262_v5 }
 0x112   : > { %v2494_v39 = vmax.f32 %v2462_v43, 0.0  ;;  %v1271_v6 = vrot.slane %v1146_v58, 2  ;;  %v1030_v51 = vsel %vm957_vm1, %v1028_v21, %v1029_v3  ;;  %v1376_v8 = vmul.f32 %v4094_v59, %v4390_v41 }
 0x113   : > { %v1032_v52 = vsel %vm957_vm1, %v1029_v3, %v1031_v4  ;;  %v1272_v7 = vrot.slane %v1147_v35, 2  ;;  %v1098_v26 = vadd.f32 %v1030_v51, %v823_v53  ;;  %v1274_v12 = vrot.slane %v1148_v1, 2 }
 0x114   : > { %v2520_v9 = vpack.c.bf16 %v2494_v39, %v2493_v54  ;;  %v1099_v11 = vadd.f32 %v1032_v52, %v824_v32  ;;  %v1377_v17 = vmul.f32 %v4094_v59, %v4403_v34  ;;  %v1456_v5 = vmul.f32 %v4104_v40, %v4390_v41 }
 0x115   : > { %v1273_v0 = vsel %vm1200_vm2, %v1271_v6, %v1272_v7  ;;  %v1457_v14 = vmul.f32 %v4104_v40, %v4403_v34  ;;  %v1275_v19 = vsel %vm1200_vm2, %v1272_v7, %v1274_v12  ;;  %v1458_v13 = vmul.f32 %v4104_v40, %v4406_v37 }
 0x116   : > { %2628 = vmatmul.bf16.gmra.mxu0 %v2520_v9  ;;  %v1341_v20 = vadd.f32 %v1273_v0, %v1098_v26  ;;  %v1698_v50 = vmul.f32 %v4116_v45, %v4390_v41  ;;  %v1342_v48 = vadd.f32 %v1275_v19, %v1099_v11  ;;  %v1580_v46 = vrot.slane %v1456_v5, 1 }
 0x117   : > { %v1581_v28 = vrot.slane %v1457_v14, 1  ;;  %v1699_v59 = vmul.f32 %v4116_v45, %v4403_v34  ;;  %v1583_v32 = vrot.slane %v1458_v13, 1  ;;  %v1700_v56 = vmul.f32 %v4116_v45, %v4406_v37 }
 0x118   : > { %v1408_v53 = vadd.f32 %v1376_v8, %v1341_v20  ;;  %v1822_v33 = vrot.slane %v1698_v50, 2  ;;  %v1409_v18 = vadd.f32 %v1377_v17, %v1342_v48  ;;  %v1927_v40 = vmul.f32 %v4128_v31, %v4534_v57  ;;  %v4616_v50 = vld [vmem:[%s5066_s3 + $0x1] ss:$0 sm:$0xff] }
 0x119   : > { %v1582_v61 = vsel %vm957_vm1, %v1580_v46, %v1581_v28  ;;  %v1823_v55 = vrot.slane %v1699_v59, 2  ;;  %v1584_v38 = vsel %vm957_vm1, %v1581_v28, %v1583_v32  ;;  %v1825_v16 = vrot.slane %v1700_v56, 2 }
 0x11a   : > { %v1650_v58 = vadd.f32 %v1582_v61, %v1408_v53  ;;  %v1928_v43 = vmul.f32 %v4128_v31, %v4547_v62  ;;  %v1651_v21 = vadd.f32 %v1584_v38, %v1409_v18  ;;  %v2007_v45 = vmul.f32 %v4139_v49, %v4534_v57 }
 0x11b   : > { %v1824_v3 = vsel %vm1200_vm2, %v1822_v33, %v1823_v55  ;;  %v2008_v4 = vmul.f32 %v4139_v49, %v4547_v62  ;;  %v1826_v35 = vsel %vm1200_vm2, %v1823_v55, %v1825_v16  ;;  %v2009_v39 = vmul.f32 %v4139_v49, %v4550_v42  ;;  %v4605_v49 = vld [vmem:[%s5066_s3] ss:$0 sm:$0xff] }
 0x11c   : > { %v1892_v54 = vadd.f32 %v1824_v3, %v1650_v58  ;;  %v2249_v1 = vmul.f32 %v4151_v27, %v4534_v57  ;;  %v1893_v6 = vadd.f32 %v1826_v35, %v1651_v21  ;;  %v2131_v31 = vrot.slane %v2007_v45, 1 }
 0x11d   : > { %v2132_v51 = vrot.slane %v2008_v4, 1  ;;  %v2250_v52 = vmul.f32 %v4151_v27, %v4547_v62  ;;  %v2134_v8 = vrot.slane %v2009_v39, 1  ;;  %v2251_v9 = vmul.f32 %v4151_v27, %v4550_v42 }
 0x11e   : > { %v1959_v7 = vadd.f32 %v1927_v40, %v1892_v54  ;;  %v2373_v26 = vrot.slane %v2249_v1, 2  ;;  %v1960_v11 = vadd.f32 %v1928_v43, %v1893_v6  ;;  %v807_v17 = vmul.f32 %v4605_v49, %v4318_v63 }
 0x11f   : > { %v2133_v12 = vsel %vm957_vm1, %v2131_v31, %v2132_v51  ;;  %v2374_v0 = vrot.slane %v2250_v52, 2  ;;  %v2135_v5 = vsel %vm957_vm1, %v2132_v51, %v2134_v8  ;;  %v2376_v19 = vrot.slane %v2251_v9, 2  ;;  %v4649_v31 = vld [vmem:[%s5066_s3 + $0x5] ss:$0 sm:$0xff] }
 0x120   : > { %v2201_v14 = vadd.f32 %v2133_v12, %v1959_v7  ;;  %v808_v27 = vmul.f32 %v4605_v49, %v4326_v10  ;;  %v2202_v20 = vadd.f32 %v2135_v5, %v1960_v11  ;;  %v879_v48 = vmul.f32 %v4616_v50, %v4318_v63 }
 0x121   : > { %v2375_v13 = vsel %vm1200_vm2, %v2373_v26, %v2374_v0  ;;  %v880_v46 = vmul.f32 %v4616_v50, %v4326_v10  ;;  %v2377_v28 = vsel %vm1200_vm2, %v2374_v0, %v2376_v19  ;;  %v881_v53 = vmul.f32 %v4616_v50, %v4329_v2  ;;  %v4661_v26 = vld [vmem:[%s5066_s3 + $0x6] ss:$0 sm:$0xff] }
 0x122   : > { %v2443_v59 = vadd.f32 %v2375_v13, %v2201_v14  ;;  %v1122_v32 = vmul.f32 %v4555_v60, %v4318_v63  ;;  %v2444_v56 = vadd.f32 %v2377_v28, %v2202_v20  ;;  %v988_v33 = vrot.slane %v879_v48, 1  ;;  %v4637_v63 = vld [vmem:[%s5066_s3 + $0x4] ss:$0 sm:$0xff] }
 0x123   : > { %v989_v18 = vrot.slane %v880_v46, 1  ;;  %v1123_v61 = vmul.f32 %v4555_v60, %v4326_v10  ;;  %v991_v40 = vrot.slane %v881_v53, 1  ;;  %v1124_v38 = vmul.f32 %v4555_v60, %v4329_v2  ;;  %v4676_v46 = vld [vmem:[%s5066_s3 + $0x8] ss:$0 sm:$0xff] }
 0x124   : > { %v2479_v55 = vadd.f32 %v4178_v47, %v2443_v59  ;;  %v1231_v58 = vrot.slane %v1122_v32, 2  ;;  %v2480_v16 = vadd.f32 %v4178_v47, %v2444_v56  ;;  %v1360_v10 = vmul.f32 %v4637_v63, %v4462_v36 }
 0x125   : > { %v990_v43 = vsel %vm957_vm1, %v988_v33, %v989_v18  ;;  %v1232_v21 = vrot.slane %v1123_v61, 2  ;;  %v992_v45 = vsel %vm957_vm1, %v989_v18, %v991_v40  ;;  %v1234_v2 = vrot.slane %v1124_v38, 2  ;;  %v4686_v33 = vld [vmem:[%s5066_s3 + $0x9] ss:$0 sm:$0xff] }
 0x126   : > { %v2511_v3 = vmax.f32 %v2479_v55, 0.0  ;;  %v1082_v4 = vadd.f32 %v990_v43, %v807_v17  ;;  %v2512_v35 = vmax.f32 %v2480_v16, 0.0  ;;  %v1083_v54 = vadd.f32 %v992_v45, %v808_v27 }
 0x127   : > { %v1233_v47 = vsel %vm1200_vm2, %v1231_v58, %v1232_v21  ;;  %v1361_v39 = vmul.f32 %v4637_v63, %v4470_v15  ;;  %v1235_v1 = vsel %vm1200_vm2, %v1232_v21, %v1234_v2  ;;  %v1432_v51 = vmul.f32 %v4649_v31, %v4462_v36  ;;  %v3307_v58 = vld [vmem:[%s512_s22] sm:$0xff]  }
 0x128   : > { %v1325_v6 = vadd.f32 %v1233_v47, %v1082_v4  ;;  %v1433_v52 = vmul.f32 %v4649_v31, %v4470_v15  ;;  %v2529_v7 = vpack.c.bf16 %v2512_v35, %v2511_v3  ;;  %v1326_v8 = vadd.f32 %v1235_v1, %v1083_v54 }
 0x129   : > { %v1434_v9 = vmul.f32 %v4649_v31, %v4473_v44  ;;  %v1674_v11 = vmul.f32 %v4661_v26, %v4462_v36  ;;  %v1540_v0 = vrot.slane %v1432_v51, 1  ;;  %v1675_v5 = vmul.f32 %v4661_v26, %v4470_v15 }
 0x12a   : > { %v1392_v12 = vadd.f32 %v1360_v10, %v1325_v6  ;;  %v1541_v17 = vrot.slane %v1433_v52, 1  ;;  %2673 = vmatmul.bf16.gmra.mxu2 %v2529_v7  ;;  %v1393_v14 = vadd.f32 %v1361_v39, %v1326_v8  ;;  %v1676_v27 = vmul.f32 %v4661_v26, %v4473_v44  ;;  %v4699_v10 = vld [vmem:[%s5066_s3 + $0xa] ss:$0 sm:$0xff]  ;;  %v3237_v8 = vld [vmem:[%s5071_s8 + $0x38] sm:$0xff] }
 0x12b   : > { %v1543_v19 = vrot.slane %v1434_v9, 1  ;;  %v1782_v20 = vrot.slane %v1674_v11, 2  ;;  %v1783_v48 = vrot.slane %v1675_v5, 2  ;;  %v1911_v28 = vmul.f32 %v4676_v46, %v3548_v24  ;;  %2872 = vmatpush.bf16.msra.mxu1 %v3237_v8  ;;  %3334 = vmatpush.bf16.msra.mxu3 %v3237_v8 }
 0x12c   : > { %v1542_v13 = vsel %vm957_vm1, %v1540_v0, %v1541_v17  ;;  %v1912_v59 = vmul.f32 %v4676_v46, %v3542_v22  ;;  %v1785_v56 = vrot.slane %v1676_v27, 2  ;;  %v1983_v18 = vmul.f32 %v4686_v33, %v3548_v24 }
 0x12d   : > { %v1544_v53 = vsel %vm957_vm1, %v1541_v17, %v1543_v19  ;;  %v1634_v32 = vadd.f32 %v1542_v13, %v1392_v12  ;;  %v1784_v55 = vsel %vm1200_vm2, %v1782_v20, %v1783_v48  ;;  %v1984_v40 = vmul.f32 %v4686_v33, %v3542_v22 }
 0x12e   : > { %v1635_v61 = vadd.f32 %v1544_v53, %v1393_v14  ;;  %v1985_v38 = vmul.f32 %v4686_v33, %v3565_v29  ;;  %v1786_v16 = vsel %vm1200_vm2, %v1783_v48, %v1785_v56  ;;  %v2091_v21 = vrot.slane %v1983_v18, 1  ;;  %v4727_v56 = vld [vmem:[%s5067_s4] ss:$0 sm:$0xff] }
 0x12f   : > { %v1876_v43 = vadd.f32 %v1784_v55, %v1634_v32  ;;  %v2225_v3 = vmul.f32 %v4699_v10, %v3548_v24  ;;  %v2092_v4 = vrot.slane %v1984_v40, 1  ;;  %v2226_v35 = vmul.f32 %v4699_v10, %v3542_v22 }
 0x130   : > { %v1877_v45 = vadd.f32 %v1786_v16, %v1635_v61  ;;  %v2094_v2 = vrot.slane %v1985_v38, 1  ;;  %v2227_v47 = vmul.f32 %v4699_v10, %v3565_v29  ;;  %v3308_v1 = vunpack.c.l.bf16 %v3307_v58 }
 0x131   : > { %v1943_v54 = vadd.f32 %v1911_v28, %v1876_v43  ;;  %v2333_v39 = vrot.slane %v2225_v3, 2  ;;  %v2093_v51 = vsel %vm957_vm1, %v2091_v21, %v2092_v4  ;;  %v2334_v7 = vrot.slane %v2226_v35, 2 }
 0x132   : > { %v1944_v6 = vadd.f32 %v1912_v59, %v1877_v45  ;;  %v2095_v52 = vsel %vm957_vm1, %v2092_v4, %v2094_v2  ;;  %v2336_v11 = vrot.slane %v2227_v47, 2  ;;  %v3309_v12 = vunpack.c.h.bf16 %v3307_v58 }
 0x133   : > { %v2185_v9 = vadd.f32 %v2093_v51, %v1943_v54  ;;  %v610_v0 = vmul.f32 0.0, %v3308_v1  ;;  %v2335_v5 = vsel %vm1200_vm2, %v2333_v39, %v2334_v7  ;;  %v825_v14 = vmul.f32 %v4605_v49, %v4390_v41 }
 0x134   : > { %v2186_v17 = vadd.f32 %v2095_v52, %v1944_v6  ;;  %v826_v19 = vmul.f32 %v4605_v49, %v4403_v34  ;;  %v2337_v27 = vsel %vm1200_vm2, %v2334_v7, %v2336_v11  ;;  %v611_v13 = vmul.f32 0.0, %v3309_v12 }
 0x135   : > { %v2427_v20 = vadd.f32 %v2335_v5, %v2185_v9  ;;  %v700_v48 = vrot.slane %v610_v0, 7  ;;  %v906_v59 = vmul.f32 %v4616_v50, %v4390_v41  ;;  %v907_v53 = vmul.f32 %v4616_v50, %v4403_v34 }
 0x136   : > { %v2428_v28 = vadd.f32 %v2337_v27, %v2186_v17  ;;  %v908_v32 = vmul.f32 %v4616_v50, %v4406_v37  ;;  %v701_v61 = vrot.slane %v611_v13, 7  ;;  %v1149_v40 = vmul.f32 %v4555_v60, %v4390_v41 }
 0x137   : > { %v2463_v18 = vadd.f32 %v4727_v56, %v2427_v20  ;;  %v774_v55 = vsel %vm648_vm0, 0.0, %v700_v48  ;;  %v1033_v58 = vrot.slane %v906_v59, 1  ;;  %v1034_v16 = vrot.slane %v907_v53, 1 }
 0x138   : > { %v2464_v38 = vadd.f32 %v4727_v56, %v2428_v28  ;;  %v1036_v43 = vrot.slane %v908_v32, 1  ;;  %v702_v3 = vsel %vm648_vm0, %v700_v48, %v701_v61  ;;  %v792_v45 = vsel %vm648_vm0, %v701_v61, 0.0 }
 0x139   : > { %v2495_v21 = vmax.f32 %v2463_v18, 0.0  ;;  %v1150_v4 = vmul.f32 %v4555_v60, %v4403_v34  ;;  %v1035_v35 = vsel %vm957_vm1, %v1033_v58, %v1034_v16  ;;  %v1151_v41 = vmul.f32 %v4555_v60, %v4406_v37 }
 0x13a   : > { %v2496_v2 = vmax.f32 %v2464_v38, 0.0  ;;  %v1037_v54 = vsel %vm957_vm1, %v1034_v16, %v1036_v43  ;;  %v1100_v47 = vadd.f32 %v1035_v35, %v825_v14  ;;  %v1276_v1 = vrot.slane %v1149_v40, 2 }
 0x13b   : > { %v1101_v39 = vadd.f32 %v1037_v54, %v826_v19  ;;  %v1277_v6 = vrot.slane %v1150_v4, 2  ;;  %v1279_v52 = vrot.slane %v1151_v41, 2  ;;  %v1378_v7 = vmul.f32 %v4637_v63, %v4534_v57 }
 0x13c   : > { %v2521_v51 = vpack.c.bf16 %v2496_v2, %v2495_v21  ;;  %v1379_v34 = vmul.f32 %v4637_v63, %v4547_v62  ;;  %v1459_v9 = vmul.f32 %v4649_v31, %v4534_v57  ;;  %v1460_v37 = vmul.f32 %v4649_v31, %v4547_v62 }
 0x13d   : > { %v1278_v8 = vsel %vm1200_vm2, %v1276_v1, %v1277_v6  ;;  %v1461_v11 = vmul.f32 %v4649_v31, %v4550_v42  ;;  %v1280_v12 = vsel %vm1200_vm2, %v1277_v6, %v1279_v52  ;;  %v1701_v17 = vmul.f32 %v4661_v26, %v4534_v57 }
 0x13e   : > { %2633 = vmatmul.bf16.gmra.mxu0 %v2521_v51  ;;  %v1343_v0 = vadd.f32 %v1278_v8, %v1100_v47  ;;  %v1702_v5 = vmul.f32 %v4661_v26, %v4547_v62  ;;  %v1344_v14 = vadd.f32 %v1280_v12, %v1101_v39  ;;  %v1585_v19 = vrot.slane %v1459_v9, 1  ;;  %v4777_v8 = vpop.f32.mrf.mxu2 }
 0x13f   : > { %v1586_v27 = vrot.slane %v1460_v37, 1  ;;  %v1588_v20 = vrot.slane %v1461_v11, 1  ;;  %v1703_v48 = vmul.f32 %v4661_v26, %v4550_v42  ;;  %v1827_v28 = vrot.slane %v1701_v17, 2  ;;  %v3235_v17 = vld [vmem:[%s5071_s8 + $0x28] sm:$0xff] }
 0x140   : > { %v1410_v13 = vadd.f32 %v1378_v7, %v1343_v0  ;;  %v1828_v59 = vrot.slane %v1702_v5, 2  ;;  %v1411_v53 = vadd.f32 %v1379_v34, %v1344_v14  ;;  %v1929_v57 = vmul.f32 %v4676_v46, %v774_v55  ;;  %v3236_v7 = vld [vmem:[%s5071_s8 + $0x30] sm:$0xff]  ;;  %v4775_v34 = vpop.f32.mrf.mxu0 }
 0x141   : > { %v1587_v32 = vsel %vm957_vm1, %v1585_v19, %v1586_v27  ;;  %v1589_v18 = vsel %vm957_vm1, %v1586_v27, %v1588_v20  ;;  %v1830_v40 = vrot.slane %v1703_v48, 2  ;;  %v1930_v38 = vmul.f32 %v4676_v46, %v702_v3  ;;  %2873 = vmatpush.bf16.msra.mxu1 %v3236_v7  ;;  %3335 = vmatpush.bf16.msra.mxu3 %v3236_v7 }
 0x142   : > { %v1652_v61 = vadd.f32 %v1587_v32, %v1410_v13  ;;  %v1829_v62 = vsel %vm1200_vm2, %v1827_v28, %v1828_v59  ;;  %v1653_v58 = vadd.f32 %v1589_v18, %v1411_v53  ;;  %v2010_v16 = vmul.f32 %v4686_v33, %v774_v55 }
 0x143   : > { %v2011_v42 = vmul.f32 %v4686_v33, %v702_v3  ;;  %v2012_v43 = vmul.f32 %v4686_v33, %v792_v45  ;;  %v1831_v21 = vsel %vm1200_vm2, %v1828_v59, %v1830_v40  ;;  %v2252_v2 = vmul.f32 %v4699_v10, %v774_v55 }
 0x144   : > { %v1894_v4 = vadd.f32 %v1829_v62, %v1652_v61  ;;  %v2253_v35 = vmul.f32 %v4699_v10, %v702_v3  ;;  %v1895_v54 = vadd.f32 %v1831_v21, %v1653_v58  ;;  %v2136_v41 = vrot.slane %v2010_v16, 1 }
 0x145   : > { %v2137_v47 = vrot.slane %v2011_v42, 1  ;;  %v2139_v39 = vrot.slane %v2012_v43, 1  ;;  %v2254_v6 = vmul.f32 %v4699_v10, %v792_v45  ;;  %v2378_v51 = vrot.slane %v2252_v2, 2  ;;  %2874 = vmatpush.bf16.msra.mxu1 %v3235_v17  ;;  %3336 = vmatpush.bf16.msra.mxu3 %v3235_v17  ;;  %v3232_v17 = vld [vmem:[%s5071_s8 + $0x10] sm:$0xff] }
 0x146   : > { %v1961_v1 = vadd.f32 %v1929_v57, %v1894_v4  ;;  %v2379_v52 = vrot.slane %v2253_v35, 2  ;;  %v1962_v55 = vadd.f32 %v1930_v38, %v1895_v54  ;;  %v809_v37 = vmul.f32 %v4605_v49, %v4462_v36  ;;  %v4814_v43 = vpop.f32.mrf.mxu2 }
 0x147   : > { %v2138_v3 = vsel %vm957_vm1, %v2136_v41, %v2137_v47  ;;  %v2140_v9 = vsel %vm957_vm1, %v2137_v47, %v2139_v39  ;;  %v2381_v12 = vrot.slane %v2254_v6, 2  ;;  %v810_v0 = vmul.f32 %v4605_v49, %v4470_v15 }
 0x148   : > { %v2203_v11 = vadd.f32 %v2138_v3, %v1961_v1  ;;  %v2380_v45 = vsel %vm1200_vm2, %v2378_v51, %v2379_v52  ;;  %v2204_v5 = vadd.f32 %v2140_v9, %v1962_v55  ;;  %v882_v14 = vmul.f32 %v4616_v50, %v4462_v36  ;;  %v4812_v42 = vpop.f32.mrf.mxu0  ;;  %v3233_v1 = vld [vmem:[%s5071_s8 + $0x18] sm:$0xff] }
 0x149   : > { %v883_v19 = vmul.f32 %v4616_v50, %v4470_v15  ;;  %v884_v27 = vmul.f32 %v4616_v50, %v4473_v44  ;;  %v2382_v20 = vsel %vm1200_vm2, %v2379_v52, %v2381_v12  ;;  %v1125_v49 = vmul.f32 %v4555_v60, %v4462_v36  ;;  %v3234_v36 = vld [vmem:[%s5071_s8 + $0x20] sm:$0xff] }
 0x14a   : > { %v2445_v13 = vadd.f32 %v2380_v45, %v2203_v11  ;;  %v1126_v48 = vmul.f32 %v4555_v60, %v4470_v15  ;;  %v2446_v28 = vadd.f32 %v2382_v20, %v2204_v5  ;;  %v993_v59 = vrot.slane %v882_v14, 1  ;;  %2875 = vmatpush.bf16.msra.mxu1 %v3234_v36  ;;  %3337 = vmatpush.bf16.msra.mxu3 %v3234_v36 }
 0x14b   : > { %v994_v53 = vrot.slane %v883_v19, 1  ;;  %v996_v32 = vrot.slane %v884_v27, 1  ;;  %v1127_v57 = vmul.f32 %v4555_v60, %v4473_v44  ;;  %v1236_v61 = vrot.slane %v1125_v49, 2 }
 0x14c   : > { %v2481_v18 = vadd.f32 %v4727_v56, %v2445_v13  ;;  %v1237_v50 = vrot.slane %v1126_v48, 2  ;;  %v2482_v62 = vadd.f32 %v4727_v56, %v2446_v28  ;;  %v1362_v38 = vmul.f32 %v4637_v63, %v3548_v24 }
 0x14d   : > { %v995_v15 = vsel %vm957_vm1, %v993_v59, %v994_v53  ;;  %v997_v40 = vsel %vm957_vm1, %v994_v53, %v996_v32  ;;  %v1239_v4 = vrot.slane %v1127_v57, 2  ;;  %v1363_v2 = vmul.f32 %v4637_v63, %v3542_v22  ;;  %v4858_v32 = vld [vmem:[%s5069_s6] ss:$0 sm:$0xff] }
 0x14e   : > { %v2513_v58 = vmax.f32 %v2481_v18, 0.0  ;;  %v1084_v16 = vadd.f32 %v995_v15, %v809_v37  ;;  %v1085_v44 = vadd.f32 %v997_v40, %v810_v0  ;;  %v1238_v60 = vsel %vm1200_vm2, %v1236_v61, %v1237_v50  ;;  %2876 = vmatpush.bf16.msra.mxu1 %v3233_v1  ;;  %3338 = vmatpush.bf16.msra.mxu3 %v3233_v1  ;;  %v2649_v49 = vpop.f32.mrf.mxu2  ;;  %v3231_v61 = vld [vmem:[%s5071_s8 + $0x8] sm:$0xff]  ;;  %v4870_v15 = vld [vmem:[%s5070_s7] ss:$0 sm:$0xff] }
 0x14f   : > { %v2514_v21 = vmax.f32 %v2482_v62, 0.0  ;;  %v1435_v35 = vmul.f32 %v4649_v31, %v3548_v24  ;;  %v1436_v41 = vmul.f32 %v4649_v31, %v3542_v22  ;;  %v1437_v47 = vmul.f32 %v4649_v31, %v3565_v29 }
 0x150   : > { %v1327_v54 = vadd.f32 %v1238_v60, %v1084_v16  ;;  %v1677_v39 = vmul.f32 %v4661_v26, %v3548_v24  ;;  %v1240_v63 = vsel %vm1200_vm2, %v1237_v50, %v1239_v4  ;;  %v1678_v52 = vmul.f32 %v4661_v26, %v3542_v22  ;;  %v2609_v13 = vpop.f32.mrf.mxu0 }
 0x151   : > { %v2530_v6 = vpack.c.bf16 %v2514_v21, %v2513_v58  ;;  %v1545_v51 = vrot.slane %v1435_v35, 1  ;;  %v1328_v7 = vadd.f32 %v1240_v63, %v1085_v44  ;;  %v1546_v3 = vrot.slane %v1436_v41, 1  ;;  %v3230_v35 = vld [vmem:[%s5071_s8] sm:$0xff] }
 0x152   : > { %v1394_v55 = vadd.f32 %v1362_v38, %v1327_v54  ;;  %v1548_v31 = vrot.slane %v1437_v47, 1  ;;  %v1679_v24 = vmul.f32 %v4661_v26, %v3565_v29  ;;  %v1787_v9 = vrot.slane %v1677_v39, 2  ;;  %2877 = vmatpush.bf16.msra.mxu1 %v3232_v17  ;;  %3339 = vmatpush.bf16.msra.mxu3 %v3232_v17 }
 0x153   : > { %2678 = vmatmul.bf16.gmra.mxu2 %v2530_v6  ;;  %v1788_v37 = vrot.slane %v1678_v52, 2  ;;  %v1913_v11 = vmul.f32 %v4676_v46, %v3551_v25  ;;  %v1395_v45 = vadd.f32 %v1363_v2, %v1328_v7  ;;  %v1547_v12 = vsel %vm957_vm1, %v1545_v51, %v1546_v3 }
 0x154   : > { %v1549_v0 = vsel %vm957_vm1, %v1546_v3, %v1548_v31  ;;  %v1914_v22 = vmul.f32 %v4676_v46, %v3545_v23  ;;  %v1636_v5 = vadd.f32 %v1547_v12, %v1394_v55  ;;  %v1790_v26 = vrot.slane %v1679_v24, 2 }
 0x155   : > { %v1789_v29 = vsel %vm1200_vm2, %v1787_v9, %v1788_v37  ;;  %v1986_v14 = vmul.f32 %v4686_v33, %v3551_v25  ;;  %v1637_v19 = vadd.f32 %v1549_v0, %v1395_v45  ;;  %v1987_v27 = vmul.f32 %v4686_v33, %v3545_v23 }
 0x156   : > { %v1988_v46 = vmul.f32 %v4686_v33, %v3568_v30  ;;  %v2228_v20 = vmul.f32 %v4699_v10, %v3551_v25  ;;  %v1791_v48 = vsel %vm1200_vm2, %v1788_v37, %v1790_v26  ;;  %v1878_v28 = vadd.f32 %v1789_v29, %v1636_v5  ;;  %2878 = vmatpush.bf16.msra.mxu1 %v3231_v61 }
 0x157   : > { %v2096_v59 = vrot.slane %v1986_v14, 1  ;;  %v2229_v53 = vmul.f32 %v4699_v10, %v3545_v23  ;;  %v1879_v18 = vadd.f32 %v1791_v48, %v1637_v19  ;;  %v2097_v57 = vrot.slane %v1987_v27, 1  ;;  %3340 = vmatpush.bf16.msra.mxu3 %v3231_v61 }
 0x158   : > { %v2099_v33 = vrot.slane %v1988_v46, 1  ;;  %v2230_v25 = vmul.f32 %v4699_v10, %v3568_v30  ;;  %v1945_v50 = vadd.f32 %v1913_v11, %v1878_v28  ;;  %v2338_v36 = vrot.slane %v2228_v20, 2  ;;  %v2611_v6 = vpop.f32.mrf.mxu0 }
 0x159   : > { %v2339_v62 = vrot.slane %v2229_v53, 2  ;;  %v2688_v23 = vmul.f32 %v4858_v32, %v4775_v34  ;;  %v1946_v40 = vadd.f32 %v1914_v22, %v1879_v18  ;;  %v2098_v30 = vsel %vm957_vm1, %v2096_v59, %v2097_v57 }
 0x15a   : > { %v2100_v10 = vsel %vm957_vm1, %v2097_v57, %v2099_v33  ;;  %v2341_v38 = vrot.slane %v2230_v25, 2  ;;  %v2187_v58 = vadd.f32 %v2098_v30, %v1945_v50  ;;  %v2704_v34 = vmul.f32 %v4858_v32, %v4777_v8  ;;  %2879 = vmatpush.bf16.msra.mxu1 %v3230_v35 }
 0x15b   : > { %v2340_v16 = vsel %vm1200_vm2, %v2338_v36, %v2339_v62  ;;  %v2724_v44 = vadd.f32 %v4870_v15, %v2688_v23  ;;  %v2188_v60 = vadd.f32 %v2100_v10, %v1946_v40  ;;  %v2689_v4 = vmul.f32 %v4858_v32, %v4812_v42  ;;  %v2651_v42 = vpop.f32.mrf.mxu2  ;;  %3341 = vmatpush.bf16.msra.mxu3 %v3230_v35 }
 0x15c   : > { %v2342_v21 = vsel %vm1200_vm2, %v2339_v62, %v2341_v38  ;;  %v2705_v2 = vmul.f32 %v4858_v32, %v4814_v43  ;;  %v2429_v54 = vadd.f32 %v2340_v16, %v2187_v58  ;;  %v2740_v41 = vadd.f32 %v4870_v15, %v2704_v34 }
 0x15d   : > { %v2430_v47 = vadd.f32 %v2342_v21, %v2188_v60  ;;  %v2756_v8 = vmax.f32 %v2724_v44, 0.0  ;;  %v2725_v39 = vadd.f32 %v4870_v15, %v2689_v4  ;;  %v2690_v9 = vmul.f32 %v4858_v32, %v2609_v13 }
 0x15e   : > { %v2741_v1 = vadd.f32 %v4870_v15, %v2705_v2  ;;  %v2465_v63 = vadd.f32 %v4727_v56, %v2429_v54  ;;  %v2772_v51 = vmax.f32 %v2740_v41, 0.0  ;;  %v2691_v11 = vmul.f32 %v4858_v32, %v2611_v6 }
 0x15f   : > { %v2466_v43 = vadd.f32 %v4727_v56, %v2430_v47  ;;  %v2757_v52 = vmax.f32 %v2725_v39, 0.0  ;;  %v2707_v45 = vmul.f32 %v4858_v32, %v2651_v42  ;;  %v2706_v56 = vmul.f32 %v4858_v32, %v2649_v49 }
 0x160   : > { %v2773_v7 = vmax.f32 %v2741_v1, 0.0  ;;  %v2497_v55 = vmax.f32 %v2465_v63, 0.0  ;;  %v2614_v12 = vpop.f32.mrf.mxu0  ;;  %v2726_v22 = vadd.f32 %v4870_v15, %v2690_v9  ;;  %v2727_v17 = vadd.f32 %v4870_v15, %v2691_v11 }
 0x161   : > { %v2498_v3 = vmax.f32 %v2466_v43, 0.0  ;;  %v2788_v31 = vpack.c.bf16 %v2757_v52, %v2756_v8  ;;  %v2743_v5 = vadd.f32 %v4870_v15, %v2707_v45  ;;  %v2742_v29 = vadd.f32 %v4870_v15, %v2706_v56 }
 0x162   : > { %v2796_v24 = vpack.c.bf16 %v2773_v7, %v2772_v51  ;;  %v2758_v26 = vmax.f32 %v2726_v22, 0.0  ;;  %v2759_v14 = vmax.f32 %v2727_v17, 0.0  ;;  %v2692_v49 = vmul.f32 %v4858_v32, %v2614_v12 }
 0x163   : > { %v2522_v37 = vpack.c.bf16 %v2498_v3, %v2497_v55  ;;  %2880 = vmatmul.bf16.vlgmr.msra.gmra.mxu1 %v2788_v31  ;;  %v2654_v0 = vpop.f32.mrf.mxu2  ;;  %v2775_v19 = vmax.f32 %v2743_v5, 0.0  ;;  %v2774_v27 = vmax.f32 %v2742_v29, 0.0 }
 0x164   : > { %2920 = vmatmul.bf16.vlgmr.msra.gmra.mxu3 %v2796_v24  ;;  %v2789_v13 = vpack.c.bf16 %v2759_v14, %v2758_v26  ;;  %v2708_v53 = vmul.f32 %v4858_v32, %v2654_v0  ;;  %v2728_v33 = vadd.f32 %v4870_v15, %v2692_v49 }
 0x165   : > { %2638 = vmatmul.bf16.gmra.mxu0 %v2522_v37  ;;  %v2797_v48 = vpack.c.bf16 %v2775_v19, %v2774_v27 }
 0x166   : > { %v2744_v50 = vadd.f32 %v4870_v15, %v2708_v53  ;;  %v2760_v36 = vmax.f32 %v2728_v33, 0.0 }
 0x168   : > { %v2616_v46 = vpop.f32.mrf.mxu0  ;;  %v2776_v40 = vmax.f32 %v2744_v50, 0.0 }
 0x169   : > { %v2693_v28 = vmul.f32 %v4858_v32, %v2616_v46 }
 0x16b   : > { %v2656_v20 = vpop.f32.mrf.mxu2  ;;  %v2729_v25 = vadd.f32 %v4870_v15, %v2693_v28 }
 0x16c   : > { %v2709_v59 = vmul.f32 %v4858_v32, %v2656_v20 }
 0x16d   : > { %v2761_v62 = vmax.f32 %v2729_v25, 0.0 }
 0x16e   : > { %v2745_v61 = vadd.f32 %v4870_v15, %v2709_v59 }
 0x16f   : > { %v2790_v38 = vpack.c.bf16 %v2761_v62, %v2760_v36 }
 0x170   : > { %v2619_v18 = vpop.f32.mrf.mxu0  ;;  %v2777_v23 = vmax.f32 %v2745_v61, 0.0 }
 0x171   : > { %v2694_v16 = vmul.f32 %v4858_v32, %v2619_v18 }
 0x172   : > { %v2798_v58 = vpack.c.bf16 %v2777_v23, %v2776_v40 }
 0x173   : > { %2885 = vmatmul.bf16.gmra.mxu1 %v2789_v13  ;;  %v2659_v57 = vpop.f32.mrf.mxu2  ;;  %v2730_v2 = vadd.f32 %v4870_v15, %v2694_v16 }
 0x174   : > { %2925 = vmatmul.bf16.gmra.mxu3 %v2797_v48  ;;  %v2710_v60 = vmul.f32 %v4858_v32, %v2659_v57 }
 0x175   : > { %v2762_v47 = vmax.f32 %v2730_v2, 0.0 }
 0x176   : > { %v2746_v41 = vadd.f32 %v4870_v15, %v2710_v60 }
 0x178   : > { %v2621_v30 = vpop.f32.mrf.mxu0  ;;  %v2778_v1 = vmax.f32 %v2746_v41, 0.0  ;;  %v4944_v41 = vld [vmem:[%s5072_s9] ss:$0 sm:$0xff] }
 0x179   : > { %v2695_v44 = vmul.f32 %v4858_v32, %v2621_v30 }
 0x17b   : > { %v2661_v10 = vpop.f32.mrf.mxu2  ;;  %v2731_v35 = vadd.f32 %v4870_v15, %v2695_v44 }
 0x17c   : > { %v2711_v34 = vmul.f32 %v4858_v32, %v2661_v10 }
 0x17d   : > { %v2763_v8 = vmax.f32 %v2731_v35, 0.0 }
 0x17e   : > { %v2747_v54 = vadd.f32 %v4870_v15, %v2711_v34 }
 0x17f   : > { %v2791_v63 = vpack.c.bf16 %v2763_v8, %v2762_v47 }
 0x180   : > { %v2624_v21 = vpop.f32.mrf.mxu0  ;;  %v2779_v39 = vmax.f32 %v2747_v54, 0.0 }
 0x181   : > { %v2696_v51 = vmul.f32 %v4858_v32, %v2624_v21 }
 0x182   : > { %v2799_v43 = vpack.c.bf16 %v2779_v39, %v2778_v1 }
 0x183   : > { %2890 = vmatmul.bf16.gmra.mxu1 %v2790_v38  ;;  %v2664_v4 = vpop.f32.mrf.mxu2  ;;  %v2732_v24 = vadd.f32 %v4870_v15, %v2696_v51 }
 0x184   : > { %2930 = vmatmul.bf16.gmra.mxu3 %v2798_v58  ;;  %v2712_v55 = vmul.f32 %v4858_v32, %v2664_v4 }
 0x185   : > { %v2764_v45 = vmax.f32 %v2732_v24, 0.0 }
 0x186   : > { %v2748_v11 = vadd.f32 %v4870_v15, %v2712_v55 }
 0x188   : > { %v2626_v6 = vpop.f32.mrf.mxu0  ;;  %v2780_v0 = vmax.f32 %v2748_v11, 0.0 }
 0x189   : > { %v2697_v52 = vmul.f32 %v4858_v32, %v2626_v6 }
 0x18b   : > { %v2666_v42 = vpop.f32.mrf.mxu2  ;;  %v2733_v9 = vadd.f32 %v4870_v15, %v2697_v52 }
 0x18c   : > { %v2713_v7 = vmul.f32 %v4858_v32, %v2666_v42 }
 0x18d   : > { %v2765_v56 = vmax.f32 %v2733_v9, 0.0 }
 0x18e   : > { %v2749_v37 = vadd.f32 %v4870_v15, %v2713_v7 }
 0x18f   : > { %v2792_v22 = vpack.c.bf16 %v2765_v56, %v2764_v45 }
 0x190   : > { %v2781_v12 = vmax.f32 %v2749_v37, 0.0 }
 0x192   : > { %v2800_v17 = vpack.c.bf16 %v2781_v12, %v2780_v0 }
 0x193   : > { %2895 = vmatmul.bf16.gmra.mxu1 %v2791_v63  ;;  %v2629_v3 = vpop.f32.mrf.mxu0  ;;  %v2669_v31 = vpop.f32.mrf.mxu2 }
 0x194   : > { %2935 = vmatmul.bf16.gmra.mxu3 %v2799_v43  ;;  %v2698_v26 = vmul.f32 %v4858_v32, %v2629_v3  ;;  %v2714_v27 = vmul.f32 %v4858_v32, %v2669_v31 }
 0x196   : > { %v2734_v46 = vadd.f32 %v4870_v15, %v2698_v26  ;;  %v2750_v48 = vadd.f32 %v4870_v15, %v2714_v27 }
 0x198   : > { %v2766_v49 = vmax.f32 %v2734_v46, 0.0  ;;  %v2782_v53 = vmax.f32 %v2750_v48, 0.0 }
 0x19b   : > { %v2631_v5 = vpop.f32.mrf.mxu0  ;;  %v2671_v29 = vpop.f32.mrf.mxu2 }
 0x19c   : > { %v2699_v14 = vmul.f32 %v4858_v32, %v2631_v5  ;;  %v2715_v19 = vmul.f32 %v4858_v32, %v2671_v29 }
 0x19e   : > { %v2735_v20 = vadd.f32 %v4870_v15, %v2699_v14  ;;  %v2751_v13 = vadd.f32 %v4870_v15, %v2715_v19 }
 0x1a0   : > { %v2767_v28 = vmax.f32 %v2735_v20, 0.0  ;;  %v2783_v59 = vmax.f32 %v2751_v13, 0.0 }
 0x1a2   : > { %v2793_v57 = vpack.c.bf16 %v2767_v28, %v2766_v49  ;;  %v2801_v33 = vpack.c.bf16 %v2783_v59, %v2782_v53 }
 0x1a3   : > { %2900 = vmatmul.bf16.gmra.mxu1 %v2792_v22 }
 0x1a4   : > { %2940 = vmatmul.bf16.gmra.mxu3 %v2800_v17 }
 0x1ad   : > { %v2674_v18 = vpop.f32.mrf.mxu2 }
 0x1ae   : > { %v2716_v36 = vmul.f32 %v4858_v32, %v2674_v18 }
 0x1b0   : > { %v2752_v40 = vadd.f32 %v4870_v15, %v2716_v36 }
 0x1b2   : > { %v2784_v58 = vmax.f32 %v2752_v40, 0.0 }
 0x1b3   : > { %2905 = vmatmul.bf16.gmra.mxu1 %v2793_v57 }
 0x1b4   : > { %2945 = vmatmul.bf16.gmra.mxu3 %v2801_v33 }
 0x1b5   : > { %v2676_v25 = vpop.f32.mrf.mxu2 }
 0x1b6   : > { %v2717_v61 = vmul.f32 %v4858_v32, %v2676_v25 }
 0x1b8   : > { %v2753_v23 = vadd.f32 %v4870_v15, %v2717_v61 }
 0x1ba   : > { %v2785_v10 = vmax.f32 %v2753_v23, 0.0 }
 0x1bb   : > { %v2634_v50 = vpop.f32.mrf.mxu0 }
 0x1bc   : > { %v2700_v62 = vmul.f32 %v4858_v32, %v2634_v50  ;;  %v2802_v60 = vpack.c.bf16 %v2785_v10, %v2784_v58 }
 0x1be   : > { %v2736_v30 = vadd.f32 %v4870_v15, %v2700_v62 }
 0x1c0   : > { %v2768_v44 = vmax.f32 %v2736_v30, 0.0 }
 0x1c3   : > { %v2636_v38 = vpop.f32.mrf.mxu0 }
 0x1c4   : > { %v2701_v16 = vmul.f32 %v4858_v32, %v2636_v38  ;;  %2950 = vmatmul.bf16.gmra.mxu3 %v2802_v60 }
 0x1c6   : > { %v2737_v34 = vadd.f32 %v4870_v15, %v2701_v16 }
 0x1c8   : > { %v2769_v21 = vmax.f32 %v2737_v34, 0.0 }
 0x1ca   : > { %v2794_v4 = vpack.c.bf16 %v2769_v21, %v2768_v44 }
 0x1cc   : > { %2910 = vmatmul.bf16.gmra.mxu1 %v2794_v4 }
 0x1d6   : > { %v2679_v2 = vpop.f32.mrf.mxu2 }
 0x1d7   : > { %v2718_v35 = vmul.f32 %v4858_v32, %v2679_v2 }
 0x1d9   : > { %v2754_v47 = vadd.f32 %v4870_v15, %v2718_v35 }
 0x1db   : > { %v2786_v63 = vmax.f32 %v2754_v47, 0.0 }
 0x1de   : > { %v2681_v54 = vpop.f32.mrf.mxu2 }
 0x1df   : > { %v2719_v8 = vmul.f32 %v4858_v32, %v2681_v54 }
 0x1e0   : > { %v2881_v1 = vpop.f32.mrf.mxu1 }
 0x1e1   : > { %v2755_v39 = vadd.f32 %v4870_v15, %v2719_v8  ;;  %v2882_v6 = vadd.f32 %v4944_v41, %v2881_v1 }
 0x1e2   : > { %v2639_v42 = vpop.f32.mrf.mxu0 }
 0x1e3   : > { %v2787_v43 = vmax.f32 %v2755_v39, 0.0  ;;  %2962 = vst.msk [vmem:[%s4951_s23] sm:$0xff] %vm2961_vm3, %v2882_v6  ;;  %v2702_v52 = vmul.f32 %v4858_v32, %v2639_v42 }
 0x1e5   : > { %v2803_v51 = vpack.c.bf16 %v2787_v43, %v2786_v63  ;;  %v2738_v31 = vadd.f32 %v4870_v15, %v2702_v52 }
 0x1e7   : > { %2955 = vmatmul.bf16.gmra.mxu3 %v2803_v51  ;;  %v2921_v7 = vpop.f32.mrf.mxu3  ;;  %v2770_v11 = vmax.f32 %v2738_v31, 0.0 }
 0x1e8   : > { %v2922_v55 = vadd.f32 %v4944_v41, %v2921_v7  ;;  %v2883_v3 = vpop.f32.mrf.mxu1 }
 0x1e9   : > { %v2884_v24 = vadd.f32 %v4944_v41, %v2883_v3 }
 0x1ea   : > { %2978 = vst.msk [vmem:[%s4951_s23 + $0x80] sm:$0xff] %vm2961_vm3, %v2922_v55  ;;  %v2641_v9 = vpop.f32.mrf.mxu0 }
 0x1eb   : > { %v2703_v37 = vmul.f32 %v4858_v32, %v2641_v9  ;;  %2963 = vst.msk [vmem:[%s4951_s23 + $0x8] sm:$0xff] %vm2961_vm3, %v2884_v24 }
 0x1ed   : > { %v2739_v45 = vadd.f32 %v4870_v15, %v2703_v37 }
 0x1ef   : > { %v2923_v56 = vpop.f32.mrf.mxu3  ;;  %v2771_v12 = vmax.f32 %v2739_v45, 0.0 }
 0x1f0   : > { %v2924_v0 = vadd.f32 %v4944_v41, %v2923_v56  ;;  %v2886_v22 = vpop.f32.mrf.mxu1 }
 0x1f1   : > { %v2795_v17 = vpack.c.bf16 %v2771_v12, %v2770_v11  ;;  %v2887_v5 = vadd.f32 %v4944_v41, %v2886_v22 }
 0x1f2   : > { %2979 = vst.msk [vmem:[%s4951_s23 + $0x88] sm:$0xff] %vm2961_vm3, %v2924_v0 }
 0x1f3   : > { %2915 = vmatmul.bf16.gmra.mxu1 %v2795_v17  ;;  %2964 = vst.msk [vmem:[%s4951_s23 + $0x10] sm:$0xff] %vm2961_vm3, %v2887_v5 }
 0x1f7   : > { %v2926_v32 = vpop.f32.mrf.mxu3 }
 0x1f8   : > { %v2927_v29 = vadd.f32 %v4944_v41, %v2926_v32  ;;  %v2888_v15 = vpop.f32.mrf.mxu1 }
 0x1f9   : > { %v2889_v26 = vadd.f32 %v4944_v41, %v2888_v15 }
 0x1fa   : > { %2980 = vst.msk [vmem:[%s4951_s23 + $0x90] sm:$0xff] %vm2961_vm3, %v2927_v29 }
 0x1fb   : > { %2965 = vst.msk [vmem:[%s4951_s23 + $0x18] sm:$0xff] %vm2961_vm3, %v2889_v26 }
 0x1ff   : > { %v2928_v14 = vpop.f32.mrf.mxu3 }
 0x200   : > { %v2929_v19 = vadd.f32 %v4944_v41, %v2928_v14  ;;  %v2891_v27 = vpop.f32.mrf.mxu1 }
 0x201   : > { %v2892_v46 = vadd.f32 %v4944_v41, %v2891_v27 }
 0x202   : > { %2981 = vst.msk [vmem:[%s4951_s23 + $0x98] sm:$0xff] %vm2961_vm3, %v2929_v19 }
 0x203   : > { %2966 = vst.msk [vmem:[%s4951_s23 + $0x20] sm:$0xff] %vm2961_vm3, %v2892_v46 }
 0x207   : > { %v2931_v20 = vpop.f32.mrf.mxu3 }
 0x208   : > { %v2932_v13 = vadd.f32 %v4944_v41, %v2931_v20  ;;  %v2893_v48 = vpop.f32.mrf.mxu1 }
 0x209   : > { %v2894_v49 = vadd.f32 %v4944_v41, %v2893_v48 }
 0x20a   : > { %2982 = vst.msk [vmem:[%s4951_s23 + $0xa0] sm:$0xff] %vm2961_vm3, %v2932_v13 }
 0x20b   : > { %2967 = vst.msk [vmem:[%s4951_s23 + $0x28] sm:$0xff] %vm2961_vm3, %v2894_v49 }
 0x20f   : > { %v2933_v28 = vpop.f32.mrf.mxu3 }
 0x210   : > { %v2934_v59 = vadd.f32 %v4944_v41, %v2933_v28  ;;  %v2896_v53 = vpop.f32.mrf.mxu1 }
 0x211   : > { %v2897_v18 = vadd.f32 %v4944_v41, %v2896_v53 }
 0x212   : > { %2983 = vst.msk [vmem:[%s4951_s23 + $0xa8] sm:$0xff] %vm2961_vm3, %v2934_v59 }
 0x213   : > { %2968 = vst.msk [vmem:[%s4951_s23 + $0x30] sm:$0xff] %vm2961_vm3, %v2897_v18 }
 0x217   : > { %v2936_v57 = vpop.f32.mrf.mxu3 }
 0x218   : > { %v2937_v33 = vadd.f32 %v4944_v41, %v2936_v57  ;;  %v2898_v25 = vpop.f32.mrf.mxu1 }
 0x219   : > { %v2899_v61 = vadd.f32 %v4944_v41, %v2898_v25 }
 0x21a   : > { %2984 = vst.msk [vmem:[%s4951_s23 + $0xb0] sm:$0xff] %vm2961_vm3, %v2937_v33 }
 0x21b   : > { %2969 = vst.msk [vmem:[%s4951_s23 + $0x38] sm:$0xff] %vm2961_vm3, %v2899_v61 }
 0x21f   : > { %v2938_v50 = vpop.f32.mrf.mxu3 }
 0x220   : > { %v2939_v36 = vadd.f32 %v4944_v41, %v2938_v50  ;;  %v2901_v62 = vpop.f32.mrf.mxu1 }
 0x221   : > { %v2902_v23 = vadd.f32 %v4944_v41, %v2901_v62 }
 0x222   : > { %2985 = vst.msk [vmem:[%s4951_s23 + $0xb8] sm:$0xff] %vm2961_vm3, %v2939_v36 }
 0x223   : > { %2970 = vst.msk [vmem:[%s4951_s23 + $0x40] sm:$0xff] %vm2961_vm3, %v2902_v23 }
 0x227   : > { %v2941_v40 = vpop.f32.mrf.mxu3 }
 0x228   : > { %v2942_v30 = vadd.f32 %v4944_v41, %v2941_v40  ;;  %v2903_v10 = vpop.f32.mrf.mxu1 }
 0x229   : > { %v2904_v38 = vadd.f32 %v4944_v41, %v2903_v10 }
 0x22a   : > { %2986 = vst.msk [vmem:[%s4951_s23 + $0xc0] sm:$0xff] %vm2961_vm3, %v2942_v30 }
 0x22b   : > { %2971 = vst.msk [vmem:[%s4951_s23 + $0x48] sm:$0xff] %vm2961_vm3, %v2904_v38 }
 0x22f   : > { %v2943_v58 = vpop.f32.mrf.mxu3 }
 0x230   : > { %v2944_v16 = vadd.f32 %v4944_v41, %v2943_v58  ;;  %v2906_v44 = vpop.f32.mrf.mxu1 }
 0x231   : > { %v2907_v34 = vadd.f32 %v4944_v41, %v2906_v44 }
 0x232   : > { %2987 = vst.msk [vmem:[%s4951_s23 + $0xc8] sm:$0xff] %vm2961_vm3, %v2944_v16 }
 0x233   : > { %2972 = vst.msk [vmem:[%s4951_s23 + $0x50] sm:$0xff] %vm2961_vm3, %v2907_v34 }
 0x237   : > { %v2946_v60 = vpop.f32.mrf.mxu3 }
 0x238   : > { %v2947_v21 = vadd.f32 %v4944_v41, %v2946_v60  ;;  %v2908_v4 = vpop.f32.mrf.mxu1 }
 0x239   : > { %v2909_v2 = vadd.f32 %v4944_v41, %v2908_v4 }
 0x23a   : > { %2988 = vst.msk [vmem:[%s4951_s23 + $0xd0] sm:$0xff] %vm2961_vm3, %v2947_v21 }
 0x23b   : > { %2973 = vst.msk [vmem:[%s4951_s23 + $0x58] sm:$0xff] %vm2961_vm3, %v2909_v2 }
 0x23f   : > { %v2948_v35 = vpop.f32.mrf.mxu3 }
 0x240   : > { %v2949_v54 = vadd.f32 %v4944_v41, %v2948_v35 }
 0x242   : > { %2989 = vst.msk [vmem:[%s4951_s23 + $0xd8] sm:$0xff] %vm2961_vm3, %v2949_v54 }
 0x247   : > { %v2951_v39 = vpop.f32.mrf.mxu3 }
 0x248   : > { %v2952_v1 = vadd.f32 %v4944_v41, %v2951_v39 }
 0x249   : > { %v2911_v47 = vpop.f32.mrf.mxu1 }
 0x24a   : > { %v2912_v8 = vadd.f32 %v4944_v41, %v2911_v47  ;;  %2990 = vst.msk [vmem:[%s4951_s23 + $0xe0] sm:$0xff] %vm2961_vm3, %v2952_v1 }
 0x24c   : > { %2974 = vst.msk [vmem:[%s4951_s23 + $0x60] sm:$0xff] %vm2961_vm3, %v2912_v8 }
 0x24f   : > { %v2953_v63 = vpop.f32.mrf.mxu3 }
 0x250   : > { %v2954_v43 = vadd.f32 %v4944_v41, %v2953_v63 }
 0x251   : > { %v2913_v6 = vpop.f32.mrf.mxu1 }
 0x252   : > { %v2914_v42 = vadd.f32 %v4944_v41, %v2913_v6  ;;  %2991 = vst.msk [vmem:[%s4951_s23 + $0xe8] sm:$0xff] %vm2961_vm3, %v2954_v43 }
 0x254   : > { %2975 = vst.msk [vmem:[%s4951_s23 + $0x68] sm:$0xff] %vm2961_vm3, %v2914_v42 }
 0x26a   : > { %v2956_v51 = vpop.f32.mrf.mxu3 }
 0x26b   : > { %v2957_v52 = vadd.f32 %v4944_v41, %v2956_v51 }
 0x26d   : > { %2992 = vst.msk [vmem:[%s4951_s23 + $0xf0] sm:$0xff] %vm2961_vm3, %v2957_v52 }
 0x270   : > { %v2916_v7 = vpop.f32.mrf.mxu1 }
 0x271   : > { %v2917_v55 = vadd.f32 %v4944_v41, %v2916_v7 }
 0x272   : > { %v2958_v3 = vpop.f32.mrf.mxu3 }
 0x273   : > { %v2959_v31 = vadd.f32 %v4944_v41, %v2958_v3  ;;  %2976 = vst.msk [vmem:[%s4951_s23 + $0x70] sm:$0xff] %vm2961_vm3, %v2917_v55 }
 0x275   : > { %2993 = vst.msk [vmem:[%s4951_s23 + $0xf8] sm:$0xff] %vm2961_vm3, %v2959_v31 }
 0x278   : > { %v2918_v24 = vpop.f32.mrf.mxu1 }
 0x279   : > { %v2919_v9 = vadd.f32 %v4944_v41, %v2918_v24 }
 0x27b   : > { %2977 = vst.msk [vmem:[%s4951_s23 + $0x78] sm:$0xff] %vm2961_vm3, %v2919_v9 }
 0x27c PF: > { %s20_s15 = sadd.s32 1, %s3421_s15   ;;  %s5074_s13 = smov %s3417_s14 }
 0x27d   : > { %p17_p5 = scmp.ge.s32.totalorder %s20_s15, 4   ;;  %s5075_s14 = smov %s5077_s16 }
 0x27f   :  { %19 = sbr.rel (!%p17_p5) target bundleno = 2 (0x2), region = 98 }

</bundles_post_ra>
